<compile_context>
chip_gen: v5e
topology: v5e:2x2
jax: 0.10.0
libtpu: 0.0.40
codegen_flags: <defaults>
</compile_context>

<pallas_src>
import functools

import jax
import jax.numpy as jnp
import numpy as np
from jax.experimental import pallas as pl
from jax.experimental.pallas import tpu as pltpu


BN_EPS = 1e-5


def _round_up(x, m):
    return ((x + m - 1) // m) * m


# ---------------------------------------------------------------------------
# Conv GEMM kernel: single-K-block  (x @ w) + bias -> ReLU [-> BN scale/shift]
# ---------------------------------------------------------------------------
def _make_conv_gemm_kernel(apply_bn: bool):
    if apply_bn:
        def kernel(x_ref, w_ref, b_ref, s_ref, t_ref, o_ref):
            y = jnp.dot(x_ref[...], w_ref[...], preferred_element_type=jnp.float32)
            y = jnp.maximum(y + b_ref[...], 0.0)          # bias + ReLU
            y = y * s_ref[...] + t_ref[...]               # BatchNorm (eval) after ReLU
            o_ref[...] = y.astype(o_ref.dtype)
    else:
        def kernel(x_ref, w_ref, b_ref, o_ref):
            y = jnp.dot(x_ref[...], w_ref[...], preferred_element_type=jnp.float32)
            y = jnp.maximum(y + b_ref[...], 0.0)
            o_ref[...] = y.astype(o_ref.dtype)
    return kernel


def _im2col_nhwc(x, kh, kw, stride, pad):
    """x: (N, H, W, C) -> patches (N*Ho*Wo, kh*kw*C), column order (i*kw+j)*C+c."""
    if pad:
        x = jnp.pad(x, ((0, 0), (pad, pad), (pad, pad), (0, 0)))
    N, H, W, C = x.shape
    Ho = (H - kh) // stride + 1
    Wo = (W - kw) // stride + 1
    cols = []
    for i in range(kh):
        for j in range(kw):
            cols.append(x[:, i: i + stride * (Ho - 1) + 1: stride,
                             j: j + stride * (Wo - 1) + 1: stride, :])
    patches = jnp.stack(cols, axis=3)                      # (N, Ho, Wo, kh*kw, C)
    patches = patches.reshape(N * Ho * Wo, kh * kw * C)
    return patches, Ho, Wo


def conv_block(x, wp, bp, sp, tp, *, kh, kw, stride, pad, cout):
    """Conv2d(+bias)+ReLU(+BN) on NHWC input; returns NHWC bf16 output."""
    N = x.shape[0]
    patches, Ho, Wo = _im2col_nhwc(x, kh, kw, stride, pad)
    patches = patches.astype(jnp.bfloat16)
    M = patches.shape[0]
    Np = wp.shape[1]
    apply_bn = sp is not None
    args = (patches, wp, bp) + ((sp, tp) if apply_bn else ())
    # Whole problem is a single block: full K (no reduction axis, no scratch),
    # full M, lane-dense Cout.  These layers are tiny; launch overhead dominates.
    out = pl.pallas_call(
        _make_conv_gemm_kernel(apply_bn),
        out_shape=jax.ShapeDtypeStruct((M, Np), jnp.bfloat16),
    )(*args)
    return out[:, :cout].reshape(N, Ho, Wo, cout)


# ---------------------------------------------------------------------------
# Max-pool 3x3 stride 2 — lane-dense 9-way max reduction
# ---------------------------------------------------------------------------
def _max9_kernel(win_ref, o_ref):
    acc = win_ref[0]
    for i in range(1, win_ref.shape[0]):
        acc = jnp.maximum(acc, win_ref[i])
    o_ref[...] = acc


def maxpool_3x3_s2(x):
    # x: (N, H, W, C) NHWC -> (N, Ho, Wo, C); kernel 3x3, stride 2, no padding.
    N, H, W, C = x.shape
    Ho = (H - 3) // 2 + 1
    Wo = (W - 3) // 2 + 1
    wins = [x[:, i: i + 2 * (Ho - 1) + 1: 2, j: j + 2 * (Wo - 1) + 1: 2, :]
            for i in range(3) for j in range(3)]
    stacked = jnp.stack(wins, axis=0).reshape(9, -1)       # (9, N*Ho*Wo*C)
    total = stacked.shape[1]
    padded = _round_up(total, 8 * 128)
    stacked = jnp.pad(stacked, ((0, 0), (0, padded - total)))
    rows = padded // 128
    stacked = stacked.reshape(9, rows, 128)                # lane-dense view
    out = pl.pallas_call(
        _max9_kernel,
        out_shape=jax.ShapeDtypeStruct((rows, 128), stacked.dtype),
    )(stacked)
    return out.reshape(-1)[:total].reshape(N, Ho, Wo, C)


# ---------------------------------------------------------------------------
# dense_1: tiled GEMM + bias + ReLU   (M padded to 8, K=8192 split into 4)
# ---------------------------------------------------------------------------
def _dense1_kernel(x_ref, w_ref, b_ref, o_ref, acc_ref):
    @pl.when(pl.program_id(1) == 0)
    def _():
        acc_ref[...] = jnp.zeros_like(acc_ref)

    acc_ref[...] += jnp.dot(x_ref[...], w_ref[...], preferred_element_type=jnp.float32)

    @pl.when(pl.program_id(1) == pl.num_programs(1) - 1)
    def _():
        o_ref[...] = jnp.maximum(acc_ref[...] + b_ref[...], 0.0).astype(o_ref.dtype)


def dense1_relu(xp, wp, bp, *, tn=512, tk=2048):
    Mp, K = xp.shape            # (8, 8192)
    Np = wp.shape[1]            # 1024
    grid = (Np // tn, K // tk)  # (2, 4) -> 8 steps; 2 parallel N tiles
    return pl.pallas_call(
        _dense1_kernel,
        out_shape=jax.ShapeDtypeStruct((Mp, Np), jnp.bfloat16),
        grid_spec=pltpu.PrefetchScalarGridSpec(
            num_scalar_prefetch=0,
            grid=grid,
            in_specs=[
                pl.BlockSpec((Mp, tk), lambda j, k: (0, k)),
                pl.BlockSpec((tk, tn), lambda j, k: (k, j)),
                pl.BlockSpec((1, tn), lambda j, k: (0, j)),
            ],
            out_specs=pl.BlockSpec((Mp, tn), lambda j, k: (0, j)),
            scratch_shapes=[pltpu.VMEM((Mp, tn), jnp.float32)],
        ),
        compiler_params=pltpu.CompilerParams(
            dimension_semantics=("parallel", "arbitrary")),
    )(xp, wp, bp)


# ---------------------------------------------------------------------------
# dense_2 + softmax fused (single block; padded class lanes masked in f32)
# ---------------------------------------------------------------------------
def _dense2_softmax_kernel(x_ref, w_ref, b_ref, logits_ref, probs_ref, *, n_valid):
    y = jnp.dot(x_ref[...], w_ref[...], preferred_element_type=jnp.float32)
    y = y + b_ref[...]
    logits_ref[...] = y
    col = jax.lax.broadcasted_iota(jnp.int32, y.shape, 1)
    ym = jnp.where(col < n_valid, y, jnp.float32(-1e30))   # mask padded classes (f32)
    m = jnp.max(ym, axis=-1, keepdims=True)
    e = jnp.exp(ym - m)
    s = jnp.sum(e, axis=-1, keepdims=True)
    probs_ref[...] = e * pl.reciprocal(s, approx=False)


def dense2_softmax(xp, wp, bp, *, n_classes):
    Mp = xp.shape[0]
    Np = wp.shape[1]
    kernel = functools.partial(_dense2_softmax_kernel, n_valid=n_classes)
    logits, probs = pl.pallas_call(
        kernel,
        out_shape=(jax.ShapeDtypeStruct((Mp, Np), jnp.float32),
                   jax.ShapeDtypeStruct((Mp, Np), jnp.float32)),
    )(xp, wp, bp)
    return logits, probs


# ---------------------------------------------------------------------------
# Parameter construction (deterministic, synthetic) — prepped for the kernels
# ---------------------------------------------------------------------------
def _conv_raw(key, cout, cin, kh, kw):
    k1, k2 = jax.random.split(key)
    fan_in = cin * kh * kw
    w = jax.random.normal(k1, (cout, cin, kh, kw), jnp.float32) / np.sqrt(fan_in)
    b = 0.01 * jax.random.normal(k2, (cout,), jnp.float32)
    return w, b


def _linear_raw(key, out_f, in_f):
    k1, k2 = jax.random.split(key)
    w = jax.random.normal(k1, (out_f, in_f), jnp.float32) / np.sqrt(in_f)
    b = 0.01 * jax.random.normal(k2, (out_f,), jnp.float32)
    return w, b


def _bn_raw(key, c):
    k1, k2, k3 = jax.random.split(key, 3)
    gamma = 1.0 + 0.1 * jax.random.normal(k1, (c,), jnp.float32)
    beta = 0.1 * jax.random.normal(k2, (c,), jnp.float32)
    rmean = 0.1 * jax.random.normal(k3, (c,), jnp.float32)
    rvar = jnp.ones((c,), jnp.float32)
    scale = gamma / jnp.sqrt(rvar + BN_EPS)
    shift = beta - rmean * scale
    return scale, shift


def _prep_conv(w, b, scale=None, shift=None):
    """torch (Cout,Cin,kh,kw) -> bf16 (kh*kw*Cin, Cout_pad128) GEMM matrix + vectors."""
    cout, cin, kh, kw = w.shape
    K = kh * kw * cin
    npad = _round_up(cout, 128)
    wmat = jnp.transpose(w, (2, 3, 1, 0)).reshape(K, cout)     # row = (i*kw+j)*Cin+c
    wp = jnp.zeros((K, npad), jnp.bfloat16).at[:, :cout].set(wmat.astype(jnp.bfloat16))
    bp = jnp.zeros((1, npad), jnp.float32).at[0, :cout].set(b)
    if scale is None:
        return wp, bp, None, None
    sp = jnp.zeros((1, npad), jnp.float32).at[0, :cout].set(scale)
    tp = jnp.zeros((1, npad), jnp.float32).at[0, :cout].set(shift)
    return wp, bp, sp, tp


def _prep_dense1(w, b, C, H, W):
    """torch Linear(8192,1024) weight, with its 8192 columns permuted from the
    torch NCHW-flatten order (c*H*W + h*W + w) to our NHWC-flatten order
    (h*W*C + w*C + c), then transposed to (K, N) and cast to bf16."""
    out_f = w.shape[0]
    wn = w.reshape(out_f, C, H, W).transpose(0, 2, 3, 1).reshape(out_f, C * H * W)
    wp = wn.T.astype(jnp.bfloat16)                             # (8192, 1024)
    bp = b.reshape(1, -1).astype(jnp.float32)                  # (1, 1024)
    return wp, bp


def _prep_dense2(w, b, npad=128):
    out_f, in_f = w.shape                                      # (3, 1024)
    wp = jnp.zeros((in_f, npad), jnp.bfloat16).at[:, :out_f].set(w.T.astype(jnp.bfloat16))
    bp = jnp.zeros((1, npad), jnp.float32).at[0, :out_f].set(b)
    return wp, bp


def init_params(key):
    ks = jax.random.split(key, 16)
    p = {}
    w, b = _conv_raw(ks[0], 16, 1, 7, 7)
    s, t = _bn_raw(ks[1], 16)
    p["c1_w"], p["c1_b"], p["c1_s"], p["c1_t"] = _prep_conv(w, b, s, t)

    w, b = _conv_raw(ks[2], 32, 16, 5, 5)
    s, t = _bn_raw(ks[3], 32)
    p["c2_w"], p["c2_b"], p["c2_s"], p["c2_t"] = _prep_conv(w, b, s, t)

    w, b = _conv_raw(ks[4], 128, 32, 3, 3)
    s, t = _bn_raw(ks[5], 128)
    p["c5_w"], p["c5_b"], p["c5_s"], p["c5_t"] = _prep_conv(w, b, s, t)

    w, b = _conv_raw(ks[6], 256, 128, 2, 1)
    p["c6_w"], p["c6_b"], _, _ = _prep_conv(w, b)

    w, b = _linear_raw(ks[7], 1024, 8192)
    p["d1_w"], p["d1_b"] = _prep_dense1(w, b, C=256, H=4, W=8)

    w, b = _linear_raw(ks[8], 3, 1024)
    p["d2_w"], p["d2_b"] = _prep_dense2(w, b)
    return p


# ---------------------------------------------------------------------------
# Forward pass (mirrors Convolutional_Neural_Network.forward, eval mode)
# ---------------------------------------------------------------------------
N_CLASSES = 3


@jax.jit
def forward(params, x):
    n = x.shape[0]
    x = jnp.transpose(x, (0, 2, 3, 1))                 # NCHW -> NHWC, once
    # conv1 -> ReLU -> bn1
    x = conv_block(x, params["c1_w"], params["c1_b"], params["c1_s"], params["c1_t"],
                   kh=7, kw=7, stride=2, pad=1, cout=16)
    # conv2 -> ReLU -> bn2
    x = conv_block(x, params["c2_w"], params["c2_b"], params["c2_s"], params["c2_t"],
                   kh=5, kw=5, stride=2, pad=1, cout=32)
    # max_pool_2d_1
    x = maxpool_3x3_s2(x)
    # conv5 -> ReLU -> bn5
    x = conv_block(x, params["c5_w"], params["c5_b"], params["c5_s"], params["c5_t"],
                   kh=3, kw=3, stride=1, pad=1, cout=128)
    # conv6 -> ReLU (no BN)
    x = conv_block(x, params["c6_w"], params["c6_b"], None, None,
                   kh=2, kw=1, stride=1, pad=0, cout=256)
    # TODO(synk): Dropout(p=0.5) drop_1 / drop_2 are train-mode stochastic ops;
    #             implemented as identity (inference semantics).
    # flatten in NHWC order; dense_1 weight columns were pre-permuted to match
    # torch's NCHW flatten ordering, so no activation transpose is needed.
    feat = x.reshape(n, -1)                            # (n, 8192) bf16
    mp = _round_up(n, 8)
    featp = jnp.zeros((mp, feat.shape[1]), jnp.bfloat16).at[:n].set(
        feat.astype(jnp.bfloat16))
    # dense_1 -> ReLU
    h = dense1_relu(featp, params["d1_w"], params["d1_b"])
    # dense_2 -> softmax (fused)
    logits_p, probs_p = dense2_softmax(h, params["d2_w"], params["d2_b"],
                                       n_classes=N_CLASSES)
    return logits_p[:n, :N_CLASSES], probs_p[:n, :N_CLASSES]


# ---------------------------------------------------------------------------
# main
# ---------------------------------------------------------------------------
if __name__ == "__main__":
    # Input spatial size (49, 73) is the smallest that makes the flattened
    # feature size equal Linear(8192, ...)'s expected 8192 (final map 256x4x8).
    key = jax.random.PRNGKey(0)
    x = jax.random.normal(key, (2, 1, 49, 73), jnp.float32)

    params = init_params(jax.random.PRNGKey(1234))

    logits, probs = forward(params, x)
    logits, probs = jax.block_until_ready((logits, probs))

    assert logits.shape == (2, 3), logits.shape
    assert probs.shape == (2, 3), probs.shape
    assert bool(jnp.all(jnp.isfinite(logits)))
    assert bool(jnp.allclose(jnp.sum(probs, axis=1), 1.0, atol=1e-5))
    print("KERNEL_OK")
</pallas_src>

<mosaic_0001>
module attributes {stable_mosaic.version = 11 : i64} {
  func.func @kernel(%arg0: memref<1610x49xbf16, #tpu.memory_space<vmem>>, %arg1: memref<49x128xbf16, #tpu.memory_space<vmem>>, %arg2: memref<1x128xf32, #tpu.memory_space<vmem>>, %arg3: memref<1x128xf32, #tpu.memory_space<vmem>>, %arg4: memref<1x128xf32, #tpu.memory_space<vmem>>, %arg5: memref<1610x128xbf16, #tpu.memory_space<vmem>>) attributes {dimension_semantics = [], scalar_prefetch = 0 : i64, scratch_operands = 0 : i64, tpu.core_type = #tpu.core_type<tc>} {
    %c0 = arith.constant 0 : index
    %c0_0 = arith.constant 0 : index
    %0 = vector.load %arg0[%c0, %c0_0] : memref<1610x49xbf16, #tpu.memory_space<vmem>>, vector<1610x49xbf16>
    %c0_1 = arith.constant 0 : index
    %c0_2 = arith.constant 0 : index
    %1 = vector.load %arg1[%c0_1, %c0_2] : memref<49x128xbf16, #tpu.memory_space<vmem>>, vector<49x128xbf16>
    %cst = arith.constant dense<0.000000e+00> : vector<1610x128xf32>
    %2 = tpu.matmul %0, %1, %cst {dimension_numbers = #tpu.dot_dimension_numbers<[1], [0], [0], [1], [0, 0, 1, 1], [], []>} : vector<1610x49xbf16>, vector<49x128xbf16>, vector<1610x128xf32> -> vector<1610x128xf32>
    %c0_3 = arith.constant 0 : index
    %c0_4 = arith.constant 0 : index
    %3 = vector.load %arg2[%c0_3, %c0_4] : memref<1x128xf32, #tpu.memory_space<vmem>>, vector<1x128xf32>
    %4 = vector.broadcast %3 : vector<1x128xf32> to vector<1610x128xf32>
    %5 = arith.addf %2, %4 : vector<1610x128xf32>
    %cst_5 = arith.constant 0.000000e+00 : f32
    %6 = vector.broadcast %cst_5 : f32 to vector<1610x128xf32>
    %7 = arith.maximumf %5, %6 : vector<1610x128xf32>
    %c0_6 = arith.constant 0 : index
    %c0_7 = arith.constant 0 : index
    %8 = vector.load %arg3[%c0_6, %c0_7] : memref<1x128xf32, #tpu.memory_space<vmem>>, vector<1x128xf32>
    %9 = vector.broadcast %8 : vector<1x128xf32> to vector<1610x128xf32>
    %10 = arith.mulf %7, %9 : vector<1610x128xf32>
    %c0_8 = arith.constant 0 : index
    %c0_9 = arith.constant 0 : index
    %11 = vector.load %arg4[%c0_8, %c0_9] : memref<1x128xf32, #tpu.memory_space<vmem>>, vector<1x128xf32>
    %12 = vector.broadcast %11 : vector<1x128xf32> to vector<1610x128xf32>
    %13 = arith.addf %10, %12 : vector<1610x128xf32>
    %14 = arith.truncf %13 : vector<1610x128xf32> to vector<1610x128xbf16>
    %c0_10 = arith.constant 0 : index
    %c0_11 = arith.constant 0 : index
    %15 = vector.load %arg5[%c0_10, %c0_11] : memref<1610x128xbf16, #tpu.memory_space<vmem>>, vector<1610x128xbf16>
    tpu.vector_store %arg5[%c0_10, %c0_11], %14 {strides = array<i32>} : memref<1610x128xbf16, #tpu.memory_space<vmem>>, vector<1610x128xbf16>,
    return
  }
}

module attributes {stable_mosaic.version = 11 : i64} {
  func.func @kernel(%arg0: memref<374x400xbf16, #tpu.memory_space<vmem>>, %arg1: memref<400x128xbf16, #tpu.memory_space<vmem>>, %arg2: memref<1x128xf32, #tpu.memory_space<vmem>>, %arg3: memref<1x128xf32, #tpu.memory_space<vmem>>, %arg4: memref<1x128xf32, #tpu.memory_space<vmem>>, %arg5: memref<374x128xbf16, #tpu.memory_space<vmem>>) attributes {dimension_semantics = [], scalar_prefetch = 0 : i64, scratch_operands = 0 : i64, tpu.core_type = #tpu.core_type<tc>} {
    %c0 = arith.constant 0 : index
    %c0_0 = arith.constant 0 : index
    %0 = vector.load %arg0[%c0, %c0_0] : memref<374x400xbf16, #tpu.memory_space<vmem>>, vector<374x400xbf16>
    %c0_1 = arith.constant 0 : index
    %c0_2 = arith.constant 0 : index
    %1 = vector.load %arg1[%c0_1, %c0_2] : memref<400x128xbf16, #tpu.memory_space<vmem>>, vector<400x128xbf16>
    %cst = arith.constant dense<0.000000e+00> : vector<374x128xf32>
    %2 = tpu.matmul %0, %1, %cst {dimension_numbers = #tpu.dot_dimension_numbers<[1], [0], [0], [1], [0, 0, 1, 1], [], []>} : vector<374x400xbf16>, vector<400x128xbf16>, vector<374x128xf32> -> vector<374x128xf32>
    %c0_3 = arith.constant 0 : index
    %c0_4 = arith.constant 0 : index
    %3 = vector.load %arg2[%c0_3, %c0_4] : memref<1x128xf32, #tpu.memory_space<vmem>>, vector<1x128xf32>
    %4 = vector.broadcast %3 : vector<1x128xf32> to vector<374x128xf32>
    %5 = arith.addf %2, %4 : vector<374x128xf32>
    %cst_5 = arith.constant 0.000000e+00 : f32
    %6 = vector.broadcast %cst_5 : f32 to vector<374x128xf32>
    %7 = arith.maximumf %5, %6 : vector<374x128xf32>
    %c0_6 = arith.constant 0 : index
    %c0_7 = arith.constant 0 : index
    %8 = vector.load %arg3[%c0_6, %c0_7] : memref<1x128xf32, #tpu.memory_space<vmem>>, vector<1x128xf32>
    %9 = vector.broadcast %8 : vector<1x128xf32> to vector<374x128xf32>
    %10 = arith.mulf %7, %9 : vector<374x128xf32>
    %c0_8 = arith.constant 0 : index
    %c0_9 = arith.constant 0 : index
    %11 = vector.load %arg4[%c0_8, %c0_9] : memref<1x128xf32, #tpu.memory_space<vmem>>, vector<1x128xf32>
    %12 = vector.broadcast %11 : vector<1x128xf32> to vector<374x128xf32>
    %13 = arith.addf %10, %12 : vector<374x128xf32>
    %14 = arith.truncf %13 : vector<374x128xf32> to vector<374x128xbf16>
    %c0_10 = arith.constant 0 : index
    %c0_11 = arith.constant 0 : index
    %15 = vector.load %arg5[%c0_10, %c0_11] : memref<374x128xbf16, #tpu.memory_space<vmem>>, vector<374x128xbf16>
    tpu.vector_store %arg5[%c0_10, %c0_11], %14 {strides = array<i32>} : memref<374x128xbf16, #tpu.memory_space<vmem>>, vector<374x128xbf16>,
    return
  }
}

module attributes {stable_mosaic.version = 11 : i64} {
  func.func @_max9_kernel(%arg0: memref<9x24x128xbf16, #tpu.memory_space<vmem>>, %arg1: memref<24x128xbf16, #tpu.memory_space<vmem>>) attributes {dimension_semantics = [], scalar_prefetch = 0 : i64, scratch_operands = 0 : i64, tpu.core_type = #tpu.core_type<tc>} {
    %c0 = arith.constant 0 : index
    %c0_0 = arith.constant 0 : index
    %c0_1 = arith.constant 0 : index
    %0 = vector.load %arg0[%c0, %c0_0, %c0_1] : memref<9x24x128xbf16, #tpu.memory_space<vmem>>, vector<1x24x128xbf16>
    %1 = vector.shape_cast %0 : vector<1x24x128xbf16> to vector<24x128xbf16>
    %c1 = arith.constant 1 : index
    %c0_2 = arith.constant 0 : index
    %c0_3 = arith.constant 0 : index
    %2 = vector.load %arg0[%c1, %c0_2, %c0_3] : memref<9x24x128xbf16, #tpu.memory_space<vmem>>, vector<1x24x128xbf16>
    %3 = vector.shape_cast %2 : vector<1x24x128xbf16> to vector<24x128xbf16>
    %4 = arith.maximumf %1, %3 : vector<24x128xbf16>
    %c2 = arith.constant 2 : index
    %c0_4 = arith.constant 0 : index
    %c0_5 = arith.constant 0 : index
    %5 = vector.load %arg0[%c2, %c0_4, %c0_5] : memref<9x24x128xbf16, #tpu.memory_space<vmem>>, vector<1x24x128xbf16>
    %6 = vector.shape_cast %5 : vector<1x24x128xbf16> to vector<24x128xbf16>
    %7 = arith.maximumf %4, %6 : vector<24x128xbf16>
    %c3 = arith.constant 3 : index
    %c0_6 = arith.constant 0 : index
    %c0_7 = arith.constant 0 : index
    %8 = vector.load %arg0[%c3, %c0_6, %c0_7] : memref<9x24x128xbf16, #tpu.memory_space<vmem>>, vector<1x24x128xbf16>
    %9 = vector.shape_cast %8 : vector<1x24x128xbf16> to vector<24x128xbf16>
    %10 = arith.maximumf %7, %9 : vector<24x128xbf16>
    %c4 = arith.constant 4 : index
    %c0_8 = arith.constant 0 : index
    %c0_9 = arith.constant 0 : index
    %11 = vector.load %arg0[%c4, %c0_8, %c0_9] : memref<9x24x128xbf16, #tpu.memory_space<vmem>>, vector<1x24x128xbf16>
    %12 = vector.shape_cast %11 : vector<1x24x128xbf16> to vector<24x128xbf16>
    %13 = arith.maximumf %10, %12 : vector<24x128xbf16>
    %c5 = arith.constant 5 : index
    %c0_10 = arith.constant 0 : index
    %c0_11 = arith.constant 0 : index
    %14 = vector.load %arg0[%c5, %c0_10, %c0_11] : memref<9x24x128xbf16, #tpu.memory_space<vmem>>, vector<1x24x128xbf16>
    %15 = vector.shape_cast %14 : vector<1x24x128xbf16> to vector<24x128xbf16>
    %16 = arith.maximumf %13, %15 : vector<24x128xbf16>
    %c6 = arith.constant 6 : index
    %c0_12 = arith.constant 0 : index
    %c0_13 = arith.constant 0 : index
    %17 = vector.load %arg0[%c6, %c0_12, %c0_13] : memref<9x24x128xbf16, #tpu.memory_space<vmem>>, vector<1x24x128xbf16>
    %18 = vector.shape_cast %17 : vector<1x24x128xbf16> to vector<24x128xbf16>
    %19 = arith.maximumf %16, %18 : vector<24x128xbf16>
    %c7 = arith.constant 7 : index
    %c0_14 = arith.constant 0 : index
    %c0_15 = arith.constant 0 : index
    %20 = vector.load %arg0[%c7, %c0_14, %c0_15] : memref<9x24x128xbf16, #tpu.memory_space<vmem>>, vector<1x24x128xbf16>
    %21 = vector.shape_cast %20 : vector<1x24x128xbf16> to vector<24x128xbf16>
    %22 = arith.maximumf %19, %21 : vector<24x128xbf16>
    %c8 = arith.constant 8 : index
    %c0_16 = arith.constant 0 : index
    %c0_17 = arith.constant 0 : index
    %23 = vector.load %arg0[%c8, %c0_16, %c0_17] : memref<9x24x128xbf16, #tpu.memory_space<vmem>>, vector<1x24x128xbf16>
    %24 = vector.shape_cast %23 : vector<1x24x128xbf16> to vector<24x128xbf16>
    %25 = arith.maximumf %22, %24 : vector<24x128xbf16>
    %c0_18 = arith.constant 0 : index
    %c0_19 = arith.constant 0 : index
    %26 = vector.load %arg1[%c0_18, %c0_19] : memref<24x128xbf16, #tpu.memory_space<vmem>>, vector<24x128xbf16>
    tpu.vector_store %arg1[%c0_18, %c0_19], %25 {strides = array<i32>} : memref<24x128xbf16, #tpu.memory_space<vmem>>, vector<24x128xbf16>,
    return
  }
}

module attributes {stable_mosaic.version = 11 : i64} {
  func.func @kernel(%arg0: memref<80x288xbf16, #tpu.memory_space<vmem>>, %arg1: memref<288x128xbf16, #tpu.memory_space<vmem>>, %arg2: memref<1x128xf32, #tpu.memory_space<vmem>>, %arg3: memref<1x128xf32, #tpu.memory_space<vmem>>, %arg4: memref<1x128xf32, #tpu.memory_space<vmem>>, %arg5: memref<80x128xbf16, #tpu.memory_space<vmem>>) attributes {dimension_semantics = [], scalar_prefetch = 0 : i64, scratch_operands = 0 : i64, tpu.core_type = #tpu.core_type<tc>} {
    %c0 = arith.constant 0 : index
    %c0_0 = arith.constant 0 : index
    %0 = vector.load %arg0[%c0, %c0_0] : memref<80x288xbf16, #tpu.memory_space<vmem>>, vector<80x288xbf16>
    %c0_1 = arith.constant 0 : index
    %c0_2 = arith.constant 0 : index
    %1 = vector.load %arg1[%c0_1, %c0_2] : memref<288x128xbf16, #tpu.memory_space<vmem>>, vector<288x128xbf16>
    %cst = arith.constant dense<0.000000e+00> : vector<80x128xf32>
    %2 = tpu.matmul %0, %1, %cst {dimension_numbers = #tpu.dot_dimension_numbers<[1], [0], [0], [1], [0, 0, 1, 1], [], []>} : vector<80x288xbf16>, vector<288x128xbf16>, vector<80x128xf32> -> vector<80x128xf32>
    %c0_3 = arith.constant 0 : index
    %c0_4 = arith.constant 0 : index
    %3 = vector.load %arg2[%c0_3, %c0_4] : memref<1x128xf32, #tpu.memory_space<vmem>>, vector<1x128xf32>
    %4 = vector.broadcast %3 : vector<1x128xf32> to vector<80x128xf32>
    %5 = arith.addf %2, %4 : vector<80x128xf32>
    %cst_5 = arith.constant 0.000000e+00 : f32
    %6 = vector.broadcast %cst_5 : f32 to vector<80x128xf32>
    %7 = arith.maximumf %5, %6 : vector<80x128xf32>
    %c0_6 = arith.constant 0 : index
    %c0_7 = arith.constant 0 : index
    %8 = vector.load %arg3[%c0_6, %c0_7] : memref<1x128xf32, #tpu.memory_space<vmem>>, vector<1x128xf32>
    %9 = vector.broadcast %8 : vector<1x128xf32> to vector<80x128xf32>
    %10 = arith.mulf %7, %9 : vector<80x128xf32>
    %c0_8 = arith.constant 0 : index
    %c0_9 = arith.constant 0 : index
    %11 = vector.load %arg4[%c0_8, %c0_9] : memref<1x128xf32, #tpu.memory_space<vmem>>, vector<1x128xf32>
    %12 = vector.broadcast %11 : vector<1x128xf32> to vector<80x128xf32>
    %13 = arith.addf %10, %12 : vector<80x128xf32>
    %14 = arith.truncf %13 : vector<80x128xf32> to vector<80x128xbf16>
    %c0_10 = arith.constant 0 : index
    %c0_11 = arith.constant 0 : index
    %15 = vector.load %arg5[%c0_10, %c0_11] : memref<80x128xbf16, #tpu.memory_space<vmem>>, vector<80x128xbf16>
    tpu.vector_store %arg5[%c0_10, %c0_11], %14 {strides = array<i32>} : memref<80x128xbf16, #tpu.memory_space<vmem>>, vector<80x128xbf16>,
    return
  }
}

module attributes {stable_mosaic.version = 11 : i64} {
  func.func @kernel(%arg0: memref<64x256xbf16, #tpu.memory_space<vmem>>, %arg1: memref<256x256xbf16, #tpu.memory_space<vmem>>, %arg2: memref<1x256xf32, #tpu.memory_space<vmem>>, %arg3: memref<64x256xbf16, #tpu.memory_space<vmem>>) attributes {dimension_semantics = [], scalar_prefetch = 0 : i64, scratch_operands = 0 : i64, tpu.core_type = #tpu.core_type<tc>} {
    %c0 = arith.constant 0 : index
    %c0_0 = arith.constant 0 : index
    %0 = vector.load %arg0[%c0, %c0_0] : memref<64x256xbf16, #tpu.memory_space<vmem>>, vector<64x256xbf16>
    %c0_1 = arith.constant 0 : index
    %c0_2 = arith.constant 0 : index
    %1 = vector.load %arg1[%c0_1, %c0_2] : memref<256x256xbf16, #tpu.memory_space<vmem>>, vector<256x256xbf16>
    %cst = arith.constant dense<0.000000e+00> : vector<64x256xf32>
    %2 = tpu.matmul %0, %1, %cst {dimension_numbers = #tpu.dot_dimension_numbers<[1], [0], [0], [1], [0, 0, 1, 1], [], []>} : vector<64x256xbf16>, vector<256x256xbf16>, vector<64x256xf32> -> vector<64x256xf32>
    %c0_3 = arith.constant 0 : index
    %c0_4 = arith.constant 0 : index
    %3 = vector.load %arg2[%c0_3, %c0_4] : memref<1x256xf32, #tpu.memory_space<vmem>>, vector<1x256xf32>
    %4 = vector.broadcast %3 : vector<1x256xf32> to vector<64x256xf32>
    %5 = arith.addf %2, %4 : vector<64x256xf32>
    %cst_5 = arith.constant 0.000000e+00 : f32
    %6 = vector.broadcast %cst_5 : f32 to vector<64x256xf32>
    %7 = arith.maximumf %5, %6 : vector<64x256xf32>
    %8 = arith.truncf %7 : vector<64x256xf32> to vector<64x256xbf16>
    %c0_6 = arith.constant 0 : index
    %c0_7 = arith.constant 0 : index
    %9 = vector.load %arg3[%c0_6, %c0_7] : memref<64x256xbf16, #tpu.memory_space<vmem>>, vector<64x256xbf16>
    tpu.vector_store %arg3[%c0_6, %c0_7], %8 {strides = array<i32>} : memref<64x256xbf16, #tpu.memory_space<vmem>>, vector<64x256xbf16>,
    return
  }
}

module attributes {stable_mosaic.version = 11 : i64} {
  func.func @_dense1_kernel(%arg0: i32, %arg1: i32, %arg2: memref<8x2048xbf16, #tpu.memory_space<vmem>>, %arg3: memref<2048x512xbf16, #tpu.memory_space<vmem>>, %arg4: memref<1x512xf32, #tpu.memory_space<vmem>>, %arg5: memref<8x512xbf16, #tpu.memory_space<vmem>>, %arg6: memref<8x512xf32, #tpu.memory_space<vmem>>) attributes {dimension_semantics = [#tpu.dimension_semantics<parallel>, #tpu.dimension_semantics<arbitrary>], iteration_bounds = array<i64: 2, 4>, scalar_prefetch = 0 : i64, scratch_operands = 1 : i64, tpu.core_type = #tpu.core_type<tc>, window_params = [{transform_indices = @transform_0, window_bounds = array<i64: 8, 2048>}, {transform_indices = @transform_1, window_bounds = array<i64: 2048, 512>}, {transform_indices = @transform_2, window_bounds = array<i64: 1, 512>}, {transform_indices = @transform_3, window_bounds = array<i64: 8, 512>}]} {
    %c0_i32 = arith.constant 0 : i32
    %0 = arith.cmpi eq, %arg1, %c0_i32 : i32
    %1 = arith.extui %0 : i1 to i32
    %c0_i32_0 = arith.constant 0 : i32
    %2 = arith.cmpi ne, %1, %c0_i32_0 : i32
    scf.if %2 {
      %cst_9 = arith.constant 0.000000e+00 : f32
      %12 = vector.broadcast %cst_9 : f32 to vector<8x512xf32>
      %c0_10 = arith.constant 0 : index
      %c0_11 = arith.constant 0 : index
      %13 = vector.load %arg6[%c0_10, %c0_11] : memref<8x512xf32, #tpu.memory_space<vmem>>, vector<8x512xf32>
      tpu.vector_store %arg6[%c0_10, %c0_11], %12 {strides = array<i32>} : memref<8x512xf32, #tpu.memory_space<vmem>>, vector<8x512xf32>,
    } else {
    }
    %c0 = arith.constant 0 : index
    %c0_1 = arith.constant 0 : index
    %3 = vector.load %arg6[%c0, %c0_1] : memref<8x512xf32, #tpu.memory_space<vmem>>, vector<8x512xf32>
    %c0_2 = arith.constant 0 : index
    %c0_3 = arith.constant 0 : index
    %4 = vector.load %arg2[%c0_2, %c0_3] : memref<8x2048xbf16, #tpu.memory_space<vmem>>, vector<8x2048xbf16>
    %c0_4 = arith.constant 0 : index
    %c0_5 = arith.constant 0 : index
    %5 = vector.load %arg3[%c0_4, %c0_5] : memref<2048x512xbf16, #tpu.memory_space<vmem>>, vector<2048x512xbf16>
    %cst = arith.constant dense<0.000000e+00> : vector<8x512xf32>
    %6 = tpu.matmul %4, %5, %cst {dimension_numbers = #tpu.dot_dimension_numbers<[1], [0], [0], [1], [0, 0, 1, 1], [], []>} : vector<8x2048xbf16>, vector<2048x512xbf16>, vector<8x512xf32> -> vector<8x512xf32>
    %7 = arith.addf %3, %6 : vector<8x512xf32>
    %c0_6 = arith.constant 0 : index
    %c0_7 = arith.constant 0 : index
    %8 = vector.load %arg6[%c0_6, %c0_7] : memref<8x512xf32, #tpu.memory_space<vmem>>, vector<8x512xf32>
    tpu.vector_store %arg6[%c0_6, %c0_7], %7 {strides = array<i32>} : memref<8x512xf32, #tpu.memory_space<vmem>>, vector<8x512xf32>,
    %c3_i32 = arith.constant 3 : i32
    %9 = arith.cmpi eq, %arg1, %c3_i32 : i32
    %10 = arith.extui %9 : i1 to i32
    %c0_i32_8 = arith.constant 0 : i32
    %11 = arith.cmpi ne, %10, %c0_i32_8 : i32
    scf.if %11 {
      %c0_9 = arith.constant 0 : index
      %c0_10 = arith.constant 0 : index
      %12 = vector.load %arg6[%c0_9, %c0_10] : memref<8x512xf32, #tpu.memory_space<vmem>>, vector<8x512xf32>
      %c0_11 = arith.constant 0 : index
      %c0_12 = arith.constant 0 : index
      %13 = vector.load %arg4[%c0_11, %c0_12] : memref<1x512xf32, #tpu.memory_space<vmem>>, vector<1x512xf32>
      %14 = vector.broadcast %13 : vector<1x512xf32> to vector<8x512xf32>
      %15 = arith.addf %12, %14 : vector<8x512xf32>
      %cst_13 = arith.constant 0.000000e+00 : f32
      %16 = vector.broadcast %cst_13 : f32 to vector<8x512xf32>
      %17 = arith.maximumf %15, %16 : vector<8x512xf32>
      %18 = arith.truncf %17 : vector<8x512xf32> to vector<8x512xbf16>
      %c0_14 = arith.constant 0 : index
      %c0_15 = arith.constant 0 : index
      %19 = vector.load %arg5[%c0_14, %c0_15] : memref<8x512xbf16, #tpu.memory_space<vmem>>, vector<8x512xbf16>
      tpu.vector_store %arg5[%c0_14, %c0_15], %18 {strides = array<i32>} : memref<8x512xbf16, #tpu.memory_space<vmem>>, vector<8x512xbf16>,
    } else {
    }
    return
  }
  func.func @transform_0(%arg0: i32, %arg1: i32) -> (i32, i32) {
    %c0_i32 = arith.constant 0 : i32
    %c0_i32_0 = arith.constant 0 : i32
    return %c0_i32, %arg1 : i32, i32
  }
  func.func @transform_1(%arg0: i32, %arg1: i32) -> (i32, i32) {
    %c0_i32 = arith.constant 0 : i32
    return %arg1, %arg0 : i32, i32
  }
  func.func @transform_2(%arg0: i32, %arg1: i32) -> (i32, i32) {
    %c0_i32 = arith.constant 0 : i32
    %c0_i32_0 = arith.constant 0 : i32
    return %c0_i32, %arg0 : i32, i32
  }
  func.func @transform_3(%arg0: i32, %arg1: i32) -> (i32, i32) {
    %c0_i32 = arith.constant 0 : i32
    %c0_i32_0 = arith.constant 0 : i32
    return %c0_i32, %arg0 : i32, i32
  }
}

module attributes {stable_mosaic.version = 11 : i64} {
  func.func @_dense2_softmax_kernel(%arg0: memref<8x1024xbf16, #tpu.memory_space<vmem>>, %arg1: memref<1024x128xbf16, #tpu.memory_space<vmem>>, %arg2: memref<1x128xf32, #tpu.memory_space<vmem>>, %arg3: memref<8x128xf32, #tpu.memory_space<vmem>>, %arg4: memref<8x128xf32, #tpu.memory_space<vmem>>) attributes {dimension_semantics = [], scalar_prefetch = 0 : i64, scratch_operands = 0 : i64, tpu.core_type = #tpu.core_type<tc>} {
    %c0 = arith.constant 0 : index
    %c0_0 = arith.constant 0 : index
    %0 = vector.load %arg0[%c0, %c0_0] : memref<8x1024xbf16, #tpu.memory_space<vmem>>, vector<8x1024xbf16>
    %c0_1 = arith.constant 0 : index
    %c0_2 = arith.constant 0 : index
    %1 = vector.load %arg1[%c0_1, %c0_2] : memref<1024x128xbf16, #tpu.memory_space<vmem>>, vector<1024x128xbf16>
    %cst = arith.constant dense<0.000000e+00> : vector<8x128xf32>
    %2 = tpu.matmul %0, %1, %cst {dimension_numbers = #tpu.dot_dimension_numbers<[1], [0], [0], [1], [0, 0, 1, 1], [], []>} : vector<8x1024xbf16>, vector<1024x128xbf16>, vector<8x128xf32> -> vector<8x128xf32>
    %c0_3 = arith.constant 0 : index
    %c0_4 = arith.constant 0 : index
    %3 = vector.load %arg2[%c0_3, %c0_4] : memref<1x128xf32, #tpu.memory_space<vmem>>, vector<1x128xf32>
    %4 = vector.broadcast %3 : vector<1x128xf32> to vector<8x128xf32>
    %5 = arith.addf %2, %4 : vector<8x128xf32>
    %c0_5 = arith.constant 0 : index
    %c0_6 = arith.constant 0 : index
    %6 = vector.load %arg3[%c0_5, %c0_6] : memref<8x128xf32, #tpu.memory_space<vmem>>, vector<8x128xf32>
    tpu.vector_store %arg3[%c0_5, %c0_6], %5 {strides = array<i32>} : memref<8x128xf32, #tpu.memory_space<vmem>>, vector<8x128xf32>,
    %7 = tpu.iota {dimensions = array<i32: 1>} : vector<8x128xi32>
    %c3_i32 = arith.constant 3 : i32
    %8 = vector.broadcast %c3_i32 : i32 to vector<8x128xi32>
    %9 = arith.cmpi slt, %7, %8 : vector<8x128xi32>
    %cst_7 = arith.constant -1.000000e+30 : f32
    %10 = vector.broadcast %cst_7 : f32 to vector<8x128xf32>
    %11 = arith.select %9, %5, %10 : vector<8x128xi1>, vector<8x128xf32>
    %cst_8 = arith.constant dense<0xFF800000> : vector<8xf32>
    %12 = vector.multi_reduction <maximumf>, %11, %cst_8 [1] : vector<8x128xf32> to vector<8xf32>
    %13 = vector.shape_cast %12 : vector<8xf32> to vector<8x1xf32>
    %14 = vector.broadcast %13 : vector<8x1xf32> to vector<8x128xf32>
    %15 = arith.subf %11, %14 : vector<8x128xf32>
    %16 = math.exp %15 : vector<8x128xf32>
    %cst_9 = arith.constant dense<0.000000e+00> : vector<8xf32>
    %17 = vector.multi_reduction <add>, %16, %cst_9 [1] : vector<8x128xf32> to vector<8xf32>
    %18 = vector.shape_cast %17 : vector<8xf32> to vector<8x1xf32>
    %19 = tpu.reciprocal %18 : vector<8x1xf32> -> vector<8x1xf32>
    %20 = vector.broadcast %19 : vector<8x1xf32> to vector<8x128xf32>
    %21 = arith.mulf %16, %20 : vector<8x128xf32>
    %c0_10 = arith.constant 0 : index
    %c0_11 = arith.constant 0 : index
    %22 = vector.load %arg4[%c0_10, %c0_11] : memref<8x128xf32, #tpu.memory_space<vmem>>, vector<8x128xf32>
    tpu.vector_store %arg4[%c0_10, %c0_11], %21 {strides = array<i32>} : memref<8x128xf32, #tpu.memory_space<vmem>>, vector<8x128xf32>,
    return
  }
}

</mosaic_0001>

<bundles_post_ra>
// kernel: forward.7
= control target key start
LH: loop header
LB: loop body
LE: loop exit
PB: predicated region body
PF: predicated region fallthrough
CT: control target
= control target key end

     0   :  { %vm1064_vm0 = vcmask 1040384   ;;  %v3848_v2 = vmov 0   ;;  %vm760_vm1 = vcmask 400384   ;;  %s5255_s1 = inlined_call_operand.vmem [shape: bf16[49,128], index: 1, kind: input, shape index: {}]   ;;  %s5256_s0 = inlined_call_operand.vmem [shape: bf16[1610,49], index: 0, kind: input, shape index: {}]   ;;  %s5257_s2 = inlined_call_operand.vmem [shape: f32[1,128], index: 2, kind: input, shape index: {}]   ;;  %s5258_s3 = inlined_call_operand.vmem [shape: f32[1,128], index: 3, kind: input, shape index: {}]   ;;  %s5259_s4 = inlined_call_operand.vmem [shape: f32[1,128], index: 4, kind: input, shape index: {}]   ;;  %s5260_s5 = inlined_call_operand.vmem [shape: bf16[1610,128], index: 5, kind: output, shape index: {}]  }
   0x1   :  { %v229_v0 = vld [vmem:[%s5255_s1 + $0x18] sm:$0x1]  ;;  %v1066_v3 = vsel %vm1064_vm0, 65535, %v3848_v2  ;;  %v3226_v6 = vld [vmem:[%s5255_s1 + $0x10] sm:$0xff]  ;;  %v3225_v7 = vld [vmem:[%s5255_s1 + $0x8] sm:$0xff] }
   0x2   :  { %v752_v1 = vunpack.c.l.b16 %v229_v0  ;;  %v3224_v8 = vld [vmem:[%s5255_s1] sm:$0xff]  ;;  %v3173_v9 = vld [vmem:[%s5256_s0 + $0x190] sm:$0xff]  ;;  %v3148_v12 = vld [vmem:[%s5256_s0 + $0xc8] sm:$0xff] }
   0x3   :  { %v3199_v10 = vld [vmem:[%s5256_s0 + $0x260] sm:$0xff]  ;;  %v3174_v13 = vld [vmem:[%s5256_s0 + $0x198] sm:$0xff]  ;;  %v3200_v14 = vld [vmem:[%s5256_s0 + $0x268] sm:$0xff] }
   0x4   :  { %v756_v4 = vpack.c.b16 %v752_v1, %v752_v1  ;;  %v3123_v11 = vld [vmem:[%s5256_s0] sm:$0xff]  ;;  %v3124_v15 = vld [vmem:[%s5256_s0 + $0x8] sm:$0xff]  ;;  %v3149_v16 = vld [vmem:[%s5256_s0 + $0xd0] sm:$0xff] }
   0x5   :  { %v3175_v17 = vld [vmem:[%s5256_s0 + $0x1a0] sm:$0xff]  ;;  %v3201_v18 = vld [vmem:[%s5256_s0 + $0x270] sm:$0xff]  ;;  %v3150_v20 = vld [vmem:[%s5256_s0 + $0xd8] sm:$0xff] }
   0x6   :  { %v1068_v5 = vand.u32 %v1066_v3, %v756_v4  ;;  %v3125_v19 = vld [vmem:[%s5256_s0 + $0x10] sm:$0xff]  ;;  %v3176_v21 = vld [vmem:[%s5256_s0 + $0x1a8] sm:$0xff]  ;;  %v3202_v22 = vld [vmem:[%s5256_s0 + $0x278] sm:$0xff] }
   0x7   :  { %v3126_v23 = vld [vmem:[%s5256_s0 + $0x18] sm:$0xff]  ;;  %v3151_v24 = vld [vmem:[%s5256_s0 + $0xe0] sm:$0xff]  ;;  %v3177_v25 = vld [vmem:[%s5256_s0 + $0x1b0] sm:$0xff] }
   0x8   :  { %3827 = vmatpush.bf16.msra.mxu2 %v1068_v5  ;;  %3828 = vmatpush.bf16.msra.mxu3 %v1068_v5  ;;  %v3203_v26 = vld [vmem:[%s5256_s0 + $0x280] sm:$0xff]  ;;  %v3152_v28 = vld [vmem:[%s5256_s0 + $0xe8] sm:$0xff]  ;;  %v3178_v29 = vld [vmem:[%s5256_s0 + $0x1b8] sm:$0xff] }
   0x9   :  { %1074 = vmatpush.bf16.msra.mxu0 %v1068_v5  ;;  %3826 = vmatpush.bf16.msra.mxu1 %v1068_v5  ;;  %v3127_v27 = vld [vmem:[%s5256_s0 + $0x20] sm:$0xff]  ;;  %v3204_v30 = vld [vmem:[%s5256_s0 + $0x288] sm:$0xff]  ;;  %v3153_v32 = vld [vmem:[%s5256_s0 + $0xf0] sm:$0xff] }
   0xa   :  { %v3128_v31 = vld [vmem:[%s5256_s0 + $0x28] sm:$0xff]  ;;  %v3179_v33 = vld [vmem:[%s5256_s0 + $0x1c0] sm:$0xff]  ;;  %v3205_v34 = vld [vmem:[%s5256_s0 + $0x290] sm:$0xff] }
   0xb   :  { %v3129_v35 = vld [vmem:[%s5256_s0 + $0x30] sm:$0xff]  ;;  %v3154_v36 = vld [vmem:[%s5256_s0 + $0xf8] sm:$0xff]  ;;  %v3180_v37 = vld [vmem:[%s5256_s0 + $0x1c8] sm:$0xff] }
   0xc   :  { %3830 = vmatpush.bf16.msra.mxu2 %v3226_v6  ;;  %3831 = vmatpush.bf16.msra.mxu3 %v3226_v6  ;;  %v3206_v38 = vld [vmem:[%s5256_s0 + $0x298] sm:$0xff]  ;;  %v3155_v40 = vld [vmem:[%s5256_s0 + $0x100] sm:$0xff]  ;;  %v3181_v41 = vld [vmem:[%s5256_s0 + $0x1d0] sm:$0xff] }
   0xd   :  { %1075 = vmatpush.bf16.msra.mxu0 %v3226_v6  ;;  %3829 = vmatpush.bf16.msra.mxu1 %v3226_v6  ;;  %v3130_v39 = vld [vmem:[%s5256_s0 + $0x38] sm:$0xff]  ;;  %v3207_v42 = vld [vmem:[%s5256_s0 + $0x2a0] sm:$0xff]  ;;  %v3156_v45 = vld [vmem:[%s5256_s0 + $0x108] sm:$0xff] }
   0xe   :  { %v4028_v43 = vld [vmem:[%s5257_s2] ss:$0 sm:$0xff] }
   0xf   :  { %v3131_v44 = vld [vmem:[%s5256_s0 + $0x40] sm:$0xff] }
  0x10   :  { %3833 = vmatpush.bf16.msra.mxu2 %v3225_v7  ;;  %3834 = vmatpush.bf16.msra.mxu3 %v3225_v7  ;;  %v4046_v55 = vld [vmem:[%s5258_s3] ss:$0 sm:$0xff] }
  0x11   :  { %1076 = vmatpush.bf16.msra.mxu0 %v3225_v7  ;;  %3832 = vmatpush.bf16.msra.mxu1 %v3225_v7  ;;  %v4056_v0 = vld [vmem:[%s5259_s4] ss:$0 sm:$0xff] }
  0x14   :  { %3836 = vmatpush.bf16.msra.mxu2 %v3224_v8  ;;  %3837 = vmatpush.bf16.msra.mxu3 %v3224_v8 }
  0x15   :  { %1077 = vmatpush.bf16.msra.mxu0 %v3224_v8  ;;  %3835 = vmatpush.bf16.msra.mxu1 %v3224_v8 }
  0x17   :  { %3072 = vmatmul.msk.bf16.vlgmr.msra.gmra.mxu2 %vm760_vm1, %v3173_v9  ;;  %3098 = vmatmul.msk.bf16.vlgmr.msra.gmra.mxu3 %vm760_vm1, %v3199_v10 }
  0x18   :  { %3022 = vmatmul.msk.bf16.vlgmr.msra.gmra.mxu0 %vm760_vm1, %v3123_v11  ;;  %3047 = vmatmul.msk.bf16.vlgmr.msra.gmra.mxu1 %vm760_vm1, %v3148_v12  ;;  %v3182_v12 = vld [vmem:[%s5256_s0 + $0x1d8] sm:$0xff] }
  0x27   :  { %3073 = vmatmul.msk.bf16.gmra.mxu2 %vm760_vm1, %v3174_v13  ;;  %3099 = vmatmul.msk.bf16.gmra.mxu3 %vm760_vm1, %v3200_v14  ;;  %v3208_v14 = vld [vmem:[%s5256_s0 + $0x2a8] sm:$0xff] }
  0x28   :  { %3023 = vmatmul.msk.bf16.gmra.mxu0 %vm760_vm1, %v3124_v15  ;;  %3048 = vmatmul.msk.bf16.gmra.mxu1 %vm760_vm1, %v3149_v16 }
  0x37   :  { %3074 = vmatmul.msk.bf16.gmra.mxu2 %vm760_vm1, %v3175_v17  ;;  %3100 = vmatmul.msk.bf16.gmra.mxu3 %vm760_vm1, %v3201_v18  ;;  %v3132_v17 = vld [vmem:[%s5256_s0 + $0x48] sm:$0xff]  ;;  %v3157_v18 = vld [vmem:[%s5256_s0 + $0x110] sm:$0xff] }
  0x38   :  { %3024 = vmatmul.msk.bf16.gmra.mxu0 %vm760_vm1, %v3125_v19  ;;  %3049 = vmatmul.msk.bf16.gmra.mxu1 %vm760_vm1, %v3150_v20 }
  0x47   :  { %3075 = vmatmul.msk.bf16.gmra.mxu2 %vm760_vm1, %v3176_v21  ;;  %3101 = vmatmul.msk.bf16.gmra.mxu3 %vm760_vm1, %v3202_v22 }
  0x48   :  { %3025 = vmatmul.msk.bf16.gmra.mxu0 %vm760_vm1, %v3126_v23  ;;  %3050 = vmatmul.msk.bf16.gmra.mxu1 %vm760_vm1, %v3151_v24 }
  0x57   :  { %3076 = vmatmul.msk.bf16.gmra.mxu2 %vm760_vm1, %v3177_v25  ;;  %3102 = vmatmul.msk.bf16.gmra.mxu3 %vm760_vm1, %v3203_v26 }
  0x58   :  { %3026 = vmatmul.msk.bf16.gmra.mxu0 %vm760_vm1, %v3127_v27  ;;  %3051 = vmatmul.msk.bf16.gmra.mxu1 %vm760_vm1, %v3152_v28 }
  0x67   :  { %3077 = vmatmul.msk.bf16.gmra.mxu2 %vm760_vm1, %v3178_v29  ;;  %3103 = vmatmul.msk.bf16.gmra.mxu3 %vm760_vm1, %v3204_v30 }
  0x68   :  { %3027 = vmatmul.msk.bf16.gmra.mxu0 %vm760_vm1, %v3128_v31  ;;  %3052 = vmatmul.msk.bf16.gmra.mxu1 %vm760_vm1, %v3153_v32 }
  0x77   :  { %3078 = vmatmul.msk.bf16.gmra.mxu2 %vm760_vm1, %v3179_v33  ;;  %3104 = vmatmul.msk.bf16.gmra.mxu3 %vm760_vm1, %v3205_v34 }
  0x78   :  { %3028 = vmatmul.msk.bf16.gmra.mxu0 %vm760_vm1, %v3129_v35  ;;  %3053 = vmatmul.msk.bf16.gmra.mxu1 %vm760_vm1, %v3154_v36 }
  0x87   :  { %3079 = vmatmul.msk.bf16.gmra.mxu2 %vm760_vm1, %v3180_v37  ;;  %3105 = vmatmul.msk.bf16.gmra.mxu3 %vm760_vm1, %v3206_v38 }
  0x88   :  { %3029 = vmatmul.msk.bf16.gmra.mxu0 %vm760_vm1, %v3130_v39  ;;  %3054 = vmatmul.msk.bf16.gmra.mxu1 %vm760_vm1, %v3155_v40 }
  0x95   :  { %v1079_v46 = vpop.f32.mrf.mxu0  ;;  %v1204_v47 = vpop.f32.mrf.mxu1 }
  0x96   :  { %v1080_v48 = vadd.f32 %v4028_v43, %v1079_v46  ;;  %v1205_v49 = vadd.f32 %v4028_v43, %v1204_v47 }
  0x97   :  { %3080 = vmatmul.msk.bf16.gmra.mxu2 %vm760_vm1, %v3181_v41  ;;  %3106 = vmatmul.msk.bf16.gmra.mxu3 %vm760_vm1, %v3207_v42 }
  0x98   :  { %3030 = vmatmul.msk.bf16.gmra.mxu0 %vm760_vm1, %v3131_v44  ;;  %3055 = vmatmul.msk.bf16.gmra.mxu1 %vm760_vm1, %v3156_v45  ;;  %v1584_v51 = vmax.f32 %v1080_v48, 0.0  ;;  %v1634_v52 = vmax.f32 %v1205_v49, 0.0 }
  0x9a   :  { %v1329_v50 = vpop.f32.mrf.mxu2  ;;  %v1459_v53 = vpop.f32.mrf.mxu3  ;;  %v1790_v59 = vmul.f32 %v4046_v55, %v1584_v51  ;;  %v1840_v60 = vmul.f32 %v4046_v55, %v1634_v52 }
  0x9b   :  { %v1460_v54 = vadd.f32 %v4028_v43, %v1459_v53  ;;  %v1330_v56 = vadd.f32 %v4028_v43, %v1329_v50 }
  0x9c   :  { %v1996_v4 = vadd.f32 %v4056_v0, %v1790_v59  ;;  %v2046_v5 = vadd.f32 %v4056_v0, %v1840_v60 }
  0x9d   :  { %v1081_v57 = vpop.f32.mrf.mxu0  ;;  %v1206_v58 = vpop.f32.mrf.mxu1  ;;  %v1736_v63 = vmax.f32 %v1460_v54, 0.0  ;;  %v1684_v3 = vmax.f32 %v1330_v56, 0.0 }
  0x9e   :  { %v1082_v61 = vadd.f32 %v4028_v43, %v1081_v57  ;;  %v1207_v62 = vadd.f32 %v4028_v43, %v1206_v58 }
  0x9f   :  { %v1942_v11 = vmul.f32 %v4046_v55, %v1736_v63  ;;  %v1890_v19 = vmul.f32 %v4046_v55, %v1684_v3 }
  0xa0   :  { %v1585_v1 = vmax.f32 %v1082_v61, 0.0  ;;  %v1635_v2 = vmax.f32 %v1207_v62, 0.0  ;;  %v3183_v62 = vld [vmem:[%s5256_s0 + $0x1e0] sm:$0xff] }
  0xa1   :  { %v2148_v29 = vadd.f32 %v4056_v0, %v1942_v11  ;;  %v2096_v31 = vadd.f32 %v4056_v0, %v1890_v19 }
  0xa2   :  { %v1331_v6 = vpop.f32.mrf.mxu2  ;;  %v1791_v7 = vmul.f32 %v4046_v55, %v1585_v1  ;;  %v1841_v8 = vmul.f32 %v4046_v55, %v1635_v2  ;;  %v1461_v9 = vpop.f32.mrf.mxu3  ;;  %v3209_v1 = vld [vmem:[%s5256_s0 + $0x2b0] sm:$0xff] }
  0xa3   :  { %v1332_v10 = vadd.f32 %v4028_v43, %v1331_v6  ;;  %v1462_v13 = vadd.f32 %v4028_v43, %v1461_v9 }
  0xa4   :  { %v1997_v15 = vadd.f32 %v4056_v0, %v1791_v7  ;;  %v2047_v16 = vadd.f32 %v4056_v0, %v1841_v8 }
  0xa5   :  { %v1685_v20 = vmax.f32 %v1332_v10, 0.0  ;;  %v1737_v21 = vmax.f32 %v1462_v13, 0.0  ;;  %v1084_v22 = vpop.f32.mrf.mxu0  ;;  %v1209_v23 = vpop.f32.mrf.mxu1 }
  0xa6   :  { %v3230_v24 = vpack.c.bf16 %v1997_v15, %v1996_v4  ;;  %v3355_v25 = vpack.c.bf16 %v2047_v16, %v2046_v5  ;;  %v1085_v26 = vadd.f32 %v4028_v43, %v1084_v22  ;;  %v1210_v27 = vadd.f32 %v4028_v43, %v1209_v23  ;;  %v3133_v4 = vld [vmem:[%s5256_s0 + $0x50] sm:$0xff]  ;;  %v3158_v5 = vld [vmem:[%s5256_s0 + $0x118] sm:$0xff] }
  0xa7   :  { %v1891_v28 = vmul.f32 %v4046_v55, %v1685_v20  ;;  %3081 = vmatmul.msk.bf16.gmra.mxu2 %vm760_vm1, %v3182_v12  ;;  %v1943_v30 = vmul.f32 %v4046_v55, %v1737_v21  ;;  %3107 = vmatmul.msk.bf16.gmra.mxu3 %vm760_vm1, %v3208_v14 }
  0xa8   :  { %3231 = vst [vmem:[%s5260_s5] sm:$0xff] %v3230_v24   ;;  %3031 = vmatmul.msk.bf16.gmra.mxu0 %vm760_vm1, %v3132_v17  ;;  %3056 = vmatmul.msk.bf16.gmra.mxu1 %vm760_vm1, %v3157_v18  ;;  %v1586_v35 = vmax.f32 %v1085_v26, 0.0  ;;  %v1636_v36 = vmax.f32 %v1210_v27, 0.0 }
  0xa9   :  { %v2097_v32 = vadd.f32 %v4056_v0, %v1891_v28  ;;  %3751 = vst [vmem:[%s5260_s5 + $0xc8] sm:$0xff] %v3355_v25   ;;  %v2149_v33 = vadd.f32 %v4056_v0, %v1943_v30 }
  0xaa   :  { %v1334_v34 = vpop.f32.mrf.mxu2  ;;  %v1464_v37 = vpop.f32.mrf.mxu3  ;;  %v1792_v45 = vmul.f32 %v4046_v55, %v1586_v35  ;;  %v1842_v46 = vmul.f32 %v4046_v55, %v1636_v36 }
  0xab   :  { %v3480_v38 = vpack.c.bf16 %v2097_v32, %v2096_v31  ;;  %v3610_v39 = vpack.c.bf16 %v2149_v33, %v2148_v29  ;;  %v1465_v40 = vadd.f32 %v4028_v43, %v1464_v37  ;;  %v1335_v41 = vadd.f32 %v4028_v43, %v1334_v34 }
  0xac   :  { %v1998_v53 = vadd.f32 %v4056_v0, %v1792_v45  ;;  %v2048_v54 = vadd.f32 %v4056_v0, %v1842_v46 }
  0xad   :  { %3776 = vst [vmem:[%s5260_s5 + $0x190] sm:$0xff] %v3480_v38   ;;  %v1086_v42 = vpop.f32.mrf.mxu0  ;;  %v1211_v44 = vpop.f32.mrf.mxu1  ;;  %v1738_v49 = vmax.f32 %v1465_v40, 0.0  ;;  %v1686_v52 = vmax.f32 %v1335_v41, 0.0 }
  0xae   :  { %3802 = vst [vmem:[%s5260_s5 + $0x260] sm:$0xff] %v3610_v39   ;;  %v1087_v47 = vadd.f32 %v4028_v43, %v1086_v42  ;;  %v1212_v48 = vadd.f32 %v4028_v43, %v1211_v44 }
  0xaf   :  { %v1944_v61 = vmul.f32 %v4046_v55, %v1738_v49  ;;  %v1892_v6 = vmul.f32 %v4046_v55, %v1686_v52 }
  0xb0   :  { %v1587_v50 = vmax.f32 %v1087_v47, 0.0  ;;  %v1637_v51 = vmax.f32 %v1212_v48, 0.0  ;;  %v3184_v48 = vld [vmem:[%s5256_s0 + $0x1e8] sm:$0xff] }
  0xb1   :  { %v2150_v16 = vadd.f32 %v4056_v0, %v1944_v61  ;;  %v2098_v18 = vadd.f32 %v4056_v0, %v1892_v6 }
  0xb2   :  { %v1336_v56 = vpop.f32.mrf.mxu2  ;;  %v1793_v57 = vmul.f32 %v4046_v55, %v1587_v50  ;;  %v1843_v58 = vmul.f32 %v4046_v55, %v1637_v51  ;;  %v1466_v59 = vpop.f32.mrf.mxu3  ;;  %v3210_v50 = vld [vmem:[%s5256_s0 + $0x2b8] sm:$0xff] }
  0xb3   :  { %v1337_v60 = vadd.f32 %v4028_v43, %v1336_v56  ;;  %v1467_v63 = vadd.f32 %v4028_v43, %v1466_v59 }
  0xb4   :  { %v1999_v2 = vadd.f32 %v4056_v0, %v1793_v57  ;;  %v2049_v3 = vadd.f32 %v4056_v0, %v1843_v58 }
  0xb5   :  { %v1687_v7 = vmax.f32 %v1337_v60, 0.0  ;;  %v1739_v8 = vmax.f32 %v1467_v63, 0.0  ;;  %v1089_v9 = vpop.f32.mrf.mxu0  ;;  %v1214_v10 = vpop.f32.mrf.mxu1 }
  0xb6   :  { %v3235_v11 = vpack.c.bf16 %v1999_v2, %v1998_v53  ;;  %v3360_v12 = vpack.c.bf16 %v2049_v3, %v2048_v54  ;;  %v1090_v13 = vadd.f32 %v4028_v43, %v1089_v9  ;;  %v1215_v14 = vadd.f32 %v4028_v43, %v1214_v10  ;;  %v3134_v53 = vld [vmem:[%s5256_s0 + $0x58] sm:$0xff]  ;;  %v3159_v54 = vld [vmem:[%s5256_s0 + $0x120] sm:$0xff] }
  0xb7   :  { %v1893_v15 = vmul.f32 %v4046_v55, %v1687_v7  ;;  %3082 = vmatmul.msk.bf16.gmra.mxu2 %vm760_vm1, %v3183_v62  ;;  %v1945_v17 = vmul.f32 %v4046_v55, %v1739_v8  ;;  %3108 = vmatmul.msk.bf16.gmra.mxu3 %vm760_vm1, %v3209_v1 }
  0xb8   :  { %3727 = vst [vmem:[%s5260_s5 + $0x8] sm:$0xff] %v3235_v11   ;;  %3032 = vmatmul.msk.bf16.gmra.mxu0 %vm760_vm1, %v3133_v4  ;;  %3057 = vmatmul.msk.bf16.gmra.mxu1 %vm760_vm1, %v3158_v5  ;;  %v1588_v22 = vmax.f32 %v1090_v13, 0.0  ;;  %v1638_v23 = vmax.f32 %v1215_v14, 0.0 }
  0xb9   :  { %v2099_v19 = vadd.f32 %v4056_v0, %v1893_v15  ;;  %3752 = vst [vmem:[%s5260_s5 + $0xd0] sm:$0xff] %v3360_v12   ;;  %v2151_v20 = vadd.f32 %v4056_v0, %v1945_v17 }
  0xba   :  { %v1339_v21 = vpop.f32.mrf.mxu2  ;;  %v1469_v24 = vpop.f32.mrf.mxu3  ;;  %v1794_v31 = vmul.f32 %v4046_v55, %v1588_v22  ;;  %v1844_v32 = vmul.f32 %v4046_v55, %v1638_v23 }
  0xbb   :  { %v3485_v25 = vpack.c.bf16 %v2099_v19, %v2098_v18  ;;  %v3615_v26 = vpack.c.bf16 %v2151_v20, %v2150_v16  ;;  %v1470_v27 = vadd.f32 %v4028_v43, %v1469_v24  ;;  %v1340_v28 = vadd.f32 %v4028_v43, %v1339_v21 }
  0xbc   :  { %v2000_v39 = vadd.f32 %v4056_v0, %v1794_v31  ;;  %v2050_v40 = vadd.f32 %v4056_v0, %v1844_v32 }
  0xbd   :  { %3777 = vst [vmem:[%s5260_s5 + $0x198] sm:$0xff] %v3485_v25   ;;  %v1091_v29 = vpop.f32.mrf.mxu0  ;;  %v1216_v30 = vpop.f32.mrf.mxu1  ;;  %v1740_v35 = vmax.f32 %v1470_v27, 0.0  ;;  %v1688_v38 = vmax.f32 %v1340_v28, 0.0 }
  0xbe   :  { %3803 = vst [vmem:[%s5260_s5 + $0x268] sm:$0xff] %v3615_v26   ;;  %v1092_v33 = vadd.f32 %v4028_v43, %v1091_v29  ;;  %v1217_v34 = vadd.f32 %v4028_v43, %v1216_v30 }
  0xbf   :  { %v1946_v47 = vmul.f32 %v4046_v55, %v1740_v35  ;;  %v1894_v56 = vmul.f32 %v4046_v55, %v1688_v38 }
  0xc0   :  { %v1589_v36 = vmax.f32 %v1092_v33, 0.0  ;;  %v1639_v37 = vmax.f32 %v1217_v34, 0.0  ;;  %v3185_v34 = vld [vmem:[%s5256_s0 + $0x1f0] sm:$0xff] }
  0xc1   :  { %v2152_v3 = vadd.f32 %v4056_v0, %v1946_v47  ;;  %v2100_v5 = vadd.f32 %v4056_v0, %v1894_v56 }
  0xc2   :  { %v1341_v41 = vpop.f32.mrf.mxu2  ;;  %v1795_v42 = vmul.f32 %v4046_v55, %v1589_v36  ;;  %v1845_v44 = vmul.f32 %v4046_v55, %v1639_v37  ;;  %v1471_v45 = vpop.f32.mrf.mxu3  ;;  %v3211_v36 = vld [vmem:[%s5256_s0 + $0x2c0] sm:$0xff] }
  0xc3   :  { %v1342_v46 = vadd.f32 %v4028_v43, %v1341_v41  ;;  %v1472_v49 = vadd.f32 %v4028_v43, %v1471_v45 }
  0xc4   :  { %v2001_v51 = vadd.f32 %v4056_v0, %v1795_v42  ;;  %v2051_v52 = vadd.f32 %v4056_v0, %v1845_v44 }
  0xc5   :  { %v1689_v57 = vmax.f32 %v1342_v46, 0.0  ;;  %v1741_v58 = vmax.f32 %v1472_v49, 0.0  ;;  %v1094_v59 = vpop.f32.mrf.mxu0  ;;  %v1219_v60 = vpop.f32.mrf.mxu1 }
  0xc6   :  { %v3240_v61 = vpack.c.bf16 %v2001_v51, %v2000_v39  ;;  %v3365_v62 = vpack.c.bf16 %v2051_v52, %v2050_v40  ;;  %v1095_v63 = vadd.f32 %v4028_v43, %v1094_v59  ;;  %v1220_v1 = vadd.f32 %v4028_v43, %v1219_v60  ;;  %v3135_v39 = vld [vmem:[%s5256_s0 + $0x60] sm:$0xff]  ;;  %v3160_v40 = vld [vmem:[%s5256_s0 + $0x128] sm:$0xff] }
  0xc7   :  { %v1895_v2 = vmul.f32 %v4046_v55, %v1689_v57  ;;  %3083 = vmatmul.msk.bf16.gmra.mxu2 %vm760_vm1, %v3184_v48  ;;  %v1947_v4 = vmul.f32 %v4046_v55, %v1741_v58  ;;  %3109 = vmatmul.msk.bf16.gmra.mxu3 %vm760_vm1, %v3210_v50 }
  0xc8   :  { %3728 = vst [vmem:[%s5260_s5 + $0x10] sm:$0xff] %v3240_v61   ;;  %3033 = vmatmul.msk.bf16.gmra.mxu0 %vm760_vm1, %v3134_v53  ;;  %3058 = vmatmul.msk.bf16.gmra.mxu1 %vm760_vm1, %v3159_v54  ;;  %v1590_v9 = vmax.f32 %v1095_v63, 0.0  ;;  %v1640_v10 = vmax.f32 %v1220_v1, 0.0 }
  0xc9   :  { %v2101_v6 = vadd.f32 %v4056_v0, %v1895_v2  ;;  %3753 = vst [vmem:[%s5260_s5 + $0xd8] sm:$0xff] %v3365_v62   ;;  %v2153_v7 = vadd.f32 %v4056_v0, %v1947_v4 }
  0xca   :  { %v1344_v8 = vpop.f32.mrf.mxu2  ;;  %v1474_v11 = vpop.f32.mrf.mxu3  ;;  %v1796_v18 = vmul.f32 %v4046_v55, %v1590_v9  ;;  %v1846_v19 = vmul.f32 %v4046_v55, %v1640_v10 }
  0xcb   :  { %v3490_v12 = vpack.c.bf16 %v2101_v6, %v2100_v5  ;;  %v3620_v13 = vpack.c.bf16 %v2153_v7, %v2152_v3  ;;  %v1475_v14 = vadd.f32 %v4028_v43, %v1474_v11  ;;  %v1345_v15 = vadd.f32 %v4028_v43, %v1344_v8 }
  0xcc   :  { %v2002_v26 = vadd.f32 %v4056_v0, %v1796_v18  ;;  %v2052_v27 = vadd.f32 %v4056_v0, %v1846_v19 }
  0xcd   :  { %3778 = vst [vmem:[%s5260_s5 + $0x1a0] sm:$0xff] %v3490_v12   ;;  %v1096_v16 = vpop.f32.mrf.mxu0  ;;  %v1221_v17 = vpop.f32.mrf.mxu1  ;;  %v1742_v22 = vmax.f32 %v1475_v14, 0.0  ;;  %v1690_v25 = vmax.f32 %v1345_v15, 0.0 }
  0xce   :  { %3804 = vst [vmem:[%s5260_s5 + $0x270] sm:$0xff] %v3620_v13   ;;  %v1097_v20 = vadd.f32 %v4028_v43, %v1096_v16  ;;  %v1222_v21 = vadd.f32 %v4028_v43, %v1221_v17 }
  0xcf   :  { %v1948_v33 = vmul.f32 %v4046_v55, %v1742_v22  ;;  %v1896_v41 = vmul.f32 %v4046_v55, %v1690_v25 }
  0xd0   :  { %v1591_v23 = vmax.f32 %v1097_v20, 0.0  ;;  %v1641_v24 = vmax.f32 %v1222_v21, 0.0  ;;  %v3186_v21 = vld [vmem:[%s5256_s0 + $0x1f8] sm:$0xff] }
  0xd1   :  { %v2154_v52 = vadd.f32 %v4056_v0, %v1948_v33  ;;  %v2102_v54 = vadd.f32 %v4056_v0, %v1896_v41 }
  0xd2   :  { %v1346_v28 = vpop.f32.mrf.mxu2  ;;  %v1797_v29 = vmul.f32 %v4046_v55, %v1591_v23  ;;  %v1847_v30 = vmul.f32 %v4046_v55, %v1641_v24  ;;  %v1476_v31 = vpop.f32.mrf.mxu3  ;;  %v3212_v23 = vld [vmem:[%s5256_s0 + $0x2c8] sm:$0xff] }
  0xd3   :  { %v1347_v32 = vadd.f32 %v4028_v43, %v1346_v28  ;;  %v1477_v35 = vadd.f32 %v4028_v43, %v1476_v31 }
  0xd4   :  { %v2003_v37 = vadd.f32 %v4056_v0, %v1797_v29  ;;  %v2053_v38 = vadd.f32 %v4056_v0, %v1847_v30 }
  0xd5   :  { %v1691_v42 = vmax.f32 %v1347_v32, 0.0  ;;  %v1743_v44 = vmax.f32 %v1477_v35, 0.0  ;;  %v1099_v45 = vpop.f32.mrf.mxu0  ;;  %v1224_v46 = vpop.f32.mrf.mxu1 }
  0xd6   :  { %v3245_v47 = vpack.c.bf16 %v2003_v37, %v2002_v26  ;;  %v3370_v48 = vpack.c.bf16 %v2053_v38, %v2052_v27  ;;  %v1100_v49 = vadd.f32 %v4028_v43, %v1099_v45  ;;  %v1225_v50 = vadd.f32 %v4028_v43, %v1224_v46  ;;  %v3136_v26 = vld [vmem:[%s5256_s0 + $0x68] sm:$0xff]  ;;  %v3161_v27 = vld [vmem:[%s5256_s0 + $0x130] sm:$0xff] }
  0xd7   :  { %v1897_v51 = vmul.f32 %v4046_v55, %v1691_v42  ;;  %3084 = vmatmul.msk.bf16.gmra.mxu2 %vm760_vm1, %v3185_v34  ;;  %v1949_v53 = vmul.f32 %v4046_v55, %v1743_v44  ;;  %3110 = vmatmul.msk.bf16.gmra.mxu3 %vm760_vm1, %v3211_v36 }
  0xd8   :  { %3729 = vst [vmem:[%s5260_s5 + $0x18] sm:$0xff] %v3245_v47   ;;  %3034 = vmatmul.msk.bf16.gmra.mxu0 %vm760_vm1, %v3135_v39  ;;  %3059 = vmatmul.msk.bf16.gmra.mxu1 %vm760_vm1, %v3160_v40  ;;  %v1592_v59 = vmax.f32 %v1100_v49, 0.0  ;;  %v1642_v60 = vmax.f32 %v1225_v50, 0.0 }
  0xd9   :  { %v2103_v56 = vadd.f32 %v4056_v0, %v1897_v51  ;;  %3754 = vst [vmem:[%s5260_s5 + $0xe0] sm:$0xff] %v3370_v48   ;;  %v2155_v57 = vadd.f32 %v4056_v0, %v1949_v53 }
  0xda   :  { %v1349_v58 = vpop.f32.mrf.mxu2  ;;  %v1479_v61 = vpop.f32.mrf.mxu3  ;;  %v1798_v5 = vmul.f32 %v4046_v55, %v1592_v59  ;;  %v1848_v6 = vmul.f32 %v4046_v55, %v1642_v60 }
  0xdb   :  { %v3495_v62 = vpack.c.bf16 %v2103_v56, %v2102_v54  ;;  %v3625_v63 = vpack.c.bf16 %v2155_v57, %v2154_v52  ;;  %v1480_v1 = vadd.f32 %v4028_v43, %v1479_v61  ;;  %v1350_v2 = vadd.f32 %v4028_v43, %v1349_v58 }
  0xdc   :  { %v2004_v13 = vadd.f32 %v4056_v0, %v1798_v5  ;;  %v2054_v14 = vadd.f32 %v4056_v0, %v1848_v6 }
  0xdd   :  { %3779 = vst [vmem:[%s5260_s5 + $0x1a8] sm:$0xff] %v3495_v62   ;;  %v1101_v3 = vpop.f32.mrf.mxu0  ;;  %v1226_v4 = vpop.f32.mrf.mxu1  ;;  %v1744_v9 = vmax.f32 %v1480_v1, 0.0  ;;  %v1692_v12 = vmax.f32 %v1350_v2, 0.0 }
  0xde   :  { %3805 = vst [vmem:[%s5260_s5 + $0x278] sm:$0xff] %v3625_v63   ;;  %v1102_v7 = vadd.f32 %v4028_v43, %v1101_v3  ;;  %v1227_v8 = vadd.f32 %v4028_v43, %v1226_v4 }
  0xdf   :  { %v1950_v20 = vmul.f32 %v4046_v55, %v1744_v9  ;;  %v1898_v28 = vmul.f32 %v4046_v55, %v1692_v12 }
  0xe0   :  { %v1593_v10 = vmax.f32 %v1102_v7, 0.0  ;;  %v1643_v11 = vmax.f32 %v1227_v8, 0.0  ;;  %v3187_v8 = vld [vmem:[%s5256_s0 + $0x200] sm:$0xff] }
  0xe1   :  { %v2156_v38 = vadd.f32 %v4056_v0, %v1950_v20  ;;  %v2104_v40 = vadd.f32 %v4056_v0, %v1898_v28 }
  0xe2   :  { %v1351_v15 = vpop.f32.mrf.mxu2  ;;  %v1799_v16 = vmul.f32 %v4046_v55, %v1593_v10  ;;  %v1849_v17 = vmul.f32 %v4046_v55, %v1643_v11  ;;  %v1481_v18 = vpop.f32.mrf.mxu3  ;;  %v3213_v10 = vld [vmem:[%s5256_s0 + $0x2d0] sm:$0xff] }
  0xe3   :  { %v1352_v19 = vadd.f32 %v4028_v43, %v1351_v15  ;;  %v1482_v22 = vadd.f32 %v4028_v43, %v1481_v18 }
  0xe4   :  { %v2005_v24 = vadd.f32 %v4056_v0, %v1799_v16  ;;  %v2055_v25 = vadd.f32 %v4056_v0, %v1849_v17 }
  0xe5   :  { %v1693_v29 = vmax.f32 %v1352_v19, 0.0  ;;  %v1745_v30 = vmax.f32 %v1482_v22, 0.0  ;;  %v1104_v31 = vpop.f32.mrf.mxu0  ;;  %v1229_v32 = vpop.f32.mrf.mxu1 }
  0xe6   :  { %v3250_v33 = vpack.c.bf16 %v2005_v24, %v2004_v13  ;;  %v3375_v34 = vpack.c.bf16 %v2055_v25, %v2054_v14  ;;  %v1105_v35 = vadd.f32 %v4028_v43, %v1104_v31  ;;  %v1230_v36 = vadd.f32 %v4028_v43, %v1229_v32  ;;  %v3137_v13 = vld [vmem:[%s5256_s0 + $0x70] sm:$0xff]  ;;  %v3162_v14 = vld [vmem:[%s5256_s0 + $0x138] sm:$0xff] }
  0xe7   :  { %v1899_v37 = vmul.f32 %v4046_v55, %v1693_v29  ;;  %3085 = vmatmul.msk.bf16.gmra.mxu2 %vm760_vm1, %v3186_v21  ;;  %v1951_v39 = vmul.f32 %v4046_v55, %v1745_v30  ;;  %3111 = vmatmul.msk.bf16.gmra.mxu3 %vm760_vm1, %v3212_v23 }
  0xe8   :  { %3730 = vst [vmem:[%s5260_s5 + $0x20] sm:$0xff] %v3250_v33   ;;  %3035 = vmatmul.msk.bf16.gmra.mxu0 %vm760_vm1, %v3136_v26  ;;  %3060 = vmatmul.msk.bf16.gmra.mxu1 %vm760_vm1, %v3161_v27  ;;  %v1594_v45 = vmax.f32 %v1105_v35, 0.0  ;;  %v1644_v46 = vmax.f32 %v1230_v36, 0.0 }
  0xe9   :  { %v2105_v41 = vadd.f32 %v4056_v0, %v1899_v37  ;;  %3755 = vst [vmem:[%s5260_s5 + $0xe8] sm:$0xff] %v3375_v34   ;;  %v2157_v42 = vadd.f32 %v4056_v0, %v1951_v39 }
  0xea   :  { %v1354_v44 = vpop.f32.mrf.mxu2  ;;  %v1484_v47 = vpop.f32.mrf.mxu3  ;;  %v1800_v54 = vmul.f32 %v4046_v55, %v1594_v45  ;;  %v1850_v56 = vmul.f32 %v4046_v55, %v1644_v46 }
  0xeb   :  { %v3500_v48 = vpack.c.bf16 %v2105_v41, %v2104_v40  ;;  %v3630_v49 = vpack.c.bf16 %v2157_v42, %v2156_v38  ;;  %v1485_v50 = vadd.f32 %v4028_v43, %v1484_v47  ;;  %v1355_v51 = vadd.f32 %v4028_v43, %v1354_v44 }
  0xec   :  { %v2006_v63 = vadd.f32 %v4056_v0, %v1800_v54  ;;  %v2056_v1 = vadd.f32 %v4056_v0, %v1850_v56 }
  0xed   :  { %3780 = vst [vmem:[%s5260_s5 + $0x1b0] sm:$0xff] %v3500_v48   ;;  %v1106_v52 = vpop.f32.mrf.mxu0  ;;  %v1231_v53 = vpop.f32.mrf.mxu1  ;;  %v1746_v59 = vmax.f32 %v1485_v50, 0.0  ;;  %v1694_v62 = vmax.f32 %v1355_v51, 0.0 }
  0xee   :  { %3806 = vst [vmem:[%s5260_s5 + $0x280] sm:$0xff] %v3630_v49   ;;  %v1107_v57 = vadd.f32 %v4028_v43, %v1106_v52  ;;  %v1232_v58 = vadd.f32 %v4028_v43, %v1231_v53 }
  0xef   :  { %v1952_v7 = vmul.f32 %v4046_v55, %v1746_v59  ;;  %v1900_v15 = vmul.f32 %v4046_v55, %v1694_v62 }
  0xf0   :  { %v1595_v60 = vmax.f32 %v1107_v57, 0.0  ;;  %v1645_v61 = vmax.f32 %v1232_v58, 0.0  ;;  %v3188_v58 = vld [vmem:[%s5256_s0 + $0x208] sm:$0xff] }
  0xf1   :  { %v2158_v25 = vadd.f32 %v4056_v0, %v1952_v7  ;;  %v2106_v27 = vadd.f32 %v4056_v0, %v1900_v15 }
  0xf2   :  { %v1356_v2 = vpop.f32.mrf.mxu2  ;;  %v1801_v3 = vmul.f32 %v4046_v55, %v1595_v60  ;;  %v1851_v4 = vmul.f32 %v4046_v55, %v1645_v61  ;;  %v1486_v5 = vpop.f32.mrf.mxu3  ;;  %v3214_v60 = vld [vmem:[%s5256_s0 + $0x2d8] sm:$0xff] }
  0xf3   :  { %v1357_v6 = vadd.f32 %v4028_v43, %v1356_v2  ;;  %v1487_v9 = vadd.f32 %v4028_v43, %v1486_v5 }
  0xf4   :  { %v2007_v11 = vadd.f32 %v4056_v0, %v1801_v3  ;;  %v2057_v12 = vadd.f32 %v4056_v0, %v1851_v4 }
  0xf5   :  { %v1695_v16 = vmax.f32 %v1357_v6, 0.0  ;;  %v1747_v17 = vmax.f32 %v1487_v9, 0.0  ;;  %v1109_v18 = vpop.f32.mrf.mxu0  ;;  %v1234_v19 = vpop.f32.mrf.mxu1 }
  0xf6   :  { %v3255_v20 = vpack.c.bf16 %v2007_v11, %v2006_v63  ;;  %v3380_v21 = vpack.c.bf16 %v2057_v12, %v2056_v1  ;;  %v1110_v22 = vadd.f32 %v4028_v43, %v1109_v18  ;;  %v1235_v23 = vadd.f32 %v4028_v43, %v1234_v19  ;;  %v3138_v63 = vld [vmem:[%s5256_s0 + $0x78] sm:$0xff]  ;;  %v3163_v1 = vld [vmem:[%s5256_s0 + $0x140] sm:$0xff] }
  0xf7   :  { %v1901_v24 = vmul.f32 %v4046_v55, %v1695_v16  ;;  %3086 = vmatmul.msk.bf16.gmra.mxu2 %vm760_vm1, %v3187_v8  ;;  %v1953_v26 = vmul.f32 %v4046_v55, %v1747_v17  ;;  %3112 = vmatmul.msk.bf16.gmra.mxu3 %vm760_vm1, %v3213_v10 }
  0xf8   :  { %3731 = vst [vmem:[%s5260_s5 + $0x28] sm:$0xff] %v3255_v20   ;;  %3036 = vmatmul.msk.bf16.gmra.mxu0 %vm760_vm1, %v3137_v13  ;;  %3061 = vmatmul.msk.bf16.gmra.mxu1 %vm760_vm1, %v3162_v14  ;;  %v1596_v31 = vmax.f32 %v1110_v22, 0.0  ;;  %v1646_v32 = vmax.f32 %v1235_v23, 0.0 }
  0xf9   :  { %v2107_v28 = vadd.f32 %v4056_v0, %v1901_v24  ;;  %3756 = vst [vmem:[%s5260_s5 + $0xf0] sm:$0xff] %v3380_v21   ;;  %v2159_v29 = vadd.f32 %v4056_v0, %v1953_v26 }
  0xfa   :  { %v1359_v30 = vpop.f32.mrf.mxu2  ;;  %v1489_v33 = vpop.f32.mrf.mxu3  ;;  %v1802_v40 = vmul.f32 %v4046_v55, %v1596_v31  ;;  %v1852_v41 = vmul.f32 %v4046_v55, %v1646_v32 }
  0xfb   :  { %v3505_v34 = vpack.c.bf16 %v2107_v28, %v2106_v27  ;;  %v3635_v35 = vpack.c.bf16 %v2159_v29, %v2158_v25  ;;  %v1490_v36 = vadd.f32 %v4028_v43, %v1489_v33  ;;  %v1360_v37 = vadd.f32 %v4028_v43, %v1359_v30 }
  0xfc   :  { %v2008_v49 = vadd.f32 %v4056_v0, %v1802_v40  ;;  %v2058_v50 = vadd.f32 %v4056_v0, %v1852_v41 }
  0xfd   :  { %3781 = vst [vmem:[%s5260_s5 + $0x1b8] sm:$0xff] %v3505_v34   ;;  %v1111_v38 = vpop.f32.mrf.mxu0  ;;  %v1236_v39 = vpop.f32.mrf.mxu1  ;;  %v1748_v45 = vmax.f32 %v1490_v36, 0.0  ;;  %v1696_v48 = vmax.f32 %v1360_v37, 0.0 }
  0xfe   :  { %3807 = vst [vmem:[%s5260_s5 + $0x288] sm:$0xff] %v3635_v35   ;;  %v1112_v42 = vadd.f32 %v4028_v43, %v1111_v38  ;;  %v1237_v44 = vadd.f32 %v4028_v43, %v1236_v39 }
  0xff   :  { %v1954_v57 = vmul.f32 %v4046_v55, %v1748_v45  ;;  %v1902_v2 = vmul.f32 %v4046_v55, %v1696_v48 }
 0x100   :  { %v1597_v46 = vmax.f32 %v1112_v42, 0.0  ;;  %v1647_v47 = vmax.f32 %v1237_v44, 0.0  ;;  %v3189_v44 = vld [vmem:[%s5256_s0 + $0x210] sm:$0xff] }
 0x101   :  { %v2160_v12 = vadd.f32 %v4056_v0, %v1954_v57  ;;  %v2108_v14 = vadd.f32 %v4056_v0, %v1902_v2 }
 0x102   :  { %v1361_v51 = vpop.f32.mrf.mxu2  ;;  %v1803_v52 = vmul.f32 %v4046_v55, %v1597_v46  ;;  %v1853_v53 = vmul.f32 %v4046_v55, %v1647_v47  ;;  %v1491_v54 = vpop.f32.mrf.mxu3  ;;  %v3215_v46 = vld [vmem:[%s5256_s0 + $0x2e0] sm:$0xff] }
 0x103   :  { %v1362_v56 = vadd.f32 %v4028_v43, %v1361_v51  ;;  %v1492_v59 = vadd.f32 %v4028_v43, %v1491_v54 }
 0x104   :  { %v2009_v61 = vadd.f32 %v4056_v0, %v1803_v52  ;;  %v2059_v62 = vadd.f32 %v4056_v0, %v1853_v53 }
 0x105   :  { %v1697_v3 = vmax.f32 %v1362_v56, 0.0  ;;  %v1749_v4 = vmax.f32 %v1492_v59, 0.0  ;;  %v1114_v5 = vpop.f32.mrf.mxu0  ;;  %v1239_v6 = vpop.f32.mrf.mxu1 }
 0x106   :  { %v3260_v7 = vpack.c.bf16 %v2009_v61, %v2008_v49  ;;  %v3385_v8 = vpack.c.bf16 %v2059_v62, %v2058_v50  ;;  %v1115_v9 = vadd.f32 %v4028_v43, %v1114_v5  ;;  %v1240_v10 = vadd.f32 %v4028_v43, %v1239_v6  ;;  %v3139_v49 = vld [vmem:[%s5256_s0 + $0x80] sm:$0xff]  ;;  %v3164_v50 = vld [vmem:[%s5256_s0 + $0x148] sm:$0xff] }
 0x107   :  { %v1903_v11 = vmul.f32 %v4046_v55, %v1697_v3  ;;  %3087 = vmatmul.msk.bf16.gmra.mxu2 %vm760_vm1, %v3188_v58  ;;  %v1955_v13 = vmul.f32 %v4046_v55, %v1749_v4  ;;  %3113 = vmatmul.msk.bf16.gmra.mxu3 %vm760_vm1, %v3214_v60 }
 0x108   :  { %3732 = vst [vmem:[%s5260_s5 + $0x30] sm:$0xff] %v3260_v7   ;;  %3037 = vmatmul.msk.bf16.gmra.mxu0 %vm760_vm1, %v3138_v63  ;;  %3062 = vmatmul.msk.bf16.gmra.mxu1 %vm760_vm1, %v3163_v1  ;;  %v1598_v18 = vmax.f32 %v1115_v9, 0.0  ;;  %v1648_v19 = vmax.f32 %v1240_v10, 0.0 }
 0x109   :  { %v2109_v15 = vadd.f32 %v4056_v0, %v1903_v11  ;;  %3757 = vst [vmem:[%s5260_s5 + $0xf8] sm:$0xff] %v3385_v8   ;;  %v2161_v16 = vadd.f32 %v4056_v0, %v1955_v13 }
 0x10a   :  { %v1364_v17 = vpop.f32.mrf.mxu2  ;;  %v1494_v20 = vpop.f32.mrf.mxu3  ;;  %v1804_v27 = vmul.f32 %v4046_v55, %v1598_v18  ;;  %v1854_v28 = vmul.f32 %v4046_v55, %v1648_v19 }
 0x10b   :  { %v3510_v21 = vpack.c.bf16 %v2109_v15, %v2108_v14  ;;  %v3640_v22 = vpack.c.bf16 %v2161_v16, %v2160_v12  ;;  %v1495_v23 = vadd.f32 %v4028_v43, %v1494_v20  ;;  %v1365_v24 = vadd.f32 %v4028_v43, %v1364_v17 }
 0x10c   :  { %v2010_v35 = vadd.f32 %v4056_v0, %v1804_v27  ;;  %v2060_v36 = vadd.f32 %v4056_v0, %v1854_v28 }
 0x10d   :  { %3782 = vst [vmem:[%s5260_s5 + $0x1c0] sm:$0xff] %v3510_v21   ;;  %v1116_v25 = vpop.f32.mrf.mxu0  ;;  %v1241_v26 = vpop.f32.mrf.mxu1  ;;  %v1750_v31 = vmax.f32 %v1495_v23, 0.0  ;;  %v1698_v34 = vmax.f32 %v1365_v24, 0.0 }
 0x10e   :  { %3808 = vst [vmem:[%s5260_s5 + $0x290] sm:$0xff] %v3640_v22   ;;  %v1117_v29 = vadd.f32 %v4028_v43, %v1116_v25  ;;  %v1242_v30 = vadd.f32 %v4028_v43, %v1241_v26 }
 0x10f   :  { %v1956_v42 = vmul.f32 %v4046_v55, %v1750_v31  ;;  %v1904_v51 = vmul.f32 %v4046_v55, %v1698_v34 }
 0x110   :  { %v1599_v32 = vmax.f32 %v1117_v29, 0.0  ;;  %v1649_v33 = vmax.f32 %v1242_v30, 0.0  ;;  %v3190_v30 = vld [vmem:[%s5256_s0 + $0x218] sm:$0xff] }
 0x111   :  { %v2162_v62 = vadd.f32 %v4056_v0, %v1956_v42  ;;  %v2110_v1 = vadd.f32 %v4056_v0, %v1904_v51 }
 0x112   :  { %v1366_v37 = vpop.f32.mrf.mxu2  ;;  %v1805_v38 = vmul.f32 %v4046_v55, %v1599_v32  ;;  %v1855_v39 = vmul.f32 %v4046_v55, %v1649_v33  ;;  %v1496_v40 = vpop.f32.mrf.mxu3  ;;  %v3216_v32 = vld [vmem:[%s5256_s0 + $0x2e8] sm:$0xff] }
 0x113   :  { %v1367_v41 = vadd.f32 %v4028_v43, %v1366_v37  ;;  %v1497_v45 = vadd.f32 %v4028_v43, %v1496_v40 }
 0x114   :  { %v2011_v47 = vadd.f32 %v4056_v0, %v1805_v38  ;;  %v2061_v48 = vadd.f32 %v4056_v0, %v1855_v39 }
 0x115   :  { %v1699_v52 = vmax.f32 %v1367_v41, 0.0  ;;  %v1751_v53 = vmax.f32 %v1497_v45, 0.0  ;;  %v1119_v54 = vpop.f32.mrf.mxu0  ;;  %v1244_v56 = vpop.f32.mrf.mxu1 }
 0x116   :  { %v3265_v57 = vpack.c.bf16 %v2011_v47, %v2010_v35  ;;  %v3390_v58 = vpack.c.bf16 %v2061_v48, %v2060_v36  ;;  %v1120_v59 = vadd.f32 %v4028_v43, %v1119_v54  ;;  %v1245_v60 = vadd.f32 %v4028_v43, %v1244_v56  ;;  %v3140_v35 = vld [vmem:[%s5256_s0 + $0x88] sm:$0xff]  ;;  %v3165_v36 = vld [vmem:[%s5256_s0 + $0x150] sm:$0xff] }
 0x117   :  { %v1905_v61 = vmul.f32 %v4046_v55, %v1699_v52  ;;  %3088 = vmatmul.msk.bf16.gmra.mxu2 %vm760_vm1, %v3189_v44  ;;  %v1957_v63 = vmul.f32 %v4046_v55, %v1751_v53  ;;  %3114 = vmatmul.msk.bf16.gmra.mxu3 %vm760_vm1, %v3215_v46 }
 0x118   :  { %3733 = vst [vmem:[%s5260_s5 + $0x38] sm:$0xff] %v3265_v57   ;;  %3038 = vmatmul.msk.bf16.gmra.mxu0 %vm760_vm1, %v3139_v49  ;;  %3063 = vmatmul.msk.bf16.gmra.mxu1 %vm760_vm1, %v3164_v50  ;;  %v1600_v5 = vmax.f32 %v1120_v59, 0.0  ;;  %v1650_v6 = vmax.f32 %v1245_v60, 0.0  ;;  %v4517_v59 = vld [vmem:[%s5257_s2] ss:$0 sm:$0xff] }
 0x119   :  { %v2111_v2 = vadd.f32 %v4056_v0, %v1905_v61  ;;  %3758 = vst [vmem:[%s5260_s5 + $0x100] sm:$0xff] %v3390_v58   ;;  %v2163_v3 = vadd.f32 %v4056_v0, %v1957_v63 }
 0x11a   :  { %v1369_v4 = vpop.f32.mrf.mxu2  ;;  %v1499_v7 = vpop.f32.mrf.mxu3  ;;  %v1806_v14 = vmul.f32 %v4046_v55, %v1600_v5  ;;  %v1856_v15 = vmul.f32 %v4046_v55, %v1650_v6 }
 0x11b   :  { %v3515_v8 = vpack.c.bf16 %v2111_v2, %v2110_v1  ;;  %v3645_v9 = vpack.c.bf16 %v2163_v3, %v2162_v62  ;;  %v1500_v10 = vadd.f32 %v4028_v43, %v1499_v7  ;;  %v1370_v11 = vadd.f32 %v4028_v43, %v1369_v4 }
 0x11c   :  { %v2012_v22 = vadd.f32 %v4056_v0, %v1806_v14  ;;  %v2062_v23 = vadd.f32 %v4056_v0, %v1856_v15 }
 0x11d   :  { %3783 = vst [vmem:[%s5260_s5 + $0x1c8] sm:$0xff] %v3515_v8   ;;  %v1121_v12 = vpop.f32.mrf.mxu0  ;;  %v1246_v13 = vpop.f32.mrf.mxu1  ;;  %v1752_v18 = vmax.f32 %v1500_v10, 0.0  ;;  %v1700_v21 = vmax.f32 %v1370_v11, 0.0 }
 0x11e   :  { %3809 = vst [vmem:[%s5260_s5 + $0x298] sm:$0xff] %v3645_v9   ;;  %v1122_v16 = vadd.f32 %v4028_v43, %v1121_v12  ;;  %v1247_v17 = vadd.f32 %v4028_v43, %v1246_v13  ;;  %v4536_v12 = vld [vmem:[%s5258_s3] ss:$0 sm:$0xff] }
 0x11f   :  { %v1958_v29 = vmul.f32 %v4046_v55, %v1752_v18  ;;  %v1906_v37 = vmul.f32 %v4046_v55, %v1700_v21  ;;  %v3217_v18 = vld [vmem:[%s5256_s0 + $0x2f0] sm:$0xff] }
 0x120   :  { %v1601_v19 = vmax.f32 %v1122_v16, 0.0  ;;  %v1651_v20 = vmax.f32 %v1247_v17, 0.0  ;;  %v3191_v17 = vld [vmem:[%s5256_s0 + $0x220] sm:$0xff] }
 0x121   :  { %v2164_v48 = vadd.f32 %v4056_v0, %v1958_v29 }
 0x122   :  { %v1371_v24 = vpop.f32.mrf.mxu2  ;;  %v1807_v25 = vmul.f32 %v4046_v55, %v1601_v19  ;;  %v1857_v26 = vmul.f32 %v4046_v55, %v1651_v20  ;;  %v1501_v27 = vpop.f32.mrf.mxu3  ;;  %v4552_v19 = vld [vmem:[%s5259_s4] ss:$0 sm:$0xff] }
 0x123   :  { %v1372_v28 = vadd.f32 %v4028_v43, %v1371_v24  ;;  %v1502_v31 = vadd.f32 %v4028_v43, %v1501_v27 }
 0x124   :  { %v2013_v33 = vadd.f32 %v4056_v0, %v1807_v25  ;;  %v2063_v34 = vadd.f32 %v4056_v0, %v1857_v26 }
 0x125   :  { %v1701_v38 = vmax.f32 %v1372_v28, 0.0  ;;  %v1753_v39 = vmax.f32 %v1502_v31, 0.0  ;;  %v1124_v40 = vpop.f32.mrf.mxu0  ;;  %v1249_v41 = vpop.f32.mrf.mxu1 }
 0x126   :  { %v3270_v42 = vpack.c.bf16 %v2013_v33, %v2012_v22  ;;  %v3395_v44 = vpack.c.bf16 %v2063_v34, %v2062_v23  ;;  %v1125_v45 = vadd.f32 %v4028_v43, %v1124_v40  ;;  %v1250_v46 = vadd.f32 %v4028_v43, %v1249_v41  ;;  %v3141_v22 = vld [vmem:[%s5256_s0 + $0x90] sm:$0xff]  ;;  %v3166_v23 = vld [vmem:[%s5256_s0 + $0x158] sm:$0xff] }
 0x127   :  { %v1907_v47 = vmul.f32 %v4046_v55, %v1701_v38  ;;  %3089 = vmatmul.msk.bf16.gmra.mxu2 %vm760_vm1, %v3190_v30  ;;  %v1959_v49 = vmul.f32 %v4046_v55, %v1753_v39  ;;  %3115 = vmatmul.msk.bf16.gmra.mxu3 %vm760_vm1, %v3216_v32  ;;  %v2112_v43 = vadd.f32 %v4056_v0, %v1906_v37 }
 0x128   :  { %3734 = vst [vmem:[%s5260_s5 + $0x40] sm:$0xff] %v3270_v42   ;;  %3039 = vmatmul.msk.bf16.gmra.mxu0 %vm760_vm1, %v3140_v35  ;;  %3064 = vmatmul.msk.bf16.gmra.mxu1 %vm760_vm1, %v3165_v36  ;;  %v1602_v53 = vmax.f32 %v1125_v45, 0.0  ;;  %v1652_v54 = vmax.f32 %v1250_v46, 0.0 }
 0x129   :  { %v2113_v50 = vadd.f32 %v4056_v0, %v1907_v47  ;;  %3759 = vst [vmem:[%s5260_s5 + $0x108] sm:$0xff] %v3395_v44   ;;  %v2165_v51 = vadd.f32 %v4056_v0, %v1959_v49 }
 0x12a   :  { %v1374_v52 = vpop.f32.mrf.mxu2  ;;  %v1504_v56 = vpop.f32.mrf.mxu3  ;;  %v1808_v1 = vmul.f32 %v4046_v55, %v1602_v53  ;;  %v1858_v2 = vmul.f32 %v4046_v55, %v1652_v54 }
 0x12b   :  { %v3520_v57 = vpack.c.bf16 %v2113_v50, %v2112_v43  ;;  %v3650_v58 = vpack.c.bf16 %v2165_v51, %v2164_v48  ;;  %v1505_v60 = vadd.f32 %v4517_v59, %v1504_v56  ;;  %v1375_v61 = vadd.f32 %v4517_v59, %v1374_v52 }
 0x12c   :  { %v2014_v9 = vadd.f32 %v4056_v0, %v1808_v1  ;;  %v2064_v10 = vadd.f32 %v4056_v0, %v1858_v2 }
 0x12d   :  { %3784 = vst [vmem:[%s5260_s5 + $0x1d0] sm:$0xff] %v3520_v57   ;;  %v1126_v62 = vpop.f32.mrf.mxu0  ;;  %v1251_v63 = vpop.f32.mrf.mxu1  ;;  %v1754_v5 = vmax.f32 %v1505_v60, 0.0  ;;  %v1702_v8 = vmax.f32 %v1375_v61, 0.0 }
 0x12e   :  { %3810 = vst [vmem:[%s5260_s5 + $0x2a0] sm:$0xff] %v3650_v58   ;;  %v1127_v3 = vadd.f32 %v4517_v59, %v1126_v62  ;;  %v1252_v4 = vadd.f32 %v4517_v59, %v1251_v63 }
 0x12f   :  { %v1960_v16 = vmul.f32 %v4536_v12, %v1754_v5  ;;  %v1908_v24 = vmul.f32 %v4536_v12, %v1702_v8 }
 0x130   :  { %v1603_v6 = vmax.f32 %v1127_v3, 0.0  ;;  %v1653_v7 = vmax.f32 %v1252_v4, 0.0  ;;  %v3192_v4 = vld [vmem:[%s5256_s0 + $0x228] sm:$0xff] }
 0x131   :  { %v2166_v34 = vadd.f32 %v4552_v19, %v1960_v16  ;;  %v2114_v36 = vadd.f32 %v4552_v19, %v1908_v24 }
 0x132   :  { %v1376_v11 = vpop.f32.mrf.mxu2  ;;  %v1809_v55 = vmul.f32 %v4536_v12, %v1603_v6  ;;  %v1859_v13 = vmul.f32 %v4536_v12, %v1653_v7  ;;  %v1506_v14 = vpop.f32.mrf.mxu3  ;;  %v3218_v6 = vld [vmem:[%s5256_s0 + $0x2f8] sm:$0xff] }
 0x133   :  { %v1377_v15 = vadd.f32 %v4517_v59, %v1376_v11  ;;  %v1507_v0 = vadd.f32 %v4517_v59, %v1506_v14 }
 0x134   :  { %v2015_v20 = vadd.f32 %v4552_v19, %v1809_v55  ;;  %v2065_v21 = vadd.f32 %v4552_v19, %v1859_v13 }
 0x135   :  { %v1703_v25 = vmax.f32 %v1377_v15, 0.0  ;;  %v1755_v26 = vmax.f32 %v1507_v0, 0.0  ;;  %v1129_v27 = vpop.f32.mrf.mxu0  ;;  %v1254_v28 = vpop.f32.mrf.mxu1 }
 0x136   :  { %v3275_v29 = vpack.c.bf16 %v2015_v20, %v2014_v9  ;;  %v3400_v30 = vpack.c.bf16 %v2065_v21, %v2064_v10  ;;  %v1130_v31 = vadd.f32 %v4517_v59, %v1129_v27  ;;  %v1255_v32 = vadd.f32 %v4517_v59, %v1254_v28  ;;  %v3142_v9 = vld [vmem:[%s5256_s0 + $0x98] sm:$0xff]  ;;  %v3167_v10 = vld [vmem:[%s5256_s0 + $0x160] sm:$0xff] }
 0x137   :  { %v1909_v33 = vmul.f32 %v4536_v12, %v1703_v25  ;;  %3090 = vmatmul.msk.bf16.gmra.mxu2 %vm760_vm1, %v3191_v17  ;;  %v1961_v35 = vmul.f32 %v4536_v12, %v1755_v26  ;;  %3116 = vmatmul.msk.bf16.gmra.mxu3 %vm760_vm1, %v3217_v18 }
 0x138   :  { %3735 = vst [vmem:[%s5260_s5 + $0x48] sm:$0xff] %v3275_v29   ;;  %3040 = vmatmul.msk.bf16.gmra.mxu0 %vm760_vm1, %v3141_v22  ;;  %3065 = vmatmul.msk.bf16.gmra.mxu1 %vm760_vm1, %v3166_v23  ;;  %v1604_v40 = vmax.f32 %v1130_v31, 0.0  ;;  %v1654_v41 = vmax.f32 %v1255_v32, 0.0 }
 0x139   :  { %v2115_v37 = vadd.f32 %v4552_v19, %v1909_v33  ;;  %3760 = vst [vmem:[%s5260_s5 + $0x110] sm:$0xff] %v3400_v30   ;;  %v2167_v38 = vadd.f32 %v4552_v19, %v1961_v35 }
 0x13a   :  { %v1379_v39 = vpop.f32.mrf.mxu2  ;;  %v1509_v42 = vpop.f32.mrf.mxu3  ;;  %v1810_v43 = vmul.f32 %v4536_v12, %v1604_v40  ;;  %v1860_v50 = vmul.f32 %v4536_v12, %v1654_v41 }
 0x13b   :  { %v3525_v44 = vpack.c.bf16 %v2115_v37, %v2114_v36  ;;  %v3655_v45 = vpack.c.bf16 %v2167_v38, %v2166_v34  ;;  %v1510_v46 = vadd.f32 %v4517_v59, %v1509_v42  ;;  %v1380_v47 = vadd.f32 %v4517_v59, %v1379_v39 }
 0x13c   :  { %v2016_v58 = vadd.f32 %v4552_v19, %v1810_v43  ;;  %v2066_v60 = vadd.f32 %v4552_v19, %v1860_v50 }
 0x13d   :  { %3785 = vst [vmem:[%s5260_s5 + $0x1d8] sm:$0xff] %v3525_v44   ;;  %v1131_v48 = vpop.f32.mrf.mxu0  ;;  %v1256_v49 = vpop.f32.mrf.mxu1  ;;  %v1756_v53 = vmax.f32 %v1510_v46, 0.0  ;;  %v1704_v57 = vmax.f32 %v1380_v47, 0.0 }
 0x13e   :  { %3811 = vst [vmem:[%s5260_s5 + $0x2a8] sm:$0xff] %v3655_v45   ;;  %v1132_v51 = vadd.f32 %v4517_v59, %v1131_v48  ;;  %v1257_v52 = vadd.f32 %v4517_v59, %v1256_v49 }
 0x13f   :  { %v1962_v3 = vmul.f32 %v4536_v12, %v1756_v53  ;;  %v1910_v11 = vmul.f32 %v4536_v12, %v1704_v57 }
 0x140   :  { %v1605_v54 = vmax.f32 %v1132_v51, 0.0  ;;  %v1655_v56 = vmax.f32 %v1257_v52, 0.0  ;;  %v3193_v52 = vld [vmem:[%s5256_s0 + $0x230] sm:$0xff] }
 0x141   :  { %v2168_v21 = vadd.f32 %v4552_v19, %v1962_v3  ;;  %v2116_v23 = vadd.f32 %v4552_v19, %v1910_v11 }
 0x142   :  { %v1381_v61 = vpop.f32.mrf.mxu2  ;;  %v1811_v62 = vmul.f32 %v4536_v12, %v1605_v54  ;;  %v1861_v63 = vmul.f32 %v4536_v12, %v1655_v56  ;;  %v1511_v1 = vpop.f32.mrf.mxu3  ;;  %v3219_v54 = vld [vmem:[%s5256_s0 + $0x300] sm:$0xff] }
 0x143   :  { %v1382_v2 = vadd.f32 %v4517_v59, %v1381_v61  ;;  %v1512_v5 = vadd.f32 %v4517_v59, %v1511_v1 }
 0x144   :  { %v2017_v7 = vadd.f32 %v4552_v19, %v1811_v62  ;;  %v2067_v8 = vadd.f32 %v4552_v19, %v1861_v63 }
 0x145   :  { %v1705_v55 = vmax.f32 %v1382_v2, 0.0  ;;  %v1757_v13 = vmax.f32 %v1512_v5, 0.0  ;;  %v1134_v14 = vpop.f32.mrf.mxu0  ;;  %v1259_v15 = vpop.f32.mrf.mxu1 }
 0x146   :  { %v3280_v16 = vpack.c.bf16 %v2017_v7, %v2016_v58  ;;  %v3405_v17 = vpack.c.bf16 %v2067_v8, %v2066_v60  ;;  %v1135_v0 = vadd.f32 %v4517_v59, %v1134_v14  ;;  %v1260_v18 = vadd.f32 %v4517_v59, %v1259_v15  ;;  %v3143_v58 = vld [vmem:[%s5256_s0 + $0xa0] sm:$0xff]  ;;  %v3168_v60 = vld [vmem:[%s5256_s0 + $0x168] sm:$0xff] }
 0x147   :  { %v1911_v20 = vmul.f32 %v4536_v12, %v1705_v55  ;;  %3091 = vmatmul.msk.bf16.gmra.mxu2 %vm760_vm1, %v3192_v4  ;;  %v1963_v22 = vmul.f32 %v4536_v12, %v1757_v13  ;;  %3117 = vmatmul.msk.bf16.gmra.mxu3 %vm760_vm1, %v3218_v6 }
 0x148   :  { %3736 = vst [vmem:[%s5260_s5 + $0x50] sm:$0xff] %v3280_v16   ;;  %3041 = vmatmul.msk.bf16.gmra.mxu0 %vm760_vm1, %v3142_v9  ;;  %3066 = vmatmul.msk.bf16.gmra.mxu1 %vm760_vm1, %v3167_v10  ;;  %v1606_v27 = vmax.f32 %v1135_v0, 0.0  ;;  %v1656_v28 = vmax.f32 %v1260_v18, 0.0 }
 0x149   :  { %v2117_v24 = vadd.f32 %v4552_v19, %v1911_v20  ;;  %3761 = vst [vmem:[%s5260_s5 + $0x118] sm:$0xff] %v3405_v17   ;;  %v2169_v25 = vadd.f32 %v4552_v19, %v1963_v22 }
 0x14a   :  { %v1384_v26 = vpop.f32.mrf.mxu2  ;;  %v1514_v29 = vpop.f32.mrf.mxu3  ;;  %v1812_v36 = vmul.f32 %v4536_v12, %v1606_v27  ;;  %v1862_v37 = vmul.f32 %v4536_v12, %v1656_v28 }
 0x14b   :  { %v3530_v30 = vpack.c.bf16 %v2117_v24, %v2116_v23  ;;  %v3660_v31 = vpack.c.bf16 %v2169_v25, %v2168_v21  ;;  %v1515_v32 = vadd.f32 %v4517_v59, %v1514_v29  ;;  %v1385_v33 = vadd.f32 %v4517_v59, %v1384_v26 }
 0x14c   :  { %v2018_v45 = vadd.f32 %v4552_v19, %v1812_v36  ;;  %v2068_v46 = vadd.f32 %v4552_v19, %v1862_v37 }
 0x14d   :  { %3786 = vst [vmem:[%s5260_s5 + $0x1e0] sm:$0xff] %v3530_v30   ;;  %v1136_v34 = vpop.f32.mrf.mxu0  ;;  %v1261_v35 = vpop.f32.mrf.mxu1  ;;  %v1758_v40 = vmax.f32 %v1515_v32, 0.0  ;;  %v1706_v44 = vmax.f32 %v1385_v33, 0.0 }
 0x14e   :  { %3812 = vst [vmem:[%s5260_s5 + $0x2b0] sm:$0xff] %v3660_v31   ;;  %v1137_v38 = vadd.f32 %v4517_v59, %v1136_v34  ;;  %v1262_v39 = vadd.f32 %v4517_v59, %v1261_v35 }
 0x14f   :  { %v1964_v51 = vmul.f32 %v4536_v12, %v1758_v40  ;;  %v1912_v61 = vmul.f32 %v4536_v12, %v1706_v44 }
 0x150   :  { %v1607_v41 = vmax.f32 %v1137_v38, 0.0  ;;  %v1657_v42 = vmax.f32 %v1262_v39, 0.0  ;;  %v3194_v39 = vld [vmem:[%s5256_s0 + $0x238] sm:$0xff] }
 0x151   :  { %v2170_v8 = vadd.f32 %v4552_v19, %v1964_v51  ;;  %v2118_v10 = vadd.f32 %v4552_v19, %v1912_v61 }
 0x152   :  { %v1386_v47 = vpop.f32.mrf.mxu2  ;;  %v1813_v48 = vmul.f32 %v4536_v12, %v1607_v41  ;;  %v1863_v49 = vmul.f32 %v4536_v12, %v1657_v42  ;;  %v1516_v43 = vpop.f32.mrf.mxu3  ;;  %v3220_v41 = vld [vmem:[%s5256_s0 + $0x308] sm:$0xff] }
 0x153   :  { %v1387_v50 = vadd.f32 %v4517_v59, %v1386_v47  ;;  %v1517_v53 = vadd.f32 %v4517_v59, %v1516_v43 }
 0x154   :  { %v2019_v56 = vadd.f32 %v4552_v19, %v1813_v48  ;;  %v2069_v57 = vadd.f32 %v4552_v19, %v1863_v49 }
 0x155   :  { %v1707_v62 = vmax.f32 %v1387_v50, 0.0  ;;  %v1759_v63 = vmax.f32 %v1517_v53, 0.0  ;;  %v1139_v1 = vpop.f32.mrf.mxu0  ;;  %v1264_v2 = vpop.f32.mrf.mxu1 }
 0x156   :  { %v3285_v3 = vpack.c.bf16 %v2019_v56, %v2018_v45  ;;  %v3410_v4 = vpack.c.bf16 %v2069_v57, %v2068_v46  ;;  %v1140_v5 = vadd.f32 %v4517_v59, %v1139_v1  ;;  %v1265_v6 = vadd.f32 %v4517_v59, %v1264_v2  ;;  %v3144_v45 = vld [vmem:[%s5256_s0 + $0xa8] sm:$0xff]  ;;  %v3169_v46 = vld [vmem:[%s5256_s0 + $0x170] sm:$0xff] }
 0x157   :  { %v1913_v7 = vmul.f32 %v4536_v12, %v1707_v62  ;;  %3092 = vmatmul.msk.bf16.gmra.mxu2 %vm760_vm1, %v3193_v52  ;;  %v1965_v9 = vmul.f32 %v4536_v12, %v1759_v63  ;;  %3118 = vmatmul.msk.bf16.gmra.mxu3 %vm760_vm1, %v3219_v54 }
 0x158   :  { %3737 = vst [vmem:[%s5260_s5 + $0x58] sm:$0xff] %v3285_v3   ;;  %3042 = vmatmul.msk.bf16.gmra.mxu0 %vm760_vm1, %v3143_v58  ;;  %3067 = vmatmul.msk.bf16.gmra.mxu1 %vm760_vm1, %v3168_v60  ;;  %v1608_v14 = vmax.f32 %v1140_v5, 0.0  ;;  %v1658_v15 = vmax.f32 %v1265_v6, 0.0 }
 0x159   :  { %v2119_v11 = vadd.f32 %v4552_v19, %v1913_v7  ;;  %3762 = vst [vmem:[%s5260_s5 + $0x120] sm:$0xff] %v3410_v4   ;;  %v2171_v55 = vadd.f32 %v4552_v19, %v1965_v9 }
 0x15a   :  { %v1389_v13 = vpop.f32.mrf.mxu2  ;;  %v1519_v16 = vpop.f32.mrf.mxu3  ;;  %v1814_v23 = vmul.f32 %v4536_v12, %v1608_v14  ;;  %v1864_v24 = vmul.f32 %v4536_v12, %v1658_v15 }
 0x15b   :  { %v3535_v17 = vpack.c.bf16 %v2119_v11, %v2118_v10  ;;  %v3665_v0 = vpack.c.bf16 %v2171_v55, %v2170_v8  ;;  %v1520_v18 = vadd.f32 %v4517_v59, %v1519_v16  ;;  %v1390_v20 = vadd.f32 %v4517_v59, %v1389_v13 }
 0x15c   :  { %v2020_v31 = vadd.f32 %v4552_v19, %v1814_v23  ;;  %v2070_v32 = vadd.f32 %v4552_v19, %v1864_v24 }
 0x15d   :  { %3787 = vst [vmem:[%s5260_s5 + $0x1e8] sm:$0xff] %v3535_v17   ;;  %v1141_v21 = vpop.f32.mrf.mxu0  ;;  %v1266_v22 = vpop.f32.mrf.mxu1  ;;  %v1760_v27 = vmax.f32 %v1520_v18, 0.0  ;;  %v1708_v30 = vmax.f32 %v1390_v20, 0.0 }
 0x15e   :  { %3813 = vst [vmem:[%s5260_s5 + $0x2b8] sm:$0xff] %v3665_v0   ;;  %v1142_v25 = vadd.f32 %v4517_v59, %v1141_v21  ;;  %v1267_v26 = vadd.f32 %v4517_v59, %v1266_v22 }
 0x15f   :  { %v1966_v38 = vmul.f32 %v4536_v12, %v1760_v27  ;;  %v1914_v47 = vmul.f32 %v4536_v12, %v1708_v30 }
 0x160   :  { %v1609_v28 = vmax.f32 %v1142_v25, 0.0  ;;  %v1659_v29 = vmax.f32 %v1267_v26, 0.0  ;;  %v3195_v26 = vld [vmem:[%s5256_s0 + $0x240] sm:$0xff] }
 0x161   :  { %v2172_v57 = vadd.f32 %v4552_v19, %v1966_v38  ;;  %v2120_v60 = vadd.f32 %v4552_v19, %v1914_v47 }
 0x162   :  { %v1391_v33 = vpop.f32.mrf.mxu2  ;;  %v1815_v34 = vmul.f32 %v4536_v12, %v1609_v28  ;;  %v1865_v35 = vmul.f32 %v4536_v12, %v1659_v29  ;;  %v1521_v36 = vpop.f32.mrf.mxu3  ;;  %v3221_v28 = vld [vmem:[%s5256_s0 + $0x310] sm:$0xff] }
 0x163   :  { %v1392_v37 = vadd.f32 %v4517_v59, %v1391_v33  ;;  %v1522_v40 = vadd.f32 %v4517_v59, %v1521_v36 }
 0x164   :  { %v2021_v42 = vadd.f32 %v4552_v19, %v1815_v34  ;;  %v2071_v44 = vadd.f32 %v4552_v19, %v1865_v35 }
 0x165   :  { %v1709_v48 = vmax.f32 %v1392_v37, 0.0  ;;  %v1761_v49 = vmax.f32 %v1522_v40, 0.0  ;;  %v1144_v43 = vpop.f32.mrf.mxu0  ;;  %v1269_v50 = vpop.f32.mrf.mxu1 }
 0x166   :  { %v3290_v51 = vpack.c.bf16 %v2021_v42, %v2020_v31  ;;  %v3415_v52 = vpack.c.bf16 %v2071_v44, %v2070_v32  ;;  %v1145_v53 = vadd.f32 %v4517_v59, %v1144_v43  ;;  %v1270_v54 = vadd.f32 %v4517_v59, %v1269_v50  ;;  %v3145_v31 = vld [vmem:[%s5256_s0 + $0xb0] sm:$0xff]  ;;  %v3170_v32 = vld [vmem:[%s5256_s0 + $0x178] sm:$0xff] }
 0x167   :  { %v1915_v56 = vmul.f32 %v4536_v12, %v1709_v48  ;;  %3093 = vmatmul.msk.bf16.gmra.mxu2 %vm760_vm1, %v3194_v39  ;;  %v1967_v58 = vmul.f32 %v4536_v12, %v1761_v49  ;;  %3119 = vmatmul.msk.bf16.gmra.mxu3 %vm760_vm1, %v3220_v41 }
 0x168   :  { %3738 = vst [vmem:[%s5260_s5 + $0x60] sm:$0xff] %v3290_v51   ;;  %3043 = vmatmul.msk.bf16.gmra.mxu0 %vm760_vm1, %v3144_v45  ;;  %3068 = vmatmul.msk.bf16.gmra.mxu1 %vm760_vm1, %v3169_v46  ;;  %v1610_v1 = vmax.f32 %v1145_v53, 0.0  ;;  %v1660_v2 = vmax.f32 %v1270_v54, 0.0 }
 0x169   :  { %v2121_v61 = vadd.f32 %v4552_v19, %v1915_v56  ;;  %3763 = vst [vmem:[%s5260_s5 + $0x128] sm:$0xff] %v3415_v52   ;;  %v2173_v62 = vadd.f32 %v4552_v19, %v1967_v58 }
 0x16a   :  { %v1394_v63 = vpop.f32.mrf.mxu2  ;;  %v1524_v3 = vpop.f32.mrf.mxu3  ;;  %v1816_v10 = vmul.f32 %v4536_v12, %v1610_v1  ;;  %v1866_v11 = vmul.f32 %v4536_v12, %v1660_v2 }
 0x16b   :  { %v3540_v4 = vpack.c.bf16 %v2121_v61, %v2120_v60  ;;  %v3670_v5 = vpack.c.bf16 %v2173_v62, %v2172_v57  ;;  %v1525_v6 = vadd.f32 %v4517_v59, %v1524_v3  ;;  %v1395_v7 = vadd.f32 %v4517_v59, %v1394_v63 }
 0x16c   :  { %v2022_v0 = vadd.f32 %v4552_v19, %v1816_v10  ;;  %v2072_v18 = vadd.f32 %v4552_v19, %v1866_v11 }
 0x16d   :  { %3788 = vst [vmem:[%s5260_s5 + $0x1f0] sm:$0xff] %v3540_v4   ;;  %v1146_v8 = vpop.f32.mrf.mxu0  ;;  %v1271_v9 = vpop.f32.mrf.mxu1  ;;  %v1762_v14 = vmax.f32 %v1525_v6, 0.0  ;;  %v1710_v17 = vmax.f32 %v1395_v7, 0.0 }
 0x16e   :  { %3814 = vst [vmem:[%s5260_s5 + $0x2c0] sm:$0xff] %v3670_v5   ;;  %v1147_v55 = vadd.f32 %v4517_v59, %v1146_v8  ;;  %v1272_v13 = vadd.f32 %v4517_v59, %v1271_v9 }
 0x16f   :  { %v1968_v25 = vmul.f32 %v4536_v12, %v1762_v14  ;;  %v1916_v33 = vmul.f32 %v4536_v12, %v1710_v17 }
 0x170   :  { %v1611_v15 = vmax.f32 %v1147_v55, 0.0  ;;  %v1661_v16 = vmax.f32 %v1272_v13, 0.0  ;;  %v3196_v13 = vld [vmem:[%s5256_s0 + $0x248] sm:$0xff] }
 0x171   :  { %v2174_v44 = vadd.f32 %v4552_v19, %v1968_v25  ;;  %v2122_v46 = vadd.f32 %v4552_v19, %v1916_v33 }
 0x172   :  { %v1396_v20 = vpop.f32.mrf.mxu2  ;;  %v1817_v21 = vmul.f32 %v4536_v12, %v1611_v15  ;;  %v1867_v22 = vmul.f32 %v4536_v12, %v1661_v16  ;;  %v1526_v23 = vpop.f32.mrf.mxu3  ;;  %v3222_v15 = vld [vmem:[%s5256_s0 + $0x318] sm:$0xff] }
 0x173   :  { %v1397_v24 = vadd.f32 %v4517_v59, %v1396_v20  ;;  %v1527_v27 = vadd.f32 %v4517_v59, %v1526_v23 }
 0x174   :  { %v2023_v29 = vadd.f32 %v4552_v19, %v1817_v21  ;;  %v2073_v30 = vadd.f32 %v4552_v19, %v1867_v22 }
 0x175   :  { %v1711_v34 = vmax.f32 %v1397_v24, 0.0  ;;  %v1763_v35 = vmax.f32 %v1527_v27, 0.0  ;;  %v1149_v36 = vpop.f32.mrf.mxu0  ;;  %v1274_v37 = vpop.f32.mrf.mxu1 }
 0x176   :  { %v3295_v38 = vpack.c.bf16 %v2023_v29, %v2022_v0  ;;  %v3420_v39 = vpack.c.bf16 %v2073_v30, %v2072_v18  ;;  %v1150_v40 = vadd.f32 %v4517_v59, %v1149_v36  ;;  %v1275_v41 = vadd.f32 %v4517_v59, %v1274_v37  ;;  %v3146_v0 = vld [vmem:[%s5256_s0 + $0xb8] sm:$0xff]  ;;  %v3171_v18 = vld [vmem:[%s5256_s0 + $0x180] sm:$0xff] }
 0x177   :  { %v1917_v42 = vmul.f32 %v4536_v12, %v1711_v34  ;;  %3094 = vmatmul.msk.bf16.gmra.mxu2 %vm760_vm1, %v3195_v26  ;;  %v1969_v45 = vmul.f32 %v4536_v12, %v1763_v35  ;;  %3120 = vmatmul.msk.bf16.gmra.mxu3 %vm760_vm1, %v3221_v28 }
 0x178   :  { %3739 = vst [vmem:[%s5260_s5 + $0x68] sm:$0xff] %v3295_v38   ;;  %3044 = vmatmul.msk.bf16.gmra.mxu0 %vm760_vm1, %v3145_v31  ;;  %3069 = vmatmul.msk.bf16.gmra.mxu1 %vm760_vm1, %v3170_v32  ;;  %v1612_v43 = vmax.f32 %v1150_v40, 0.0  ;;  %v1662_v50 = vmax.f32 %v1275_v41, 0.0 }
 0x179   :  { %v2123_v47 = vadd.f32 %v4552_v19, %v1917_v42  ;;  %3764 = vst [vmem:[%s5260_s5 + $0x130] sm:$0xff] %v3420_v39   ;;  %v2175_v48 = vadd.f32 %v4552_v19, %v1969_v45 }
 0x17a   :  { %v1399_v49 = vpop.f32.mrf.mxu2  ;;  %v1529_v51 = vpop.f32.mrf.mxu3  ;;  %v1818_v60 = vmul.f32 %v4536_v12, %v1612_v43  ;;  %v1868_v61 = vmul.f32 %v4536_v12, %v1662_v50 }
 0x17b   :  { %v3545_v52 = vpack.c.bf16 %v2123_v47, %v2122_v46  ;;  %v3675_v53 = vpack.c.bf16 %v2175_v48, %v2174_v44  ;;  %v1530_v54 = vadd.f32 %v4517_v59, %v1529_v51  ;;  %v1400_v56 = vadd.f32 %v4517_v59, %v1399_v49 }
 0x17c   :  { %v2024_v5 = vadd.f32 %v4552_v19, %v1818_v60  ;;  %v2074_v6 = vadd.f32 %v4552_v19, %v1868_v61 }
 0x17d   :  { %3789 = vst [vmem:[%s5260_s5 + $0x1f8] sm:$0xff] %v3545_v52   ;;  %v1151_v57 = vpop.f32.mrf.mxu0  ;;  %v1276_v58 = vpop.f32.mrf.mxu1  ;;  %v1764_v1 = vmax.f32 %v1530_v54, 0.0  ;;  %v1712_v4 = vmax.f32 %v1400_v56, 0.0  ;;  %v3008_v52 = vld [vmem:[%s5256_s0 + $0x320] sm:$0xf] }
 0x17e   :  { %3815 = vst [vmem:[%s5260_s5 + $0x2c8] sm:$0xff] %v3675_v53   ;;  %v1152_v62 = vadd.f32 %v4517_v59, %v1151_v57  ;;  %v1277_v63 = vadd.f32 %v4517_v59, %v1276_v58  ;;  %v3223_v53 = vld [vmem:[%s5256_s0 + $0x320] sm:$0x10] }
 0x17f   :  { %v1970_v55 = vmul.f32 %v4536_v12, %v1764_v1  ;;  %v1918_v20 = vmul.f32 %v4536_v12, %v1712_v4  ;;  %v3009_v4 = vor.u32 %v3223_v53, %v3008_v52 }
 0x180   :  { %v1613_v2 = vmax.f32 %v1152_v62, 0.0  ;;  %v1663_v3 = vmax.f32 %v1277_v63, 0.0 }
 0x181   :  { %v2176_v30 = vadd.f32 %v4552_v19, %v1970_v55  ;;  %v2124_v32 = vadd.f32 %v4552_v19, %v1918_v20 }
 0x182   :  { %v1401_v7 = vpop.f32.mrf.mxu2  ;;  %v1819_v8 = vmul.f32 %v4536_v12, %v1613_v2  ;;  %v1869_v9 = vmul.f32 %v4536_v12, %v1663_v3  ;;  %v1531_v10 = vpop.f32.mrf.mxu3  ;;  %v3197_v2 = vld [vmem:[%s5256_s0 + $0x250] sm:$0xff] }
 0x183   :  { %v1402_v11 = vadd.f32 %v4517_v59, %v1401_v7  ;;  %v1532_v14 = vadd.f32 %v4517_v59, %v1531_v10  ;;  %v3147_v7 = vld [vmem:[%s5256_s0 + $0xc0] sm:$0xff] }
 0x184   :  { %v2025_v16 = vadd.f32 %v4552_v19, %v1819_v8  ;;  %v2075_v17 = vadd.f32 %v4552_v19, %v1869_v9  ;;  %v3172_v8 = vld [vmem:[%s5256_s0 + $0x188] sm:$0xff] }
 0x185   :  { %v1713_v21 = vmax.f32 %v1402_v11, 0.0  ;;  %v1765_v22 = vmax.f32 %v1532_v14, 0.0  ;;  %v1154_v23 = vpop.f32.mrf.mxu0  ;;  %v1279_v24 = vpop.f32.mrf.mxu1 }
 0x186   :  { %v3300_v25 = vpack.c.bf16 %v2025_v16, %v2024_v5  ;;  %v3425_v26 = vpack.c.bf16 %v2075_v17, %v2074_v6  ;;  %v1155_v27 = vadd.f32 %v4517_v59, %v1154_v23  ;;  %v1280_v28 = vadd.f32 %v4517_v59, %v1279_v24 }
 0x187   :  { %v1919_v29 = vmul.f32 %v4536_v12, %v1713_v21  ;;  %3095 = vmatmul.msk.bf16.gmra.mxu2 %vm760_vm1, %v3196_v13  ;;  %v1971_v31 = vmul.f32 %v4536_v12, %v1765_v22  ;;  %3121 = vmatmul.msk.bf16.gmra.mxu3 %vm760_vm1, %v3222_v15 }
 0x188   :  { %3740 = vst [vmem:[%s5260_s5 + $0x70] sm:$0xff] %v3300_v25   ;;  %3045 = vmatmul.msk.bf16.gmra.mxu0 %vm760_vm1, %v3146_v0  ;;  %3070 = vmatmul.msk.bf16.gmra.mxu1 %vm760_vm1, %v3171_v18  ;;  %v1614_v36 = vmax.f32 %v1155_v27, 0.0  ;;  %v1664_v37 = vmax.f32 %v1280_v28, 0.0 }
 0x189   :  { %v2125_v33 = vadd.f32 %v4552_v19, %v1919_v29  ;;  %3765 = vst [vmem:[%s5260_s5 + $0x138] sm:$0xff] %v3425_v26   ;;  %v2177_v34 = vadd.f32 %v4552_v19, %v1971_v31 }
 0x18a   :  { %v1404_v35 = vpop.f32.mrf.mxu2  ;;  %v1534_v38 = vpop.f32.mrf.mxu3  ;;  %v1820_v46 = vmul.f32 %v4536_v12, %v1614_v36  ;;  %v1870_v47 = vmul.f32 %v4536_v12, %v1664_v37 }
 0x18b   :  { %v3550_v39 = vpack.c.bf16 %v2125_v33, %v2124_v32  ;;  %v3680_v40 = vpack.c.bf16 %v2177_v34, %v2176_v30  ;;  %v1535_v41 = vadd.f32 %v4517_v59, %v1534_v38  ;;  %v1405_v42 = vadd.f32 %v4517_v59, %v1404_v35 }
 0x18c   :  { %v2026_v56 = vadd.f32 %v4552_v19, %v1820_v46  ;;  %v2076_v57 = vadd.f32 %v4552_v19, %v1870_v47 }
 0x18d   :  { %3790 = vst [vmem:[%s5260_s5 + $0x200] sm:$0xff] %v3550_v39   ;;  %v1156_v44 = vpop.f32.mrf.mxu0  ;;  %v1281_v45 = vpop.f32.mrf.mxu1  ;;  %v1766_v43 = vmax.f32 %v1535_v41, 0.0  ;;  %v1714_v54 = vmax.f32 %v1405_v42, 0.0 }
 0x18e   :  { %3816 = vst [vmem:[%s5260_s5 + $0x2d0] sm:$0xff] %v3680_v40   ;;  %v1157_v48 = vadd.f32 %v4517_v59, %v1156_v44  ;;  %v1282_v49 = vadd.f32 %v4517_v59, %v1281_v45 }
 0x18f   :  { %v1972_v1 = vmul.f32 %v4536_v12, %v1766_v43  ;;  %v1920_v9 = vmul.f32 %v4536_v12, %v1714_v54 }
 0x190   :  { %v1615_v50 = vmax.f32 %v1157_v48, 0.0  ;;  %v1665_v51 = vmax.f32 %v1282_v49, 0.0 }
 0x191   :  { %v2178_v18 = vadd.f32 %v4552_v19, %v1972_v1  ;;  %v2126_v21 = vadd.f32 %v4552_v19, %v1920_v9 }
 0x192   :  { %v1406_v58 = vpop.f32.mrf.mxu2  ;;  %v1821_v60 = vmul.f32 %v4536_v12, %v1615_v50  ;;  %v1871_v61 = vmul.f32 %v4536_v12, %v1665_v51  ;;  %v1536_v62 = vpop.f32.mrf.mxu3  ;;  %v3198_v50 = vld [vmem:[%s5256_s0 + $0x258] sm:$0xff] }
 0x193   :  { %v1407_v63 = vadd.f32 %v4517_v59, %v1406_v58  ;;  %v1537_v3 = vadd.f32 %v4517_v59, %v1536_v62 }
 0x194   :  { %v2027_v5 = vadd.f32 %v4552_v19, %v1821_v60  ;;  %v2077_v6 = vadd.f32 %v4552_v19, %v1871_v61 }
 0x195   :  { %v1715_v10 = vmax.f32 %v1407_v63, 0.0  ;;  %v1767_v11 = vmax.f32 %v1537_v3, 0.0  ;;  %v1159_v55 = vpop.f32.mrf.mxu0  ;;  %v1284_v13 = vpop.f32.mrf.mxu1 }
 0x196   :  { %v3305_v14 = vpack.c.bf16 %v2027_v5, %v2026_v56  ;;  %v3430_v15 = vpack.c.bf16 %v2077_v6, %v2076_v57  ;;  %v1160_v16 = vadd.f32 %v4517_v59, %v1159_v55  ;;  %v1285_v17 = vadd.f32 %v4517_v59, %v1284_v13 }
 0x197   :  { %v1921_v0 = vmul.f32 %v4536_v12, %v1715_v10  ;;  %3096 = vmatmul.msk.bf16.gmra.mxu2 %vm760_vm1, %v3197_v2  ;;  %v1973_v20 = vmul.f32 %v4536_v12, %v1767_v11  ;;  %3122 = vmatmul.msk.bf16.gmra.mxu3 %vm760_vm1, %v3009_v4 }
 0x198   :  { %3741 = vst [vmem:[%s5260_s5 + $0x78] sm:$0xff] %v3305_v14   ;;  %3046 = vmatmul.msk.bf16.gmra.mxu0 %vm760_vm1, %v3147_v7  ;;  %3071 = vmatmul.msk.bf16.gmra.mxu1 %vm760_vm1, %v3172_v8  ;;  %v1616_v25 = vmax.f32 %v1160_v16, 0.0  ;;  %v1666_v26 = vmax.f32 %v1285_v17, 0.0 }
 0x199   :  { %v2127_v22 = vadd.f32 %v4552_v19, %v1921_v0  ;;  %3766 = vst [vmem:[%s5260_s5 + $0x140] sm:$0xff] %v3430_v15   ;;  %v2179_v23 = vadd.f32 %v4552_v19, %v1973_v20 }
 0x19a   :  { %v1409_v24 = vpop.f32.mrf.mxu2  ;;  %v1539_v27 = vpop.f32.mrf.mxu3  ;;  %v1822_v34 = vmul.f32 %v4536_v12, %v1616_v25  ;;  %v1872_v35 = vmul.f32 %v4536_v12, %v1666_v26 }
 0x19b   :  { %v3555_v28 = vpack.c.bf16 %v2127_v22, %v2126_v21  ;;  %v3685_v29 = vpack.c.bf16 %v2179_v23, %v2178_v18  ;;  %v1540_v30 = vadd.f32 %v4517_v59, %v1539_v27  ;;  %v1410_v31 = vadd.f32 %v4517_v59, %v1409_v24 }
 0x19c   :  { %v2028_v42 = vadd.f32 %v4552_v19, %v1822_v34  ;;  %v2078_v44 = vadd.f32 %v4552_v19, %v1872_v35 }
 0x19d   :  { %3791 = vst [vmem:[%s5260_s5 + $0x208] sm:$0xff] %v3555_v28   ;;  %v1161_v32 = vpop.f32.mrf.mxu0  ;;  %v1286_v33 = vpop.f32.mrf.mxu1  ;;  %v1768_v38 = vmax.f32 %v1540_v30, 0.0  ;;  %v1716_v41 = vmax.f32 %v1410_v31, 0.0 }
 0x19e   :  { %3817 = vst [vmem:[%s5260_s5 + $0x2d8] sm:$0xff] %v3685_v29   ;;  %v1162_v36 = vadd.f32 %v4517_v59, %v1161_v32  ;;  %v1287_v37 = vadd.f32 %v4517_v59, %v1286_v33 }
 0x19f   :  { %v1974_v43 = vmul.f32 %v4536_v12, %v1768_v38  ;;  %v1922_v54 = vmul.f32 %v4536_v12, %v1716_v41 }
 0x1a0   :  { %v1617_v39 = vmax.f32 %v1162_v36, 0.0  ;;  %v1667_v40 = vmax.f32 %v1287_v37, 0.0 }
 0x1a1   :  { %v2180_v3 = vadd.f32 %v4552_v19, %v1974_v43  ;;  %v2128_v5 = vadd.f32 %v4552_v19, %v1922_v54 }
 0x1a2   :  { %v1411_v45 = vpop.f32.mrf.mxu2  ;;  %v1823_v46 = vmul.f32 %v4536_v12, %v1617_v39  ;;  %v1873_v47 = vmul.f32 %v4536_v12, %v1667_v40  ;;  %v1541_v48 = vpop.f32.mrf.mxu3 }
 0x1a3   :  { %v1412_v49 = vadd.f32 %v4517_v59, %v1411_v45  ;;  %v1542_v51 = vadd.f32 %v4517_v59, %v1541_v48 }
 0x1a4   :  { %v2029_v52 = vadd.f32 %v4552_v19, %v1823_v46  ;;  %v2079_v53 = vadd.f32 %v4552_v19, %v1873_v47 }
 0x1a5   :  { %v1717_v56 = vmax.f32 %v1412_v49, 0.0  ;;  %v1769_v57 = vmax.f32 %v1542_v51, 0.0  ;;  %v1164_v58 = vpop.f32.mrf.mxu0  ;;  %v1289_v60 = vpop.f32.mrf.mxu1 }
 0x1a6   :  { %v3310_v61 = vpack.c.bf16 %v2029_v52, %v2028_v42  ;;  %v3435_v62 = vpack.c.bf16 %v2079_v53, %v2078_v44  ;;  %v1165_v63 = vadd.f32 %v4517_v59, %v1164_v58  ;;  %v1290_v1 = vadd.f32 %v4517_v59, %v1289_v60 }
 0x1a7   :  { %v1923_v2 = vmul.f32 %v4536_v12, %v1717_v56  ;;  %3097 = vmatmul.msk.bf16.gmra.mxu2 %vm760_vm1, %v3198_v50  ;;  %v1975_v4 = vmul.f32 %v4536_v12, %v1769_v57 }
 0x1a8   :  { %3742 = vst [vmem:[%s5260_s5 + $0x80] sm:$0xff] %v3310_v61   ;;  %v1618_v9 = vmax.f32 %v1165_v63, 0.0  ;;  %v1668_v10 = vmax.f32 %v1290_v1, 0.0 }
 0x1a9   :  { %v2129_v6 = vadd.f32 %v4552_v19, %v1923_v2  ;;  %3767 = vst [vmem:[%s5260_s5 + $0x148] sm:$0xff] %v3435_v62   ;;  %v2181_v7 = vadd.f32 %v4552_v19, %v1975_v4 }
 0x1aa   :  { %v1414_v8 = vpop.f32.mrf.mxu2  ;;  %v1544_v11 = vpop.f32.mrf.mxu3  ;;  %v1824_v0 = vmul.f32 %v4536_v12, %v1618_v9  ;;  %v1874_v18 = vmul.f32 %v4536_v12, %v1668_v10 }
 0x1ab   :  { %v3560_v55 = vpack.c.bf16 %v2129_v6, %v2128_v5  ;;  %v3690_v13 = vpack.c.bf16 %v2181_v7, %v2180_v3  ;;  %v1545_v14 = vadd.f32 %v4517_v59, %v1544_v11  ;;  %v1415_v15 = vadd.f32 %v4517_v59, %v1414_v8 }
 0x1ac   :  { %v2030_v26 = vadd.f32 %v4552_v19, %v1824_v0  ;;  %v2080_v27 = vadd.f32 %v4552_v19, %v1874_v18 }
 0x1ad   :  { %3792 = vst [vmem:[%s5260_s5 + $0x210] sm:$0xff] %v3560_v55   ;;  %v1166_v16 = vpop.f32.mrf.mxu0  ;;  %v1291_v17 = vpop.f32.mrf.mxu1  ;;  %v1770_v22 = vmax.f32 %v1545_v14, 0.0  ;;  %v1718_v25 = vmax.f32 %v1415_v15, 0.0  ;;  %v4991_v15 = vld [vmem:[%s5257_s2] ss:$0 sm:$0xff] }
 0x1ae   :  { %3818 = vst [vmem:[%s5260_s5 + $0x2e0] sm:$0xff] %v3690_v13   ;;  %v1167_v20 = vadd.f32 %v4517_v59, %v1166_v16  ;;  %v1292_v21 = vadd.f32 %v4517_v59, %v1291_v17 }
 0x1af   :  { %v1976_v33 = vmul.f32 %v4536_v12, %v1770_v22  ;;  %v1924_v37 = vmul.f32 %v4536_v12, %v1718_v25 }
 0x1b0   :  { %v1619_v23 = vmax.f32 %v1167_v20, 0.0  ;;  %v1669_v24 = vmax.f32 %v1292_v21, 0.0 }
 0x1b1   :  { %v2182_v48 = vadd.f32 %v4552_v19, %v1976_v33  ;;  %v2130_v43 = vadd.f32 %v4552_v19, %v1924_v37 }
 0x1b2   :  { %v1416_v28 = vpop.f32.mrf.mxu2  ;;  %v1825_v29 = vmul.f32 %v4536_v12, %v1619_v23  ;;  %v1875_v30 = vmul.f32 %v4536_v12, %v1669_v24  ;;  %v1546_v31 = vpop.f32.mrf.mxu3 }
 0x1b3   :  { %v1417_v32 = vadd.f32 %v4517_v59, %v1416_v28  ;;  %v1547_v34 = vadd.f32 %v4517_v59, %v1546_v31 }
 0x1b4   :  { %v2031_v35 = vadd.f32 %v4552_v19, %v1825_v29  ;;  %v2081_v36 = vadd.f32 %v4552_v19, %v1875_v30 }
 0x1b5   :  { %v1719_v38 = vmax.f32 %v1417_v32, 0.0  ;;  %v1771_v39 = vmax.f32 %v1547_v34, 0.0  ;;  %v1169_v40 = vpop.f32.mrf.mxu0  ;;  %v1294_v41 = vpop.f32.mrf.mxu1 }
 0x1b6   :  { %v3315_v42 = vpack.c.bf16 %v2031_v35, %v2030_v26  ;;  %v3440_v44 = vpack.c.bf16 %v2081_v36, %v2080_v27  ;;  %v1170_v45 = vadd.f32 %v4517_v59, %v1169_v40  ;;  %v1295_v46 = vadd.f32 %v4517_v59, %v1294_v41 }
 0x1b7   :  { %v1925_v47 = vmul.f32 %v4536_v12, %v1719_v38  ;;  %v1977_v49 = vmul.f32 %v4536_v12, %v1771_v39 }
 0x1b8   :  { %3743 = vst [vmem:[%s5260_s5 + $0x88] sm:$0xff] %v3315_v42   ;;  %v1620_v53 = vmax.f32 %v1170_v45, 0.0  ;;  %v1670_v54 = vmax.f32 %v1295_v46, 0.0 }
 0x1b9   :  { %v2131_v50 = vadd.f32 %v4552_v19, %v1925_v47  ;;  %3768 = vst [vmem:[%s5260_s5 + $0x150] sm:$0xff] %v3440_v44   ;;  %v2183_v51 = vadd.f32 %v4552_v19, %v1977_v49 }
 0x1ba   :  { %v1419_v52 = vpop.f32.mrf.mxu2  ;;  %v1549_v56 = vpop.f32.mrf.mxu3  ;;  %v1826_v1 = vmul.f32 %v4536_v12, %v1620_v53  ;;  %v1876_v2 = vmul.f32 %v4536_v12, %v1670_v54 }
 0x1bb   :  { %v3565_v57 = vpack.c.bf16 %v2131_v50, %v2130_v43  ;;  %v3695_v58 = vpack.c.bf16 %v2183_v51, %v2182_v48  ;;  %v1550_v60 = vadd.f32 %v4517_v59, %v1549_v56  ;;  %v1420_v61 = vadd.f32 %v4517_v59, %v1419_v52  ;;  %v5033_v52 = vld [vmem:[%s5259_s4] ss:$0 sm:$0xff] }
 0x1bc   :  { %v2032_v9 = vadd.f32 %v4552_v19, %v1826_v1  ;;  %v2082_v10 = vadd.f32 %v4552_v19, %v1876_v2 }
 0x1bd   :  { %3793 = vst [vmem:[%s5260_s5 + $0x218] sm:$0xff] %v3565_v57   ;;  %v1171_v62 = vpop.f32.mrf.mxu0  ;;  %v1296_v63 = vpop.f32.mrf.mxu1  ;;  %v1772_v5 = vmax.f32 %v1550_v60, 0.0  ;;  %v1720_v8 = vmax.f32 %v1420_v61, 0.0 }
 0x1be   :  { %3819 = vst [vmem:[%s5260_s5 + $0x2e8] sm:$0xff] %v3695_v58   ;;  %v1172_v3 = vadd.f32 %v4517_v59, %v1171_v62  ;;  %v1297_v4 = vadd.f32 %v4517_v59, %v1296_v63 }
 0x1bf   :  { %v1978_v16 = vmul.f32 %v4536_v12, %v1772_v5  ;;  %v1926_v20 = vmul.f32 %v4536_v12, %v1720_v8 }
 0x1c0   :  { %v1621_v6 = vmax.f32 %v1172_v3, 0.0  ;;  %v1671_v7 = vmax.f32 %v1297_v4, 0.0 }
 0x1c1   :  { %v2184_v30 = vadd.f32 %v4552_v19, %v1978_v16  ;;  %v2132_v32 = vadd.f32 %v4552_v19, %v1926_v20 }
 0x1c2   :  { %v1421_v11 = vpop.f32.mrf.mxu2  ;;  %v1827_v55 = vmul.f32 %v4536_v12, %v1621_v6  ;;  %v1877_v13 = vmul.f32 %v4536_v12, %v1671_v7  ;;  %v1551_v14 = vpop.f32.mrf.mxu3 }
 0x1c3   :  { %v1422_v59 = vadd.f32 %v4991_v15, %v1421_v11  ;;  %v1552_v17 = vadd.f32 %v4991_v15, %v1551_v14 }
 0x1c4   :  { %v2033_v0 = vadd.f32 %v4552_v19, %v1827_v55  ;;  %v2083_v18 = vadd.f32 %v4552_v19, %v1877_v13 }
 0x1c5   :  { %v1721_v21 = vmax.f32 %v1422_v59, 0.0  ;;  %v1773_v22 = vmax.f32 %v1552_v17, 0.0  ;;  %v1174_v23 = vpop.f32.mrf.mxu0  ;;  %v1299_v24 = vpop.f32.mrf.mxu1 }
 0x1c6   :  { %v3320_v25 = vpack.c.bf16 %v2033_v0, %v2032_v9  ;;  %v3445_v26 = vpack.c.bf16 %v2083_v18, %v2082_v10  ;;  %v1175_v27 = vadd.f32 %v4991_v15, %v1174_v23  ;;  %v1300_v28 = vadd.f32 %v4991_v15, %v1299_v24 }
 0x1c7   :  { %v1927_v29 = vmul.f32 %v4536_v12, %v1721_v21  ;;  %v1979_v31 = vmul.f32 %v4536_v12, %v1773_v22 }
 0x1c8   :  { %3744 = vst [vmem:[%s5260_s5 + $0x90] sm:$0xff] %v3320_v25   ;;  %v1622_v36 = vmax.f32 %v1175_v27, 0.0  ;;  %v1672_v37 = vmax.f32 %v1300_v28, 0.0 }
 0x1c9   :  { %v2133_v33 = vadd.f32 %v4552_v19, %v1927_v29  ;;  %3769 = vst [vmem:[%s5260_s5 + $0x158] sm:$0xff] %v3445_v26   ;;  %v2185_v34 = vadd.f32 %v4552_v19, %v1979_v31  ;;  %v5024_v19 = vld [vmem:[%s5258_s3] ss:$0 sm:$0xff] }
 0x1ca   :  { %v1424_v35 = vpop.f32.mrf.mxu2  ;;  %v1554_v38 = vpop.f32.mrf.mxu3  ;;  %v1828_v45 = vmul.f32 %v5024_v19, %v1622_v36  ;;  %v1878_v46 = vmul.f32 %v5024_v19, %v1672_v37 }
 0x1cb   :  { %v3570_v39 = vpack.c.bf16 %v2133_v33, %v2132_v32  ;;  %v3700_v12 = vpack.c.bf16 %v2185_v34, %v2184_v30  ;;  %v1555_v40 = vadd.f32 %v4991_v15, %v1554_v38  ;;  %v1425_v41 = vadd.f32 %v4991_v15, %v1424_v35 }
 0x1cc   :  { %v2034_v53 = vadd.f32 %v5033_v52, %v1828_v45  ;;  %v2084_v54 = vadd.f32 %v5033_v52, %v1878_v46 }
 0x1cd   :  { %3794 = vst [vmem:[%s5260_s5 + $0x220] sm:$0xff] %v3570_v39   ;;  %v1176_v42 = vpop.f32.mrf.mxu0  ;;  %v1301_v44 = vpop.f32.mrf.mxu1  ;;  %v1774_v49 = vmax.f32 %v1555_v40, 0.0  ;;  %v1722_v51 = vmax.f32 %v1425_v41, 0.0 }
 0x1ce   :  { %3820 = vst [vmem:[%s5260_s5 + $0x2f0] sm:$0xff] %v3700_v12   ;;  %v1177_v47 = vadd.f32 %v4991_v15, %v1176_v42  ;;  %v1302_v48 = vadd.f32 %v4991_v15, %v1301_v44 }
 0x1cf   :  { %v1980_v62 = vmul.f32 %v5024_v19, %v1774_v49  ;;  %v1928_v3 = vmul.f32 %v5024_v19, %v1722_v51 }
 0x1d0   :  { %v1623_v43 = vmax.f32 %v1177_v47, 0.0  ;;  %v1673_v50 = vmax.f32 %v1302_v48, 0.0 }
 0x1d1   :  { %v2186_v13 = vadd.f32 %v5033_v52, %v1980_v62  ;;  %v2134_v59 = vadd.f32 %v5033_v52, %v1928_v3 }
 0x1d2   :  { %v1426_v56 = vpop.f32.mrf.mxu2  ;;  %v1829_v57 = vmul.f32 %v5024_v19, %v1623_v43  ;;  %v1879_v58 = vmul.f32 %v5024_v19, %v1673_v50  ;;  %v1556_v60 = vpop.f32.mrf.mxu3 }
 0x1d3   :  { %v1427_v61 = vadd.f32 %v4991_v15, %v1426_v56  ;;  %v1557_v63 = vadd.f32 %v4991_v15, %v1556_v60 }
 0x1d4   :  { %v2035_v1 = vadd.f32 %v5033_v52, %v1829_v57  ;;  %v2085_v2 = vadd.f32 %v5033_v52, %v1879_v58 }
 0x1d5   :  { %v1723_v4 = vmax.f32 %v1427_v61, 0.0  ;;  %v1775_v5 = vmax.f32 %v1557_v63, 0.0  ;;  %v1179_v6 = vpop.f32.mrf.mxu0  ;;  %v1304_v7 = vpop.f32.mrf.mxu1 }
 0x1d6   :  { %v3325_v8 = vpack.c.bf16 %v2035_v1, %v2034_v53  ;;  %v3450_v9 = vpack.c.bf16 %v2085_v2, %v2084_v54  ;;  %v1180_v10 = vadd.f32 %v4991_v15, %v1179_v6  ;;  %v1305_v11 = vadd.f32 %v4991_v15, %v1304_v7 }
 0x1d7   :  { %v1929_v55 = vmul.f32 %v5024_v19, %v1723_v4  ;;  %v1981_v14 = vmul.f32 %v5024_v19, %v1775_v5 }
 0x1d8   :  { %3745 = vst [vmem:[%s5260_s5 + $0x98] sm:$0xff] %v3325_v8   ;;  %v1624_v18 = vmax.f32 %v1180_v10, 0.0  ;;  %v1674_v20 = vmax.f32 %v1305_v11, 0.0 }
 0x1d9   :  { %v2135_v16 = vadd.f32 %v5033_v52, %v1929_v55  ;;  %3770 = vst [vmem:[%s5260_s5 + $0x160] sm:$0xff] %v3450_v9   ;;  %v2187_v17 = vadd.f32 %v5033_v52, %v1981_v14 }
 0x1da   :  { %v1429_v0 = vpop.f32.mrf.mxu2  ;;  %v1559_v21 = vpop.f32.mrf.mxu3  ;;  %v1830_v28 = vmul.f32 %v5024_v19, %v1624_v18  ;;  %v1880_v29 = vmul.f32 %v5024_v19, %v1674_v20 }
 0x1db   :  { %v3575_v22 = vpack.c.bf16 %v2135_v16, %v2134_v59  ;;  %v3705_v23 = vpack.c.bf16 %v2187_v17, %v2186_v13  ;;  %v1560_v24 = vadd.f32 %v4991_v15, %v1559_v21  ;;  %v1430_v25 = vadd.f32 %v4991_v15, %v1429_v0 }
 0x1dc   :  { %v2036_v36 = vadd.f32 %v5033_v52, %v1830_v28  ;;  %v2086_v37 = vadd.f32 %v5033_v52, %v1880_v29 }
 0x1dd   :  { %3795 = vst [vmem:[%s5260_s5 + $0x228] sm:$0xff] %v3575_v22   ;;  %v1181_v26 = vpop.f32.mrf.mxu0  ;;  %v1306_v27 = vpop.f32.mrf.mxu1  ;;  %v1776_v32 = vmax.f32 %v1560_v24, 0.0  ;;  %v1724_v35 = vmax.f32 %v1430_v25, 0.0 }
 0x1de   :  { %3821 = vst [vmem:[%s5260_s5 + $0x2f8] sm:$0xff] %v3705_v23   ;;  %v1182_v30 = vadd.f32 %v4991_v15, %v1181_v26  ;;  %v1307_v31 = vadd.f32 %v4991_v15, %v1306_v27 }
 0x1df   :  { %v1982_v42 = vmul.f32 %v5024_v19, %v1776_v32  ;;  %v1930_v47 = vmul.f32 %v5024_v19, %v1724_v35 }
 0x1e0   :  { %v1625_v33 = vmax.f32 %v1182_v30, 0.0  ;;  %v1675_v34 = vmax.f32 %v1307_v31, 0.0 }
 0x1e1   :  { %v2188_v58 = vadd.f32 %v5033_v52, %v1982_v42  ;;  %v2136_v61 = vadd.f32 %v5033_v52, %v1930_v47 }
 0x1e2   :  { %v1431_v38 = vpop.f32.mrf.mxu2  ;;  %v1831_v39 = vmul.f32 %v5024_v19, %v1625_v33  ;;  %v1881_v12 = vmul.f32 %v5024_v19, %v1675_v34  ;;  %v1561_v40 = vpop.f32.mrf.mxu3 }
 0x1e3   :  { %v1432_v41 = vadd.f32 %v4991_v15, %v1431_v38  ;;  %v1562_v44 = vadd.f32 %v4991_v15, %v1561_v40 }
 0x1e4   :  { %v2037_v45 = vadd.f32 %v5033_v52, %v1831_v39  ;;  %v2087_v46 = vadd.f32 %v5033_v52, %v1881_v12 }
 0x1e5   :  { %v1725_v48 = vmax.f32 %v1432_v41, 0.0  ;;  %v1777_v49 = vmax.f32 %v1562_v44, 0.0  ;;  %v1184_v43 = vpop.f32.mrf.mxu0  ;;  %v1309_v50 = vpop.f32.mrf.mxu1 }
 0x1e6   :  { %v3330_v51 = vpack.c.bf16 %v2037_v45, %v2036_v36  ;;  %v3455_v53 = vpack.c.bf16 %v2087_v46, %v2086_v37  ;;  %v1185_v54 = vadd.f32 %v4991_v15, %v1184_v43  ;;  %v1310_v56 = vadd.f32 %v4991_v15, %v1309_v50 }
 0x1e7   :  { %v1931_v57 = vmul.f32 %v5024_v19, %v1725_v48  ;;  %v1983_v60 = vmul.f32 %v5024_v19, %v1777_v49 }
 0x1e8   :  { %3746 = vst [vmem:[%s5260_s5 + $0xa0] sm:$0xff] %v3330_v51   ;;  %v1626_v2 = vmax.f32 %v1185_v54, 0.0  ;;  %v1676_v3 = vmax.f32 %v1310_v56, 0.0 }
 0x1e9   :  { %v2137_v62 = vadd.f32 %v5033_v52, %v1931_v57  ;;  %3771 = vst [vmem:[%s5260_s5 + $0x168] sm:$0xff] %v3455_v53   ;;  %v2189_v63 = vadd.f32 %v5033_v52, %v1983_v60 }
 0x1ea   :  { %v1434_v1 = vpop.f32.mrf.mxu2  ;;  %v1564_v4 = vpop.f32.mrf.mxu3  ;;  %v1832_v11 = vmul.f32 %v5024_v19, %v1626_v2  ;;  %v1882_v55 = vmul.f32 %v5024_v19, %v1676_v3 }
 0x1eb   :  { %v3580_v5 = vpack.c.bf16 %v2137_v62, %v2136_v61  ;;  %v3710_v6 = vpack.c.bf16 %v2189_v63, %v2188_v58  ;;  %v1565_v7 = vadd.f32 %v4991_v15, %v1564_v4  ;;  %v1435_v8 = vadd.f32 %v4991_v15, %v1434_v1 }
 0x1ec   :  { %v2038_v18 = vadd.f32 %v5033_v52, %v1832_v11  ;;  %v2088_v20 = vadd.f32 %v5033_v52, %v1882_v55 }
 0x1ed   :  { %3796 = vst [vmem:[%s5260_s5 + $0x230] sm:$0xff] %v3580_v5   ;;  %v1186_v9 = vpop.f32.mrf.mxu0  ;;  %v1311_v10 = vpop.f32.mrf.mxu1  ;;  %v1778_v59 = vmax.f32 %v1565_v7, 0.0  ;;  %v1726_v0 = vmax.f32 %v1435_v8, 0.0 }
 0x1ee   :  { %3822 = vst [vmem:[%s5260_s5 + $0x300] sm:$0xff] %v3710_v6   ;;  %v1187_v13 = vadd.f32 %v4991_v15, %v1186_v9  ;;  %v1312_v14 = vadd.f32 %v4991_v15, %v1311_v10 }
 0x1ef   :  { %v1984_v26 = vmul.f32 %v5024_v19, %v1778_v59  ;;  %v1932_v30 = vmul.f32 %v5024_v19, %v1726_v0 }
 0x1f0   :  { %v1627_v16 = vmax.f32 %v1187_v13, 0.0  ;;  %v1677_v17 = vmax.f32 %v1312_v14, 0.0 }
 0x1f1   :  { %v2190_v12 = vadd.f32 %v5033_v52, %v1984_v26  ;;  %v2138_v41 = vadd.f32 %v5033_v52, %v1932_v30 }
 0x1f2   :  { %v1436_v21 = vpop.f32.mrf.mxu2  ;;  %v1833_v22 = vmul.f32 %v5024_v19, %v1627_v16  ;;  %v1883_v23 = vmul.f32 %v5024_v19, %v1677_v17  ;;  %v1566_v24 = vpop.f32.mrf.mxu3 }
 0x1f3   :  { %v1437_v25 = vadd.f32 %v4991_v15, %v1436_v21  ;;  %v1567_v27 = vadd.f32 %v4991_v15, %v1566_v24 }
 0x1f4   :  { %v2039_v28 = vadd.f32 %v5033_v52, %v1833_v22  ;;  %v2089_v29 = vadd.f32 %v5033_v52, %v1883_v23 }
 0x1f5   :  { %v1727_v31 = vmax.f32 %v1437_v25, 0.0  ;;  %v1779_v32 = vmax.f32 %v1567_v27, 0.0  ;;  %v1189_v33 = vpop.f32.mrf.mxu0  ;;  %v1314_v34 = vpop.f32.mrf.mxu1 }
 0x1f6   :  { %v3335_v35 = vpack.c.bf16 %v2039_v28, %v2038_v18  ;;  %v3460_v36 = vpack.c.bf16 %v2089_v29, %v2088_v20  ;;  %v1190_v37 = vadd.f32 %v4991_v15, %v1189_v33  ;;  %v1315_v38 = vadd.f32 %v4991_v15, %v1314_v34 }
 0x1f7   :  { %v1933_v39 = vmul.f32 %v5024_v19, %v1727_v31  ;;  %v1985_v40 = vmul.f32 %v5024_v19, %v1779_v32 }
 0x1f8   :  { %3747 = vst [vmem:[%s5260_s5 + $0xa8] sm:$0xff] %v3335_v35   ;;  %v1628_v46 = vmax.f32 %v1190_v37, 0.0  ;;  %v1678_v47 = vmax.f32 %v1315_v38, 0.0 }
 0x1f9   :  { %v2139_v42 = vadd.f32 %v5033_v52, %v1933_v39  ;;  %3772 = vst [vmem:[%s5260_s5 + $0x170] sm:$0xff] %v3460_v36   ;;  %v2191_v44 = vadd.f32 %v5033_v52, %v1985_v40 }
 0x1fa   :  { %v1439_v45 = vpop.f32.mrf.mxu2  ;;  %v1569_v48 = vpop.f32.mrf.mxu3  ;;  %v1834_v56 = vmul.f32 %v5024_v19, %v1628_v46  ;;  %v1884_v57 = vmul.f32 %v5024_v19, %v1678_v47 }
 0x1fb   :  { %v3585_v49 = vpack.c.bf16 %v2139_v42, %v2138_v41  ;;  %v3715_v43 = vpack.c.bf16 %v2191_v44, %v2190_v12  ;;  %v1570_v50 = vadd.f32 %v4991_v15, %v1569_v48  ;;  %v1440_v51 = vadd.f32 %v4991_v15, %v1439_v45 }
 0x1fc   :  { %v2040_v2 = vadd.f32 %v5033_v52, %v1834_v56  ;;  %v2090_v3 = vadd.f32 %v5033_v52, %v1884_v57 }
 0x1fd   :  { %3797 = vst [vmem:[%s5260_s5 + $0x238] sm:$0xff] %v3585_v49   ;;  %v1191_v53 = vpop.f32.mrf.mxu0  ;;  %v1316_v54 = vpop.f32.mrf.mxu1  ;;  %v1780_v61 = vmax.f32 %v1570_v50, 0.0  ;;  %v1728_v1 = vmax.f32 %v1440_v51, 0.0 }
 0x1fe   :  { %3823 = vst [vmem:[%s5260_s5 + $0x308] sm:$0xff] %v3715_v43   ;;  %v1192_v58 = vadd.f32 %v4991_v15, %v1191_v53  ;;  %v1317_v60 = vadd.f32 %v4991_v15, %v1316_v54 }
 0x1ff   :  { %v1986_v9 = vmul.f32 %v5024_v19, %v1780_v61  ;;  %v1934_v13 = vmul.f32 %v5024_v19, %v1728_v1 }
 0x200   :  { %v1629_v62 = vmax.f32 %v1192_v58, 0.0  ;;  %v1679_v63 = vmax.f32 %v1317_v60, 0.0 }
 0x201   :  { %v2192_v23 = vadd.f32 %v5033_v52, %v1986_v9  ;;  %v2140_v25 = vadd.f32 %v5033_v52, %v1934_v13 }
 0x202   :  { %v1441_v4 = vpop.f32.mrf.mxu2  ;;  %v1835_v5 = vmul.f32 %v5024_v19, %v1629_v62  ;;  %v1885_v6 = vmul.f32 %v5024_v19, %v1679_v63  ;;  %v1571_v7 = vpop.f32.mrf.mxu3 }
 0x203   :  { %v1442_v8 = vadd.f32 %v4991_v15, %v1441_v4  ;;  %v1572_v10 = vadd.f32 %v4991_v15, %v1571_v7 }
 0x204   :  { %v2041_v11 = vadd.f32 %v5033_v52, %v1835_v5  ;;  %v2091_v55 = vadd.f32 %v5033_v52, %v1885_v6 }
 0x205   :  { %v1729_v14 = vmax.f32 %v1442_v8, 0.0  ;;  %v1781_v59 = vmax.f32 %v1572_v10, 0.0  ;;  %v1194_v16 = vpop.f32.mrf.mxu0  ;;  %v1319_v17 = vpop.f32.mrf.mxu1 }
 0x206   :  { %v3340_v0 = vpack.c.bf16 %v2041_v11, %v2040_v2  ;;  %v3465_v18 = vpack.c.bf16 %v2091_v55, %v2090_v3  ;;  %v1195_v20 = vadd.f32 %v4991_v15, %v1194_v16  ;;  %v1320_v21 = vadd.f32 %v4991_v15, %v1319_v17 }
 0x207   :  { %v1935_v22 = vmul.f32 %v5024_v19, %v1729_v14  ;;  %v1987_v24 = vmul.f32 %v5024_v19, %v1781_v59 }
 0x208   :  { %3748 = vst [vmem:[%s5260_s5 + $0xb0] sm:$0xff] %v3340_v0   ;;  %v1630_v29 = vmax.f32 %v1195_v20, 0.0  ;;  %v1680_v30 = vmax.f32 %v1320_v21, 0.0 }
 0x209   :  { %v2141_v26 = vadd.f32 %v5033_v52, %v1935_v22  ;;  %3773 = vst [vmem:[%s5260_s5 + $0x178] sm:$0xff] %v3465_v18   ;;  %v2193_v27 = vadd.f32 %v5033_v52, %v1987_v24 }
 0x20a   :  { %v1444_v28 = vpop.f32.mrf.mxu2  ;;  %v1574_v31 = vpop.f32.mrf.mxu3  ;;  %v1836_v38 = vmul.f32 %v5024_v19, %v1630_v29  ;;  %v1886_v39 = vmul.f32 %v5024_v19, %v1680_v30 }
 0x20b   :  { %v3590_v32 = vpack.c.bf16 %v2141_v26, %v2140_v25  ;;  %v3720_v33 = vpack.c.bf16 %v2193_v27, %v2192_v23  ;;  %v1575_v34 = vadd.f32 %v4991_v15, %v1574_v31  ;;  %v1445_v35 = vadd.f32 %v4991_v15, %v1444_v28 }
 0x20c   :  { %v2042_v46 = vadd.f32 %v5033_v52, %v1836_v38  ;;  %v2092_v47 = vadd.f32 %v5033_v52, %v1886_v39 }
 0x20d   :  { %3798 = vst [vmem:[%s5260_s5 + $0x240] sm:$0xff] %v3590_v32   ;;  %v1196_v36 = vpop.f32.mrf.mxu0  ;;  %v1321_v37 = vpop.f32.mrf.mxu1  ;;  %v1782_v41 = vmax.f32 %v1575_v34, 0.0  ;;  %v1730_v45 = vmax.f32 %v1445_v35, 0.0 }
 0x20e   :  { %3824 = vst [vmem:[%s5260_s5 + $0x310] sm:$0xff] %v3720_v33   ;;  %v1197_v12 = vadd.f32 %v4991_v15, %v1196_v36  ;;  %v1322_v40 = vadd.f32 %v4991_v15, %v1321_v37 }
 0x20f   :  { %v1988_v53 = vmul.f32 %v5024_v19, %v1782_v41  ;;  %v1936_v58 = vmul.f32 %v5024_v19, %v1730_v45 }
 0x210   :  { %v1631_v42 = vmax.f32 %v1197_v12, 0.0  ;;  %v1681_v44 = vmax.f32 %v1322_v40, 0.0 }
 0x211   :  { %v2194_v6 = vadd.f32 %v5033_v52, %v1988_v53  ;;  %v2142_v8 = vadd.f32 %v5033_v52, %v1936_v58 }
 0x212   :  { %v1446_v48 = vpop.f32.mrf.mxu2  ;;  %v1837_v49 = vmul.f32 %v5024_v19, %v1631_v42  ;;  %v1887_v43 = vmul.f32 %v5024_v19, %v1681_v44  ;;  %v1576_v50 = vpop.f32.mrf.mxu3 }
 0x213   :  { %v1447_v51 = vadd.f32 %v4991_v15, %v1446_v48  ;;  %v1577_v54 = vadd.f32 %v4991_v15, %v1576_v50 }
 0x214   :  { %v2043_v56 = vadd.f32 %v5033_v52, %v1837_v49  ;;  %v2093_v57 = vadd.f32 %v5033_v52, %v1887_v43 }
 0x215   :  { %v1731_v60 = vmax.f32 %v1447_v51, 0.0  ;;  %v1783_v61 = vmax.f32 %v1577_v54, 0.0  ;;  %v1199_v62 = vpop.f32.mrf.mxu0  ;;  %v1324_v63 = vpop.f32.mrf.mxu1 }
 0x216   :  { %v3345_v1 = vpack.c.bf16 %v2043_v56, %v2042_v46  ;;  %v3470_v2 = vpack.c.bf16 %v2093_v57, %v2092_v47  ;;  %v1200_v3 = vadd.f32 %v4991_v15, %v1199_v62  ;;  %v1325_v4 = vadd.f32 %v4991_v15, %v1324_v63 }
 0x217   :  { %v1937_v5 = vmul.f32 %v5024_v19, %v1731_v60  ;;  %v1989_v7 = vmul.f32 %v5024_v19, %v1783_v61 }
 0x218   :  { %3749 = vst [vmem:[%s5260_s5 + $0xb8] sm:$0xff] %v3345_v1   ;;  %v1632_v55 = vmax.f32 %v1200_v3, 0.0  ;;  %v1682_v13 = vmax.f32 %v1325_v4, 0.0 }
 0x219   :  { %v2143_v9 = vadd.f32 %v5033_v52, %v1937_v5  ;;  %3774 = vst [vmem:[%s5260_s5 + $0x180] sm:$0xff] %v3470_v2   ;;  %v2195_v10 = vadd.f32 %v5033_v52, %v1989_v7 }
 0x21a   :  { %v1449_v11 = vpop.f32.mrf.mxu2  ;;  %v1579_v14 = vpop.f32.mrf.mxu3  ;;  %v1838_v22 = vmul.f32 %v5024_v19, %v1632_v55  ;;  %v1888_v23 = vmul.f32 %v5024_v19, %v1682_v13 }
 0x21b   :  { %v3595_v59 = vpack.c.bf16 %v2143_v9, %v2142_v8  ;;  %v3725_v16 = vpack.c.bf16 %v2195_v10, %v2194_v6  ;;  %v1580_v17 = vadd.f32 %v4991_v15, %v1579_v14  ;;  %v1450_v0 = vadd.f32 %v4991_v15, %v1449_v11 }
 0x21c   :  { %v2044_v31 = vadd.f32 %v5033_v52, %v1838_v22  ;;  %v2094_v32 = vadd.f32 %v5033_v52, %v1888_v23 }
 0x21d   :  { %3799 = vst [vmem:[%s5260_s5 + $0x248] sm:$0xff] %v3595_v59   ;;  %v1784_v18 = vmax.f32 %v1580_v17, 0.0  ;;  %v1201_v20 = vpop.f32.mrf.mxu0  ;;  %v1326_v21 = vpop.f32.mrf.mxu1  ;;  %v1732_v29 = vmax.f32 %v1450_v0, 0.0 }
 0x21e   :  { %3825 = vst [vmem:[%s5260_s5 + $0x318] sm:$0xff] %v3725_v16   ;;  %v1202_v24 = vadd.f32 %v4991_v15, %v1201_v20  ;;  %v1327_v25 = vadd.f32 %v4991_v15, %v1326_v21 }
 0x21f   :  { %v1990_v26 = vmul.f32 %v5024_v19, %v1784_v18  ;;  %v1938_v41 = vmul.f32 %v5024_v19, %v1732_v29 }
 0x220   :  { %v1633_v27 = vmax.f32 %v1202_v24, 0.0  ;;  %v1683_v28 = vmax.f32 %v1327_v25, 0.0 }
 0x221   :  { %v2196_v30 = vadd.f32 %v5033_v52, %v1990_v26  ;;  %v2144_v49 = vadd.f32 %v5033_v52, %v1938_v41 }
 0x222   :  { %v1451_v33 = vpop.f32.mrf.mxu2  ;;  %v1839_v34 = vmul.f32 %v5024_v19, %v1633_v27  ;;  %v1889_v35 = vmul.f32 %v5024_v19, %v1683_v28  ;;  %v1581_v36 = vpop.f32.mrf.mxu3 }
 0x223   :  { %v1452_v37 = vadd.f32 %v4991_v15, %v1451_v33  ;;  %v2398_v38 = vpack.c.bf16 %v2196_v30, %v2196_v30  ;;  %v1582_v39 = vadd.f32 %v4991_v15, %v1581_v36 }
 0x224   :  { %v2045_v12 = vadd.f32 %v5033_v52, %v1839_v34  ;;  %v2095_v40 = vadd.f32 %v5033_v52, %v1889_v35 }
 0x225   :  { %v1733_v42 = vmax.f32 %v1452_v37, 0.0  ;;  %2600 = vst [vmem:[%s5260_s5 + $0x320] sm:$0xf] %v2398_v38  ;;  %v1785_v44 = vmax.f32 %v1582_v39, 0.0 }
 0x226   :  { %v3350_v45 = vpack.c.bf16 %v2045_v12, %v2044_v31  ;;  %v3475_v46 = vpack.c.bf16 %v2095_v40, %v2094_v32 }
 0x227   :  { %v1939_v47 = vmul.f32 %v5024_v19, %v1733_v42  ;;  %v1991_v48 = vmul.f32 %v5024_v19, %v1785_v44 }
 0x228   :  { %3750 = vst [vmem:[%s5260_s5 + $0xc0] sm:$0xff] %v3350_v45  }
 0x229   :  { %v2145_v43 = vadd.f32 %v5033_v52, %v1939_v47  ;;  %3775 = vst [vmem:[%s5260_s5 + $0x188] sm:$0xff] %v3475_v46   ;;  %v2197_v50 = vadd.f32 %v5033_v52, %v1991_v48 }
 0x22a   :  { %v1454_v51 = vpop.f32.mrf.mxu2 }
 0x22b   :  { %v3600_v53 = vpack.c.bf16 %v2145_v43, %v2144_v49  ;;  %v2399_v54 = vpack.c.bf16 %v2197_v50, %v2197_v50  ;;  %v1455_v56 = vadd.f32 %v4991_v15, %v1454_v51 }
 0x22d   :  { %3800 = vst [vmem:[%s5260_s5 + $0x250] sm:$0xff] %v3600_v53   ;;  %v1734_v57 = vmax.f32 %v1455_v56, 0.0 }
 0x22e   :  { %2601 = vst [vmem:[%s5260_s5 + $0x324] sm:$0x1] %v2399_v54 }
 0x22f   :  { %v1940_v61 = vmul.f32 %v5024_v19, %v1734_v57 }
 0x231   :  { %v2146_v1 = vadd.f32 %v5033_v52, %v1940_v61 }
 0x232   :  { %v1456_v58 = vpop.f32.mrf.mxu2 }
 0x233   :  { %v1457_v60 = vadd.f32 %v4991_v15, %v1456_v58 }
 0x235   :  { %v1735_v62 = vmax.f32 %v1457_v60, 0.0 }
 0x237   :  { %v1941_v63 = vmul.f32 %v5024_v19, %v1735_v62 }
 0x239   :  { %v2147_v2 = vadd.f32 %v5033_v52, %v1941_v63 }
 0x23b   :  { %v3605_v3 = vpack.c.bf16 %v2147_v2, %v2146_v1 }
 0x23d   :  { %3801 = vst [vmem:[%s5260_s5 + $0x258] sm:$0xff] %v3605_v3  }

// kernel: forward.8
= control target key start
LH: loop header
LB: loop body
LE: loop exit
PB: predicated region body
PF: predicated region fallthrough
CT: control target
= control target key end

     0   :  { %vm769_vm0 = vcmask 130048   ;;  %s3365_s1 = inlined_call_operand.vmem [shape: bf16[400,128], index: 1, kind: input, shape index: {}]   ;;  %s3366_s0 = inlined_call_operand.vmem [shape: bf16[374,400], index: 0, kind: input, shape index: {}]   ;;  %s3367_s2 = inlined_call_operand.vmem [shape: f32[1,128], index: 2, kind: input, shape index: {}]   ;;  %s3368_s3 = inlined_call_operand.vmem [shape: f32[1,128], index: 3, kind: input, shape index: {}]   ;;  %s3369_s4 = inlined_call_operand.vmem [shape: f32[1,128], index: 4, kind: input, shape index: {}]   ;;  %s3370_s5 = inlined_call_operand.vmem [shape: bf16[374,128], index: 5, kind: output, shape index: {}]  }
   0x1   :  { %v2192_v0 = vld [vmem:[%s3365_s1 + $0x38] sm:$0xff]  ;;  %v2191_v3 = vld [vmem:[%s3365_s1 + $0x30] sm:$0xff]  ;;  %v2190_v6 = vld [vmem:[%s3365_s1 + $0x28] sm:$0xff] }
   0x2   :  { %v2200_v1 = vld [vmem:[%s3365_s1 + $0x78] sm:$0xff]  ;;  %842 = vmatpush.bf16.msra.mxu0 %v2192_v0  ;;  %v2199_v4 = vld [vmem:[%s3365_s1 + $0x70] sm:$0xff]  ;;  %v2198_v7 = vld [vmem:[%s3365_s1 + $0x68] sm:$0xff] }
   0x3   :  { %v2208_v2 = vld [vmem:[%s3365_s1 + $0xb8] sm:$0xff]  ;;  %970 = vmatpush.bf16.msra.mxu1 %v2200_v1  ;;  %v2207_v5 = vld [vmem:[%s3365_s1 + $0xb0] sm:$0xff]  ;;  %v2209_v8 = vld [vmem:[%s3365_s1 + $0xc0] sm:$0xff] }
   0x4   :  { %1098 = vmatpush.bf16.msra.mxu2 %v2208_v2  ;;  %v2206_v9 = vld [vmem:[%s3365_s1 + $0xa8] sm:$0xff]  ;;  %v1613_v11 = vld [vmem:[%s3366_s0 + $0x18] sm:$0xf0]  ;;  %1233 = vmatpush.bf16.msra.mxu3 %v2209_v8  ;;  %v2189_v13 = vld [vmem:[%s3365_s1 + $0x20] sm:$0xff] }
   0x5   :  { %v2094_v10 = vld [vmem:[%s3366_s0 + $0xc] sm:$0xf]  ;;  %v2197_v14 = vld [vmem:[%s3365_s1 + $0x60] sm:$0xff]  ;;  %v2188_v16 = vld [vmem:[%s3365_s1 + $0x18] sm:$0xff] }
   0x6   :  { %843 = vmatpush.bf16.msra.mxu0 %v2191_v3  ;;  %v1616_v12 = vor.u32 %v2094_v10, %v1613_v11  ;;  %v2205_v15 = vld [vmem:[%s3365_s1 + $0xa0] sm:$0xff]  ;;  %v2196_v17 = vld [vmem:[%s3365_s1 + $0x58] sm:$0xff]  ;;  %v2187_v19 = vld [vmem:[%s3365_s1 + $0x10] sm:$0xff] }
   0x7   :  { %971 = vmatpush.bf16.msra.mxu1 %v2199_v4  ;;  %v2204_v18 = vld [vmem:[%s3365_s1 + $0x98] sm:$0xff]  ;;  %v2195_v20 = vld [vmem:[%s3365_s1 + $0x50] sm:$0xff]  ;;  %v2098_v22 = vld [vmem:[%s3366_s0 + $0x2c] sm:$0xf] }
   0x8   :  { %1099 = vmatpush.bf16.msra.mxu2 %v2207_v5  ;;  %2069 = vmatmul.msk.bf16.vlgmr.msra.gmra.mxu3 %vm769_vm0, %v1616_v12  ;;  %v2203_v21 = vld [vmem:[%s3365_s1 + $0x90] sm:$0xff]  ;;  %v1629_v23 = vld [vmem:[%s3366_s0 + $0x38] sm:$0xf0]  ;;  %v2186_v24 = vld [vmem:[%s3365_s1 + $0x8] sm:$0xff] }
   0x9   :  { %v2194_v25 = vld [vmem:[%s3365_s1 + $0x48] sm:$0xff]  ;;  %v1632_v27 = vor.u32 %v2098_v22, %v1629_v23  ;;  %v2185_v28 = vld [vmem:[%s3365_s1] sm:$0xff]  ;;  %v2095_v31 = vld [vmem:[%s3366_s0 + $0xc] sm:$0xf0] }
   0xa   :  { %844 = vmatpush.bf16.msra.mxu0 %v2190_v6  ;;  %v2202_v26 = vld [vmem:[%s3365_s1 + $0x88] sm:$0xff]  ;;  %v2193_v29 = vld [vmem:[%s3365_s1 + $0x40] sm:$0xff]  ;;  %v1605_v33 = vld [vmem:[%s3366_s0 + $0x10] sm:$0xf0] }
   0xb   :  { %972 = vmatpush.bf16.msra.mxu1 %v2198_v7  ;;  %v1603_v30 = vld [vmem:[%s3366_s0] sm:$0xf]  ;;  %v2093_v32 = vld [vmem:[%s3366_s0 + $0x4] sm:$0xf]  ;;  %v1611_v35 = vld [vmem:[%s3366_s0 + $0x8] sm:$0xf] }
   0xc   :  { %1100 = vmatpush.bf16.msra.mxu2 %v2206_v9  ;;  %v2201_v34 = vld [vmem:[%s3365_s1 + $0x80] sm:$0xff]  ;;  %v2096_v36 = vld [vmem:[%s3366_s0 + $0x14] sm:$0xf0]  ;;  %v1604_v37 = vor.u32 %v2095_v31, %v1603_v30  ;;  %v1608_v38 = vor.u32 %v2093_v32, %v1605_v33  ;;  %v2102_v40 = vld [vmem:[%s3366_s0 + $0x4c] sm:$0xf] }
   0xd   :  { %v1612_v39 = vor.u32 %v2096_v36, %v1611_v35  ;;  %v1645_v41 = vld [vmem:[%s3366_s0 + $0x58] sm:$0xf0]  ;;  %v1619_v43 = vld [vmem:[%s3366_s0 + $0x20] sm:$0xf]  ;;  %v2099_v44 = vld [vmem:[%s3366_s0 + $0x2c] sm:$0xf0] }
   0xe   :  { %845 = vmatpush.bf16.msra.mxu0 %v2189_v13  ;;  %v1648_v42 = vor.u32 %v2102_v40, %v1645_v41  ;;  %v2097_v45 = vld [vmem:[%s3366_s0 + $0x24] sm:$0xf]  ;;  %v1621_v46 = vld [vmem:[%s3366_s0 + $0x30] sm:$0xf0]  ;;  %v1627_v47 = vld [vmem:[%s3366_s0 + $0x28] sm:$0xf]  ;;  %v1620_v49 = vor.u32 %v2099_v44, %v1619_v43 }
   0xf   :  { %973 = vmatpush.bf16.msra.mxu1 %v2197_v14  ;;  %v2100_v48 = vld [vmem:[%s3366_s0 + $0x34] sm:$0xf0]  ;;  %v1624_v50 = vor.u32 %v2097_v45, %v1621_v46  ;;  %v2106_v52 = vld [vmem:[%s3366_s0 + $0x6c] sm:$0xf]  ;;  %v1661_v53 = vld [vmem:[%s3366_s0 + $0x78] sm:$0xf0] }
  0x10   :  { %1101 = vmatpush.bf16.msra.mxu2 %v2205_v15  ;;  %v1628_v51 = vor.u32 %v2100_v48, %v1627_v47  ;;  %v1664_v54 = vor.u32 %v2106_v52, %v1661_v53  ;;  %v1635_v55 = vld [vmem:[%s3366_s0 + $0x40] sm:$0xf]  ;;  %v2103_v56 = vld [vmem:[%s3366_s0 + $0x4c] sm:$0xf0]  ;;  %v2101_v57 = vld [vmem:[%s3366_s0 + $0x44] sm:$0xf] }
  0x11   :  { %v1637_v58 = vld [vmem:[%s3366_s0 + $0x50] sm:$0xf0]  ;;  %v1643_v59 = vld [vmem:[%s3366_s0 + $0x48] sm:$0xf]  ;;  %v2104_v60 = vld [vmem:[%s3366_s0 + $0x54] sm:$0xf0]  ;;  %v1636_v61 = vor.u32 %v2103_v56, %v1635_v55 }
  0x12   :  { %846 = vmatpush.bf16.msra.mxu0 %v2188_v16  ;;  %v1640_v62 = vor.u32 %v2101_v57, %v1637_v58  ;;  %v1644_v63 = vor.u32 %v2104_v60, %v1643_v59  ;;  %v2110_v0 = vld [vmem:[%s3366_s0 + $0x8c] sm:$0xf]  ;;  %v1677_v1 = vld [vmem:[%s3366_s0 + $0x98] sm:$0xf0]  ;;  %v1651_v3 = vld [vmem:[%s3366_s0 + $0x60] sm:$0xf] }
  0x13   :  { %974 = vmatpush.bf16.msra.mxu1 %v2196_v17  ;;  %v1680_v2 = vor.u32 %v2110_v0, %v1677_v1  ;;  %v2107_v4 = vld [vmem:[%s3366_s0 + $0x6c] sm:$0xf0]  ;;  %v2105_v5 = vld [vmem:[%s3366_s0 + $0x64] sm:$0xf]  ;;  %v1653_v6 = vld [vmem:[%s3366_s0 + $0x70] sm:$0xf0] }
  0x14   :  { %1102 = vmatpush.bf16.msra.mxu2 %v2204_v18  ;;  %v1659_v7 = vld [vmem:[%s3366_s0 + $0x68] sm:$0xf]  ;;  %v2108_v8 = vld [vmem:[%s3366_s0 + $0x74] sm:$0xf0]  ;;  %v1652_v9 = vor.u32 %v2107_v4, %v1651_v3  ;;  %v1656_v10 = vor.u32 %v2105_v5, %v1653_v6  ;;  %v2114_v12 = vld [vmem:[%s3366_s0 + $0xac] sm:$0xf] }
  0x15   :  { %v1660_v11 = vor.u32 %v2108_v8, %v1659_v7  ;;  %v1693_v13 = vld [vmem:[%s3366_s0 + $0xb8] sm:$0xf0]  ;;  %v1667_v15 = vld [vmem:[%s3366_s0 + $0x80] sm:$0xf]  ;;  %v2111_v16 = vld [vmem:[%s3366_s0 + $0x8c] sm:$0xf0] }
  0x16   :  { %847 = vmatpush.bf16.msra.mxu0 %v2187_v19  ;;  %v1696_v14 = vor.u32 %v2114_v12, %v1693_v13  ;;  %v2109_v17 = vld [vmem:[%s3366_s0 + $0x84] sm:$0xf]  ;;  %v1669_v18 = vld [vmem:[%s3366_s0 + $0x90] sm:$0xf0]  ;;  %v1675_v19 = vld [vmem:[%s3366_s0 + $0x88] sm:$0xf] }
  0x17   :  { %975 = vmatpush.bf16.msra.mxu1 %v2195_v20  ;;  %v2112_v20 = vld [vmem:[%s3366_s0 + $0x94] sm:$0xf0]  ;;  %v1672_v22 = vor.u32 %v2109_v17, %v1669_v18  ;;  %v1685_v30 = vld [vmem:[%s3366_s0 + $0xb0] sm:$0xf0]  ;;  %v1691_v31 = vld [vmem:[%s3366_s0 + $0xa8] sm:$0xf] }
  0x18   :  { %1103 = vmatpush.bf16.msra.mxu2 %v2203_v21  ;;  %2070 = vmatmul.msk.bf16.gmra.mxu3 %vm769_vm0, %v1632_v27  ;;  %v1668_v21 = vor.u32 %v2111_v16, %v1667_v15  ;;  %v1676_v23 = vor.u32 %v2112_v20, %v1675_v19  ;;  %v1683_v27 = vld [vmem:[%s3366_s0 + $0xa0] sm:$0xf]  ;;  %v2116_v32 = vld [vmem:[%s3366_s0 + $0xb4] sm:$0xf0]  ;;  %v2122_v36 = vld [vmem:[%s3366_s0 + $0xec] sm:$0xf] }
  0x19   :  { %v1692_v35 = vor.u32 %v2116_v32, %v1691_v31  ;;  %v2119_v40 = vld [vmem:[%s3366_s0 + $0xcc] sm:$0xf0]  ;;  %v2117_v41 = vld [vmem:[%s3366_s0 + $0xc4] sm:$0xf]  ;;  %v1707_v43 = vld [vmem:[%s3366_s0 + $0xc8] sm:$0xf] }
  0x1a   :  { %848 = vmatpush.bf16.msra.mxu0 %v2186_v24  ;;  %v2118_v24 = vld [vmem:[%s3366_s0 + $0xcc] sm:$0xf]  ;;  %v2120_v44 = vld [vmem:[%s3366_s0 + $0xd4] sm:$0xf0]  ;;  %v2123_v52 = vld [vmem:[%s3366_s0 + $0xec] sm:$0xf0] }
  0x1b   :  { %976 = vmatpush.bf16.msra.mxu1 %v2194_v25  ;;  %v1709_v25 = vld [vmem:[%s3366_s0 + $0xd8] sm:$0xf0]  ;;  %v1708_v47 = vor.u32 %v2120_v44, %v1707_v43  ;;  %v2126_v48 = vld [vmem:[%s3366_s0 + $0x10c] sm:$0xf]  ;;  %v2121_v53 = vld [vmem:[%s3366_s0 + $0xe4] sm:$0xf] }
  0x1c   :  { %1104 = vmatpush.bf16.msra.mxu2 %v2202_v26  ;;  %v1712_v26 = vor.u32 %v2118_v24, %v1709_v25  ;;  %v1723_v55 = vld [vmem:[%s3366_s0 + $0xe8] sm:$0xf]  ;;  %v2124_v56 = vld [vmem:[%s3366_s0 + $0xf4] sm:$0xf0]  ;;  %v1731_v1 = vld [vmem:[%s3366_s0 + $0x100] sm:$0xf] }
  0x1d   :  { %v1724_v59 = vor.u32 %v2124_v56, %v1723_v55  ;;  %v2125_v3 = vld [vmem:[%s3366_s0 + $0x104] sm:$0xf]  ;;  %v1733_v4 = vld [vmem:[%s3366_s0 + $0x110] sm:$0xf0]  ;;  %v2686_v5 = vld [vmem:[%s3367_s2] ss:$0 sm:$0xff] }
  0x1e   :  { %849 = vmatpush.bf16.msra.mxu0 %v2185_v28  ;;  %v2115_v28 = vld [vmem:[%s3366_s0 + $0xac] sm:$0xf0]  ;;  %v1739_v6 = vld [vmem:[%s3366_s0 + $0x108] sm:$0xf]  ;;  %v2128_v7 = vld [vmem:[%s3366_s0 + $0x114] sm:$0xf0] }
  0x1f   :  { %977 = vmatpush.bf16.msra.mxu1 %v2193_v29  ;;  %v2113_v29 = vld [vmem:[%s3366_s0 + $0xa4] sm:$0xf]  ;;  %v1684_v33 = vor.u32 %v2115_v28, %v1683_v27  ;;  %v1740_v12 = vor.u32 %v2128_v7, %v1739_v6  ;;  %v2134_v16 = vld [vmem:[%s3366_s0 + $0x14c] sm:$0xf]  ;;  %v1773_v17 = vld [vmem:[%s3366_s0 + $0x158] sm:$0xf0] }
  0x20   :  { %1105 = vmatpush.bf16.msra.mxu2 %v2201_v34  ;;  %v1688_v34 = vor.u32 %v2113_v29, %v1685_v30  ;;  %v1747_v25 = vld [vmem:[%s3366_s0 + $0x120] sm:$0xf]  ;;  %v2131_v27 = vld [vmem:[%s3366_s0 + $0x12c] sm:$0xf0]  ;;  %v2129_v28 = vld [vmem:[%s3366_s0 + $0x124] sm:$0xf] }
  0x21   :  { %850 = vmatmul.bf16.vlgmr.msra.gmra.mxu0 %v1604_v37  ;;  %v1725_v37 = vld [vmem:[%s3366_s0 + $0xf8] sm:$0xf0]  ;;  %v1749_v29 = vld [vmem:[%s3366_s0 + $0x130] sm:$0xf0]  ;;  %v1755_v30 = vld [vmem:[%s3366_s0 + $0x128] sm:$0xf] }
  0x22   :  { %978 = vmatmul.bf16.vlgmr.msra.gmra.mxu1 %v1608_v38  ;;  %v1728_v38 = vor.u32 %v2122_v36, %v1725_v37  ;;  %v2132_v31 = vld [vmem:[%s3366_s0 + $0x134] sm:$0xf0]  ;;  %v2727_v37 = vld [vmem:[%s3368_s3] ss:$0 sm:$0xff] }
  0x23   :  { %1106 = vmatmul.bf16.vlgmr.msra.gmra.mxu2 %v1612_v39  ;;  %v1699_v39 = vld [vmem:[%s3366_s0 + $0xc0] sm:$0xf] }
  0x24   :  { %v1700_v45 = vor.u32 %v2119_v40, %v1699_v39 }
  0x28   :  { %2071 = vmatmul.msk.bf16.gmra.mxu3 %vm769_vm0, %v1648_v42  ;;  %v1701_v42 = vld [vmem:[%s3366_s0 + $0xd0] sm:$0xf0] }
  0x29   :  { %v1704_v46 = vor.u32 %v2117_v41, %v1701_v42  ;;  %v1756_v41 = vor.u32 %v2132_v31, %v1755_v30 }
  0x31   :  { %855 = vmatmul.bf16.gmra.mxu0 %v1620_v49  ;;  %v1741_v49 = vld [vmem:[%s3366_s0 + $0x118] sm:$0xf0] }
  0x32   :  { %983 = vmatmul.bf16.gmra.mxu1 %v1624_v50  ;;  %v1744_v50 = vor.u32 %v2126_v48, %v1741_v49 }
  0x33   :  { %1111 = vmatmul.bf16.gmra.mxu2 %v1628_v51  ;;  %v1715_v51 = vld [vmem:[%s3366_s0 + $0xe0] sm:$0xf] }
  0x34   :  { %v1716_v57 = vor.u32 %v2123_v52, %v1715_v51  ;;  %v1789_v51 = vld [vmem:[%s3366_s0 + $0x178] sm:$0xf0] }
  0x38   :  { %2072 = vmatmul.msk.bf16.gmra.mxu3 %vm769_vm0, %v1664_v54  ;;  %v1717_v54 = vld [vmem:[%s3366_s0 + $0xf0] sm:$0xf0] }
  0x39   :  { %v1720_v58 = vor.u32 %v2121_v53, %v1717_v54 }
  0x41   :  { %860 = vmatmul.bf16.gmra.mxu0 %v1636_v61  ;;  %v2130_v61 = vld [vmem:[%s3366_s0 + $0x12c] sm:$0xf] }
  0x42   :  { %988 = vmatmul.bf16.gmra.mxu1 %v1640_v62  ;;  %v1757_v62 = vld [vmem:[%s3366_s0 + $0x138] sm:$0xf0] }
  0x43   :  { %1116 = vmatmul.bf16.gmra.mxu2 %v1644_v63  ;;  %v1760_v0 = vor.u32 %v2130_v61, %v1757_v62  ;;  %v1763_v62 = vld [vmem:[%s3366_s0 + $0x140] sm:$0xf] }
  0x48   :  { %2073 = vmatmul.msk.bf16.gmra.mxu3 %vm769_vm0, %v1680_v2  ;;  %v2127_v2 = vld [vmem:[%s3366_s0 + $0x10c] sm:$0xf0] }
  0x49   :  { %v1732_v8 = vor.u32 %v2127_v2, %v1731_v1  ;;  %v2133_v1 = vld [vmem:[%s3366_s0 + $0x144] sm:$0xf]  ;;  %v1765_v2 = vld [vmem:[%s3366_s0 + $0x150] sm:$0xf0] }
  0x51   :  { %865 = vmatmul.bf16.gmra.mxu0 %v1652_v9  ;;  %v1736_v9 = vor.u32 %v2125_v3, %v1733_v4  ;;  %v1771_v3 = vld [vmem:[%s3366_s0 + $0x148] sm:$0xf]  ;;  %v2136_v4 = vld [vmem:[%s3366_s0 + $0x154] sm:$0xf0] }
  0x52   :  { %993 = vmatmul.bf16.gmra.mxu1 %v1656_v10 }
  0x53   :  { %1121 = vmatmul.bf16.gmra.mxu2 %v1660_v11 }
  0x58   :  { %2074 = vmatmul.msk.bf16.gmra.mxu3 %vm769_vm0, %v1696_v14 }
  0x61   :  { %870 = vmatmul.bf16.gmra.mxu0 %v1668_v21 }
  0x62   :  { %998 = vmatmul.bf16.gmra.mxu1 %v1672_v22 }
  0x63   :  { %1126 = vmatmul.bf16.gmra.mxu2 %v1676_v23  ;;  %v1776_v23 = vor.u32 %v2134_v16, %v1773_v17 }
  0x68   :  { %2075 = vmatmul.msk.bf16.gmra.mxu3 %vm769_vm0, %v1712_v26 }
  0x71   :  { %875 = vmatmul.bf16.gmra.mxu0 %v1684_v33 }
  0x72   :  { %1003 = vmatmul.bf16.gmra.mxu1 %v1688_v34  ;;  %v1748_v34 = vor.u32 %v2131_v27, %v1747_v25 }
  0x73   :  { %1131 = vmatmul.bf16.gmra.mxu2 %v1692_v35  ;;  %v1752_v35 = vor.u32 %v2129_v28, %v1749_v29 }
  0x78   :  { %2076 = vmatmul.msk.bf16.gmra.mxu3 %vm769_vm0, %v1728_v38 }
  0x81   :  { %880 = vmatmul.bf16.gmra.mxu0 %v1700_v45 }
  0x82   :  { %1008 = vmatmul.bf16.gmra.mxu1 %v1704_v46  ;;  %v2736_v46 = vld [vmem:[%s3369_s4] ss:$0 sm:$0xff] }
  0x83   :  { %1136 = vmatmul.bf16.gmra.mxu2 %v1708_v47 }
  0x88   :  { %2077 = vmatmul.msk.bf16.gmra.mxu3 %vm769_vm0, %v1744_v50  ;;  %v2138_v50 = vld [vmem:[%s3366_s0 + $0x16c] sm:$0xf] }
  0x8b   :  { %v1235_v60 = vpop.f32.mrf.mxu3 }
  0x91   :  { %885 = vmatmul.bf16.gmra.mxu0 %v1716_v57 }
  0x92   :  { %1013 = vmatmul.bf16.gmra.mxu1 %v1720_v58 }
  0x93   :  { %1141 = vmatmul.bf16.gmra.mxu2 %v1724_v59  ;;  %v1237_v63 = vpop.f32.mrf.mxu3  ;;  %v1792_v59 = vor.u32 %v2138_v50, %v1789_v51 }
  0x98   :  { %2078 = vmatmul.msk.bf16.gmra.mxu3 %vm769_vm0, %v1760_v0  ;;  %v2135_v0 = vld [vmem:[%s3366_s0 + $0x14c] sm:$0xf0] }
  0x9b   :  { %v1240_v14 = vpop.f32.mrf.mxu3 }
  0x9e   :  { %v851_v10 = vpop.f32.mrf.mxu0 }
  0x9f   :  { %v979_v11 = vpop.f32.mrf.mxu1  ;;  %v852_v13 = vadd.f32 %v2686_v5, %v851_v10 }
  0xa1   :  { %890 = vmatmul.bf16.gmra.mxu0 %v1732_v8  ;;  %v980_v15 = vadd.f32 %v979_v11, %v852_v13  ;;  %v1764_v8 = vor.u32 %v2135_v0, %v1763_v62 }
  0xa2   :  { %1018 = vmatmul.bf16.gmra.mxu1 %v1736_v9  ;;  %v1768_v9 = vor.u32 %v2133_v1, %v1765_v2 }
  0xa3   :  { %1146 = vmatmul.bf16.gmra.mxu2 %v1740_v12  ;;  %v2702_v22 = vpop.f32.mrf.mxu3 }
  0xa6   :  { %v1107_v18 = vpop.f32.mrf.mxu2  ;;  %v853_v20 = vpop.f32.mrf.mxu0 }
  0xa7   :  { %v1108_v19 = vadd.f32 %v1107_v18, %v980_v15  ;;  %v981_v21 = vpop.f32.mrf.mxu1  ;;  %v854_v24 = vadd.f32 %v2686_v5, %v853_v20 }
  0xa8   :  { %2079 = vmatmul.msk.bf16.gmra.mxu3 %vm769_vm0, %v1776_v23  ;;  %v2142_v23 = vld [vmem:[%s3366_s0 + $0x18c] sm:$0xf] }
  0xa9   :  { %v1236_v26 = vadd.f32 %v1235_v60, %v1108_v19  ;;  %v982_v32 = vadd.f32 %v981_v21, %v854_v24  ;;  %v1805_v24 = vld [vmem:[%s3366_s0 + $0x198] sm:$0xf0] }
  0xaa   :  { %v1808_v31 = vor.u32 %v2142_v23, %v1805_v24 }
  0xab   :  { %v1354_v36 = vmax.f32 %v1236_v26, 0.0  ;;  %v2730_v43 = vpop.f32.mrf.mxu3 }
  0xad   :  { %v1405_v45 = vmul.f32 %v2727_v37, %v1354_v36 }
  0xae   :  { %v1109_v33 = vpop.f32.mrf.mxu2  ;;  %v856_v39 = vpop.f32.mrf.mxu0 }
  0xaf   :  { %v1110_v38 = vadd.f32 %v1109_v33, %v982_v32  ;;  %v984_v40 = vpop.f32.mrf.mxu1  ;;  %v857_v42 = vadd.f32 %v2686_v5, %v856_v39  ;;  %v1456_v53 = vadd.f32 %v2736_v46, %v1405_v45  ;;  %v1781_v39 = vld [vmem:[%s3366_s0 + $0x170] sm:$0xf0] }
  0xb1   :  { %v1238_v44 = vadd.f32 %v1237_v63, %v1110_v38  ;;  %895 = vmatmul.bf16.gmra.mxu0 %v1748_v34  ;;  %v985_v48 = vadd.f32 %v984_v40, %v857_v42  ;;  %v1779_v34 = vld [vmem:[%s3366_s0 + $0x160] sm:$0xf]  ;;  %v2137_v38 = vld [vmem:[%s3366_s0 + $0x164] sm:$0xf]  ;;  %v1787_v40 = vld [vmem:[%s3366_s0 + $0x168] sm:$0xf] }
  0xb2   :  { %1023 = vmatmul.bf16.gmra.mxu1 %v1752_v35  ;;  %v2139_v35 = vld [vmem:[%s3366_s0 + $0x16c] sm:$0xf0]  ;;  %v1784_v45 = vor.u32 %v2137_v38, %v1781_v39 }
  0xb3   :  { %v1355_v47 = vmax.f32 %v1238_v44, 0.0  ;;  %1151 = vmatmul.bf16.gmra.mxu2 %v1756_v41  ;;  %v2747_v58 = vpop.f32.mrf.mxu3  ;;  %v2140_v41 = vld [vmem:[%s3366_s0 + $0x174] sm:$0xf0]  ;;  %v1780_v44 = vor.u32 %v2139_v35, %v1779_v34 }
  0xb4   :  { %v1788_v51 = vor.u32 %v2140_v41, %v1787_v40 }
  0xb5   :  { %v1406_v49 = vmul.f32 %v2727_v37, %v1355_v47 }
  0xb6   :  { %v1112_v52 = vpop.f32.mrf.mxu2  ;;  %v858_v56 = vpop.f32.mrf.mxu0 }
  0xb7   :  { %v1457_v54 = vadd.f32 %v2736_v46, %v1406_v49  ;;  %v1113_v55 = vadd.f32 %v1112_v52, %v985_v48  ;;  %v986_v57 = vpop.f32.mrf.mxu1  ;;  %v859_v61 = vadd.f32 %v2686_v5, %v858_v56 }
  0xb8   :  { %2080 = vmatmul.msk.bf16.gmra.mxu3 %vm769_vm0, %v1792_v59 }
  0xb9   :  { %v2213_v60 = vpack.c.bf16 %v1457_v54, %v1456_v53  ;;  %v1241_v63 = vadd.f32 %v1240_v14, %v1113_v55  ;;  %v987_v6 = vadd.f32 %v986_v57, %v859_v61  ;;  %v1772_v14 = vor.u32 %v2136_v4, %v1771_v3  ;;  %v1821_v61 = vld [vmem:[%s3366_s0 + $0x1b8] sm:$0xf0] }
  0xbb   :  { %2214 = vst [vmem:[%s3370_s5] sm:$0xff] %v2213_v60   ;;  %v1356_v10 = vmax.f32 %v1241_v63, 0.0  ;;  %v2773_v16 = vpop.f32.mrf.mxu3  ;;  %v2146_v60 = vld [vmem:[%s3366_s0 + $0x1ac] sm:$0xf] }
  0xbc   :  { %v1824_v4 = vor.u32 %v2146_v60, %v1821_v61 }
  0xbd   :  { %v1407_v18 = vmul.f32 %v2727_v37, %v1356_v10 }
  0xbe   :  { %v1114_v7 = vpop.f32.mrf.mxu2  ;;  %v861_v12 = vpop.f32.mrf.mxu0 }
  0xbf   :  { %v1115_v11 = vadd.f32 %v1114_v7, %v987_v6  ;;  %v989_v13 = vpop.f32.mrf.mxu1  ;;  %v862_v15 = vadd.f32 %v2686_v5, %v861_v12  ;;  %v1797_v12 = vld [vmem:[%s3366_s0 + $0x190] sm:$0xf0] }
  0xc1   :  { %v1243_v17 = vadd.f32 %v2702_v22, %v1115_v11  ;;  %900 = vmatmul.bf16.gmra.mxu0 %v1764_v8  ;;  %v990_v20 = vadd.f32 %v989_v13, %v862_v15  ;;  %v1458_v22 = vadd.f32 %v2736_v46, %v1407_v18  ;;  %v1795_v8 = vld [vmem:[%s3366_s0 + $0x180] sm:$0xf]  ;;  %v2141_v11 = vld [vmem:[%s3366_s0 + $0x184] sm:$0xf]  ;;  %v1803_v13 = vld [vmem:[%s3366_s0 + $0x188] sm:$0xf] }
  0xc2   :  { %1028 = vmatmul.bf16.gmra.mxu1 %v1768_v9  ;;  %v2143_v9 = vld [vmem:[%s3366_s0 + $0x18c] sm:$0xf0]  ;;  %v1800_v18 = vor.u32 %v2141_v11, %v1797_v12 }
  0xc3   :  { %v1357_v19 = vmax.f32 %v1243_v17, 0.0  ;;  %1156 = vmatmul.bf16.gmra.mxu2 %v1772_v14  ;;  %v2786_v30 = vpop.f32.mrf.mxu3  ;;  %v2144_v14 = vld [vmem:[%s3366_s0 + $0x194] sm:$0xf0]  ;;  %v1796_v17 = vor.u32 %v2143_v9, %v1795_v8 }
  0xc4   :  { %v1804_v24 = vor.u32 %v2144_v14, %v1803_v13 }
  0xc5   :  { %v1408_v21 = vmul.f32 %v2727_v37, %v1357_v19 }
  0xc6   :  { %v1117_v25 = vpop.f32.mrf.mxu2  ;;  %v863_v28 = vpop.f32.mrf.mxu0 }
  0xc7   :  { %v1459_v26 = vadd.f32 %v2736_v46, %v1408_v21  ;;  %v1118_v27 = vadd.f32 %v1117_v25, %v990_v20  ;;  %v991_v29 = vpop.f32.mrf.mxu1  ;;  %v864_v33 = vadd.f32 %v2686_v5, %v863_v28 }
  0xc8   :  { %2081 = vmatmul.msk.bf16.gmra.mxu3 %vm769_vm0, %v1808_v31 }
  0xc9   :  { %v2218_v32 = vpack.c.bf16 %v1459_v26, %v1458_v22  ;;  %v1246_v36 = vadd.f32 %v2730_v43, %v1118_v27  ;;  %v992_v42 = vadd.f32 %v991_v29, %v864_v33  ;;  %v1837_v33 = vld [vmem:[%s3366_s0 + $0x1d8] sm:$0xf0] }
  0xcb   :  { %2325 = vst [vmem:[%s3370_s5 + $0x8] sm:$0xff] %v2218_v32   ;;  %v1358_v47 = vmax.f32 %v1246_v36, 0.0  ;;  %v2813_v53 = vpop.f32.mrf.mxu3  ;;  %v2150_v32 = vld [vmem:[%s3366_s0 + $0x1cc] sm:$0xf] }
  0xcc   :  { %v1840_v41 = vor.u32 %v2150_v32, %v1837_v33 }
  0xcd   :  { %v1409_v55 = vmul.f32 %v2727_v37, %v1358_v47 }
  0xce   :  { %v1119_v43 = vpop.f32.mrf.mxu2  ;;  %v866_v49 = vpop.f32.mrf.mxu0 }
  0xcf   :  { %v1120_v48 = vadd.f32 %v1119_v43, %v992_v42  ;;  %v994_v50 = vpop.f32.mrf.mxu1  ;;  %v867_v52 = vadd.f32 %v2686_v5, %v866_v49  ;;  %v1813_v49 = vld [vmem:[%s3366_s0 + $0x1b0] sm:$0xf0] }
  0xd1   :  { %v1248_v54 = vadd.f32 %v2747_v58, %v1120_v48  ;;  %905 = vmatmul.bf16.gmra.mxu0 %v1780_v44  ;;  %v995_v57 = vadd.f32 %v994_v50, %v867_v52  ;;  %v1460_v58 = vadd.f32 %v2736_v46, %v1409_v55  ;;  %v1811_v44 = vld [vmem:[%s3366_s0 + $0x1a0] sm:$0xf]  ;;  %v2145_v48 = vld [vmem:[%s3366_s0 + $0x1a4] sm:$0xf]  ;;  %v1819_v50 = vld [vmem:[%s3366_s0 + $0x1a8] sm:$0xf] }
  0xd2   :  { %1033 = vmatmul.bf16.gmra.mxu1 %v1784_v45  ;;  %v2147_v45 = vld [vmem:[%s3366_s0 + $0x1ac] sm:$0xf0]  ;;  %v1816_v55 = vor.u32 %v2145_v48, %v1813_v49 }
  0xd3   :  { %v1359_v56 = vmax.f32 %v1248_v54, 0.0  ;;  %1161 = vmatmul.bf16.gmra.mxu2 %v1788_v51  ;;  %v2826_v3 = vpop.f32.mrf.mxu3  ;;  %v2148_v51 = vld [vmem:[%s3366_s0 + $0x1b4] sm:$0xf0]  ;;  %v1812_v54 = vor.u32 %v2147_v45, %v1811_v44 }
  0xd4   :  { %v1820_v61 = vor.u32 %v2148_v51, %v1819_v50 }
  0xd5   :  { %v1410_v59 = vmul.f32 %v2727_v37, %v1359_v56 }
  0xd6   :  { %v1122_v62 = vpop.f32.mrf.mxu2  ;;  %v868_v1 = vpop.f32.mrf.mxu0 }
  0xd7   :  { %v1461_v63 = vadd.f32 %v2736_v46, %v1410_v59  ;;  %v1123_v0 = vadd.f32 %v1122_v62, %v995_v57  ;;  %v996_v2 = vpop.f32.mrf.mxu1  ;;  %v869_v7 = vadd.f32 %v2686_v5, %v868_v1 }
  0xd8   :  { %2082 = vmatmul.msk.bf16.gmra.mxu3 %vm769_vm0, %v1824_v4 }
  0xd9   :  { %v2223_v6 = vpack.c.bf16 %v1461_v63, %v1460_v58  ;;  %v1251_v10 = vadd.f32 %v2773_v16, %v1123_v0  ;;  %v997_v15 = vadd.f32 %v996_v2, %v869_v7  ;;  %v1853_v7 = vld [vmem:[%s3366_s0 + $0x1f8] sm:$0xf0] }
  0xdb   :  { %2326 = vst [vmem:[%s3370_s5 + $0x10] sm:$0xff] %v2223_v6   ;;  %v1360_v19 = vmax.f32 %v1251_v10, 0.0  ;;  %v2853_v22 = vpop.f32.mrf.mxu3  ;;  %v2154_v6 = vld [vmem:[%s3366_s0 + $0x1ec] sm:$0xf] }
  0xdc   :  { %v1856_v14 = vor.u32 %v2154_v6, %v1853_v7 }
  0xdd   :  { %v1411_v27 = vmul.f32 %v2727_v37, %v1360_v19 }
  0xde   :  { %v1124_v16 = vpop.f32.mrf.mxu2  ;;  %v871_v21 = vpop.f32.mrf.mxu0 }
  0xdf   :  { %v1125_v20 = vadd.f32 %v1124_v16, %v997_v15  ;;  %v999_v23 = vpop.f32.mrf.mxu1  ;;  %v872_v25 = vadd.f32 %v2686_v5, %v871_v21  ;;  %v1829_v21 = vld [vmem:[%s3366_s0 + $0x1d0] sm:$0xf0] }
  0xe1   :  { %v1253_v26 = vadd.f32 %v2786_v30, %v1125_v20  ;;  %910 = vmatmul.bf16.gmra.mxu0 %v1796_v17  ;;  %v1000_v29 = vadd.f32 %v999_v23, %v872_v25  ;;  %v1462_v30 = vadd.f32 %v2736_v46, %v1411_v27  ;;  %v1827_v17 = vld [vmem:[%s3366_s0 + $0x1c0] sm:$0xf]  ;;  %v2149_v20 = vld [vmem:[%s3366_s0 + $0x1c4] sm:$0xf]  ;;  %v1835_v23 = vld [vmem:[%s3366_s0 + $0x1c8] sm:$0xf] }
  0xe2   :  { %1038 = vmatmul.bf16.gmra.mxu1 %v1800_v18  ;;  %v2151_v18 = vld [vmem:[%s3366_s0 + $0x1cc] sm:$0xf0]  ;;  %v1832_v27 = vor.u32 %v2149_v20, %v1829_v21 }
  0xe3   :  { %v1361_v28 = vmax.f32 %v1253_v26, 0.0  ;;  %1166 = vmatmul.bf16.gmra.mxu2 %v1804_v24  ;;  %v2866_v40 = vpop.f32.mrf.mxu3  ;;  %v2152_v24 = vld [vmem:[%s3366_s0 + $0x1d4] sm:$0xf0]  ;;  %v1828_v26 = vor.u32 %v2151_v18, %v1827_v17 }
  0xe4   :  { %v1836_v33 = vor.u32 %v2152_v24, %v1835_v23 }
  0xe5   :  { %v1412_v31 = vmul.f32 %v2727_v37, %v1361_v28 }
  0xe6   :  { %v1127_v34 = vpop.f32.mrf.mxu2  ;;  %v873_v38 = vpop.f32.mrf.mxu0 }
  0xe7   :  { %v1463_v35 = vadd.f32 %v2736_v46, %v1412_v31  ;;  %v1128_v36 = vadd.f32 %v1127_v34, %v1000_v29  ;;  %v1001_v39 = vpop.f32.mrf.mxu1  ;;  %v874_v43 = vadd.f32 %v2686_v5, %v873_v38 }
  0xe8   :  { %2083 = vmatmul.msk.bf16.gmra.mxu3 %vm769_vm0, %v1840_v41 }
  0xe9   :  { %v2228_v42 = vpack.c.bf16 %v1463_v35, %v1462_v30  ;;  %v1256_v47 = vadd.f32 %v2813_v53, %v1128_v36  ;;  %v1002_v52 = vadd.f32 %v1001_v39, %v874_v43  ;;  %v1869_v43 = vld [vmem:[%s3366_s0 + $0x218] sm:$0xf0] }
  0xeb   :  { %2327 = vst [vmem:[%s3370_s5 + $0x18] sm:$0xff] %v2228_v42   ;;  %v1362_v56 = vmax.f32 %v1256_v47, 0.0  ;;  %v2893_v58 = vpop.f32.mrf.mxu3  ;;  %v2158_v42 = vld [vmem:[%s3366_s0 + $0x20c] sm:$0xf] }
  0xec   :  { %v1872_v51 = vor.u32 %v2158_v42, %v1869_v43 }
  0xed   :  { %v1413_v0 = vmul.f32 %v2727_v37, %v1362_v56 }
  0xee   :  { %v1129_v53 = vpop.f32.mrf.mxu2  ;;  %v876_v59 = vpop.f32.mrf.mxu0 }
  0xef   :  { %v1130_v57 = vadd.f32 %v1129_v53, %v1002_v52  ;;  %v1004_v60 = vpop.f32.mrf.mxu1  ;;  %v877_v62 = vadd.f32 %v2686_v5, %v876_v59  ;;  %v1845_v59 = vld [vmem:[%s3366_s0 + $0x1f0] sm:$0xf0] }
  0xf1   :  { %v1258_v63 = vadd.f32 %v2826_v3, %v1130_v57  ;;  %915 = vmatmul.bf16.gmra.mxu0 %v1812_v54  ;;  %v1005_v2 = vadd.f32 %v1004_v60, %v877_v62  ;;  %v1464_v3 = vadd.f32 %v2736_v46, %v1413_v0  ;;  %v1843_v54 = vld [vmem:[%s3366_s0 + $0x1e0] sm:$0xf]  ;;  %v2153_v57 = vld [vmem:[%s3366_s0 + $0x1e4] sm:$0xf]  ;;  %v1851_v60 = vld [vmem:[%s3366_s0 + $0x1e8] sm:$0xf] }
  0xf2   :  { %1043 = vmatmul.bf16.gmra.mxu1 %v1816_v55  ;;  %v2155_v55 = vld [vmem:[%s3366_s0 + $0x1ec] sm:$0xf0]  ;;  %v1848_v0 = vor.u32 %v2153_v57, %v1845_v59 }
  0xf3   :  { %v1363_v1 = vmax.f32 %v1258_v63, 0.0  ;;  %1171 = vmatmul.bf16.gmra.mxu2 %v1820_v61  ;;  %v2906_v13 = vpop.f32.mrf.mxu3  ;;  %v2156_v61 = vld [vmem:[%s3366_s0 + $0x1f4] sm:$0xf0]  ;;  %v1844_v63 = vor.u32 %v2155_v55, %v1843_v54 }
  0xf4   :  { %v1852_v7 = vor.u32 %v2156_v61, %v1851_v60 }
  0xf5   :  { %v1414_v4 = vmul.f32 %v2727_v37, %v1363_v1 }
  0xf6   :  { %v1132_v8 = vpop.f32.mrf.mxu2  ;;  %v878_v11 = vpop.f32.mrf.mxu0 }
  0xf7   :  { %v1465_v9 = vadd.f32 %v2736_v46, %v1414_v4  ;;  %v1133_v10 = vadd.f32 %v1132_v8, %v1005_v2  ;;  %v1006_v12 = vpop.f32.mrf.mxu1  ;;  %v879_v16 = vadd.f32 %v2686_v5, %v878_v11 }
  0xf8   :  { %2084 = vmatmul.msk.bf16.gmra.mxu3 %vm769_vm0, %v1856_v14 }
  0xf9   :  { %v2233_v15 = vpack.c.bf16 %v1465_v9, %v1464_v3  ;;  %v1261_v19 = vadd.f32 %v2853_v22, %v1133_v10  ;;  %v1007_v25 = vadd.f32 %v1006_v12, %v879_v16  ;;  %v1885_v16 = vld [vmem:[%s3366_s0 + $0x238] sm:$0xf0] }
  0xfb   :  { %2328 = vst [vmem:[%s3370_s5 + $0x20] sm:$0xff] %v2233_v15   ;;  %v1364_v28 = vmax.f32 %v1261_v19, 0.0  ;;  %v2933_v30 = vpop.f32.mrf.mxu3  ;;  %v2162_v15 = vld [vmem:[%s3366_s0 + $0x22c] sm:$0xf] }
  0xfc   :  { %v1888_v24 = vor.u32 %v2162_v15, %v1885_v16 }
  0xfd   :  { %v1415_v36 = vmul.f32 %v2727_v37, %v1364_v28 }
  0xfe   :  { %v1134_v22 = vpop.f32.mrf.mxu2  ;;  %v881_v31 = vpop.f32.mrf.mxu0 }
  0xff   :  { %v1135_v29 = vadd.f32 %v1134_v22, %v1007_v25  ;;  %v1009_v32 = vpop.f32.mrf.mxu1  ;;  %v882_v34 = vadd.f32 %v2686_v5, %v881_v31  ;;  %v1861_v31 = vld [vmem:[%s3366_s0 + $0x210] sm:$0xf0] }
 0x101   :  { %v1263_v35 = vadd.f32 %v2866_v40, %v1135_v29  ;;  %920 = vmatmul.bf16.gmra.mxu0 %v1828_v26  ;;  %v1010_v39 = vadd.f32 %v1009_v32, %v882_v34  ;;  %v1466_v40 = vadd.f32 %v2736_v46, %v1415_v36  ;;  %v1859_v26 = vld [vmem:[%s3366_s0 + $0x200] sm:$0xf]  ;;  %v2157_v29 = vld [vmem:[%s3366_s0 + $0x204] sm:$0xf]  ;;  %v1867_v32 = vld [vmem:[%s3366_s0 + $0x208] sm:$0xf] }
 0x102   :  { %1048 = vmatmul.bf16.gmra.mxu1 %v1832_v27  ;;  %v2159_v27 = vld [vmem:[%s3366_s0 + $0x20c] sm:$0xf0]  ;;  %v1864_v36 = vor.u32 %v2157_v29, %v1861_v31 }
 0x103   :  { %v1365_v38 = vmax.f32 %v1263_v35, 0.0  ;;  %1176 = vmatmul.bf16.gmra.mxu2 %v1836_v33  ;;  %v2946_v50 = vpop.f32.mrf.mxu3  ;;  %v2160_v33 = vld [vmem:[%s3366_s0 + $0x214] sm:$0xf0]  ;;  %v1860_v35 = vor.u32 %v2159_v27, %v1859_v26 }
 0x104   :  { %v1868_v43 = vor.u32 %v2160_v33, %v1867_v32 }
 0x105   :  { %v1416_v41 = vmul.f32 %v2727_v37, %v1365_v38 }
 0x106   :  { %v1137_v44 = vpop.f32.mrf.mxu2  ;;  %v883_v48 = vpop.f32.mrf.mxu0 }
 0x107   :  { %v1467_v45 = vadd.f32 %v2736_v46, %v1416_v41  ;;  %v1138_v47 = vadd.f32 %v1137_v44, %v1010_v39  ;;  %v1011_v49 = vpop.f32.mrf.mxu1  ;;  %v884_v53 = vadd.f32 %v2686_v5, %v883_v48 }
 0x108   :  { %2085 = vmatmul.msk.bf16.gmra.mxu3 %vm769_vm0, %v1872_v51 }
 0x109   :  { %v2238_v52 = vpack.c.bf16 %v1467_v45, %v1466_v40  ;;  %v1266_v56 = vadd.f32 %v2893_v58, %v1138_v47  ;;  %v1012_v62 = vadd.f32 %v1011_v49, %v884_v53  ;;  %v1901_v53 = vld [vmem:[%s3366_s0 + $0x258] sm:$0xf0] }
 0x10b   :  { %2329 = vst [vmem:[%s3370_s5 + $0x28] sm:$0xff] %v2238_v52   ;;  %v1366_v1 = vmax.f32 %v1266_v56, 0.0  ;;  %v2973_v3 = vpop.f32.mrf.mxu3  ;;  %v2166_v52 = vld [vmem:[%s3366_s0 + $0x24c] sm:$0xf] }
 0x10c   :  { %v1904_v61 = vor.u32 %v2166_v52, %v1901_v53 }
 0x10d   :  { %v1417_v10 = vmul.f32 %v2727_v37, %v1366_v1 }
 0x10e   :  { %v1139_v58 = vpop.f32.mrf.mxu2  ;;  %v886_v4 = vpop.f32.mrf.mxu0 }
 0x10f   :  { %v1140_v2 = vadd.f32 %v1139_v58, %v1012_v62  ;;  %v1014_v6 = vpop.f32.mrf.mxu1  ;;  %v887_v8 = vadd.f32 %v2686_v5, %v886_v4  ;;  %v1877_v4 = vld [vmem:[%s3366_s0 + $0x230] sm:$0xf0] }
 0x111   :  { %v1268_v9 = vadd.f32 %v2906_v13, %v1140_v2  ;;  %925 = vmatmul.bf16.gmra.mxu0 %v1844_v63  ;;  %v1015_v12 = vadd.f32 %v1014_v6, %v887_v8  ;;  %v1468_v13 = vadd.f32 %v2736_v46, %v1417_v10  ;;  %v1875_v63 = vld [vmem:[%s3366_s0 + $0x220] sm:$0xf]  ;;  %v2161_v2 = vld [vmem:[%s3366_s0 + $0x224] sm:$0xf]  ;;  %v1883_v6 = vld [vmem:[%s3366_s0 + $0x228] sm:$0xf] }
 0x112   :  { %1053 = vmatmul.bf16.gmra.mxu1 %v1848_v0  ;;  %v2163_v0 = vld [vmem:[%s3366_s0 + $0x22c] sm:$0xf0]  ;;  %v1880_v10 = vor.u32 %v2161_v2, %v1877_v4 }
 0x113   :  { %v1367_v11 = vmax.f32 %v1268_v9, 0.0  ;;  %1181 = vmatmul.bf16.gmra.mxu2 %v1852_v7  ;;  %v2986_v23 = vpop.f32.mrf.mxu3  ;;  %v2164_v7 = vld [vmem:[%s3366_s0 + $0x234] sm:$0xf0]  ;;  %v1876_v9 = vor.u32 %v2163_v0, %v1875_v63 }
 0x114   :  { %v1884_v16 = vor.u32 %v2164_v7, %v1883_v6 }
 0x115   :  { %v1418_v14 = vmul.f32 %v2727_v37, %v1367_v11 }
 0x116   :  { %v1142_v17 = vpop.f32.mrf.mxu2  ;;  %v888_v20 = vpop.f32.mrf.mxu0 }
 0x117   :  { %v1469_v18 = vadd.f32 %v2736_v46, %v1418_v14  ;;  %v1143_v19 = vadd.f32 %v1142_v17, %v1015_v12  ;;  %v1016_v21 = vpop.f32.mrf.mxu1  ;;  %v889_v22 = vadd.f32 %v2686_v5, %v888_v20 }
 0x118   :  { %2086 = vmatmul.msk.bf16.gmra.mxu3 %vm769_vm0, %v1888_v24 }
 0x119   :  { %v2243_v25 = vpack.c.bf16 %v1469_v18, %v1468_v13  ;;  %v1271_v28 = vadd.f32 %v2933_v30, %v1143_v19  ;;  %v1017_v34 = vadd.f32 %v1016_v21, %v889_v22  ;;  %v1917_v22 = vld [vmem:[%s3366_s0 + $0x278] sm:$0xf0] }
 0x11b   :  { %2330 = vst [vmem:[%s3370_s5 + $0x30] sm:$0xff] %v2243_v25   ;;  %v1368_v38 = vmax.f32 %v1271_v28, 0.0  ;;  %v3013_v40 = vpop.f32.mrf.mxu3  ;;  %v2170_v25 = vld [vmem:[%s3366_s0 + $0x26c] sm:$0xf] }
 0x11c   :  { %v1920_v33 = vor.u32 %v2170_v25, %v1917_v22 }
 0x11d   :  { %v1419_v47 = vmul.f32 %v2727_v37, %v1368_v38 }
 0x11e   :  { %v1144_v30 = vpop.f32.mrf.mxu2  ;;  %v891_v41 = vpop.f32.mrf.mxu0 }
 0x11f   :  { %v1145_v39 = vadd.f32 %v1144_v30, %v1017_v34  ;;  %v1019_v42 = vpop.f32.mrf.mxu1  ;;  %v892_v44 = vadd.f32 %v2686_v5, %v891_v41  ;;  %v1893_v41 = vld [vmem:[%s3366_s0 + $0x250] sm:$0xf0] }
 0x121   :  { %v1273_v45 = vadd.f32 %v2946_v50, %v1145_v39  ;;  %930 = vmatmul.bf16.gmra.mxu0 %v1860_v35  ;;  %v1020_v49 = vadd.f32 %v1019_v42, %v892_v44  ;;  %v1470_v50 = vadd.f32 %v2736_v46, %v1419_v47  ;;  %v1891_v35 = vld [vmem:[%s3366_s0 + $0x240] sm:$0xf]  ;;  %v2165_v39 = vld [vmem:[%s3366_s0 + $0x244] sm:$0xf]  ;;  %v1899_v42 = vld [vmem:[%s3366_s0 + $0x248] sm:$0xf] }
 0x122   :  { %1058 = vmatmul.bf16.gmra.mxu1 %v1864_v36  ;;  %v2167_v36 = vld [vmem:[%s3366_s0 + $0x24c] sm:$0xf0]  ;;  %v1896_v47 = vor.u32 %v2165_v39, %v1893_v41 }
 0x123   :  { %v1369_v48 = vmax.f32 %v1273_v45, 0.0  ;;  %1186 = vmatmul.bf16.gmra.mxu2 %v1868_v43  ;;  %v3026_v60 = vpop.f32.mrf.mxu3  ;;  %v2168_v43 = vld [vmem:[%s3366_s0 + $0x254] sm:$0xf0]  ;;  %v1892_v45 = vor.u32 %v2167_v36, %v1891_v35 }
 0x124   :  { %v1900_v53 = vor.u32 %v2168_v43, %v1899_v42 }
 0x125   :  { %v1420_v51 = vmul.f32 %v2727_v37, %v1369_v48 }
 0x126   :  { %v1147_v54 = vpop.f32.mrf.mxu2  ;;  %v893_v57 = vpop.f32.mrf.mxu0 }
 0x127   :  { %v1471_v55 = vadd.f32 %v2736_v46, %v1420_v51  ;;  %v1148_v56 = vadd.f32 %v1147_v54, %v1020_v49  ;;  %v1021_v59 = vpop.f32.mrf.mxu1  ;;  %v894_v58 = vadd.f32 %v2686_v5, %v893_v57 }
 0x128   :  { %2087 = vmatmul.msk.bf16.gmra.mxu3 %vm769_vm0, %v1904_v61 }
 0x129   :  { %v2248_v62 = vpack.c.bf16 %v1471_v55, %v1470_v50  ;;  %v1276_v1 = vadd.f32 %v2973_v3, %v1148_v56  ;;  %v1022_v8 = vadd.f32 %v1021_v59, %v894_v58  ;;  %v1933_v58 = vld [vmem:[%s3366_s0 + $0x298] sm:$0xf0] }
 0x12b   :  { %2331 = vst [vmem:[%s3370_s5 + $0x38] sm:$0xff] %v2248_v62   ;;  %v1370_v11 = vmax.f32 %v1276_v1, 0.0  ;;  %v3053_v13 = vpop.f32.mrf.mxu3  ;;  %v2174_v62 = vld [vmem:[%s3366_s0 + $0x28c] sm:$0xf] }
 0x12c   :  { %v1936_v7 = vor.u32 %v2174_v62, %v1933_v58 }
 0x12d   :  { %v1421_v19 = vmul.f32 %v2727_v37, %v1370_v11 }
 0x12e   :  { %v1149_v3 = vpop.f32.mrf.mxu2  ;;  %v896_v14 = vpop.f32.mrf.mxu0 }
 0x12f   :  { %v1150_v12 = vadd.f32 %v1149_v3, %v1022_v8  ;;  %v1024_v15 = vpop.f32.mrf.mxu1  ;;  %v897_v17 = vadd.f32 %v2686_v5, %v896_v14  ;;  %v1909_v14 = vld [vmem:[%s3366_s0 + $0x270] sm:$0xf0] }
 0x131   :  { %v1278_v18 = vadd.f32 %v2986_v23, %v1150_v12  ;;  %935 = vmatmul.bf16.gmra.mxu0 %v1876_v9  ;;  %v1025_v21 = vadd.f32 %v1024_v15, %v897_v17  ;;  %v1472_v23 = vadd.f32 %v2736_v46, %v1421_v19  ;;  %v1907_v9 = vld [vmem:[%s3366_s0 + $0x260] sm:$0xf]  ;;  %v2169_v12 = vld [vmem:[%s3366_s0 + $0x264] sm:$0xf]  ;;  %v1915_v15 = vld [vmem:[%s3366_s0 + $0x268] sm:$0xf] }
 0x132   :  { %1063 = vmatmul.bf16.gmra.mxu1 %v1880_v10  ;;  %v2171_v10 = vld [vmem:[%s3366_s0 + $0x26c] sm:$0xf0]  ;;  %v1912_v19 = vor.u32 %v2169_v12, %v1909_v14 }
 0x133   :  { %v1371_v20 = vmax.f32 %v1278_v18, 0.0  ;;  %1191 = vmatmul.bf16.gmra.mxu2 %v1884_v16  ;;  %v3066_v32 = vpop.f32.mrf.mxu3  ;;  %v2172_v16 = vld [vmem:[%s3366_s0 + $0x274] sm:$0xf0]  ;;  %v1908_v18 = vor.u32 %v2171_v10, %v1907_v9 }
 0x134   :  { %v1916_v22 = vor.u32 %v2172_v16, %v1915_v15 }
 0x135   :  { %v1422_v24 = vmul.f32 %v2727_v37, %v1371_v20 }
 0x136   :  { %v1152_v26 = vpop.f32.mrf.mxu2  ;;  %v898_v29 = vpop.f32.mrf.mxu0 }
 0x137   :  { %v1473_v27 = vadd.f32 %v2736_v46, %v1422_v24  ;;  %v1153_v28 = vadd.f32 %v1152_v26, %v1025_v21  ;;  %v1026_v31 = vpop.f32.mrf.mxu1  ;;  %v899_v30 = vadd.f32 %v2686_v5, %v898_v29 }
 0x138   :  { %2088 = vmatmul.msk.bf16.gmra.mxu3 %vm769_vm0, %v1920_v33 }
 0x139   :  { %v2253_v34 = vpack.c.bf16 %v1473_v27, %v1472_v23  ;;  %v1281_v38 = vadd.f32 %v3013_v40, %v1153_v28  ;;  %v1027_v44 = vadd.f32 %v1026_v31, %v899_v30  ;;  %v1949_v30 = vld [vmem:[%s3366_s0 + $0x2b8] sm:$0xf0] }
 0x13b   :  { %2332 = vst [vmem:[%s3370_s5 + $0x40] sm:$0xff] %v2253_v34   ;;  %v1372_v48 = vmax.f32 %v1281_v38, 0.0  ;;  %v3093_v50 = vpop.f32.mrf.mxu3  ;;  %v2178_v34 = vld [vmem:[%s3366_s0 + $0x2ac] sm:$0xf] }
 0x13c   :  { %v1952_v43 = vor.u32 %v2178_v34, %v1949_v30  ;;  %v3215_v30 = vld [vmem:[%s3367_s2] ss:$0 sm:$0xff] }
 0x13d   :  { %v1423_v56 = vmul.f32 %v2727_v37, %v1372_v48 }
 0x13e   :  { %v1154_v40 = vpop.f32.mrf.mxu2  ;;  %v901_v51 = vpop.f32.mrf.mxu0 }
 0x13f   :  { %v1155_v49 = vadd.f32 %v1154_v40, %v1027_v44  ;;  %v1029_v52 = vpop.f32.mrf.mxu1  ;;  %v902_v54 = vadd.f32 %v2686_v5, %v901_v51  ;;  %v1925_v51 = vld [vmem:[%s3366_s0 + $0x290] sm:$0xf0] }
 0x141   :  { %v1283_v55 = vadd.f32 %v3026_v60, %v1155_v49  ;;  %940 = vmatmul.bf16.gmra.mxu0 %v1892_v45  ;;  %v1030_v59 = vadd.f32 %v1029_v52, %v902_v54  ;;  %v1474_v60 = vadd.f32 %v2736_v46, %v1423_v56  ;;  %v1923_v45 = vld [vmem:[%s3366_s0 + $0x280] sm:$0xf]  ;;  %v2173_v49 = vld [vmem:[%s3366_s0 + $0x284] sm:$0xf]  ;;  %v1931_v52 = vld [vmem:[%s3366_s0 + $0x288] sm:$0xf] }
 0x142   :  { %1068 = vmatmul.bf16.gmra.mxu1 %v1896_v47  ;;  %v2175_v47 = vld [vmem:[%s3366_s0 + $0x28c] sm:$0xf0]  ;;  %v1928_v56 = vor.u32 %v2173_v49, %v1925_v51 }
 0x143   :  { %v1373_v57 = vmax.f32 %v1283_v55, 0.0  ;;  %1196 = vmatmul.bf16.gmra.mxu2 %v1900_v53  ;;  %v3106_v6 = vpop.f32.mrf.mxu3  ;;  %v2176_v53 = vld [vmem:[%s3366_s0 + $0x294] sm:$0xf0]  ;;  %v1924_v55 = vor.u32 %v2175_v47, %v1923_v45 }
 0x144   :  { %v1932_v58 = vor.u32 %v2176_v53, %v1931_v52 }
 0x145   :  { %v1424_v61 = vmul.f32 %v2727_v37, %v1373_v57 }
 0x146   :  { %v1157_v63 = vpop.f32.mrf.mxu2  ;;  %v903_v2 = vpop.f32.mrf.mxu0 }
 0x147   :  { %v1475_v0 = vadd.f32 %v2736_v46, %v1424_v61  ;;  %v1158_v1 = vadd.f32 %v1157_v63, %v1030_v59  ;;  %v1031_v4 = vpop.f32.mrf.mxu1  ;;  %v904_v3 = vadd.f32 %v2686_v5, %v903_v2 }
 0x148   :  { %2089 = vmatmul.msk.bf16.gmra.mxu3 %vm769_vm0, %v1936_v7 }
 0x149   :  { %v2258_v8 = vpack.c.bf16 %v1475_v0, %v1474_v60  ;;  %v1286_v11 = vadd.f32 %v3053_v13, %v1158_v1  ;;  %v1032_v17 = vadd.f32 %v1031_v4, %v904_v3  ;;  %v1965_v3 = vld [vmem:[%s3366_s0 + $0x2d8] sm:$0xf0] }
 0x14b   :  { %2333 = vst [vmem:[%s3370_s5 + $0x48] sm:$0xff] %v2258_v8   ;;  %v1374_v20 = vmax.f32 %v1286_v11, 0.0  ;;  %v3133_v23 = vpop.f32.mrf.mxu3  ;;  %v2182_v8 = vld [vmem:[%s3366_s0 + $0x2cc] sm:$0xf] }
 0x14c   :  { %v1968_v16 = vor.u32 %v2182_v8, %v1965_v3 }
 0x14d   :  { %v1425_v28 = vmul.f32 %v2727_v37, %v1374_v20 }
 0x14e   :  { %v1159_v13 = vpop.f32.mrf.mxu2  ;;  %v906_v24 = vpop.f32.mrf.mxu0 }
 0x14f   :  { %v1160_v21 = vadd.f32 %v1159_v13, %v1032_v17  ;;  %v1034_v25 = vpop.f32.mrf.mxu1  ;;  %v907_v26 = vadd.f32 %v2686_v5, %v906_v24  ;;  %v1947_v24 = vld [vmem:[%s3366_s0 + $0x2a8] sm:$0xf] }
 0x151   :  { %v1288_v27 = vadd.f32 %v3066_v32, %v1160_v21  ;;  %945 = vmatmul.bf16.gmra.mxu0 %v1908_v18  ;;  %v1035_v31 = vadd.f32 %v1034_v25, %v907_v26  ;;  %v1476_v32 = vadd.f32 %v2736_v46, %v1425_v28  ;;  %v1939_v18 = vld [vmem:[%s3366_s0 + $0x2a0] sm:$0xf]  ;;  %v2177_v21 = vld [vmem:[%s3366_s0 + $0x2a4] sm:$0xf]  ;;  %v2180_v25 = vld [vmem:[%s3366_s0 + $0x2b4] sm:$0xf0] }
 0x152   :  { %1073 = vmatmul.bf16.gmra.mxu1 %v1912_v19  ;;  %v2179_v19 = vld [vmem:[%s3366_s0 + $0x2ac] sm:$0xf0]  ;;  %v1948_v34 = vor.u32 %v2180_v25, %v1947_v24 }
 0x153   :  { %v1375_v29 = vmax.f32 %v1288_v27, 0.0  ;;  %1201 = vmatmul.bf16.gmra.mxu2 %v1916_v22  ;;  %v3146_v42 = vpop.f32.mrf.mxu3 }
 0x155   :  { %v1426_v33 = vmul.f32 %v2727_v37, %v1375_v29 }
 0x156   :  { %v1162_v35 = vpop.f32.mrf.mxu2  ;;  %v908_v39 = vpop.f32.mrf.mxu0 }
 0x157   :  { %v1477_v36 = vadd.f32 %v2736_v46, %v1426_v33  ;;  %v1163_v38 = vadd.f32 %v1162_v35, %v1035_v31  ;;  %v1036_v41 = vpop.f32.mrf.mxu1  ;;  %v909_v40 = vadd.f32 %v2686_v5, %v908_v39 }
 0x158   :  { %2090 = vmatmul.msk.bf16.gmra.mxu3 %vm769_vm0, %v1952_v43 }
 0x159   :  { %v2263_v44 = vpack.c.bf16 %v1477_v36, %v1476_v32  ;;  %v1291_v48 = vadd.f32 %v3093_v50, %v1163_v38  ;;  %v1037_v54 = vadd.f32 %v1036_v41, %v909_v40  ;;  %v3224_v38 = vld [vmem:[%s3366_s0 + $0x2e8] sm:$0x77] }
 0x15b   :  { %2334 = vst [vmem:[%s3370_s5 + $0x50] sm:$0xff] %v2263_v44   ;;  %v1376_v57 = vmax.f32 %v1291_v48, 0.0  ;;  %v3173_v60 = vpop.f32.mrf.mxu3  ;;  %v450_v44 = vunpack.c.h.b16 %v3224_v38 }
 0x15d   :  { %v1427_v1 = vmul.f32 %v2727_v37, %v1376_v57  ;;  %v546_v53 = vpack.c.b16 %v450_v44, %v450_v44  ;;  %v1957_v57 = vld [vmem:[%s3366_s0 + $0x2d0] sm:$0xf0] }
 0x15e   :  { %v1164_v50 = vpop.f32.mrf.mxu2  ;;  %v911_v61 = vpop.f32.mrf.mxu0 }
 0x15f   :  { %v1165_v59 = vadd.f32 %v1164_v50, %v1037_v54  ;;  %v1039_v62 = vpop.f32.mrf.mxu1  ;;  %v912_v63 = vadd.f32 %v2686_v5, %v911_v61  ;;  %v2184_v61 = vld [vmem:[%s3366_s0 + $0x2d4] sm:$0xf0] }
 0x161   :  { %v1293_v0 = vadd.f32 %v3106_v6, %v1165_v59  ;;  %950 = vmatmul.bf16.gmra.mxu0 %v1924_v55  ;;  %v1040_v4 = vadd.f32 %v1039_v62, %v912_v63  ;;  %v1478_v6 = vadd.f32 %v2736_v46, %v1427_v1  ;;  %v1955_v55 = vld [vmem:[%s3366_s0 + $0x2c0] sm:$0xf]  ;;  %v1963_v59 = vld [vmem:[%s3366_s0 + $0x2c8] sm:$0xf] }
 0x162   :  { %1078 = vmatmul.bf16.gmra.mxu1 %v1928_v56  ;;  %v2181_v56 = vld [vmem:[%s3366_s0 + $0x2c4] sm:$0xf] }
 0x163   :  { %v1377_v2 = vmax.f32 %v1293_v0, 0.0  ;;  %1206 = vmatmul.bf16.gmra.mxu2 %v1932_v58  ;;  %v3186_v15 = vpop.f32.mrf.mxu3 }
 0x165   :  { %v1428_v7 = vmul.f32 %v2727_v37, %v1377_v2 }
 0x166   :  { %v1167_v9 = vpop.f32.mrf.mxu2  ;;  %v913_v12 = vpop.f32.mrf.mxu0 }
 0x167   :  { %v1479_v10 = vadd.f32 %v2736_v46, %v1428_v7  ;;  %v1168_v11 = vadd.f32 %v1167_v9, %v1040_v4  ;;  %v1041_v14 = vpop.f32.mrf.mxu1  ;;  %v914_v13 = vadd.f32 %v2686_v5, %v913_v12  ;;  %v1941_v5 = vld [vmem:[%s3366_s0 + $0x2b0] sm:$0xf0]  ;;  %v1964_v7 = vor.u32 %v2184_v61, %v1963_v59 }
 0x168   :  { %2091 = vmatmul.msk.bf16.gmra.mxu3 %vm769_vm0, %v1968_v16  ;;  %v1944_v27 = vor.u32 %v2177_v21, %v1941_v5  ;;  %v113_v21 = vld [vmem:[%s3366_s0 + $0x2e0] sm:$0x77] }
 0x169   :  { %v2268_v17 = vpack.c.bf16 %v1479_v10, %v1478_v6  ;;  %v1296_v20 = vadd.f32 %v3133_v23, %v1168_v11  ;;  %v1042_v22 = vadd.f32 %v1041_v14, %v914_v13  ;;  %v1940_v23 = vor.u32 %v2179_v19, %v1939_v18  ;;  %v3260_v6 = vld [vmem:[%s3368_s3] ss:$0 sm:$0xff] }
 0x16b   :  { %2335 = vst [vmem:[%s3370_s5 + $0x58] sm:$0xff] %v2268_v17   ;;  %v1378_v28 = vmax.f32 %v1296_v20, 0.0  ;;  %v3218_v32 = vpop.f32.mrf.mxu3  ;;  %v3267_v17 = vld [vmem:[%s3369_s4] ss:$0 sm:$0xff] }
 0x16d   :  { %v1429_v39 = vmul.f32 %v2727_v37, %v1378_v28 }
 0x16e   :  { %v1169_v26 = vpop.f32.mrf.mxu2  ;;  %v916_v31 = vpop.f32.mrf.mxu0 }
 0x16f   :  { %v1170_v29 = vadd.f32 %v1169_v26, %v1042_v22  ;;  %v1044_v33 = vpop.f32.mrf.mxu1  ;;  %v917_v35 = vadd.f32 %v3215_v30, %v916_v31  ;;  %v1480_v47 = vadd.f32 %v2736_v46, %v1429_v39  ;;  %v447_v22 = vunpack.c.l.b16 %v113_v21 }
 0x170   :  { %v448_v26 = vunpack.c.h.b16 %v113_v21 }
 0x171   :  { %v1298_v36 = vadd.f32 %v3146_v42, %v1170_v29  ;;  %955 = vmatmul.bf16.gmra.mxu0 %v1940_v23  ;;  %v1045_v43 = vadd.f32 %v1044_v33, %v917_v35  ;;  %v543_v31 = vpack.c.b16 %v447_v22, %v447_v22 }
 0x172   :  { %1083 = vmatmul.bf16.gmra.mxu1 %v1944_v27  ;;  %v449_v27 = vunpack.c.l.b16 %v3224_v38  ;;  %v544_v33 = vpack.c.b16 %v448_v26, %v448_v26 }
 0x173   :  { %v1379_v41 = vmax.f32 %v1298_v36, 0.0  ;;  %1211 = vmatmul.bf16.gmra.mxu2 %v1948_v34  ;;  %v1307_v52 = vpop.f32.mrf.mxu3 }
 0x175   :  { %v1430_v40 = vmul.f32 %v2727_v37, %v1379_v41  ;;  %v2183_v37 = vld [vmem:[%s3366_s0 + $0x2cc] sm:$0xf0]  ;;  %v545_v41 = vpack.c.b16 %v449_v27, %v449_v27 }
 0x176   :  { %v1172_v45 = vpop.f32.mrf.mxu2  ;;  %v918_v49 = vpop.f32.mrf.mxu0  ;;  %v1956_v63 = vor.u32 %v2183_v37, %v1955_v55 }
 0x177   :  { %v1481_v42 = vadd.f32 %v2736_v46, %v1430_v40  ;;  %v1173_v48 = vadd.f32 %v1172_v45, %v1045_v43  ;;  %v1046_v51 = vpop.f32.mrf.mxu1  ;;  %v919_v50 = vadd.f32 %v3215_v30, %v918_v49 }
 0x178   :  { %2092 = vmatmul.msk.bf16.gmra.mxu3 %vm769_vm0, %v546_v53 }
 0x179   :  { %v2273_v54 = vpack.c.bf16 %v1481_v42, %v1480_v47  ;;  %v1301_v46 = vadd.f32 %v3173_v60, %v1173_v48  ;;  %v1047_v62 = vadd.f32 %v1046_v51, %v919_v50  ;;  %v1960_v60 = vor.u32 %v2181_v56, %v1957_v57 }
 0x17b   :  { %2336 = vst [vmem:[%s3370_s5 + $0x60] sm:$0xff] %v2273_v54   ;;  %v1380_v0 = vmax.f32 %v1301_v46, 0.0  ;;  %v1310_v3 = vpop.f32.mrf.mxu3 }
 0x17d   :  { %v1431_v10 = vmul.f32 %v3260_v6, %v1380_v0 }
 0x17e   :  { %v1174_v58 = vpop.f32.mrf.mxu2  ;;  %v921_v2 = vpop.f32.mrf.mxu0 }
 0x17f   :  { %v1175_v1 = vadd.f32 %v1174_v58, %v1047_v62  ;;  %v1049_v4 = vpop.f32.mrf.mxu1  ;;  %v922_v8 = vadd.f32 %v3215_v30, %v921_v2 }
 0x181   :  { %v1303_v9 = vadd.f32 %v3186_v15, %v1175_v1  ;;  %960 = vmatmul.bf16.gmra.mxu0 %v1956_v63  ;;  %v1050_v12 = vadd.f32 %v1049_v4, %v922_v8  ;;  %v1482_v15 = vadd.f32 %v3267_v17, %v1431_v10 }
 0x182   :  { %1088 = vmatmul.bf16.gmra.mxu1 %v1960_v60 }
 0x183   :  { %v1381_v11 = vmax.f32 %v1303_v9, 0.0  ;;  %1216 = vmatmul.bf16.gmra.mxu2 %v1964_v7  ;;  %v1312_v5 = vpop.f32.mrf.mxu3 }
 0x185   :  { %v1432_v14 = vmul.f32 %v3260_v6, %v1381_v11 }
 0x186   :  { %v1177_v16 = vpop.f32.mrf.mxu2  ;;  %v923_v19 = vpop.f32.mrf.mxu0 }
 0x187   :  { %v1483_v13 = vadd.f32 %v3267_v17, %v1432_v14  ;;  %v1178_v18 = vadd.f32 %v1177_v16, %v1050_v12  ;;  %v1051_v20 = vpop.f32.mrf.mxu1  ;;  %v924_v25 = vadd.f32 %v3215_v30, %v923_v19 }
 0x189   :  { %v2278_v24 = vpack.c.bf16 %v1483_v13, %v1482_v15  ;;  %v1306_v23 = vadd.f32 %v3218_v32, %v1178_v18  ;;  %v1052_v28 = vadd.f32 %v1051_v20, %v924_v25 }
 0x18b   :  { %2337 = vst [vmem:[%s3370_s5 + $0x68] sm:$0xff] %v2278_v24   ;;  %v1382_v34 = vmax.f32 %v1306_v23, 0.0  ;;  %v1315_v44 = vpop.f32.mrf.mxu3 }
 0x18d   :  { %v1433_v45 = vmul.f32 %v3260_v6, %v1382_v34 }
 0x18e   :  { %v1179_v29 = vpop.f32.mrf.mxu2  ;;  %v926_v36 = vpop.f32.mrf.mxu0 }
 0x18f   :  { %v1180_v35 = vadd.f32 %v1179_v29, %v1052_v28  ;;  %v1054_v39 = vpop.f32.mrf.mxu1  ;;  %v927_v43 = vadd.f32 %v3215_v30, %v926_v36  ;;  %v1484_v48 = vadd.f32 %v3267_v17, %v1433_v45 }
 0x191   :  { %v1308_v40 = vadd.f32 %v1307_v52, %v1180_v35  ;;  %965 = vmatmul.bf16.gmra.mxu0 %v543_v31  ;;  %v1055_v47 = vadd.f32 %v1054_v39, %v927_v43 }
 0x192   :  { %1093 = vmatmul.bf16.gmra.mxu1 %v544_v33 }
 0x193   :  { %v1383_v32 = vmax.f32 %v1308_v40, 0.0  ;;  %1221 = vmatmul.bf16.gmra.mxu2 %v545_v41  ;;  %v1317_v50 = vpop.f32.mrf.mxu3 }
 0x195   :  { %v1434_v38 = vmul.f32 %v3260_v6, %v1383_v32 }
 0x196   :  { %v1182_v42 = vpop.f32.mrf.mxu2  ;;  %v928_v53 = vpop.f32.mrf.mxu0 }
 0x197   :  { %v1485_v49 = vadd.f32 %v3267_v17, %v1434_v38  ;;  %v1183_v51 = vadd.f32 %v1182_v42, %v1055_v47  ;;  %v1056_v54 = vpop.f32.mrf.mxu1  ;;  %v929_v52 = vadd.f32 %v3215_v30, %v928_v53 }
 0x199   :  { %v2283_v55 = vpack.c.bf16 %v1485_v49, %v1484_v48  ;;  %v1311_v37 = vadd.f32 %v1310_v3, %v1183_v51  ;;  %v1057_v46 = vadd.f32 %v1056_v54, %v929_v52 }
 0x19b   :  { %2338 = vst [vmem:[%s3370_s5 + $0x70] sm:$0xff] %v2283_v55   ;;  %v1384_v57 = vmax.f32 %v1311_v37, 0.0  ;;  %v1320_v63 = vpop.f32.mrf.mxu3 }
 0x19d   :  { %v1435_v0 = vmul.f32 %v3260_v6, %v1384_v57 }
 0x19e   :  { %v1184_v56 = vpop.f32.mrf.mxu2  ;;  %v931_v61 = vpop.f32.mrf.mxu0 }
 0x19f   :  { %v1185_v59 = vadd.f32 %v1184_v56, %v1057_v46  ;;  %v1059_v62 = vpop.f32.mrf.mxu1  ;;  %v932_v58 = vadd.f32 %v3215_v30, %v931_v61  ;;  %v1486_v8 = vadd.f32 %v3267_v17, %v1435_v0 }
 0x1a1   :  { %v1313_v60 = vadd.f32 %v1312_v5, %v1185_v59  ;;  %v1060_v2 = vadd.f32 %v1059_v62, %v932_v58 }
 0x1a3   :  { %v1385_v1 = vmax.f32 %v1313_v60, 0.0  ;;  %v1322_v12 = vpop.f32.mrf.mxu3 }
 0x1a5   :  { %v1436_v4 = vmul.f32 %v3260_v6, %v1385_v1 }
 0x1a6   :  { %v1187_v7 = vpop.f32.mrf.mxu2  ;;  %v933_v10 = vpop.f32.mrf.mxu0 }
 0x1a7   :  { %v1487_v3 = vadd.f32 %v3267_v17, %v1436_v4  ;;  %v1188_v9 = vadd.f32 %v1187_v7, %v1060_v2  ;;  %v1061_v11 = vpop.f32.mrf.mxu1  ;;  %v934_v16 = vadd.f32 %v3215_v30, %v933_v10 }
 0x1a9   :  { %v2288_v14 = vpack.c.bf16 %v1487_v3, %v1486_v8  ;;  %v1316_v15 = vadd.f32 %v1315_v44, %v1188_v9  ;;  %v1062_v13 = vadd.f32 %v1061_v11, %v934_v16 }
 0x1ab   :  { %2339 = vst [vmem:[%s3370_s5 + $0x78] sm:$0xff] %v2288_v14   ;;  %v1386_v19 = vmax.f32 %v1316_v15, 0.0  ;;  %v1325_v25 = vpop.f32.mrf.mxu3 }
 0x1ad   :  { %v1437_v26 = vmul.f32 %v3260_v6, %v1386_v19 }
 0x1ae   :  { %v1189_v18 = vpop.f32.mrf.mxu2  ;;  %v936_v21 = vpop.f32.mrf.mxu0 }
 0x1af   :  { %v1190_v20 = vadd.f32 %v1189_v18, %v1062_v13  ;;  %v1064_v5 = vpop.f32.mrf.mxu1  ;;  %v937_v24 = vadd.f32 %v3215_v30, %v936_v21  ;;  %v1488_v31 = vadd.f32 %v3267_v17, %v1437_v26 }
 0x1b1   :  { %v1318_v22 = vadd.f32 %v1317_v50, %v1190_v20  ;;  %v1065_v27 = vadd.f32 %v1064_v5, %v937_v24 }
 0x1b3   :  { %v1387_v23 = vmax.f32 %v1318_v22, 0.0  ;;  %v1327_v39 = vpop.f32.mrf.mxu3 }
 0x1b5   :  { %v1438_v28 = vmul.f32 %v3260_v6, %v1387_v23 }
 0x1b6   :  { %v1192_v29 = vpop.f32.mrf.mxu2  ;;  %v938_v35 = vpop.f32.mrf.mxu0 }
 0x1b7   :  { %v1489_v33 = vadd.f32 %v3267_v17, %v1438_v28  ;;  %v1193_v34 = vadd.f32 %v1192_v29, %v1065_v27  ;;  %v1066_v36 = vpop.f32.mrf.mxu1  ;;  %v939_v43 = vadd.f32 %v3215_v30, %v938_v35 }
 0x1b9   :  { %v2293_v41 = vpack.c.bf16 %v1489_v33, %v1488_v31  ;;  %v1321_v44 = vadd.f32 %v1320_v63, %v1193_v34  ;;  %v1067_v40 = vadd.f32 %v1066_v36, %v939_v43 }
 0x1bb   :  { %2340 = vst [vmem:[%s3370_s5 + $0x80] sm:$0xff] %v2293_v41   ;;  %v1388_v32 = vmax.f32 %v1321_v44, 0.0  ;;  %v1330_v49 = vpop.f32.mrf.mxu3 }
 0x1bd   :  { %v1439_v53 = vmul.f32 %v3260_v6, %v1388_v32 }
 0x1be   :  { %v1194_v45 = vpop.f32.mrf.mxu2  ;;  %v941_v38 = vpop.f32.mrf.mxu0 }
 0x1bf   :  { %v1195_v47 = vadd.f32 %v1194_v45, %v1067_v40  ;;  %v1069_v42 = vpop.f32.mrf.mxu1  ;;  %v942_v48 = vadd.f32 %v3215_v30, %v941_v38  ;;  %v1490_v37 = vadd.f32 %v3267_v17, %v1439_v53 }
 0x1c1   :  { %v1323_v51 = vadd.f32 %v1322_v12, %v1195_v47  ;;  %v1070_v50 = vadd.f32 %v1069_v42, %v942_v48 }
 0x1c3   :  { %v1389_v54 = vmax.f32 %v1323_v51, 0.0  ;;  %v1332_v61 = vpop.f32.mrf.mxu3 }
 0x1c5   :  { %v1440_v55 = vmul.f32 %v3260_v6, %v1389_v54 }
 0x1c6   :  { %v1197_v52 = vpop.f32.mrf.mxu2  ;;  %v943_v57 = vpop.f32.mrf.mxu0 }
 0x1c7   :  { %v1491_v46 = vadd.f32 %v3267_v17, %v1440_v55  ;;  %v1198_v56 = vadd.f32 %v1197_v52, %v1070_v50  ;;  %v1071_v59 = vpop.f32.mrf.mxu1  ;;  %v944_v58 = vadd.f32 %v3215_v30, %v943_v57 }
 0x1c9   :  { %v2298_v62 = vpack.c.bf16 %v1491_v46, %v1490_v37  ;;  %v1326_v63 = vadd.f32 %v1325_v25, %v1198_v56  ;;  %v1072_v60 = vadd.f32 %v1071_v59, %v944_v58 }
 0x1cb   :  { %2341 = vst [vmem:[%s3370_s5 + $0x88] sm:$0xff] %v2298_v62   ;;  %v1390_v1 = vmax.f32 %v1326_v63, 0.0  ;;  %v1335_v3 = vpop.f32.mrf.mxu3 }
 0x1cd   :  { %v1441_v10 = vmul.f32 %v3260_v6, %v1390_v1 }
 0x1ce   :  { %v1199_v0 = vpop.f32.mrf.mxu2  ;;  %v946_v4 = vpop.f32.mrf.mxu0 }
 0x1cf   :  { %v1200_v2 = vadd.f32 %v1199_v0, %v1072_v60  ;;  %v1074_v7 = vpop.f32.mrf.mxu1  ;;  %v947_v8 = vadd.f32 %v3215_v30, %v946_v4  ;;  %v1492_v15 = vadd.f32 %v3267_v17, %v1441_v10 }
 0x1d1   :  { %v1328_v9 = vadd.f32 %v1327_v39, %v1200_v2  ;;  %v1075_v12 = vadd.f32 %v1074_v7, %v947_v8 }
 0x1d3   :  { %v1391_v11 = vmax.f32 %v1328_v9, 0.0  ;;  %v1337_v21 = vpop.f32.mrf.mxu3 }
 0x1d5   :  { %v1442_v14 = vmul.f32 %v3260_v6, %v1391_v11 }
 0x1d6   :  { %v1202_v16 = vpop.f32.mrf.mxu2  ;;  %v948_v19 = vpop.f32.mrf.mxu0 }
 0x1d7   :  { %v1493_v13 = vadd.f32 %v3267_v17, %v1442_v14  ;;  %v1203_v18 = vadd.f32 %v1202_v16, %v1075_v12  ;;  %v1076_v20 = vpop.f32.mrf.mxu1  ;;  %v949_v24 = vadd.f32 %v3215_v30, %v948_v19 }
 0x1d9   :  { %v2303_v5 = vpack.c.bf16 %v1493_v13, %v1492_v15  ;;  %v1331_v25 = vadd.f32 %v1330_v49, %v1203_v18  ;;  %v1077_v22 = vadd.f32 %v1076_v20, %v949_v24 }
 0x1db   :  { %2342 = vst [vmem:[%s3370_s5 + $0x90] sm:$0xff] %v2303_v5   ;;  %v1392_v23 = vmax.f32 %v1331_v25, 0.0  ;;  %v1340_v33 = vpop.f32.mrf.mxu3 }
 0x1dd   :  { %v1443_v35 = vmul.f32 %v3260_v6, %v1392_v23 }
 0x1de   :  { %v1204_v26 = vpop.f32.mrf.mxu2  ;;  %v951_v28 = vpop.f32.mrf.mxu0 }
 0x1df   :  { %v1205_v27 = vadd.f32 %v1204_v26, %v1077_v22  ;;  %v1079_v29 = vpop.f32.mrf.mxu1  ;;  %v952_v31 = vadd.f32 %v3215_v30, %v951_v28  ;;  %v1494_v44 = vadd.f32 %v3267_v17, %v1443_v35 }
 0x1e1   :  { %v1333_v34 = vadd.f32 %v1332_v61, %v1205_v27  ;;  %v1080_v39 = vadd.f32 %v1079_v29, %v952_v31 }
 0x1e3   :  { %v1393_v36 = vmax.f32 %v1333_v34, 0.0  ;;  %v1342_v38 = vpop.f32.mrf.mxu3 }
 0x1e5   :  { %v1444_v41 = vmul.f32 %v3260_v6, %v1393_v36 }
 0x1e6   :  { %v1207_v43 = vpop.f32.mrf.mxu2  ;;  %v953_v32 = vpop.f32.mrf.mxu0 }
 0x1e7   :  { %v1495_v40 = vadd.f32 %v3267_v17, %v1444_v41  ;;  %v1208_v45 = vadd.f32 %v1207_v43, %v1080_v39  ;;  %v1081_v47 = vpop.f32.mrf.mxu1  ;;  %v954_v48 = vadd.f32 %v3215_v30, %v953_v32 }
 0x1e9   :  { %v2308_v42 = vpack.c.bf16 %v1495_v40, %v1494_v44  ;;  %v1336_v49 = vadd.f32 %v1335_v3, %v1208_v45  ;;  %v1082_v51 = vadd.f32 %v1081_v47, %v954_v48 }
 0x1eb   :  { %2343 = vst [vmem:[%s3370_s5 + $0x98] sm:$0xff] %v2308_v42   ;;  %v1394_v54 = vmax.f32 %v1336_v49, 0.0  ;;  %v1345_v46 = vpop.f32.mrf.mxu3 }
 0x1ed   :  { %v1445_v57 = vmul.f32 %v3260_v6, %v1394_v54 }
 0x1ee   :  { %v1209_v53 = vpop.f32.mrf.mxu2  ;;  %v956_v55 = vpop.f32.mrf.mxu0 }
 0x1ef   :  { %v1210_v50 = vadd.f32 %v1209_v53, %v1082_v51  ;;  %v1084_v52 = vpop.f32.mrf.mxu1  ;;  %v957_v37 = vadd.f32 %v3215_v30, %v956_v55  ;;  %v1496_v63 = vadd.f32 %v3267_v17, %v1445_v57 }
 0x1f1   :  { %v1338_v56 = vadd.f32 %v1337_v21, %v1210_v50  ;;  %v1085_v61 = vadd.f32 %v1084_v52, %v957_v37 }
 0x1f3   :  { %v1395_v59 = vmax.f32 %v1338_v56, 0.0  ;;  %v1347_v4 = vpop.f32.mrf.mxu3 }
 0x1f5   :  { %v1446_v62 = vmul.f32 %v3260_v6, %v1395_v59 }
 0x1f6   :  { %v1212_v58 = vpop.f32.mrf.mxu2  ;;  %v958_v1 = vpop.f32.mrf.mxu0 }
 0x1f7   :  { %v1497_v60 = vadd.f32 %v3267_v17, %v1446_v62  ;;  %v1213_v0 = vadd.f32 %v1212_v58, %v1085_v61  ;;  %v1086_v2 = vpop.f32.mrf.mxu1  ;;  %v959_v8 = vadd.f32 %v3215_v30, %v958_v1 }
 0x1f9   :  { %v2313_v7 = vpack.c.bf16 %v1497_v60, %v1496_v63  ;;  %v1341_v3 = vadd.f32 %v1340_v33, %v1213_v0  ;;  %v1087_v9 = vadd.f32 %v1086_v2, %v959_v8 }
 0x1fb   :  { %2344 = vst [vmem:[%s3370_s5 + $0xa0] sm:$0xff] %v2313_v7   ;;  %v1396_v11 = vmax.f32 %v1341_v3, 0.0  ;;  %v1350_v13 = vpop.f32.mrf.mxu3 }
 0x1fd   :  { %v1447_v19 = vmul.f32 %v3260_v6, %v1396_v11 }
 0x1fe   :  { %v1214_v10 = vpop.f32.mrf.mxu2  ;;  %v961_v14 = vpop.f32.mrf.mxu0 }
 0x1ff   :  { %v1215_v12 = vadd.f32 %v1214_v10, %v1087_v9  ;;  %v1089_v16 = vpop.f32.mrf.mxu1  ;;  %v962_v15 = vadd.f32 %v3215_v30, %v961_v14  ;;  %v1498_v25 = vadd.f32 %v3267_v17, %v1447_v19 }
 0x201   :  { %v1343_v18 = vadd.f32 %v1342_v38, %v1215_v12  ;;  %v1090_v21 = vadd.f32 %v1089_v16, %v962_v15 }
 0x203   :  { %v1397_v20 = vmax.f32 %v1343_v18, 0.0  ;;  %v1352_v28 = vpop.f32.mrf.mxu3 }
 0x205   :  { %v1448_v5 = vmul.f32 %v3260_v6, %v1397_v20 }
 0x206   :  { %v1217_v24 = vpop.f32.mrf.mxu2  ;;  %v963_v23 = vpop.f32.mrf.mxu0 }
 0x207   :  { %v1499_v22 = vadd.f32 %v3267_v17, %v1448_v5  ;;  %v1218_v26 = vadd.f32 %v1217_v24, %v1090_v21  ;;  %v1091_v27 = vpop.f32.mrf.mxu1  ;;  %v964_v31 = vadd.f32 %v3215_v30, %v963_v23 }
 0x209   :  { %v2318_v29 = vpack.c.bf16 %v1499_v22, %v1498_v25  ;;  %v1346_v33 = vadd.f32 %v1345_v46, %v1218_v26  ;;  %v1092_v34 = vadd.f32 %v1091_v27, %v964_v31 }
 0x20b   :  { %2345 = vst [vmem:[%s3370_s5 + $0xa8] sm:$0xff] %v2318_v29   ;;  %v1398_v36 = vmax.f32 %v1346_v33, 0.0 }
 0x20d   :  { %v1449_v45 = vmul.f32 %v3260_v6, %v1398_v36 }
 0x20e   :  { %v1219_v35 = vpop.f32.mrf.mxu2  ;;  %v966_v41 = vpop.f32.mrf.mxu0 }
 0x20f   :  { %v1220_v39 = vadd.f32 %v1219_v35, %v1092_v34  ;;  %v1094_v43 = vpop.f32.mrf.mxu1  ;;  %v967_v44 = vadd.f32 %v3215_v30, %v966_v41  ;;  %v1500_v48 = vadd.f32 %v3267_v17, %v1449_v45 }
 0x211   :  { %v1348_v40 = vadd.f32 %v1347_v4, %v1220_v39  ;;  %v1095_v47 = vadd.f32 %v1094_v43, %v967_v44 }
 0x213   :  { %v1399_v32 = vmax.f32 %v1348_v40, 0.0 }
 0x215   :  { %v1450_v38 = vmul.f32 %v3260_v6, %v1399_v32 }
 0x216   :  { %v1222_v42 = vpop.f32.mrf.mxu2  ;;  %v968_v53 = vpop.f32.mrf.mxu0 }
 0x217   :  { %v1501_v49 = vadd.f32 %v3267_v17, %v1450_v38  ;;  %v1223_v51 = vadd.f32 %v1222_v42, %v1095_v47  ;;  %v1096_v54 = vpop.f32.mrf.mxu1 }
 0x219   :  { %v2323_v50 = vpack.c.bf16 %v1501_v49, %v1500_v48  ;;  %v1351_v55 = vadd.f32 %v1350_v13, %v1223_v51 }
 0x21b   :  { %2346 = vst [vmem:[%s3370_s5 + $0xb0] sm:$0xff] %v2323_v50   ;;  %v1400_v30 = vmax.f32 %v1351_v55, 0.0 }
 0x21d   :  { %v1451_v52 = vmul.f32 %v3260_v6, %v1400_v30 }
 0x21e   :  { %v1224_v37 = vpop.f32.mrf.mxu2 }
 0x21f   :  { %v1502_v46 = vadd.f32 %v3267_v17, %v1451_v52 }
 0x221   :  { %v1549_v56 = vpack.c.bf16 %v1502_v46, %v1502_v46 }
 0x223   :  { %1596 = vst [vmem:[%s3370_s5 + $0xb8] sm:$0x7] %v1549_v56 }

// kernel: forward.9
= control target key start
LH: loop header
LB: loop body
LE: loop exit
PB: predicated region body
PF: predicated region fallthrough
CT: control target
= control target key end

     0   :  { %s282_s0 = inlined_call_operand.vmem [shape: bf16[9,24,128], index: 0, kind: input, shape index: {}]   ;;  %s283_s1 = inlined_call_operand.vmem [shape: bf16[24,128], index: 1, kind: output, shape index: {}]  }
   0x1   :  { %v171_v0 = vld [vmem:[%s282_s0] sm:$0xff]   ;;  %v215_v1 = vld [vmem:[%s282_s0 + $0x8] sm:$0xff]   ;;  %v216_v2 = vld [vmem:[%s282_s0 + $0x10] sm:$0xff]  }
   0x2   :  { %v172_v3 = vunpack.c.l.bf16 %v171_v0  ;;  %v173_v4 = vunpack.c.h.bf16 %v171_v0  ;;  %v177_v5 = vunpack.c.h.bf16 %v215_v1  ;;  %v180_v6 = vunpack.c.l.bf16 %v216_v2  ;;  %v217_v7 = vld [vmem:[%s282_s0 + $0x18] sm:$0xff]   ;;  %v218_v8 = vld [vmem:[%s282_s0 + $0x28] sm:$0xff]   ;;  %v152_v11 = vld [vmem:[%s282_s0 + $0x20] sm:$0xff]  }
   0x3   :  { %v184_v9 = vunpack.c.l.bf16 %v217_v7  ;;  %v185_v10 = vunpack.c.h.bf16 %v217_v7  ;;  %v219_v12 = vld [vmem:[%s282_s0 + $0x30] sm:$0xff]   ;;  %v188_v15 = vunpack.c.l.bf16 %v218_v8  ;;  %v50_v16 = vunpack.c.h.bf16 %v152_v11  ;;  %v220_v17 = vld [vmem:[%s282_s0 + $0x40] sm:$0xff]   ;;  %v158_v22 = vld [vmem:[%s282_s0 + $0x38] sm:$0xff]  }
   0x4   :  { %v21_v13 = vmax.f32 %v172_v3, %v177_v5  ;;  %v22_v14 = vmax.f32 %v173_v4, %v180_v6  ;;  %v192_v20 = vunpack.c.l.bf16 %v219_v12  ;;  %v193_v21 = vunpack.c.h.bf16 %v219_v12  ;;  %v221_v24 = vld [vmem:[%s282_s0 + $0x48] sm:$0xff]   ;;  %v222_v31 = vld [vmem:[%s282_s0 + $0x58] sm:$0xff]   ;;  %v164_v38 = vld [vmem:[%s282_s0 + $0x50] sm:$0xff]  }
   0x5   :  { %v196_v23 = vunpack.c.l.bf16 %v220_v17  ;;  %v176_v25 = vunpack.c.l.bf16 %v215_v1  ;;  %v181_v26 = vunpack.c.h.bf16 %v216_v2  ;;  %v82_v29 = vunpack.c.h.bf16 %v158_v22  ;;  %v223_v39 = vld [vmem:[%s282_s0 + $0x60] sm:$0xff]   ;;  %v169_v56 = vld [vmem:[%s282_s0 + $0x68] sm:$0xf] }
   0x6   :  { %v37_v18 = vmax.f32 %v21_v13, %v184_v9  ;;  %v38_v19 = vmax.f32 %v22_v14, %v185_v10  ;;  %v36_v30 = vunpack.c.l.bf16 %v152_v11  ;;  %v189_v33 = vunpack.c.h.bf16 %v218_v8 }
   0x7   :  { %v23_v32 = vmax.f32 %v176_v25, %v181_v26  ;;  %v200_v36 = vunpack.c.l.bf16 %v221_v24  ;;  %v201_v37 = vunpack.c.h.bf16 %v221_v24  ;;  %v68_v41 = vunpack.c.l.bf16 %v158_v22 }
   0x8   :  { %v53_v27 = vmax.f32 %v37_v18, %v50_v16  ;;  %v54_v28 = vmax.f32 %v38_v19, %v188_v15  ;;  %v204_v44 = vunpack.c.l.bf16 %v222_v31  ;;  %v114_v45 = vunpack.c.h.bf16 %v164_v38 }
   0x9   :  { %v39_v40 = vmax.f32 %v23_v32, %v36_v30  ;;  %v197_v47 = vunpack.c.h.bf16 %v220_v17  ;;  %v208_v50 = vunpack.c.l.bf16 %v223_v39  ;;  %v209_v51 = vunpack.c.h.bf16 %v223_v39 }
   0xa   :  { %v69_v34 = vmax.f32 %v53_v27, %v192_v20  ;;  %v70_v35 = vmax.f32 %v54_v28, %v193_v21  ;;  %v100_v53 = vunpack.c.l.bf16 %v164_v38  ;;  %v205_v58 = vunpack.c.h.bf16 %v222_v31 }
   0xb   :  { %v55_v46 = vmax.f32 %v39_v40, %v189_v33  ;;  %v132_v62 = vunpack.c.l.bf16 %v169_v56 }
   0xc   :  { %v85_v42 = vmax.f32 %v69_v34, %v82_v29  ;;  %v86_v43 = vmax.f32 %v70_v35, %v196_v23 }
   0xd   :  { %v71_v52 = vmax.f32 %v55_v46, %v68_v41 }
   0xe   :  { %v101_v48 = vmax.f32 %v85_v42, %v200_v36  ;;  %v102_v49 = vmax.f32 %v86_v43, %v201_v37 }
   0xf   :  { %v87_v57 = vmax.f32 %v71_v52, %v197_v47 }
  0x10   :  { %v117_v54 = vmax.f32 %v101_v48, %v114_v45  ;;  %v118_v55 = vmax.f32 %v102_v49, %v204_v44 }
  0x11   :  { %v103_v61 = vmax.f32 %v87_v57, %v100_v53 }
  0x12   :  { %v133_v59 = vmax.f32 %v117_v54, %v208_v50  ;;  %v134_v60 = vmax.f32 %v118_v55, %v209_v51 }
  0x13   :  { %v119_v0 = vmax.f32 %v103_v61, %v205_v58 }
  0x14   :  { %v213_v63 = vpack.c.bf16 %v134_v60, %v133_v59 }
  0x15   :  { %v135_v1 = vmax.f32 %v119_v0, %v132_v62 }
  0x16   :  { %214 = vst [vmem:[%s283_s1] sm:$0xff] %v213_v63  }
  0x17   :  { %v138_v2 = vpack.c.bf16 %v135_v1, %v135_v1 }
  0x19   :  { %141 = vst [vmem:[%s283_s1 + $0x8] sm:$0xf] %v138_v2 }

// kernel: forward.11
= control target key start
LH: loop header
LB: loop body
LE: loop exit
PB: predicated region body
PF: predicated region fallthrough
CT: control target
= control target key end

     0   :  { %s919_s1 = inlined_call_operand.vmem [shape: bf16[256,256], index: 1, kind: input, shape index: {}]   ;;  %s920_s0 = inlined_call_operand.vmem [shape: bf16[64,256], index: 0, kind: input, shape index: {}]   ;;  %s921_s2 = inlined_call_operand.vmem [shape: f32[1,256], index: 2, kind: input, shape index: {}]   ;;  %s922_s3 = inlined_call_operand.vmem [shape: bf16[64,256], index: 3, kind: output, shape index: {}]  }
   0x1   :  { %v502_v0 = vld [vmem:[%s919_s1 + $0x70] sm:$0xf]  ;;  %v595_v1 = vld [vmem:[%s919_s1 + $0x74] sm:$0xf0]  ;;  %v594_v5 = vld [vmem:[%s919_s1 + $0x74] sm:$0xf] }
   0x2   :  { %v566_v2 = vld [vmem:[%s919_s1 + $0xf0] sm:$0xf]  ;;  %v503_v3 = vor.u32 %v595_v1, %v502_v0  ;;  %v611_v4 = vld [vmem:[%s919_s1 + $0xf4] sm:$0xf0]  ;;  %v504_v6 = vld [vmem:[%s919_s1 + $0x78] sm:$0xf0] }
   0x3   :  { %v567_v7 = vor.u32 %v611_v4, %v566_v2  ;;  %v507_v8 = vor.u32 %v594_v5, %v504_v6  ;;  %v610_v9 = vld [vmem:[%s919_s1 + $0xf4] sm:$0xf]  ;;  %v568_v10 = vld [vmem:[%s919_s1 + $0xf8] sm:$0xf0]  ;;  %v494_v11 = vld [vmem:[%s919_s1 + $0x60] sm:$0xf] }
   0x4   :  { %260 = vmatpush.bf16.msra.mxu0 %v503_v3  ;;  %v571_v12 = vor.u32 %v610_v9, %v568_v10  ;;  %v593_v13 = vld [vmem:[%s919_s1 + $0x64] sm:$0xf0]  ;;  %v558_v14 = vld [vmem:[%s919_s1 + $0xe0] sm:$0xf]  ;;  %v592_v18 = vld [vmem:[%s919_s1 + $0x64] sm:$0xf] }
   0x5   :  { %v609_v15 = vld [vmem:[%s919_s1 + $0xe4] sm:$0xf0]  ;;  %289 = vmatpush.bf16.msra.mxu1 %v567_v7  ;;  %318 = vmatpush.bf16.msra.mxu2 %v507_v8  ;;  %v495_v16 = vor.u32 %v593_v13, %v494_v11  ;;  %v496_v19 = vld [vmem:[%s919_s1 + $0x68] sm:$0xf0]  ;;  %v608_v20 = vld [vmem:[%s919_s1 + $0xe4] sm:$0xf] }
   0x6   :  { %v559_v17 = vor.u32 %v609_v15, %v558_v14  ;;  %347 = vmatpush.bf16.msra.mxu3 %v571_v12  ;;  %v499_v21 = vor.u32 %v592_v18, %v496_v19  ;;  %v560_v22 = vld [vmem:[%s919_s1 + $0xe8] sm:$0xf0]  ;;  %v486_v23 = vld [vmem:[%s919_s1 + $0x50] sm:$0xf]  ;;  %v591_v24 = vld [vmem:[%s919_s1 + $0x54] sm:$0xf0] }
   0x7   :  { %v563_v25 = vor.u32 %v608_v20, %v560_v22  ;;  %v550_v26 = vld [vmem:[%s919_s1 + $0xd0] sm:$0xf]  ;;  %v607_v27 = vld [vmem:[%s919_s1 + $0xd4] sm:$0xf0]  ;;  %v590_v28 = vld [vmem:[%s919_s1 + $0x54] sm:$0xf]  ;;  %v487_v29 = vor.u32 %v591_v24, %v486_v23 }
   0x8   :  { %261 = vmatpush.bf16.msra.mxu0 %v495_v16  ;;  %v488_v30 = vld [vmem:[%s919_s1 + $0x58] sm:$0xf0]  ;;  %v606_v31 = vld [vmem:[%s919_s1 + $0xd4] sm:$0xf]  ;;  %v551_v33 = vor.u32 %v607_v27, %v550_v26  ;;  %v478_v35 = vld [vmem:[%s919_s1 + $0x40] sm:$0xf] }
   0x9   :  { %v552_v32 = vld [vmem:[%s919_s1 + $0xd8] sm:$0xf0]  ;;  %290 = vmatpush.bf16.msra.mxu1 %v559_v17  ;;  %319 = vmatpush.bf16.msra.mxu2 %v499_v21  ;;  %v491_v34 = vor.u32 %v590_v28, %v488_v30  ;;  %v589_v36 = vld [vmem:[%s919_s1 + $0x44] sm:$0xf0]  ;;  %v542_v37 = vld [vmem:[%s919_s1 + $0xc0] sm:$0xf] }
   0xa   :  { %348 = vmatpush.bf16.msra.mxu3 %v563_v25  ;;  %v555_v38 = vor.u32 %v606_v31, %v552_v32  ;;  %v605_v39 = vld [vmem:[%s919_s1 + $0xc4] sm:$0xf0]  ;;  %v588_v40 = vld [vmem:[%s919_s1 + $0x44] sm:$0xf]  ;;  %v480_v41 = vld [vmem:[%s919_s1 + $0x48] sm:$0xf0]  ;;  %v479_v44 = vor.u32 %v589_v36, %v478_v35 }
   0xb   :  { %v604_v42 = vld [vmem:[%s919_s1 + $0xc4] sm:$0xf]  ;;  %v544_v43 = vld [vmem:[%s919_s1 + $0xc8] sm:$0xf0]  ;;  %v543_v45 = vor.u32 %v605_v39, %v542_v37  ;;  %v483_v46 = vor.u32 %v588_v40, %v480_v41  ;;  %v470_v47 = vld [vmem:[%s919_s1 + $0x30] sm:$0xf] }
   0xc   :  { %262 = vmatpush.bf16.msra.mxu0 %v487_v29  ;;  %v587_v48 = vld [vmem:[%s919_s1 + $0x34] sm:$0xf0]  ;;  %v534_v49 = vld [vmem:[%s919_s1 + $0xb0] sm:$0xf]  ;;  %v547_v50 = vor.u32 %v604_v42, %v544_v43  ;;  %v586_v52 = vld [vmem:[%s919_s1 + $0x34] sm:$0xf] }
   0xd   :  { %291 = vmatpush.bf16.msra.mxu1 %v551_v33  ;;  %320 = vmatpush.bf16.msra.mxu2 %v491_v34  ;;  %v603_v51 = vld [vmem:[%s919_s1 + $0xb4] sm:$0xf0]  ;;  %v472_v53 = vld [vmem:[%s919_s1 + $0x38] sm:$0xf0]  ;;  %v602_v54 = vld [vmem:[%s919_s1 + $0xb4] sm:$0xf]  ;;  %v471_v56 = vor.u32 %v587_v48, %v470_v47 }
   0xe   :  { %349 = vmatpush.bf16.msra.mxu3 %v555_v38  ;;  %v536_v55 = vld [vmem:[%s919_s1 + $0xb8] sm:$0xf0]  ;;  %v535_v57 = vor.u32 %v603_v51, %v534_v49  ;;  %v475_v58 = vor.u32 %v586_v52, %v472_v53  ;;  %v462_v59 = vld [vmem:[%s919_s1 + $0x20] sm:$0xf]  ;;  %v585_v60 = vld [vmem:[%s919_s1 + $0x24] sm:$0xf0] }
   0xf   :  { %v526_v61 = vld [vmem:[%s919_s1 + $0xa0] sm:$0xf]  ;;  %v539_v62 = vor.u32 %v602_v54, %v536_v55  ;;  %v601_v63 = vld [vmem:[%s919_s1 + $0xa4] sm:$0xf0]  ;;  %v584_v0 = vld [vmem:[%s919_s1 + $0x24] sm:$0xf]  ;;  %v463_v4 = vor.u32 %v585_v60, %v462_v59 }
  0x10   :  { %263 = vmatpush.bf16.msra.mxu0 %v479_v44  ;;  %v464_v1 = vld [vmem:[%s919_s1 + $0x28] sm:$0xf0]  ;;  %v600_v2 = vld [vmem:[%s919_s1 + $0xa4] sm:$0xf]  ;;  %v527_v5 = vor.u32 %v601_v63, %v526_v61  ;;  %v454_v7 = vld [vmem:[%s919_s1 + $0x10] sm:$0xf] }
  0x11   :  { %292 = vmatpush.bf16.msra.mxu1 %v543_v45  ;;  %321 = vmatpush.bf16.msra.mxu2 %v483_v46  ;;  %v528_v3 = vld [vmem:[%s919_s1 + $0xa8] sm:$0xf0]  ;;  %v467_v6 = vor.u32 %v584_v0, %v464_v1  ;;  %v583_v8 = vld [vmem:[%s919_s1 + $0x14] sm:$0xf0]  ;;  %v518_v9 = vld [vmem:[%s919_s1 + $0x90] sm:$0xf] }
  0x12   :  { %350 = vmatpush.bf16.msra.mxu3 %v547_v50  ;;  %v531_v10 = vor.u32 %v600_v2, %v528_v3  ;;  %v599_v11 = vld [vmem:[%s919_s1 + $0x94] sm:$0xf0]  ;;  %v582_v12 = vld [vmem:[%s919_s1 + $0x14] sm:$0xf]  ;;  %v456_v13 = vld [vmem:[%s919_s1 + $0x18] sm:$0xf0]  ;;  %v455_v16 = vor.u32 %v583_v8, %v454_v7 }
  0x13   :  { %v598_v14 = vld [vmem:[%s919_s1 + $0x94] sm:$0xf]  ;;  %v520_v15 = vld [vmem:[%s919_s1 + $0x98] sm:$0xf0]  ;;  %v519_v17 = vor.u32 %v599_v11, %v518_v9  ;;  %v459_v18 = vor.u32 %v582_v12, %v456_v13  ;;  %v446_v19 = vld [vmem:[%s919_s1] sm:$0xf] }
  0x14   :  { %264 = vmatpush.bf16.msra.mxu0 %v471_v56  ;;  %v581_v20 = vld [vmem:[%s919_s1 + $0x4] sm:$0xf0]  ;;  %v510_v21 = vld [vmem:[%s919_s1 + $0x80] sm:$0xf]  ;;  %v523_v22 = vor.u32 %v598_v14, %v520_v15  ;;  %v580_v24 = vld [vmem:[%s919_s1 + $0x4] sm:$0xf] }
  0x15   :  { %293 = vmatpush.bf16.msra.mxu1 %v535_v57  ;;  %322 = vmatpush.bf16.msra.mxu2 %v475_v58  ;;  %v597_v23 = vld [vmem:[%s919_s1 + $0x84] sm:$0xf0]  ;;  %v448_v25 = vld [vmem:[%s919_s1 + $0x8] sm:$0xf0]  ;;  %v596_v26 = vld [vmem:[%s919_s1 + $0x84] sm:$0xf]  ;;  %v447_v28 = vor.u32 %v581_v20, %v446_v19 }
  0x16   :  { %351 = vmatpush.bf16.msra.mxu3 %v539_v62  ;;  %v512_v27 = vld [vmem:[%s919_s1 + $0x88] sm:$0xf0]  ;;  %v414_v29 = vld [vmem:[%s920_s0] sm:$0xf]  ;;  %v573_v30 = vld [vmem:[%s920_s0 + $0x4] sm:$0xf0]  ;;  %v511_v31 = vor.u32 %v597_v23, %v510_v21  ;;  %v451_v32 = vor.u32 %v580_v24, %v448_v25 }
  0x17   :  { %v572_v33 = vld [vmem:[%s920_s0 + $0x4] sm:$0xf]  ;;  %v416_v34 = vld [vmem:[%s920_s0 + $0x8] sm:$0xf0]  ;;  %v515_v35 = vor.u32 %v596_v26, %v512_v27  ;;  %v415_v36 = vor.u32 %v573_v30, %v414_v29  ;;  %v422_v38 = vld [vmem:[%s920_s0 + $0x10] sm:$0xf] }
  0x18   :  { %265 = vmatpush.bf16.msra.mxu0 %v463_v4  ;;  %v419_v37 = vor.u32 %v572_v33, %v416_v34  ;;  %v575_v39 = vld [vmem:[%s920_s0 + $0x14] sm:$0xf0]  ;;  %v574_v40 = vld [vmem:[%s920_s0 + $0x14] sm:$0xf]  ;;  %v424_v41 = vld [vmem:[%s920_s0 + $0x18] sm:$0xf0] }
  0x19   :  { %294 = vmatpush.bf16.msra.mxu1 %v527_v5  ;;  %323 = vmatpush.bf16.msra.mxu2 %v467_v6  ;;  %v423_v42 = vor.u32 %v575_v39, %v422_v38  ;;  %v427_v43 = vor.u32 %v574_v40, %v424_v41  ;;  %v430_v44 = vld [vmem:[%s920_s0 + $0x20] sm:$0xf]  ;;  %v577_v45 = vld [vmem:[%s920_s0 + $0x24] sm:$0xf0]  ;;  %v576_v46 = vld [vmem:[%s920_s0 + $0x24] sm:$0xf] }
  0x1a   :  { %352 = vmatpush.bf16.msra.mxu3 %v531_v10  ;;  %v432_v47 = vld [vmem:[%s920_s0 + $0x28] sm:$0xf0]  ;;  %v431_v48 = vor.u32 %v577_v45, %v430_v44  ;;  %v438_v50 = vld [vmem:[%s920_s0 + $0x30] sm:$0xf]  ;;  %v579_v51 = vld [vmem:[%s920_s0 + $0x34] sm:$0xf0] }
  0x1b   :  { %v435_v49 = vor.u32 %v576_v46, %v432_v47  ;;  %v578_v52 = vld [vmem:[%s920_s0 + $0x34] sm:$0xf]  ;;  %v440_v53 = vld [vmem:[%s920_s0 + $0x38] sm:$0xf0]  ;;  %v439_v54 = vor.u32 %v579_v51, %v438_v50  ;;  %v54_v56 = vld [vmem:[%s921_s2] sm:$0x3] }
  0x1c   :  { %266 = vmatpush.bf16.msra.mxu0 %v455_v16  ;;  %v443_v55 = vor.u32 %v578_v52, %v440_v53  ;;  %v875_v57 = vperm.slane %v54_v56, 0  ;;  %v878_v61 = vperm.slane %v54_v56, 1 }
  0x1d   :  { %295 = vmatpush.bf16.msra.mxu1 %v519_v17  ;;  %324 = vmatpush.bf16.msra.mxu2 %v459_v18 }
  0x1e   :  { %353 = vmatpush.bf16.msra.mxu3 %v523_v22 }
  0x20   :  { %267 = vmatpush.bf16.msra.mxu0 %v447_v28 }
  0x21   :  { %296 = vmatpush.bf16.msra.mxu1 %v511_v31  ;;  %325 = vmatpush.bf16.msra.mxu2 %v451_v32 }
  0x22   :  { %354 = vmatpush.bf16.msra.mxu3 %v515_v35 }
  0x23   :  { %268 = vmatmul.bf16.vlgmr.msra.gmra.mxu0 %v415_v36 }
  0x24   :  { %297 = vmatmul.bf16.vlgmr.msra.gmra.mxu1 %v419_v37  ;;  %326 = vmatmul.bf16.vlgmr.msra.gmra.mxu2 %v415_v36 }
  0x25   :  { %355 = vmatmul.bf16.vlgmr.msra.gmra.mxu3 %v419_v37 }
  0x33   :  { %273 = vmatmul.bf16.gmra.mxu0 %v423_v42 }
  0x34   :  { %302 = vmatmul.bf16.gmra.mxu1 %v427_v43  ;;  %331 = vmatmul.bf16.gmra.mxu2 %v423_v42 }
  0x35   :  { %360 = vmatmul.bf16.gmra.mxu3 %v427_v43 }
  0x43   :  { %278 = vmatmul.bf16.gmra.mxu0 %v431_v48 }
  0x44   :  { %307 = vmatmul.bf16.gmra.mxu1 %v435_v49  ;;  %336 = vmatmul.bf16.gmra.mxu2 %v431_v48 }
  0x45   :  { %365 = vmatmul.bf16.gmra.mxu3 %v435_v49 }
  0x53   :  { %283 = vmatmul.bf16.gmra.mxu0 %v439_v54 }
  0x54   :  { %312 = vmatmul.bf16.gmra.mxu1 %v443_v55  ;;  %341 = vmatmul.bf16.gmra.mxu2 %v439_v54 }
  0x55   :  { %370 = vmatmul.bf16.gmra.mxu3 %v443_v55 }
  0xa0   :  { %v269_v58 = vpop.f32.mrf.mxu0 }
  0xa1   :  { %v298_v59 = vpop.f32.mrf.mxu1  ;;  %v270_v60 = vadd.f32 %v269_v58, %v875_v57 }
  0xa3   :  { %v299_v62 = vadd.f32 %v298_v59, %v270_v60 }
  0xa5   :  { %v376_v4 = vmax.f32 %v299_v62, 0.0 }
  0xa7   :  { %v327_v63 = vpop.f32.mrf.mxu2 }
  0xa8   :  { %v328_v0 = vadd.f32 %v327_v63, %v878_v61  ;;  %v356_v1 = vpop.f32.mrf.mxu3  ;;  %v271_v2 = vpop.f32.mrf.mxu0 }
  0xa9   :  { %v300_v3 = vpop.f32.mrf.mxu1  ;;  %v272_v7 = vadd.f32 %v271_v2, %v875_v57 }
  0xaa   :  { %v357_v5 = vadd.f32 %v356_v1, %v328_v0 }
  0xab   :  { %v301_v10 = vadd.f32 %v300_v3, %v272_v7 }
  0xac   :  { %v377_v6 = vmax.f32 %v357_v5, 0.0 }
  0xad   :  { %v378_v17 = vmax.f32 %v301_v10, 0.0 }
  0xae   :  { %v392_v8 = vpack.c.bf16 %v377_v6, %v376_v4 }
  0xaf   :  { %v329_v9 = vpop.f32.mrf.mxu2 }
  0xb0   :  { %400 = vst [vmem:[%s922_s3] sm:$0xff] %v392_v8  ;;  %v330_v11 = vadd.f32 %v329_v9, %v878_v61  ;;  %v358_v12 = vpop.f32.mrf.mxu3  ;;  %v274_v13 = vpop.f32.mrf.mxu0 }
  0xb1   :  { %v303_v14 = vpop.f32.mrf.mxu1  ;;  %v275_v16 = vadd.f32 %v274_v13, %v875_v57 }
  0xb2   :  { %v359_v15 = vadd.f32 %v358_v12, %v330_v11 }
  0xb3   :  { %v304_v20 = vadd.f32 %v303_v14, %v275_v16 }
  0xb4   :  { %v379_v18 = vmax.f32 %v359_v15, 0.0 }
  0xb5   :  { %v380_v26 = vmax.f32 %v304_v20, 0.0 }
  0xb6   :  { %v393_v19 = vpack.c.bf16 %v379_v18, %v378_v17 }
  0xb7   :  { %v332_v21 = vpop.f32.mrf.mxu2 }
  0xb8   :  { %401 = vst [vmem:[%s922_s3 + $0x8] sm:$0xff] %v393_v19  ;;  %v333_v22 = vadd.f32 %v332_v21, %v878_v61  ;;  %v361_v23 = vpop.f32.mrf.mxu3  ;;  %v276_v24 = vpop.f32.mrf.mxu0 }
  0xb9   :  { %v305_v25 = vpop.f32.mrf.mxu1  ;;  %v277_v29 = vadd.f32 %v276_v24, %v875_v57 }
  0xba   :  { %v362_v27 = vadd.f32 %v361_v23, %v333_v22 }
  0xbb   :  { %v306_v32 = vadd.f32 %v305_v25, %v277_v29 }
  0xbc   :  { %v381_v28 = vmax.f32 %v362_v27, 0.0 }
  0xbd   :  { %v382_v39 = vmax.f32 %v306_v32, 0.0 }
  0xbe   :  { %v394_v30 = vpack.c.bf16 %v381_v28, %v380_v26 }
  0xbf   :  { %v334_v31 = vpop.f32.mrf.mxu2 }
  0xc0   :  { %402 = vst [vmem:[%s922_s3 + $0x10] sm:$0xff] %v394_v30  ;;  %v335_v33 = vadd.f32 %v334_v31, %v878_v61  ;;  %v363_v34 = vpop.f32.mrf.mxu3  ;;  %v279_v35 = vpop.f32.mrf.mxu0 }
  0xc1   :  { %v308_v36 = vpop.f32.mrf.mxu1  ;;  %v280_v38 = vadd.f32 %v279_v35, %v875_v57 }
  0xc2   :  { %v364_v37 = vadd.f32 %v363_v34, %v335_v33 }
  0xc3   :  { %v309_v42 = vadd.f32 %v308_v36, %v280_v38 }
  0xc4   :  { %v383_v40 = vmax.f32 %v364_v37, 0.0 }
  0xc5   :  { %v384_v47 = vmax.f32 %v309_v42, 0.0 }
  0xc6   :  { %v395_v41 = vpack.c.bf16 %v383_v40, %v382_v39 }
  0xc7   :  { %v337_v43 = vpop.f32.mrf.mxu2 }
  0xc8   :  { %403 = vst [vmem:[%s922_s3 + $0x18] sm:$0xff] %v395_v41  ;;  %v338_v44 = vadd.f32 %v337_v43, %v878_v61  ;;  %v366_v45 = vpop.f32.mrf.mxu3  ;;  %v281_v46 = vpop.f32.mrf.mxu0 }
  0xc9   :  { %v310_v49 = vpop.f32.mrf.mxu1  ;;  %v282_v51 = vadd.f32 %v281_v46, %v875_v57 }
  0xca   :  { %v367_v48 = vadd.f32 %v366_v45, %v338_v44 }
  0xcb   :  { %v311_v54 = vadd.f32 %v310_v49, %v282_v51 }
  0xcc   :  { %v385_v50 = vmax.f32 %v367_v48, 0.0 }
  0xcd   :  { %v386_v62 = vmax.f32 %v311_v54, 0.0 }
  0xce   :  { %v396_v52 = vpack.c.bf16 %v385_v50, %v384_v47 }
  0xcf   :  { %v339_v53 = vpop.f32.mrf.mxu2 }
  0xd0   :  { %404 = vst [vmem:[%s922_s3 + $0x20] sm:$0xff] %v396_v52  ;;  %v340_v55 = vadd.f32 %v339_v53, %v878_v61  ;;  %v368_v56 = vpop.f32.mrf.mxu3  ;;  %v284_v58 = vpop.f32.mrf.mxu0 }
  0xd1   :  { %v285_v60 = vadd.f32 %v284_v58, %v875_v57  ;;  %v313_v0 = vpop.f32.mrf.mxu1 }
  0xd2   :  { %v369_v59 = vadd.f32 %v368_v56, %v340_v55 }
  0xd3   :  { %v314_v2 = vadd.f32 %v313_v0, %v285_v60 }
  0xd4   :  { %v387_v63 = vmax.f32 %v369_v59, 0.0 }
  0xd5   :  { %v388_v7 = vmax.f32 %v314_v2, 0.0 }
  0xd6   :  { %v397_v1 = vpack.c.bf16 %v387_v63, %v386_v62 }
  0xd7   :  { %v342_v3 = vpop.f32.mrf.mxu2 }
  0xd8   :  { %405 = vst [vmem:[%s922_s3 + $0x28] sm:$0xff] %v397_v1  ;;  %v343_v4 = vadd.f32 %v342_v3, %v878_v61  ;;  %v371_v5 = vpop.f32.mrf.mxu3  ;;  %v286_v6 = vpop.f32.mrf.mxu0 }
  0xd9   :  { %v287_v10 = vadd.f32 %v286_v6, %v875_v57  ;;  %v315_v12 = vpop.f32.mrf.mxu1 }
  0xda   :  { %v372_v8 = vadd.f32 %v371_v5, %v343_v4 }
  0xdb   :  { %v316_v14 = vadd.f32 %v315_v12, %v287_v10 }
  0xdc   :  { %v389_v9 = vmax.f32 %v372_v8, 0.0 }
  0xdd   :  { %v390_v18 = vmax.f32 %v316_v14, 0.0 }
  0xde   :  { %v398_v11 = vpack.c.bf16 %v389_v9, %v388_v7 }
  0xdf   :  { %v344_v13 = vpop.f32.mrf.mxu2 }
  0xe0   :  { %406 = vst [vmem:[%s922_s3 + $0x30] sm:$0xff] %v398_v11  ;;  %v345_v15 = vadd.f32 %v344_v13, %v878_v61  ;;  %v373_v16 = vpop.f32.mrf.mxu3 }
  0xe2   :  { %v374_v17 = vadd.f32 %v373_v16, %v345_v15 }
  0xe4   :  { %v391_v19 = vmax.f32 %v374_v17, 0.0 }
  0xe6   :  { %v399_v20 = vpack.c.bf16 %v391_v19, %v390_v18 }
  0xe8   :  { %407 = vst [vmem:[%s922_s3 + $0x38] sm:$0xff] %v399_v20 }

// kernel: forward.10
= control target key start
LH: loop header
LB: loop body
LE: loop exit
PB: predicated region body
PF: predicated region fallthrough
CT: control target
= control target key end

     0   :  { %vm264_vm0 = vcmask 261120   ;;  %s901_s1 = inlined_call_operand.vmem [shape: bf16[288,128], index: 1, kind: input, shape index: {}]   ;;  %s902_s0 = inlined_call_operand.vmem [shape: bf16[80,288], index: 0, kind: input, shape index: {}]   ;;  %s903_s2 = inlined_call_operand.vmem [shape: f32[1,128], index: 2, kind: input, shape index: {}]   ;;  %s904_s3 = inlined_call_operand.vmem [shape: f32[1,128], index: 3, kind: input, shape index: {}]   ;;  %s905_s4 = inlined_call_operand.vmem [shape: f32[1,128], index: 4, kind: input, shape index: {}]   ;;  %s906_s5 = inlined_call_operand.vmem [shape: bf16[80,128], index: 5, kind: output, shape index: {}]  }
   0x1   :  { %v603_v0 = vld [vmem:[%s901_s1 + $0x38] sm:$0xff]  ;;  %v613_v2 = vld [vmem:[%s901_s1 + $0x88] sm:$0xff]  ;;  %v602_v3 = vld [vmem:[%s901_s1 + $0x30] sm:$0xff] }
   0x2   :  { %v611_v1 = vld [vmem:[%s901_s1 + $0x78] sm:$0xff]  ;;  %280 = vmatpush.bf16.msra.mxu0 %v603_v0  ;;  %643 = vmatpush.bf16.msra.mxu3 %v603_v0  ;;  %v610_v4 = vld [vmem:[%s901_s1 + $0x70] sm:$0xff]  ;;  %v612_v5 = vld [vmem:[%s901_s1 + $0x80] sm:$0xff] }
   0x3   :  { %651 = vmatpush.bf16.msra.mxu1 %v611_v1  ;;  %354 = vmatpush.bf16.msra.mxu2 %v613_v2  ;;  %v454_v6 = vld [vmem:[%s902_s0 + $0x8] sm:$0xf]  ;;  %v583_v7 = vld [vmem:[%s902_s0 + $0x10] sm:$0xf0]  ;;  %v600_v11 = vld [vmem:[%s901_s1 + $0x20] sm:$0xff] }
   0x4   :  { %v601_v8 = vld [vmem:[%s901_s1 + $0x28] sm:$0xff]  ;;  %v455_v10 = vor.u32 %v583_v7, %v454_v6  ;;  %v608_v12 = vld [vmem:[%s901_s1 + $0x60] sm:$0xff]  ;;  %v599_v13 = vld [vmem:[%s901_s1 + $0x18] sm:$0xff] }
   0x5   :  { %v609_v9 = vld [vmem:[%s901_s1 + $0x68] sm:$0xff]  ;;  %v607_v14 = vld [vmem:[%s901_s1 + $0x58] sm:$0xff]  ;;  %v598_v15 = vld [vmem:[%s901_s1 + $0x10] sm:$0xff] }
   0x6   :  { %281 = vmatpush.bf16.msra.mxu0 %v602_v3  ;;  %644 = vmatpush.bf16.msra.mxu3 %v602_v3  ;;  %v606_v16 = vld [vmem:[%s901_s1 + $0x50] sm:$0xff]  ;;  %v466_v17 = vld [vmem:[%s902_s0 + $0x20] sm:$0xf]  ;;  %v586_v18 = vld [vmem:[%s902_s0 + $0x28] sm:$0xf0] }
   0x7   :  { %652 = vmatpush.bf16.msra.mxu1 %v610_v4  ;;  %355 = vmatpush.bf16.msra.mxu2 %v612_v5  ;;  %v597_v19 = vld [vmem:[%s901_s1 + $0x8] sm:$0xff]  ;;  %v467_v21 = vor.u32 %v586_v18, %v466_v17  ;;  %v596_v22 = vld [vmem:[%s901_s1] sm:$0xff]  ;;  %v458_v23 = vld [vmem:[%s902_s0 + $0x18] sm:$0xf] }
   0x8   :  { %v605_v20 = vld [vmem:[%s901_s1 + $0x48] sm:$0xff]  ;;  %v585_v24 = vld [vmem:[%s902_s0 + $0x20] sm:$0xf0]  ;;  %v446_v25 = vld [vmem:[%s902_s0] sm:$0xf] }
   0x9   :  { %v582_v26 = vld [vmem:[%s902_s0 + $0x8] sm:$0xf0]  ;;  %v604_v27 = vld [vmem:[%s901_s1 + $0x40] sm:$0xff]  ;;  %v584_v28 = vld [vmem:[%s902_s0 + $0x1c] sm:$0xf]  ;;  %v459_v30 = vor.u32 %v585_v24, %v458_v23 }
   0xa   :  { %282 = vmatpush.bf16.msra.mxu0 %v601_v8  ;;  %645 = vmatpush.bf16.msra.mxu3 %v601_v8  ;;  %v460_v29 = vld [vmem:[%s902_s0 + $0x24] sm:$0xf0]  ;;  %v447_v31 = vor.u32 %v582_v26, %v446_v25  ;;  %v478_v33 = vld [vmem:[%s902_s0 + $0x38] sm:$0xf]  ;;  %v589_v34 = vld [vmem:[%s902_s0 + $0x40] sm:$0xf0] }
   0xb   :  { %653 = vmatpush.bf16.msra.mxu1 %v609_v9  ;;  %576 = vmatmul.msk.bf16.vlgmr.msra.gmra.mxu2 %vm264_vm0, %v455_v10  ;;  %v463_v32 = vor.u32 %v584_v28, %v460_v29  ;;  %v479_v35 = vor.u32 %v589_v34, %v478_v33  ;;  %v470_v36 = vld [vmem:[%s902_s0 + $0x30] sm:$0xf]  ;;  %v588_v37 = vld [vmem:[%s902_s0 + $0x38] sm:$0xf0]  ;;  %v587_v38 = vld [vmem:[%s902_s0 + $0x34] sm:$0xf] }
   0xc   :  { %v472_v39 = vld [vmem:[%s902_s0 + $0x3c] sm:$0xf0]  ;;  %v471_v40 = vor.u32 %v588_v37, %v470_v36  ;;  %v490_v42 = vld [vmem:[%s902_s0 + $0x50] sm:$0xf]  ;;  %v592_v43 = vld [vmem:[%s902_s0 + $0x58] sm:$0xf0] }
   0xd   :  { %v475_v41 = vor.u32 %v587_v38, %v472_v39  ;;  %v491_v44 = vor.u32 %v592_v43, %v490_v42  ;;  %v581_v45 = vld [vmem:[%s902_s0 + $0x4] sm:$0xf]  ;;  %v448_v46 = vld [vmem:[%s902_s0 + $0xc] sm:$0xf0]  ;;  %v482_v48 = vld [vmem:[%s902_s0 + $0x48] sm:$0xf] }
   0xe   :  { %283 = vmatpush.bf16.msra.mxu0 %v600_v11  ;;  %646 = vmatpush.bf16.msra.mxu3 %v600_v11  ;;  %v451_v47 = vor.u32 %v581_v45, %v448_v46  ;;  %v591_v49 = vld [vmem:[%s902_s0 + $0x50] sm:$0xf0]  ;;  %v590_v50 = vld [vmem:[%s902_s0 + $0x4c] sm:$0xf]  ;;  %v484_v51 = vld [vmem:[%s902_s0 + $0x54] sm:$0xf0] }
   0xf   :  { %654 = vmatpush.bf16.msra.mxu1 %v608_v12  ;;  %v483_v52 = vor.u32 %v591_v49, %v482_v48  ;;  %v487_v53 = vor.u32 %v590_v50, %v484_v51  ;;  %v502_v54 = vld [vmem:[%s902_s0 + $0x68] sm:$0xf]  ;;  %v595_v55 = vld [vmem:[%s902_s0 + $0x70] sm:$0xf0]  ;;  %v494_v57 = vld [vmem:[%s902_s0 + $0x60] sm:$0xf] }
  0x10   :  { %v503_v56 = vor.u32 %v595_v55, %v502_v54  ;;  %v594_v58 = vld [vmem:[%s902_s0 + $0x68] sm:$0xf0]  ;;  %v593_v59 = vld [vmem:[%s902_s0 + $0x64] sm:$0xf]  ;;  %v496_v60 = vld [vmem:[%s902_s0 + $0x6c] sm:$0xf0] }
  0x11   :  { %v495_v61 = vor.u32 %v594_v58, %v494_v57  ;;  %v499_v62 = vor.u32 %v593_v59, %v496_v60  ;;  %v844_v3 = vld [vmem:[%s903_s2] ss:$0 sm:$0xff] }
  0x12   :  { %284 = vmatpush.bf16.msra.mxu0 %v599_v13  ;;  %647 = vmatpush.bf16.msra.mxu3 %v599_v13 }
  0x13   :  { %655 = vmatpush.bf16.msra.mxu1 %v607_v14 }
  0x16   :  { %285 = vmatpush.bf16.msra.mxu0 %v598_v15  ;;  %648 = vmatpush.bf16.msra.mxu3 %v598_v15  ;;  %v851_v15 = vld [vmem:[%s904_s3] ss:$0 sm:$0xff] }
  0x17   :  { %656 = vmatpush.bf16.msra.mxu1 %v606_v16 }
  0x1a   :  { %286 = vmatpush.bf16.msra.mxu0 %v597_v19  ;;  %649 = vmatpush.bf16.msra.mxu3 %v597_v19 }
  0x1b   :  { %657 = vmatpush.bf16.msra.mxu1 %v605_v20  ;;  %577 = vmatmul.msk.bf16.gmra.mxu2 %vm264_vm0, %v467_v21  ;;  %v857_v21 = vld [vmem:[%s905_s4] ss:$0 sm:$0xff] }
  0x1e   :  { %287 = vmatpush.bf16.msra.mxu0 %v596_v22  ;;  %650 = vmatpush.bf16.msra.mxu3 %v596_v22 }
  0x1f   :  { %658 = vmatpush.bf16.msra.mxu1 %v604_v27 }
  0x21   :  { %293 = vmatmul.bf16.vlgmr.msra.gmra.mxu3 %v459_v30  ;;  %288 = vmatmul.bf16.vlgmr.msra.gmra.mxu0 %v447_v31 }
  0x22   :  { %314 = vmatpush.bf16.msrb.mxu0 %v611_v1  ;;  %327 = vmatmul.bf16.vlgmr.msra.gmra.mxu1 %v463_v32 }
  0x26   :  { %315 = vmatpush.bf16.msrb.mxu0 %v610_v4 }
  0x2a   :  { %316 = vmatpush.bf16.msrb.mxu0 %v609_v9 }
  0x2b   :  { %578 = vmatmul.msk.bf16.gmra.mxu2 %vm264_vm0, %v479_v35 }
  0x2e   :  { %317 = vmatpush.bf16.msrb.mxu0 %v608_v12 }
  0x31   :  { %298 = vmatmul.bf16.gmra.mxu3 %v471_v40 }
  0x32   :  { %318 = vmatpush.bf16.msrb.mxu0 %v607_v14  ;;  %332 = vmatmul.bf16.gmra.mxu1 %v475_v41 }
  0x36   :  { %319 = vmatpush.bf16.msrb.mxu0 %v606_v16 }
  0x3a   :  { %320 = vmatpush.bf16.msrb.mxu0 %v605_v20 }
  0x3b   :  { %579 = vmatmul.msk.bf16.gmra.mxu2 %vm264_vm0, %v491_v44 }
  0x3e   :  { %321 = vmatpush.bf16.msrb.mxu0 %v604_v27 }
  0x41   :  { %322 = vmatmul.bf16.vlgmr.msrb.gmra.mxu0 %v451_v47  ;;  %303 = vmatmul.bf16.gmra.mxu3 %v483_v52 }
  0x42   :  { %337 = vmatmul.bf16.gmra.mxu1 %v487_v53 }
  0x4b   :  { %580 = vmatmul.msk.bf16.gmra.mxu2 %vm264_vm0, %v503_v56 }
  0x51   :  { %308 = vmatmul.bf16.gmra.mxu3 %v495_v61 }
  0x52   :  { %342 = vmatmul.bf16.gmra.mxu1 %v499_v62 }
  0x8e   :  { %v357_v63 = vpop.f32.mrf.mxu2 }
  0x96   :  { %v359_v0 = vpop.f32.mrf.mxu2 }
  0x9e   :  { %v362_v1 = vpop.f32.mrf.mxu2  ;;  %v289_v9 = vpop.f32.mrf.mxu0 }
  0x9f   :  { %v328_v2 = vpop.f32.mrf.mxu1  ;;  %v290_v30 = vadd.f32 %v844_v3, %v289_v9 }
  0xa4   :  { %v294_v4 = vpop.f32.mrf.mxu3 }
  0xa5   :  { %v295_v5 = vadd.f32 %v844_v3, %v294_v4 }
  0xa6   :  { %v364_v6 = vpop.f32.mrf.mxu2  ;;  %v291_v19 = vpop.f32.mrf.mxu0 }
  0xa7   :  { %v329_v7 = vadd.f32 %v328_v2, %v295_v5  ;;  %v330_v8 = vpop.f32.mrf.mxu1  ;;  %v292_v40 = vadd.f32 %v844_v3, %v291_v19 }
  0xa9   :  { %v363_v10 = vadd.f32 %v362_v1, %v329_v7 }
  0xab   :  { %v384_v14 = vmax.f32 %v363_v10, 0.0 }
  0xac   :  { %v296_v11 = vpop.f32.mrf.mxu3 }
  0xad   :  { %v297_v12 = vadd.f32 %v844_v3, %v296_v11  ;;  %v398_v20 = vmul.f32 %v851_v15, %v384_v14 }
  0xae   :  { %v367_v13 = vpop.f32.mrf.mxu2 }
  0xaf   :  { %v331_v16 = vadd.f32 %v330_v8, %v297_v12  ;;  %v333_v17 = vpop.f32.mrf.mxu1  ;;  %v412_v26 = vadd.f32 %v857_v21, %v398_v20 }
  0xb1   :  { %v365_v18 = vadd.f32 %v364_v6, %v331_v16 }
  0xb3   :  { %v385_v22 = vmax.f32 %v365_v18, 0.0 }
  0xb4   :  { %v299_v23 = vpop.f32.mrf.mxu3 }
  0xb5   :  { %v399_v24 = vmul.f32 %v851_v15, %v385_v22  ;;  %v300_v25 = vadd.f32 %v844_v3, %v299_v23 }
  0xb6   :  { %v369_v31 = vpop.f32.mrf.mxu2 }
  0xb7   :  { %v413_v27 = vadd.f32 %v857_v21, %v399_v24  ;;  %v334_v28 = vadd.f32 %v333_v17, %v300_v25  ;;  %v335_v29 = vpop.f32.mrf.mxu1 }
  0xb9   :  { %v622_v32 = vpack.c.bf16 %v413_v27, %v412_v26  ;;  %v368_v33 = vadd.f32 %v367_v13, %v334_v28 }
  0xbb   :  { %639 = vst [vmem:[%s906_s5 + $0x8] sm:$0xff] %v622_v32   ;;  %v386_v38 = vmax.f32 %v368_v33, 0.0 }
  0xbc   :  { %v301_v36 = vpop.f32.mrf.mxu3 }
  0xbd   :  { %v302_v37 = vadd.f32 %v844_v3, %v301_v36  ;;  %v400_v45 = vmul.f32 %v851_v15, %v386_v38 }
  0xbe   :  { %v323_v34 = vpop.f32.mrf.mxu0  ;;  %v372_v44 = vpop.f32.mrf.mxu2 }
  0xbf   :  { %v324_v35 = vadd.f32 %v323_v34, %v290_v30  ;;  %v336_v39 = vadd.f32 %v335_v29, %v302_v37  ;;  %v338_v42 = vpop.f32.mrf.mxu1  ;;  %v414_v54 = vadd.f32 %v857_v21, %v400_v45 }
  0xc1   :  { %v358_v41 = vadd.f32 %v357_v63, %v324_v35  ;;  %v370_v43 = vadd.f32 %v369_v31, %v336_v39 }
  0xc3   :  { %v387_v46 = vmax.f32 %v370_v43, 0.0  ;;  %v382_v48 = vmax.f32 %v358_v41, 0.0 }
  0xc4   :  { %v304_v50 = vpop.f32.mrf.mxu3 }
  0xc5   :  { %v401_v51 = vmul.f32 %v851_v15, %v387_v46  ;;  %v305_v52 = vadd.f32 %v844_v3, %v304_v50  ;;  %v396_v57 = vmul.f32 %v851_v15, %v382_v48 }
  0xc6   :  { %v325_v47 = vpop.f32.mrf.mxu0  ;;  %v374_v1 = vpop.f32.mrf.mxu2 }
  0xc7   :  { %v326_v49 = vadd.f32 %v325_v47, %v292_v40  ;;  %v415_v55 = vadd.f32 %v857_v21, %v401_v51  ;;  %v339_v56 = vadd.f32 %v338_v42, %v305_v52  ;;  %v340_v61 = vpop.f32.mrf.mxu1  ;;  %v410_v63 = vadd.f32 %v857_v21, %v396_v57 }
  0xc9   :  { %v360_v53 = vadd.f32 %v359_v0, %v326_v49  ;;  %v627_v59 = vpack.c.bf16 %v415_v55, %v414_v54  ;;  %v373_v62 = vadd.f32 %v372_v44, %v339_v56 }
  0xcb   :  { %v383_v58 = vmax.f32 %v360_v53, 0.0  ;;  %640 = vst [vmem:[%s906_s5 + $0x10] sm:$0xff] %v627_v59   ;;  %v388_v6 = vmax.f32 %v373_v62, 0.0 }
  0xcc   :  { %v306_v2 = vpop.f32.mrf.mxu3 }
  0xcd   :  { %v397_v60 = vmul.f32 %v851_v15, %v383_v58  ;;  %v307_v4 = vadd.f32 %v844_v3, %v306_v2  ;;  %v402_v9 = vmul.f32 %v851_v15, %v388_v6 }
  0xce   :  { %v377_v16 = vpop.f32.mrf.mxu2 }
  0xcf   :  { %v411_v0 = vadd.f32 %v857_v21, %v397_v60  ;;  %v341_v7 = vadd.f32 %v340_v61, %v307_v4  ;;  %v343_v11 = vpop.f32.mrf.mxu1  ;;  %v416_v17 = vadd.f32 %v857_v21, %v402_v9 }
  0xd1   :  { %v617_v5 = vpack.c.bf16 %v411_v0, %v410_v63  ;;  %v375_v8 = vadd.f32 %v374_v1, %v341_v7 }
  0xd3   :  { %618 = vst [vmem:[%s906_s5] sm:$0xff] %v617_v5   ;;  %v389_v10 = vmax.f32 %v375_v8, 0.0 }
  0xd4   :  { %v309_v12 = vpop.f32.mrf.mxu3 }
  0xd5   :  { %v403_v13 = vmul.f32 %v851_v15, %v389_v10  ;;  %v310_v14 = vadd.f32 %v844_v3, %v309_v12 }
  0xd6   :  { %v379_v28 = vpop.f32.mrf.mxu2 }
  0xd7   :  { %v417_v18 = vadd.f32 %v857_v21, %v403_v13  ;;  %v344_v19 = vadd.f32 %v343_v11, %v310_v14  ;;  %v345_v25 = vpop.f32.mrf.mxu1 }
  0xd9   :  { %v632_v20 = vpack.c.bf16 %v417_v18, %v416_v17  ;;  %v378_v22 = vadd.f32 %v377_v16, %v344_v19 }
  0xdb   :  { %641 = vst [vmem:[%s906_s5 + $0x18] sm:$0xff] %v632_v20   ;;  %v390_v26 = vmax.f32 %v378_v22, 0.0 }
  0xdc   :  { %v311_v23 = vpop.f32.mrf.mxu3 }
  0xdd   :  { %v312_v24 = vadd.f32 %v844_v3, %v311_v23  ;;  %v404_v30 = vmul.f32 %v851_v15, %v390_v26 }
  0xdf   :  { %v346_v27 = vadd.f32 %v345_v25, %v312_v24  ;;  %v418_v33 = vadd.f32 %v857_v21, %v404_v30 }
  0xe1   :  { %v380_v29 = vadd.f32 %v379_v28, %v346_v27 }
  0xe3   :  { %v391_v31 = vmax.f32 %v380_v29, 0.0 }
  0xe5   :  { %v405_v32 = vmul.f32 %v851_v15, %v391_v31 }
  0xe7   :  { %v419_v34 = vadd.f32 %v857_v21, %v405_v32 }
  0xe9   :  { %v637_v35 = vpack.c.bf16 %v419_v34, %v418_v33 }
  0xeb   :  { %642 = vst [vmem:[%s906_s5 + $0x20] sm:$0xff] %v637_v35  }

// kernel: forward.13
= control target key start
LH: loop header
LB: loop body
LE: loop exit
PB: predicated region body
PF: predicated region fallthrough
CT: control target
= control target key end

     0   :  { %s1267_s1 = inlined_call_operand.vmem [shape: bf16[1024,128], index: 1, kind: input, shape index: {}]   ;;  %s1268_s2 = inlined_call_operand.vmem [shape: f32[1,128], index: 2, kind: input, shape index: {}]   ;;  %s1269_s0 = inlined_call_operand.vmem [shape: bf16[8,1024], index: 0, kind: input, shape index: {}]   ;;  %s1270_s3 = inlined_call_operand.vmem [shape: f32[8,128], index: 3, kind: output, shape index: {0}]   ;;  %s1271_s4 = inlined_call_operand.vmem [shape: f32[8,128], index: 4, kind: output, shape index: {1}]  }
   0x1   :  { %v967_v0 = vld [vmem:[%s1267_s1 + $0x38] sm:$0xff]  ;;  %v966_v4 = vld [vmem:[%s1267_s1 + $0x30] sm:$0xff]  ;;  %v965_v8 = vld [vmem:[%s1267_s1 + $0x28] sm:$0xff] }
   0x2   :  { %v975_v1 = vld [vmem:[%s1267_s1 + $0x78] sm:$0xff]  ;;  %564 = vmatpush.bf16.msra.mxu0 %v967_v0  ;;  %v974_v5 = vld [vmem:[%s1267_s1 + $0x70] sm:$0xff]  ;;  %v973_v9 = vld [vmem:[%s1267_s1 + $0x68] sm:$0xff] }
   0x3   :  { %v983_v2 = vld [vmem:[%s1267_s1 + $0xb8] sm:$0xff]  ;;  %577 = vmatpush.bf16.msra.mxu1 %v975_v1  ;;  %v982_v6 = vld [vmem:[%s1267_s1 + $0xb0] sm:$0xff]  ;;  %v981_v10 = vld [vmem:[%s1267_s1 + $0xa8] sm:$0xff] }
   0x4   :  { %v991_v3 = vld [vmem:[%s1267_s1 + $0xf8] sm:$0xff]  ;;  %590 = vmatpush.bf16.msra.mxu2 %v983_v2  ;;  %v990_v7 = vld [vmem:[%s1267_s1 + $0xf0] sm:$0xff]  ;;  %v989_v11 = vld [vmem:[%s1267_s1 + $0xe8] sm:$0xff] }
   0x5   :  { %603 = vmatpush.bf16.msra.mxu3 %v991_v3  ;;  %v964_v12 = vld [vmem:[%s1267_s1 + $0x20] sm:$0xff]  ;;  %v963_v16 = vld [vmem:[%s1267_s1 + $0x18] sm:$0xff]  ;;  %v962_v20 = vld [vmem:[%s1267_s1 + $0x10] sm:$0xff] }
   0x6   :  { %565 = vmatpush.bf16.msra.mxu0 %v966_v4  ;;  %v972_v13 = vld [vmem:[%s1267_s1 + $0x60] sm:$0xff]  ;;  %v971_v17 = vld [vmem:[%s1267_s1 + $0x58] sm:$0xff]  ;;  %v970_v21 = vld [vmem:[%s1267_s1 + $0x50] sm:$0xff] }
   0x7   :  { %578 = vmatpush.bf16.msra.mxu1 %v974_v5  ;;  %v980_v14 = vld [vmem:[%s1267_s1 + $0xa0] sm:$0xff]  ;;  %v979_v18 = vld [vmem:[%s1267_s1 + $0x98] sm:$0xff]  ;;  %v978_v22 = vld [vmem:[%s1267_s1 + $0x90] sm:$0xff] }
   0x8   :  { %591 = vmatpush.bf16.msra.mxu2 %v982_v6  ;;  %v988_v15 = vld [vmem:[%s1267_s1 + $0xe0] sm:$0xff]  ;;  %v987_v19 = vld [vmem:[%s1267_s1 + $0xd8] sm:$0xff]  ;;  %v986_v23 = vld [vmem:[%s1267_s1 + $0xd0] sm:$0xff] }
   0x9   :  { %604 = vmatpush.bf16.msra.mxu3 %v990_v7  ;;  %v961_v24 = vld [vmem:[%s1267_s1 + $0x8] sm:$0xff]  ;;  %v16_v29 = vld [vmem:[%s1269_s0] sm:$0xff]  ;;  %v999_v38 = vld [vmem:[%s1267_s1 + $0x138] sm:$0xff] }
   0xa   :  { %566 = vmatpush.bf16.msra.mxu0 %v965_v8  ;;  %v969_v25 = vld [vmem:[%s1267_s1 + $0x48] sm:$0xff]  ;;  %v960_v30 = vld [vmem:[%s1267_s1] sm:$0xff]  ;;  %v156_v33 = vunpack.c.l.b16 %v16_v29  ;;  %v157_v37 = vunpack.c.h.b16 %v16_v29  ;;  %v1007_v39 = vld [vmem:[%s1267_s1 + $0x178] sm:$0xff] }
   0xb   :  { %579 = vmatpush.bf16.msra.mxu1 %v973_v9  ;;  %v977_v26 = vld [vmem:[%s1267_s1 + $0x88] sm:$0xff]  ;;  %v968_v31 = vld [vmem:[%s1267_s1 + $0x40] sm:$0xff]  ;;  %v1015_v40 = vld [vmem:[%s1267_s1 + $0x1b8] sm:$0xff] }
   0xc   :  { %592 = vmatpush.bf16.msra.mxu2 %v981_v10  ;;  %v985_v27 = vld [vmem:[%s1267_s1 + $0xc8] sm:$0xff]  ;;  %v976_v34 = vld [vmem:[%s1267_s1 + $0x80] sm:$0xff]  ;;  %v1023_v41 = vld [vmem:[%s1267_s1 + $0x1f8] sm:$0xff]  ;;  %v164_v43 = vpack.c.b16 %v156_v33, %v156_v33  ;;  %v165_v45 = vpack.c.b16 %v157_v37, %v157_v37 }
   0xd   :  { %605 = vmatpush.bf16.msra.mxu3 %v989_v11  ;;  %v17_v28 = vld [vmem:[%s1269_s0 + $0x8] sm:$0xff]  ;;  %v984_v35 = vld [vmem:[%s1267_s1 + $0xc0] sm:$0xff]  ;;  %v998_v46 = vld [vmem:[%s1267_s1 + $0x130] sm:$0xff] }
   0xe   :  { %567 = vmatpush.bf16.msra.mxu0 %v964_v12  ;;  %v158_v32 = vunpack.c.l.b16 %v17_v28  ;;  %v159_v36 = vunpack.c.h.b16 %v17_v28  ;;  %v1006_v47 = vld [vmem:[%s1267_s1 + $0x170] sm:$0xff]  ;;  %v997_v50 = vld [vmem:[%s1267_s1 + $0x128] sm:$0xff]  ;;  %v996_v54 = vld [vmem:[%s1267_s1 + $0x120] sm:$0xff] }
   0xf   :  { %580 = vmatpush.bf16.msra.mxu1 %v972_v13  ;;  %v1014_v48 = vld [vmem:[%s1267_s1 + $0x1b0] sm:$0xff]  ;;  %v1005_v51 = vld [vmem:[%s1267_s1 + $0x168] sm:$0xff]  ;;  %v1004_v55 = vld [vmem:[%s1267_s1 + $0x160] sm:$0xff] }
  0x10   :  { %593 = vmatpush.bf16.msra.mxu2 %v980_v14  ;;  %v166_v42 = vpack.c.b16 %v158_v32, %v158_v32  ;;  %v167_v44 = vpack.c.b16 %v159_v36, %v159_v36  ;;  %v1022_v49 = vld [vmem:[%s1267_s1 + $0x1f0] sm:$0xff]  ;;  %v1013_v52 = vld [vmem:[%s1267_s1 + $0x1a8] sm:$0xff]  ;;  %v1012_v56 = vld [vmem:[%s1267_s1 + $0x1a0] sm:$0xff] }
  0x11   :  { %606 = vmatpush.bf16.msra.mxu3 %v988_v15  ;;  %v1021_v53 = vld [vmem:[%s1267_s1 + $0x1e8] sm:$0xff]  ;;  %v1020_v57 = vld [vmem:[%s1267_s1 + $0x1e0] sm:$0xff]  ;;  %v995_v58 = vld [vmem:[%s1267_s1 + $0x118] sm:$0xff] }
  0x12   :  { %568 = vmatpush.bf16.msra.mxu0 %v963_v16  ;;  %v1003_v59 = vld [vmem:[%s1267_s1 + $0x158] sm:$0xff]  ;;  %v994_v62 = vld [vmem:[%s1267_s1 + $0x110] sm:$0xff]  ;;  %v993_v2 = vld [vmem:[%s1267_s1 + $0x108] sm:$0xff] }
  0x13   :  { %581 = vmatpush.bf16.msra.mxu1 %v971_v17  ;;  %v1011_v60 = vld [vmem:[%s1267_s1 + $0x198] sm:$0xff]  ;;  %v1002_v63 = vld [vmem:[%s1267_s1 + $0x150] sm:$0xff]  ;;  %v1001_v3 = vld [vmem:[%s1267_s1 + $0x148] sm:$0xff] }
  0x14   :  { %594 = vmatpush.bf16.msra.mxu2 %v979_v18  ;;  %v1019_v61 = vld [vmem:[%s1267_s1 + $0x1d8] sm:$0xff]  ;;  %v1010_v0 = vld [vmem:[%s1267_s1 + $0x190] sm:$0xff]  ;;  %v1009_v5 = vld [vmem:[%s1267_s1 + $0x188] sm:$0xff] }
  0x15   :  { %607 = vmatpush.bf16.msra.mxu3 %v987_v19  ;;  %v1018_v1 = vld [vmem:[%s1267_s1 + $0x1d0] sm:$0xff]  ;;  %v1017_v6 = vld [vmem:[%s1267_s1 + $0x1c8] sm:$0xff]  ;;  %v19_v7 = vld [vmem:[%s1269_s0 + $0x18] sm:$0xff] }
  0x16   :  { %569 = vmatpush.bf16.msra.mxu0 %v962_v20  ;;  %v18_v4 = vld [vmem:[%s1269_s0 + $0x10] sm:$0xff]  ;;  %v992_v10 = vld [vmem:[%s1267_s1 + $0x100] sm:$0xff]  ;;  %v162_v12 = vunpack.c.l.b16 %v19_v7  ;;  %v163_v13 = vunpack.c.h.b16 %v19_v7 }
  0x17   :  { %582 = vmatpush.bf16.msra.mxu1 %v970_v21  ;;  %v160_v8 = vunpack.c.l.b16 %v18_v4  ;;  %v161_v9 = vunpack.c.h.b16 %v18_v4  ;;  %v1000_v11 = vld [vmem:[%s1267_s1 + $0x140] sm:$0xff] }
  0x18   :  { %595 = vmatpush.bf16.msra.mxu2 %v978_v22  ;;  %v1008_v14 = vld [vmem:[%s1267_s1 + $0x180] sm:$0xff]  ;;  %v170_v18 = vpack.c.b16 %v162_v12, %v162_v12  ;;  %v171_v19 = vpack.c.b16 %v163_v13, %v163_v13 }
  0x19   :  { %608 = vmatpush.bf16.msra.mxu3 %v986_v23  ;;  %v1016_v15 = vld [vmem:[%s1267_s1 + $0x1c0] sm:$0xff]  ;;  %v168_v16 = vpack.c.b16 %v160_v8, %v160_v8  ;;  %v169_v17 = vpack.c.b16 %v161_v9, %v161_v9 }
  0x1a   :  { %570 = vmatpush.bf16.msra.mxu0 %v961_v24 }
  0x1b   :  { %583 = vmatpush.bf16.msra.mxu1 %v969_v25 }
  0x1c   :  { %596 = vmatpush.bf16.msra.mxu2 %v977_v26  ;;  %v1024_v26 = vld [vmem:[%s1268_s2] ss:$0 sm:$0xff] }
  0x1d   :  { %609 = vmatpush.bf16.msra.mxu3 %v985_v27 }
  0x1e   :  { %571 = vmatpush.bf16.msra.mxu0 %v960_v30 }
  0x1f   :  { %584 = vmatpush.bf16.msra.mxu1 %v968_v31 }
  0x20   :  { %597 = vmatpush.bf16.msra.mxu2 %v976_v34 }
  0x21   :  { %610 = vmatpush.bf16.msra.mxu3 %v984_v35  ;;  %572 = vmatmul.bf16.vlgmr.msra.gmra.mxu0 %v164_v43  ;;  %v669_v35 = vlaneseq }
  0x22   :  { %616 = vmatpush.bf16.msrb.mxu0 %v999_v38  ;;  %585 = vmatmul.bf16.vlgmr.msra.gmra.mxu1 %v165_v45 }
  0x23   :  { %629 = vmatpush.bf16.msrb.mxu1 %v1007_v39  ;;  %598 = vmatmul.bf16.vlgmr.msra.gmra.mxu2 %v166_v42  ;;  %v670_v37 = vand.u32 127, %v669_v35 }
  0x24   :  { %642 = vmatpush.bf16.msrb.mxu2 %v1015_v40  ;;  %611 = vmatmul.bf16.vlgmr.msra.gmra.mxu3 %v167_v44 }
  0x25   :  { %655 = vmatpush.bf16.msrb.mxu3 %v1023_v41  ;;  %vm671_vm0 = vcmp.lt.s32.totalorder %v670_v37, 3 }
  0x26   :  { %617 = vmatpush.bf16.msrb.mxu0 %v998_v46 }
  0x27   :  { %630 = vmatpush.bf16.msrb.mxu1 %v1006_v47 }
  0x28   :  { %643 = vmatpush.bf16.msrb.mxu2 %v1014_v48 }
  0x29   :  { %656 = vmatpush.bf16.msrb.mxu3 %v1022_v49 }
  0x2a   :  { %618 = vmatpush.bf16.msrb.mxu0 %v997_v50 }
  0x2b   :  { %631 = vmatpush.bf16.msrb.mxu1 %v1005_v51 }
  0x2c   :  { %644 = vmatpush.bf16.msrb.mxu2 %v1013_v52 }
  0x2d   :  { %657 = vmatpush.bf16.msrb.mxu3 %v1021_v53 }
  0x2e   :  { %619 = vmatpush.bf16.msrb.mxu0 %v996_v54 }
  0x2f   :  { %632 = vmatpush.bf16.msrb.mxu1 %v1004_v55 }
  0x30   :  { %645 = vmatpush.bf16.msrb.mxu2 %v1012_v56 }
  0x31   :  { %658 = vmatpush.bf16.msrb.mxu3 %v1020_v57 }
  0x32   :  { %620 = vmatpush.bf16.msrb.mxu0 %v995_v58 }
  0x33   :  { %633 = vmatpush.bf16.msrb.mxu1 %v1003_v59 }
  0x34   :  { %646 = vmatpush.bf16.msrb.mxu2 %v1011_v60 }
  0x35   :  { %659 = vmatpush.bf16.msrb.mxu3 %v1019_v61 }
  0x36   :  { %621 = vmatpush.bf16.msrb.mxu0 %v994_v62 }
  0x37   :  { %634 = vmatpush.bf16.msrb.mxu1 %v1002_v63 }
  0x38   :  { %647 = vmatpush.bf16.msrb.mxu2 %v1010_v0 }
  0x39   :  { %660 = vmatpush.bf16.msrb.mxu3 %v1018_v1 }
  0x3a   :  { %622 = vmatpush.bf16.msrb.mxu0 %v993_v2 }
  0x3b   :  { %635 = vmatpush.bf16.msrb.mxu1 %v1001_v3 }
  0x3c   :  { %648 = vmatpush.bf16.msrb.mxu2 %v1009_v5 }
  0x3d   :  { %661 = vmatpush.bf16.msrb.mxu3 %v1017_v6 }
  0x3e   :  { %623 = vmatpush.bf16.msrb.mxu0 %v992_v10 }
  0x3f   :  { %636 = vmatpush.bf16.msrb.mxu1 %v1000_v11 }
  0x40   :  { %649 = vmatpush.bf16.msrb.mxu2 %v1008_v14 }
  0x41   :  { %662 = vmatpush.bf16.msrb.mxu3 %v1016_v15  ;;  %624 = vmatmul.bf16.vlgmr.msrb.gmra.mxu0 %v168_v16 }
  0x42   :  { %637 = vmatmul.bf16.vlgmr.msrb.gmra.mxu1 %v169_v17 }
  0x43   :  { %650 = vmatmul.bf16.vlgmr.msrb.gmra.mxu2 %v170_v18 }
  0x44   :  { %663 = vmatmul.bf16.vlgmr.msrb.gmra.mxu3 %v171_v19 }
  0x9e   :  { %v573_v20 = vpop.f32.mrf.mxu0 }
  0x9f   :  { %v586_v21 = vpop.f32.mrf.mxu1  ;;  %v574_v29 = vadd.f32 %v1024_v26, %v573_v20 }
  0xa1   :  { %v587_v30 = vadd.f32 %v586_v21, %v574_v29 }
  0xa6   :  { %v599_v22 = vpop.f32.mrf.mxu2  ;;  %v575_v24 = vpop.f32.mrf.mxu0 }
  0xa7   :  { %v612_v23 = vpop.f32.mrf.mxu3  ;;  %v588_v25 = vpop.f32.mrf.mxu1  ;;  %v600_v31 = vadd.f32 %v599_v22, %v587_v30 }
  0xa9   :  { %v613_v32 = vadd.f32 %v612_v23, %v600_v31 }
  0xae   :  { %v601_v27 = vpop.f32.mrf.mxu2 }
  0xaf   :  { %v614_v28 = vpop.f32.mrf.mxu3 }
  0xbe   :  { %v625_v33 = vpop.f32.mrf.mxu0 }
  0xbf   :  { %v638_v34 = vpop.f32.mrf.mxu1  ;;  %v626_v36 = vadd.f32 %v625_v33, %v613_v32 }
  0xc1   :  { %v639_v38 = vadd.f32 %v638_v34, %v626_v36 }
  0xc6   :  { %v651_v39 = vpop.f32.mrf.mxu2  ;;  %v627_v42 = vpop.f32.mrf.mxu0 }
  0xc7   :  { %v664_v40 = vpop.f32.mrf.mxu3  ;;  %v652_v41 = vadd.f32 %v651_v39, %v639_v38  ;;  %v640_v43 = vpop.f32.mrf.mxu1 }
  0xc9   :  { %v665_v44 = vadd.f32 %v664_v40, %v652_v41 }
  0xcb   :  { %668 = vst [vmem:[%s1270_s3] sm:$0xff] %v665_v44  ;;  %v672_v45 = vsel %vm671_vm0, %v665_v44, -1e+30 }
  0xcc   :  { %673 = vmax.xlane.f32.xlu0 %v672_v45 }
  0xce   :  { %v653_v46 = vpop.f32.mrf.mxu2 }
  0xcf   :  { %v666_v47 = vpop.f32.mrf.mxu3 }
 0x13f   :  { %v674_v48 = vpop.xlane.xlu0 %673 }
 0x140   :  { %v675_v49 = vsub.f32 %v672_v45, %v674_v48 }
 0x142   :  { %v676_v50 = vmul.f32 1.442695, %v675_v49 }
 0x144   :  { %1025 = vpow2.f32 %v676_v50 }
 0x14a   :  { %v1026_v51 = vpop.eup %1025 }
 0x14b   :  { %678 = vadd.xlane.f32.xlu0 %v1026_v51 }
 0x1be   :  { %v679_v52 = vpop.xlane.xlu0 %678 }
 0x1bf   :  { %1027 = vrcp.f32 %v679_v52  ;;  %v691_v56 = vand.u32 2147483648, %v679_v52  ;;  %v689_v58 = vand.u32 2147483647, %v679_v52  ;;  %vm685_vm2 = vweird.f32 %v679_v52 }
 0x1c1   :  { %v692_v60 = vor.u32 1.1754944e-38, %v691_v56  ;;  %vm690_vm4 = vcmp.eq.f32.partialorder %v689_v58, 8.507059e+37 }
 0x1c5   :  { %v1028_v53 = vpop.eup %1027 }
 0x1c6   :  { %v681_v54 = vmul.f32 %v1028_v53, %v679_v52  ;;  %vm686_vm1 = vweird.f32 %v1028_v53 }
 0x1c7   :  { %vm687_vm3 = vmor %vm685_vm2, %vm686_vm1 }
 0x1c8   :  { %v682_v55 = vsub.f32 1.0, %v681_v54 }
 0x1ca   :  { %v683_v57 = vmul.f32 %v1028_v53, %v682_v55 }
 0x1cc   :  { %v684_v59 = vadd.f32 %v1028_v53, %v683_v57 }
 0x1ce   :  { %v688_v61 = vsel %vm687_vm3, %v1028_v53, %v684_v59 }
 0x1cf   :  { %v693_v62 = vsel %vm690_vm4, %v692_v60, %v688_v61 }
 0x1d0   :  { %v694_v63 = vmul.f32 %v1026_v51, %v693_v62 }
 0x1d2   :  { %695 = vst [vmem:[%s1271_s4] sm:$0xff] %v694_v63 }

// kernel: forward.12
= control target key start
LH: loop header
LB: loop body
LE: loop exit
PB: predicated region body
PF: predicated region fallthrough
CT: control target
= control target key end

     0   :  { %s8737_s12 = smov 0   ;;  %s8739_s13 = smov 0   ;;  %s10629_s0 = inlined_call_operand.vmem [shape: bf16[8,8192], index: 0, kind: input, shape index: {}]   ;;  %s10630_s1 = inlined_call_operand.vmem [shape: bf16[8192,1024], index: 1, kind: input, shape index: {}]   ;;  %s10631_s2 = inlined_call_operand.vmem [shape: f32[1,1024], index: 2, kind: input, shape index: {}]   ;;  %s10632_s3 = inlined_call_operand.vmem [shape: bf16[8,1024], index: 3, kind: output, shape index: {}]  }
   0x1   :  { %s8741_s14 = smov 0   ;;  %s8743_s15 = smov 0  }
   0x2   :  { %s8745_s16 = smov 0   ;;  %s8747_s17 = smov 0  }
   0x3   :  { %s8749_s18 = smov 0  }
   0x4 LB: > { %s22_s19 = sadd.s32 1, %s8690_s16  ;;  %s25_s20 = sadd.s32 1, %s8694_s17  ;;  %s8698_s18 = sphi %s8749_s18, %s13_s18   ;;  %s8694_s17 = sphi %s8747_s17, %s10643_s17   ;;  %s8690_s16 = sphi %s8745_s16, %s10642_s16   ;;  %s8686_s15 = sphi %s8743_s15, %s10641_s15   ;;  %s8682_s14 = sphi %s8741_s14, %s10640_s14   ;;  %s8678_s13 = sphi %s8739_s13, %s10639_s13   ;;  %s8674_s12 = sphi %s8737_s12, %s10638_s12  }
   0x5   : > { %p23_p0 = scmp.ge.s32.totalorder %s22_s19, 4  ;;  %p67_p1 = scmp.ne.s32.totalorder %s8678_s13, %s8674_s12 }
   0x6   : > { %p68_p2 = scmp.eq.s32.totalorder %s8698_s18, 0  ;;  %s60_s24 = sadd.s32 1, %s8678_s13 }
   0x7   : > { %s10645_s19 = smov (%p23_p0, %s22_s19), 0  ;;  %s10647_s20 = smov (!%p23_p0, %s25_s20), %s8694_s17 }
   0x8   : > { %p69_p3 = por %p68_p2, %p67_p1  ;;  %p27_p4 = scmp.ge.s32.totalorder %s10647_s20, 2 }
   0x9   : > { %s55_s21 = ssub.s32 %s8690_s16, %s10645_s19  ;;  %p5959_p6 = scmp.ge.s32.totalorder %s8698_s18, 8 }
   0xa   : > { %s10649_s20 = smov (%p27_p4, %s10647_s20), 0 }
   0xb   : > { %s56_s22 = ssub.s32 %s8694_s17, %s10649_s20  ;;  %145 = sbr.rel (%p5959_p6) target bundleno = 280 (0x118), region = 16 }
   0xc   : > { %s57_s23 = sor.u32 %s56_s22, %s55_s21 }
   0xd   : > { %p58_p5 = scmp.eq.s32.totalorder %s57_s23, 0 }
   0xf   : > { %s8788_s25 = scalar_select %p58_p5, %s8678_s13, %s60_s24  }
  0x10   : > { %157 = sbr.rel (!%p69_p3) target bundleno = 280 (0x118), region = 24  ;;  %s159_s26 = sand.u32 (%p69_p3), 1, %s8678_s13  }
  0x11   : > { %s5962_s27 = sshll.u32 (%p69_p3), %s8694_s17, 2  ;;  %s8793_s28 = sshll.u32 (%p69_p3), %s159_s26, 12 }
  0x12   : > { %s8026_s29 = sshll.u32 (%p69_p3), %s8690_s16, 11  ;;  %s161_s8 = scalar_lea.vmem (%p69_p3), [#allocation3], %s8793_s28  }
  0x13   : > { %s165_s30 = sadd.s32 (%p69_p3), %s8026_s29, %s5962_s27  ;;  %s10633_s9 = smov (%p69_p3), %s161_s8 }
  0x14   : > { %s5964_s4 = sshll.u32 (%p69_p3), %s165_s30, 2  ;;  %s8809_s11 = smov (%p69_p3), 0  }
  0x15   : > { %s8799_s7 = scalar_lea.vmem %s10630_s1, %s5964_s4   ;;  %s8811_s21 = smov 0  }
  0x16   : > { %s10634_s10 = smov %s8799_s7 }
  0x17 LB: >> { %v181_v0 = vld [vmem:[%s8706_s10] sm:$0xff]  ;;  %s693_s22 = sadd.s32 1, %s8710_s11  ;;  %s177_s21 = sadd.s32 1, %s8714_s21   ;;  %s8714_s21 = sphi %s8811_s21, %s177_s21   ;;  %s8710_s11 = sphi %s8809_s11, %s10637_s11   ;;  %s8706_s10 = sphi %s10634_s10, %s10636_s10   ;;  %s8702_s9 = sphi %s10633_s9, %s10635_s9  }
  0x18   : >> { %v183_v1 = vld [vmem:[%s8706_s10 + $0x20] sm:$0xff]  ;;  %182 = vst [vmem:[%s8702_s9] sm:$0xff] %v181_v0  ;;  %p694_p7 = scmp.ge.s32.totalorder %s693_s22, 2  ;;  %p174_p8 = scmp.ge.s32.totalorder %s177_s21, 2  }
  0x19   : >> { %v185_v2 = vld [vmem:[%s8706_s10 + $0x40] sm:$0xff]  ;;  %184 = vst [vmem:[%s8702_s9 + $0x10] sm:$0xff] %v183_v1 }
  0x1a   : >> { %v187_v3 = vld [vmem:[%s8706_s10 + $0x60] sm:$0xff]  ;;  %186 = vst [vmem:[%s8702_s9 + $0x20] sm:$0xff] %v185_v2  ;;  %s10651_s22 = smov (%p694_p7, %s693_s22), 0 }
  0x1b   : >> { %v189_v4 = vld [vmem:[%s8706_s10 + $0x80] sm:$0xff]  ;;  %188 = vst [vmem:[%s8702_s9 + $0x30] sm:$0xff] %v187_v3  ;;  %s5965_s23 = sshll.u32 %s10651_s22, 3  ;;  %s10637_s11 = smov %s10651_s22 }
  0x1c   : >> { %v191_v5 = vld [vmem:[%s8706_s10 + $0xa0] sm:$0xff]  ;;  %190 = vst [vmem:[%s8702_s9 + $0x40] sm:$0xff] %v189_v4  ;;  %s9089_s24 = scalar_lea.vmem %s8799_s7, %s5965_s23   ;;  %s9093_s26 = scalar_lea.vmem %s161_s8, %s5965_s23 [#allocation3]  }
  0x1d   : >> { %v193_v6 = vld [vmem:[%s8706_s10 + $0xc0] sm:$0xff]  ;;  %192 = vst [vmem:[%s8702_s9 + $0x50] sm:$0xff] %v191_v5 }
  0x1e   : >> { %v195_v7 = vld [vmem:[%s8706_s10 + $0xe0] sm:$0xff]  ;;  %194 = vst [vmem:[%s8702_s9 + $0x60] sm:$0xff] %v193_v6 }
  0x1f   : >> { %v197_v8 = vld [vmem:[%s8706_s10 + $0x100] sm:$0xff]  ;;  %196 = vst [vmem:[%s8702_s9 + $0x70] sm:$0xff] %v195_v7 }
  0x20   : >> { %v199_v9 = vld [vmem:[%s8706_s10 + $0x120] sm:$0xff]  ;;  %198 = vst [vmem:[%s8702_s9 + $0x80] sm:$0xff] %v197_v8 }
  0x21   : >> { %v201_v10 = vld [vmem:[%s8706_s10 + $0x140] sm:$0xff]  ;;  %200 = vst [vmem:[%s8702_s9 + $0x90] sm:$0xff] %v199_v9 }
  0x22   : >> { %v203_v11 = vld [vmem:[%s8706_s10 + $0x160] sm:$0xff]  ;;  %202 = vst [vmem:[%s8702_s9 + $0xa0] sm:$0xff] %v201_v10 }
  0x23   : >> { %v205_v12 = vld [vmem:[%s8706_s10 + $0x180] sm:$0xff]  ;;  %204 = vst [vmem:[%s8702_s9 + $0xb0] sm:$0xff] %v203_v11 }
  0x24   : >> { %v207_v13 = vld [vmem:[%s8706_s10 + $0x1a0] sm:$0xff]  ;;  %206 = vst [vmem:[%s8702_s9 + $0xc0] sm:$0xff] %v205_v12 }
  0x25   : >> { %v209_v14 = vld [vmem:[%s8706_s10 + $0x1c0] sm:$0xff]  ;;  %208 = vst [vmem:[%s8702_s9 + $0xd0] sm:$0xff] %v207_v13 }
  0x26   : >> { %v211_v15 = vld [vmem:[%s8706_s10 + $0x1e0] sm:$0xff]  ;;  %210 = vst [vmem:[%s8702_s9 + $0xe0] sm:$0xff] %v209_v14 }
  0x27   : >> { %v213_v16 = vld [vmem:[%s8706_s10 + $0x200] sm:$0xff]  ;;  %212 = vst [vmem:[%s8702_s9 + $0xf0] sm:$0xff] %v211_v15 }
  0x28   : >> { %v215_v17 = vld [vmem:[%s8706_s10 + $0x220] sm:$0xff]  ;;  %214 = vst [vmem:[%s8702_s9 + $0x100] sm:$0xff] %v213_v16 }
  0x29   : >> { %v217_v18 = vld [vmem:[%s8706_s10 + $0x240] sm:$0xff]  ;;  %216 = vst [vmem:[%s8702_s9 + $0x110] sm:$0xff] %v215_v17 }
  0x2a   : >> { %v219_v19 = vld [vmem:[%s8706_s10 + $0x260] sm:$0xff]  ;;  %218 = vst [vmem:[%s8702_s9 + $0x120] sm:$0xff] %v217_v18 }
  0x2b   : >> { %v221_v20 = vld [vmem:[%s8706_s10 + $0x280] sm:$0xff]  ;;  %220 = vst [vmem:[%s8702_s9 + $0x130] sm:$0xff] %v219_v19 }
  0x2c   : >> { %v223_v21 = vld [vmem:[%s8706_s10 + $0x2a0] sm:$0xff]  ;;  %222 = vst [vmem:[%s8702_s9 + $0x140] sm:$0xff] %v221_v20 }
  0x2d   : >> { %v225_v22 = vld [vmem:[%s8706_s10 + $0x2c0] sm:$0xff]  ;;  %224 = vst [vmem:[%s8702_s9 + $0x150] sm:$0xff] %v223_v21 }
  0x2e   : >> { %v227_v23 = vld [vmem:[%s8706_s10 + $0x2e0] sm:$0xff]  ;;  %226 = vst [vmem:[%s8702_s9 + $0x160] sm:$0xff] %v225_v22 }
  0x2f   : >> { %v229_v24 = vld [vmem:[%s8706_s10 + $0x300] sm:$0xff]  ;;  %228 = vst [vmem:[%s8702_s9 + $0x170] sm:$0xff] %v227_v23 }
  0x30   : >> { %v231_v25 = vld [vmem:[%s8706_s10 + $0x320] sm:$0xff]  ;;  %230 = vst [vmem:[%s8702_s9 + $0x180] sm:$0xff] %v229_v24 }
  0x31   : >> { %v233_v26 = vld [vmem:[%s8706_s10 + $0x340] sm:$0xff]  ;;  %232 = vst [vmem:[%s8702_s9 + $0x190] sm:$0xff] %v231_v25 }
  0x32   : >> { %v235_v27 = vld [vmem:[%s8706_s10 + $0x360] sm:$0xff]  ;;  %234 = vst [vmem:[%s8702_s9 + $0x1a0] sm:$0xff] %v233_v26 }
  0x33   : >> { %v237_v28 = vld [vmem:[%s8706_s10 + $0x380] sm:$0xff]  ;;  %236 = vst [vmem:[%s8702_s9 + $0x1b0] sm:$0xff] %v235_v27 }
  0x34   : >> { %v239_v29 = vld [vmem:[%s8706_s10 + $0x3a0] sm:$0xff]  ;;  %238 = vst [vmem:[%s8702_s9 + $0x1c0] sm:$0xff] %v237_v28 }
  0x35   : >> { %v241_v30 = vld [vmem:[%s8706_s10 + $0x3c0] sm:$0xff]  ;;  %240 = vst [vmem:[%s8702_s9 + $0x1d0] sm:$0xff] %v239_v29 }
  0x36   : >> { %v243_v31 = vld [vmem:[%s8706_s10 + $0x3e0] sm:$0xff]  ;;  %242 = vst [vmem:[%s8702_s9 + $0x1e0] sm:$0xff] %v241_v30 }
  0x37   : >> { %v245_v32 = vld [vmem:[%s8706_s10 + $0x400] sm:$0xff]  ;;  %244 = vst [vmem:[%s8702_s9 + $0x1f0] sm:$0xff] %v243_v31 }
  0x38   : >> { %v247_v33 = vld [vmem:[%s8706_s10 + $0x420] sm:$0xff]  ;;  %246 = vst [vmem:[%s8702_s9 + $0x200] sm:$0xff] %v245_v32 }
  0x39   : >> { %v249_v34 = vld [vmem:[%s8706_s10 + $0x440] sm:$0xff]  ;;  %248 = vst [vmem:[%s8702_s9 + $0x210] sm:$0xff] %v247_v33 }
  0x3a   : >> { %v251_v35 = vld [vmem:[%s8706_s10 + $0x460] sm:$0xff]  ;;  %250 = vst [vmem:[%s8702_s9 + $0x220] sm:$0xff] %v249_v34 }
  0x3b   : >> { %v253_v36 = vld [vmem:[%s8706_s10 + $0x480] sm:$0xff]  ;;  %252 = vst [vmem:[%s8702_s9 + $0x230] sm:$0xff] %v251_v35 }
  0x3c   : >> { %v255_v37 = vld [vmem:[%s8706_s10 + $0x4a0] sm:$0xff]  ;;  %254 = vst [vmem:[%s8702_s9 + $0x240] sm:$0xff] %v253_v36 }
  0x3d   : >> { %v257_v38 = vld [vmem:[%s8706_s10 + $0x4c0] sm:$0xff]  ;;  %256 = vst [vmem:[%s8702_s9 + $0x250] sm:$0xff] %v255_v37 }
  0x3e   : >> { %v259_v39 = vld [vmem:[%s8706_s10 + $0x4e0] sm:$0xff]  ;;  %258 = vst [vmem:[%s8702_s9 + $0x260] sm:$0xff] %v257_v38 }
  0x3f   : >> { %v261_v40 = vld [vmem:[%s8706_s10 + $0x500] sm:$0xff]  ;;  %260 = vst [vmem:[%s8702_s9 + $0x270] sm:$0xff] %v259_v39 }
  0x40   : >> { %v263_v41 = vld [vmem:[%s8706_s10 + $0x520] sm:$0xff]  ;;  %262 = vst [vmem:[%s8702_s9 + $0x280] sm:$0xff] %v261_v40 }
  0x41   : >> { %v265_v42 = vld [vmem:[%s8706_s10 + $0x540] sm:$0xff]  ;;  %264 = vst [vmem:[%s8702_s9 + $0x290] sm:$0xff] %v263_v41 }
  0x42   : >> { %v267_v43 = vld [vmem:[%s8706_s10 + $0x560] sm:$0xff]  ;;  %266 = vst [vmem:[%s8702_s9 + $0x2a0] sm:$0xff] %v265_v42 }
  0x43   : >> { %v269_v44 = vld [vmem:[%s8706_s10 + $0x580] sm:$0xff]  ;;  %268 = vst [vmem:[%s8702_s9 + $0x2b0] sm:$0xff] %v267_v43 }
  0x44   : >> { %v271_v45 = vld [vmem:[%s8706_s10 + $0x5a0] sm:$0xff]  ;;  %270 = vst [vmem:[%s8702_s9 + $0x2c0] sm:$0xff] %v269_v44 }
  0x45   : >> { %v273_v46 = vld [vmem:[%s8706_s10 + $0x5c0] sm:$0xff]  ;;  %272 = vst [vmem:[%s8702_s9 + $0x2d0] sm:$0xff] %v271_v45 }
  0x46   : >> { %v275_v47 = vld [vmem:[%s8706_s10 + $0x5e0] sm:$0xff]  ;;  %274 = vst [vmem:[%s8702_s9 + $0x2e0] sm:$0xff] %v273_v46 }
  0x47   : >> { %v277_v48 = vld [vmem:[%s8706_s10 + $0x600] sm:$0xff]  ;;  %276 = vst [vmem:[%s8702_s9 + $0x2f0] sm:$0xff] %v275_v47 }
  0x48   : >> { %v279_v49 = vld [vmem:[%s8706_s10 + $0x620] sm:$0xff]  ;;  %278 = vst [vmem:[%s8702_s9 + $0x300] sm:$0xff] %v277_v48 }
  0x49   : >> { %v281_v50 = vld [vmem:[%s8706_s10 + $0x640] sm:$0xff]  ;;  %280 = vst [vmem:[%s8702_s9 + $0x310] sm:$0xff] %v279_v49 }
  0x4a   : >> { %v283_v51 = vld [vmem:[%s8706_s10 + $0x660] sm:$0xff]  ;;  %282 = vst [vmem:[%s8702_s9 + $0x320] sm:$0xff] %v281_v50 }
  0x4b   : >> { %v285_v52 = vld [vmem:[%s8706_s10 + $0x680] sm:$0xff]  ;;  %284 = vst [vmem:[%s8702_s9 + $0x330] sm:$0xff] %v283_v51 }
  0x4c   : >> { %v287_v53 = vld [vmem:[%s8706_s10 + $0x6a0] sm:$0xff]  ;;  %286 = vst [vmem:[%s8702_s9 + $0x340] sm:$0xff] %v285_v52 }
  0x4d   : >> { %v289_v54 = vld [vmem:[%s8706_s10 + $0x6c0] sm:$0xff]  ;;  %288 = vst [vmem:[%s8702_s9 + $0x350] sm:$0xff] %v287_v53 }
  0x4e   : >> { %v291_v55 = vld [vmem:[%s8706_s10 + $0x6e0] sm:$0xff]  ;;  %290 = vst [vmem:[%s8702_s9 + $0x360] sm:$0xff] %v289_v54 }
  0x4f   : >> { %v293_v56 = vld [vmem:[%s8706_s10 + $0x700] sm:$0xff]  ;;  %292 = vst [vmem:[%s8702_s9 + $0x370] sm:$0xff] %v291_v55 }
  0x50   : >> { %v295_v57 = vld [vmem:[%s8706_s10 + $0x720] sm:$0xff]  ;;  %294 = vst [vmem:[%s8702_s9 + $0x380] sm:$0xff] %v293_v56 }
  0x51   : >> { %v297_v58 = vld [vmem:[%s8706_s10 + $0x740] sm:$0xff]  ;;  %296 = vst [vmem:[%s8702_s9 + $0x390] sm:$0xff] %v295_v57 }
  0x52   : >> { %v299_v59 = vld [vmem:[%s8706_s10 + $0x760] sm:$0xff]  ;;  %298 = vst [vmem:[%s8702_s9 + $0x3a0] sm:$0xff] %v297_v58 }
  0x53   : >> { %v301_v60 = vld [vmem:[%s8706_s10 + $0x780] sm:$0xff]  ;;  %300 = vst [vmem:[%s8702_s9 + $0x3b0] sm:$0xff] %v299_v59 }
  0x54   : >> { %v303_v61 = vld [vmem:[%s8706_s10 + $0x7a0] sm:$0xff]  ;;  %302 = vst [vmem:[%s8702_s9 + $0x3c0] sm:$0xff] %v301_v60 }
  0x55   : >> { %v305_v62 = vld [vmem:[%s8706_s10 + $0x7c0] sm:$0xff]  ;;  %304 = vst [vmem:[%s8702_s9 + $0x3d0] sm:$0xff] %v303_v61 }
  0x56   : >> { %v307_v63 = vld [vmem:[%s8706_s10 + $0x7e0] sm:$0xff]  ;;  %306 = vst [vmem:[%s8702_s9 + $0x3e0] sm:$0xff] %v305_v62 }
  0x57   : >> { %v309_v0 = vld [vmem:[%s8706_s10 + $0x800] sm:$0xff]  ;;  %308 = vst [vmem:[%s8702_s9 + $0x3f0] sm:$0xff] %v307_v63 }
  0x58   : >> { %v311_v1 = vld [vmem:[%s8706_s10 + $0x820] sm:$0xff]  ;;  %310 = vst [vmem:[%s8702_s9 + $0x400] sm:$0xff] %v309_v0 }
  0x59   : >> { %v313_v2 = vld [vmem:[%s8706_s10 + $0x840] sm:$0xff]  ;;  %312 = vst [vmem:[%s8702_s9 + $0x410] sm:$0xff] %v311_v1 }
  0x5a   : >> { %v315_v3 = vld [vmem:[%s8706_s10 + $0x860] sm:$0xff]  ;;  %314 = vst [vmem:[%s8702_s9 + $0x420] sm:$0xff] %v313_v2 }
  0x5b   : >> { %v317_v4 = vld [vmem:[%s8706_s10 + $0x880] sm:$0xff]  ;;  %316 = vst [vmem:[%s8702_s9 + $0x430] sm:$0xff] %v315_v3 }
  0x5c   : >> { %v319_v5 = vld [vmem:[%s8706_s10 + $0x8a0] sm:$0xff]  ;;  %318 = vst [vmem:[%s8702_s9 + $0x440] sm:$0xff] %v317_v4 }
  0x5d   : >> { %v321_v6 = vld [vmem:[%s8706_s10 + $0x8c0] sm:$0xff]  ;;  %320 = vst [vmem:[%s8702_s9 + $0x450] sm:$0xff] %v319_v5 }
  0x5e   : >> { %v323_v7 = vld [vmem:[%s8706_s10 + $0x8e0] sm:$0xff]  ;;  %322 = vst [vmem:[%s8702_s9 + $0x460] sm:$0xff] %v321_v6 }
  0x5f   : >> { %v325_v8 = vld [vmem:[%s8706_s10 + $0x900] sm:$0xff]  ;;  %324 = vst [vmem:[%s8702_s9 + $0x470] sm:$0xff] %v323_v7 }
  0x60   : >> { %v327_v9 = vld [vmem:[%s8706_s10 + $0x920] sm:$0xff]  ;;  %326 = vst [vmem:[%s8702_s9 + $0x480] sm:$0xff] %v325_v8 }
  0x61   : >> { %v329_v10 = vld [vmem:[%s8706_s10 + $0x940] sm:$0xff]  ;;  %328 = vst [vmem:[%s8702_s9 + $0x490] sm:$0xff] %v327_v9 }
  0x62   : >> { %v331_v11 = vld [vmem:[%s8706_s10 + $0x960] sm:$0xff]  ;;  %330 = vst [vmem:[%s8702_s9 + $0x4a0] sm:$0xff] %v329_v10 }
  0x63   : >> { %v333_v12 = vld [vmem:[%s8706_s10 + $0x980] sm:$0xff]  ;;  %332 = vst [vmem:[%s8702_s9 + $0x4b0] sm:$0xff] %v331_v11 }
  0x64   : >> { %v335_v13 = vld [vmem:[%s8706_s10 + $0x9a0] sm:$0xff]  ;;  %334 = vst [vmem:[%s8702_s9 + $0x4c0] sm:$0xff] %v333_v12 }
  0x65   : >> { %v337_v14 = vld [vmem:[%s8706_s10 + $0x9c0] sm:$0xff]  ;;  %336 = vst [vmem:[%s8702_s9 + $0x4d0] sm:$0xff] %v335_v13 }
  0x66   : >> { %v339_v15 = vld [vmem:[%s8706_s10 + $0x9e0] sm:$0xff]  ;;  %338 = vst [vmem:[%s8702_s9 + $0x4e0] sm:$0xff] %v337_v14 }
  0x67   : >> { %v341_v16 = vld [vmem:[%s8706_s10 + $0xa00] sm:$0xff]  ;;  %340 = vst [vmem:[%s8702_s9 + $0x4f0] sm:$0xff] %v339_v15 }
  0x68   : >> { %v343_v17 = vld [vmem:[%s8706_s10 + $0xa20] sm:$0xff]  ;;  %342 = vst [vmem:[%s8702_s9 + $0x500] sm:$0xff] %v341_v16 }
  0x69   : >> { %v345_v18 = vld [vmem:[%s8706_s10 + $0xa40] sm:$0xff]  ;;  %344 = vst [vmem:[%s8702_s9 + $0x510] sm:$0xff] %v343_v17 }
  0x6a   : >> { %v347_v19 = vld [vmem:[%s8706_s10 + $0xa60] sm:$0xff]  ;;  %346 = vst [vmem:[%s8702_s9 + $0x520] sm:$0xff] %v345_v18 }
  0x6b   : >> { %v349_v20 = vld [vmem:[%s8706_s10 + $0xa80] sm:$0xff]  ;;  %348 = vst [vmem:[%s8702_s9 + $0x530] sm:$0xff] %v347_v19 }
  0x6c   : >> { %v351_v21 = vld [vmem:[%s8706_s10 + $0xaa0] sm:$0xff]  ;;  %350 = vst [vmem:[%s8702_s9 + $0x540] sm:$0xff] %v349_v20 }
  0x6d   : >> { %v353_v22 = vld [vmem:[%s8706_s10 + $0xac0] sm:$0xff]  ;;  %352 = vst [vmem:[%s8702_s9 + $0x550] sm:$0xff] %v351_v21 }
  0x6e   : >> { %v355_v23 = vld [vmem:[%s8706_s10 + $0xae0] sm:$0xff]  ;;  %354 = vst [vmem:[%s8702_s9 + $0x560] sm:$0xff] %v353_v22 }
  0x6f   : >> { %v357_v24 = vld [vmem:[%s8706_s10 + $0xb00] sm:$0xff]  ;;  %356 = vst [vmem:[%s8702_s9 + $0x570] sm:$0xff] %v355_v23 }
  0x70   : >> { %v359_v25 = vld [vmem:[%s8706_s10 + $0xb20] sm:$0xff]  ;;  %358 = vst [vmem:[%s8702_s9 + $0x580] sm:$0xff] %v357_v24 }
  0x71   : >> { %v361_v26 = vld [vmem:[%s8706_s10 + $0xb40] sm:$0xff]  ;;  %360 = vst [vmem:[%s8702_s9 + $0x590] sm:$0xff] %v359_v25 }
  0x72   : >> { %v363_v27 = vld [vmem:[%s8706_s10 + $0xb60] sm:$0xff]  ;;  %362 = vst [vmem:[%s8702_s9 + $0x5a0] sm:$0xff] %v361_v26 }
  0x73   : >> { %v365_v28 = vld [vmem:[%s8706_s10 + $0xb80] sm:$0xff]  ;;  %364 = vst [vmem:[%s8702_s9 + $0x5b0] sm:$0xff] %v363_v27 }
  0x74   : >> { %v367_v29 = vld [vmem:[%s8706_s10 + $0xba0] sm:$0xff]  ;;  %366 = vst [vmem:[%s8702_s9 + $0x5c0] sm:$0xff] %v365_v28 }
  0x75   : >> { %v369_v30 = vld [vmem:[%s8706_s10 + $0xbc0] sm:$0xff]  ;;  %368 = vst [vmem:[%s8702_s9 + $0x5d0] sm:$0xff] %v367_v29 }
  0x76   : >> { %v371_v31 = vld [vmem:[%s8706_s10 + $0xbe0] sm:$0xff]  ;;  %370 = vst [vmem:[%s8702_s9 + $0x5e0] sm:$0xff] %v369_v30 }
  0x77   : >> { %v373_v32 = vld [vmem:[%s8706_s10 + $0xc00] sm:$0xff]  ;;  %372 = vst [vmem:[%s8702_s9 + $0x5f0] sm:$0xff] %v371_v31 }
  0x78   : >> { %v375_v33 = vld [vmem:[%s8706_s10 + $0xc20] sm:$0xff]  ;;  %374 = vst [vmem:[%s8702_s9 + $0x600] sm:$0xff] %v373_v32 }
  0x79   : >> { %v377_v34 = vld [vmem:[%s8706_s10 + $0xc40] sm:$0xff]  ;;  %376 = vst [vmem:[%s8702_s9 + $0x610] sm:$0xff] %v375_v33 }
  0x7a   : >> { %v379_v35 = vld [vmem:[%s8706_s10 + $0xc60] sm:$0xff]  ;;  %378 = vst [vmem:[%s8702_s9 + $0x620] sm:$0xff] %v377_v34 }
  0x7b   : >> { %v381_v36 = vld [vmem:[%s8706_s10 + $0xc80] sm:$0xff]  ;;  %380 = vst [vmem:[%s8702_s9 + $0x630] sm:$0xff] %v379_v35 }
  0x7c   : >> { %v383_v37 = vld [vmem:[%s8706_s10 + $0xca0] sm:$0xff]  ;;  %382 = vst [vmem:[%s8702_s9 + $0x640] sm:$0xff] %v381_v36 }
  0x7d   : >> { %v385_v38 = vld [vmem:[%s8706_s10 + $0xcc0] sm:$0xff]  ;;  %384 = vst [vmem:[%s8702_s9 + $0x650] sm:$0xff] %v383_v37 }
  0x7e   : >> { %v387_v39 = vld [vmem:[%s8706_s10 + $0xce0] sm:$0xff]  ;;  %386 = vst [vmem:[%s8702_s9 + $0x660] sm:$0xff] %v385_v38 }
  0x7f   : >> { %v389_v40 = vld [vmem:[%s8706_s10 + $0xd00] sm:$0xff]  ;;  %388 = vst [vmem:[%s8702_s9 + $0x670] sm:$0xff] %v387_v39 }
  0x80   : >> { %v391_v41 = vld [vmem:[%s8706_s10 + $0xd20] sm:$0xff]  ;;  %390 = vst [vmem:[%s8702_s9 + $0x680] sm:$0xff] %v389_v40 }
  0x81   : >> { %v393_v42 = vld [vmem:[%s8706_s10 + $0xd40] sm:$0xff]  ;;  %392 = vst [vmem:[%s8702_s9 + $0x690] sm:$0xff] %v391_v41 }
  0x82   : >> { %v395_v43 = vld [vmem:[%s8706_s10 + $0xd60] sm:$0xff]  ;;  %394 = vst [vmem:[%s8702_s9 + $0x6a0] sm:$0xff] %v393_v42 }
  0x83   : >> { %v397_v44 = vld [vmem:[%s8706_s10 + $0xd80] sm:$0xff]  ;;  %396 = vst [vmem:[%s8702_s9 + $0x6b0] sm:$0xff] %v395_v43 }
  0x84   : >> { %v399_v45 = vld [vmem:[%s8706_s10 + $0xda0] sm:$0xff]  ;;  %398 = vst [vmem:[%s8702_s9 + $0x6c0] sm:$0xff] %v397_v44 }
  0x85   : >> { %v401_v46 = vld [vmem:[%s8706_s10 + $0xdc0] sm:$0xff]  ;;  %400 = vst [vmem:[%s8702_s9 + $0x6d0] sm:$0xff] %v399_v45 }
  0x86   : >> { %v403_v47 = vld [vmem:[%s8706_s10 + $0xde0] sm:$0xff]  ;;  %402 = vst [vmem:[%s8702_s9 + $0x6e0] sm:$0xff] %v401_v46 }
  0x87   : >> { %v405_v48 = vld [vmem:[%s8706_s10 + $0xe00] sm:$0xff]  ;;  %404 = vst [vmem:[%s8702_s9 + $0x6f0] sm:$0xff] %v403_v47 }
  0x88   : >> { %v407_v49 = vld [vmem:[%s8706_s10 + $0xe20] sm:$0xff]  ;;  %406 = vst [vmem:[%s8702_s9 + $0x700] sm:$0xff] %v405_v48 }
  0x89   : >> { %v409_v50 = vld [vmem:[%s8706_s10 + $0xe40] sm:$0xff]  ;;  %408 = vst [vmem:[%s8702_s9 + $0x710] sm:$0xff] %v407_v49 }
  0x8a   : >> { %v411_v51 = vld [vmem:[%s8706_s10 + $0xe60] sm:$0xff]  ;;  %410 = vst [vmem:[%s8702_s9 + $0x720] sm:$0xff] %v409_v50 }
  0x8b   : >> { %v413_v52 = vld [vmem:[%s8706_s10 + $0xe80] sm:$0xff]  ;;  %412 = vst [vmem:[%s8702_s9 + $0x730] sm:$0xff] %v411_v51 }
  0x8c   : >> { %v415_v53 = vld [vmem:[%s8706_s10 + $0xea0] sm:$0xff]  ;;  %414 = vst [vmem:[%s8702_s9 + $0x740] sm:$0xff] %v413_v52 }
  0x8d   : >> { %v417_v54 = vld [vmem:[%s8706_s10 + $0xec0] sm:$0xff]  ;;  %416 = vst [vmem:[%s8702_s9 + $0x750] sm:$0xff] %v415_v53 }
  0x8e   : >> { %v419_v55 = vld [vmem:[%s8706_s10 + $0xee0] sm:$0xff]  ;;  %418 = vst [vmem:[%s8702_s9 + $0x760] sm:$0xff] %v417_v54 }
  0x8f   : >> { %v421_v56 = vld [vmem:[%s8706_s10 + $0xf00] sm:$0xff]  ;;  %420 = vst [vmem:[%s8702_s9 + $0x770] sm:$0xff] %v419_v55 }
  0x90   : >> { %v423_v57 = vld [vmem:[%s8706_s10 + $0xf20] sm:$0xff]  ;;  %422 = vst [vmem:[%s8702_s9 + $0x780] sm:$0xff] %v421_v56 }
  0x91   : >> { %v425_v58 = vld [vmem:[%s8706_s10 + $0xf40] sm:$0xff]  ;;  %424 = vst [vmem:[%s8702_s9 + $0x790] sm:$0xff] %v423_v57 }
  0x92   : >> { %v427_v59 = vld [vmem:[%s8706_s10 + $0xf60] sm:$0xff]  ;;  %426 = vst [vmem:[%s8702_s9 + $0x7a0] sm:$0xff] %v425_v58 }
  0x93   : >> { %v429_v60 = vld [vmem:[%s8706_s10 + $0xf80] sm:$0xff]  ;;  %428 = vst [vmem:[%s8702_s9 + $0x7b0] sm:$0xff] %v427_v59 }
  0x94   : >> { %v431_v61 = vld [vmem:[%s8706_s10 + $0xfa0] sm:$0xff]  ;;  %430 = vst [vmem:[%s8702_s9 + $0x7c0] sm:$0xff] %v429_v60 }
  0x95   : >> { %v433_v62 = vld [vmem:[%s8706_s10 + $0xfc0] sm:$0xff]  ;;  %432 = vst [vmem:[%s8702_s9 + $0x7d0] sm:$0xff] %v431_v61 }
  0x96   : >> { %v435_v63 = vld [vmem:[%s8706_s10 + $0xfe0] sm:$0xff]  ;;  %434 = vst [vmem:[%s8702_s9 + $0x7e0] sm:$0xff] %v433_v62 }
  0x97   : >> { %v437_v0 = vld [vmem:[%s8706_s10 + $0x1000] sm:$0xff]  ;;  %436 = vst [vmem:[%s8702_s9 + $0x7f0] sm:$0xff] %v435_v63 }
  0x98   : >> { %v439_v1 = vld [vmem:[%s8706_s10 + $0x1020] sm:$0xff]  ;;  %438 = vst [vmem:[%s8702_s9 + $0x800] sm:$0xff] %v437_v0 }
  0x99   : >> { %v441_v2 = vld [vmem:[%s8706_s10 + $0x1040] sm:$0xff]  ;;  %440 = vst [vmem:[%s8702_s9 + $0x810] sm:$0xff] %v439_v1 }
  0x9a   : >> { %v443_v3 = vld [vmem:[%s8706_s10 + $0x1060] sm:$0xff]  ;;  %442 = vst [vmem:[%s8702_s9 + $0x820] sm:$0xff] %v441_v2 }
  0x9b   : >> { %v445_v4 = vld [vmem:[%s8706_s10 + $0x1080] sm:$0xff]  ;;  %444 = vst [vmem:[%s8702_s9 + $0x830] sm:$0xff] %v443_v3 }
  0x9c   : >> { %v447_v5 = vld [vmem:[%s8706_s10 + $0x10a0] sm:$0xff]  ;;  %446 = vst [vmem:[%s8702_s9 + $0x840] sm:$0xff] %v445_v4 }
  0x9d   : >> { %v449_v6 = vld [vmem:[%s8706_s10 + $0x10c0] sm:$0xff]  ;;  %448 = vst [vmem:[%s8702_s9 + $0x850] sm:$0xff] %v447_v5 }
  0x9e   : >> { %v451_v7 = vld [vmem:[%s8706_s10 + $0x10e0] sm:$0xff]  ;;  %450 = vst [vmem:[%s8702_s9 + $0x860] sm:$0xff] %v449_v6 }
  0x9f   : >> { %v453_v8 = vld [vmem:[%s8706_s10 + $0x1100] sm:$0xff]  ;;  %452 = vst [vmem:[%s8702_s9 + $0x870] sm:$0xff] %v451_v7 }
  0xa0   : >> { %v455_v9 = vld [vmem:[%s8706_s10 + $0x1120] sm:$0xff]  ;;  %454 = vst [vmem:[%s8702_s9 + $0x880] sm:$0xff] %v453_v8 }
  0xa1   : >> { %v457_v10 = vld [vmem:[%s8706_s10 + $0x1140] sm:$0xff]  ;;  %456 = vst [vmem:[%s8702_s9 + $0x890] sm:$0xff] %v455_v9 }
  0xa2   : >> { %v459_v11 = vld [vmem:[%s8706_s10 + $0x1160] sm:$0xff]  ;;  %458 = vst [vmem:[%s8702_s9 + $0x8a0] sm:$0xff] %v457_v10 }
  0xa3   : >> { %v461_v12 = vld [vmem:[%s8706_s10 + $0x1180] sm:$0xff]  ;;  %460 = vst [vmem:[%s8702_s9 + $0x8b0] sm:$0xff] %v459_v11 }
  0xa4   : >> { %v463_v13 = vld [vmem:[%s8706_s10 + $0x11a0] sm:$0xff]  ;;  %462 = vst [vmem:[%s8702_s9 + $0x8c0] sm:$0xff] %v461_v12 }
  0xa5   : >> { %v465_v14 = vld [vmem:[%s8706_s10 + $0x11c0] sm:$0xff]  ;;  %464 = vst [vmem:[%s8702_s9 + $0x8d0] sm:$0xff] %v463_v13 }
  0xa6   : >> { %v467_v15 = vld [vmem:[%s8706_s10 + $0x11e0] sm:$0xff]  ;;  %466 = vst [vmem:[%s8702_s9 + $0x8e0] sm:$0xff] %v465_v14 }
  0xa7   : >> { %v469_v16 = vld [vmem:[%s8706_s10 + $0x1200] sm:$0xff]  ;;  %468 = vst [vmem:[%s8702_s9 + $0x8f0] sm:$0xff] %v467_v15 }
  0xa8   : >> { %v471_v17 = vld [vmem:[%s8706_s10 + $0x1220] sm:$0xff]  ;;  %470 = vst [vmem:[%s8702_s9 + $0x900] sm:$0xff] %v469_v16 }
  0xa9   : >> { %v473_v18 = vld [vmem:[%s8706_s10 + $0x1240] sm:$0xff]  ;;  %472 = vst [vmem:[%s8702_s9 + $0x910] sm:$0xff] %v471_v17 }
  0xaa   : >> { %v475_v19 = vld [vmem:[%s8706_s10 + $0x1260] sm:$0xff]  ;;  %474 = vst [vmem:[%s8702_s9 + $0x920] sm:$0xff] %v473_v18 }
  0xab   : >> { %v477_v20 = vld [vmem:[%s8706_s10 + $0x1280] sm:$0xff]  ;;  %476 = vst [vmem:[%s8702_s9 + $0x930] sm:$0xff] %v475_v19 }
  0xac   : >> { %v479_v21 = vld [vmem:[%s8706_s10 + $0x12a0] sm:$0xff]  ;;  %478 = vst [vmem:[%s8702_s9 + $0x940] sm:$0xff] %v477_v20 }
  0xad   : >> { %v481_v22 = vld [vmem:[%s8706_s10 + $0x12c0] sm:$0xff]  ;;  %480 = vst [vmem:[%s8702_s9 + $0x950] sm:$0xff] %v479_v21 }
  0xae   : >> { %v483_v23 = vld [vmem:[%s8706_s10 + $0x12e0] sm:$0xff]  ;;  %482 = vst [vmem:[%s8702_s9 + $0x960] sm:$0xff] %v481_v22 }
  0xaf   : >> { %v485_v24 = vld [vmem:[%s8706_s10 + $0x1300] sm:$0xff]  ;;  %484 = vst [vmem:[%s8702_s9 + $0x970] sm:$0xff] %v483_v23 }
  0xb0   : >> { %v487_v25 = vld [vmem:[%s8706_s10 + $0x1320] sm:$0xff]  ;;  %486 = vst [vmem:[%s8702_s9 + $0x980] sm:$0xff] %v485_v24 }
  0xb1   : >> { %v489_v26 = vld [vmem:[%s8706_s10 + $0x1340] sm:$0xff]  ;;  %488 = vst [vmem:[%s8702_s9 + $0x990] sm:$0xff] %v487_v25 }
  0xb2   : >> { %v491_v27 = vld [vmem:[%s8706_s10 + $0x1360] sm:$0xff]  ;;  %490 = vst [vmem:[%s8702_s9 + $0x9a0] sm:$0xff] %v489_v26 }
  0xb3   : >> { %v493_v28 = vld [vmem:[%s8706_s10 + $0x1380] sm:$0xff]  ;;  %492 = vst [vmem:[%s8702_s9 + $0x9b0] sm:$0xff] %v491_v27 }
  0xb4   : >> { %v495_v29 = vld [vmem:[%s8706_s10 + $0x13a0] sm:$0xff]  ;;  %494 = vst [vmem:[%s8702_s9 + $0x9c0] sm:$0xff] %v493_v28 }
  0xb5   : >> { %v497_v30 = vld [vmem:[%s8706_s10 + $0x13c0] sm:$0xff]  ;;  %496 = vst [vmem:[%s8702_s9 + $0x9d0] sm:$0xff] %v495_v29 }
  0xb6   : >> { %v499_v31 = vld [vmem:[%s8706_s10 + $0x13e0] sm:$0xff]  ;;  %498 = vst [vmem:[%s8702_s9 + $0x9e0] sm:$0xff] %v497_v30 }
  0xb7   : >> { %v501_v32 = vld [vmem:[%s8706_s10 + $0x1400] sm:$0xff]  ;;  %500 = vst [vmem:[%s8702_s9 + $0x9f0] sm:$0xff] %v499_v31 }
  0xb8   : >> { %v503_v33 = vld [vmem:[%s8706_s10 + $0x1420] sm:$0xff]  ;;  %502 = vst [vmem:[%s8702_s9 + $0xa00] sm:$0xff] %v501_v32 }
  0xb9   : >> { %v505_v34 = vld [vmem:[%s8706_s10 + $0x1440] sm:$0xff]  ;;  %504 = vst [vmem:[%s8702_s9 + $0xa10] sm:$0xff] %v503_v33 }
  0xba   : >> { %v507_v35 = vld [vmem:[%s8706_s10 + $0x1460] sm:$0xff]  ;;  %506 = vst [vmem:[%s8702_s9 + $0xa20] sm:$0xff] %v505_v34 }
  0xbb   : >> { %v509_v36 = vld [vmem:[%s8706_s10 + $0x1480] sm:$0xff]  ;;  %508 = vst [vmem:[%s8702_s9 + $0xa30] sm:$0xff] %v507_v35 }
  0xbc   : >> { %v511_v37 = vld [vmem:[%s8706_s10 + $0x14a0] sm:$0xff]  ;;  %510 = vst [vmem:[%s8702_s9 + $0xa40] sm:$0xff] %v509_v36 }
  0xbd   : >> { %v513_v38 = vld [vmem:[%s8706_s10 + $0x14c0] sm:$0xff]  ;;  %512 = vst [vmem:[%s8702_s9 + $0xa50] sm:$0xff] %v511_v37 }
  0xbe   : >> { %v515_v39 = vld [vmem:[%s8706_s10 + $0x14e0] sm:$0xff]  ;;  %514 = vst [vmem:[%s8702_s9 + $0xa60] sm:$0xff] %v513_v38 }
  0xbf   : >> { %v517_v40 = vld [vmem:[%s8706_s10 + $0x1500] sm:$0xff]  ;;  %516 = vst [vmem:[%s8702_s9 + $0xa70] sm:$0xff] %v515_v39 }
  0xc0   : >> { %v519_v41 = vld [vmem:[%s8706_s10 + $0x1520] sm:$0xff]  ;;  %518 = vst [vmem:[%s8702_s9 + $0xa80] sm:$0xff] %v517_v40 }
  0xc1   : >> { %v521_v42 = vld [vmem:[%s8706_s10 + $0x1540] sm:$0xff]  ;;  %520 = vst [vmem:[%s8702_s9 + $0xa90] sm:$0xff] %v519_v41 }
  0xc2   : >> { %v523_v43 = vld [vmem:[%s8706_s10 + $0x1560] sm:$0xff]  ;;  %522 = vst [vmem:[%s8702_s9 + $0xaa0] sm:$0xff] %v521_v42 }
  0xc3   : >> { %v525_v44 = vld [vmem:[%s8706_s10 + $0x1580] sm:$0xff]  ;;  %524 = vst [vmem:[%s8702_s9 + $0xab0] sm:$0xff] %v523_v43 }
  0xc4   : >> { %v527_v45 = vld [vmem:[%s8706_s10 + $0x15a0] sm:$0xff]  ;;  %526 = vst [vmem:[%s8702_s9 + $0xac0] sm:$0xff] %v525_v44 }
  0xc5   : >> { %v529_v46 = vld [vmem:[%s8706_s10 + $0x15c0] sm:$0xff]  ;;  %528 = vst [vmem:[%s8702_s9 + $0xad0] sm:$0xff] %v527_v45 }
  0xc6   : >> { %v531_v47 = vld [vmem:[%s8706_s10 + $0x15e0] sm:$0xff]  ;;  %530 = vst [vmem:[%s8702_s9 + $0xae0] sm:$0xff] %v529_v46 }
  0xc7   : >> { %v533_v48 = vld [vmem:[%s8706_s10 + $0x1600] sm:$0xff]  ;;  %532 = vst [vmem:[%s8702_s9 + $0xaf0] sm:$0xff] %v531_v47 }
  0xc8   : >> { %v535_v49 = vld [vmem:[%s8706_s10 + $0x1620] sm:$0xff]  ;;  %534 = vst [vmem:[%s8702_s9 + $0xb00] sm:$0xff] %v533_v48 }
  0xc9   : >> { %v537_v50 = vld [vmem:[%s8706_s10 + $0x1640] sm:$0xff]  ;;  %536 = vst [vmem:[%s8702_s9 + $0xb10] sm:$0xff] %v535_v49 }
  0xca   : >> { %v539_v51 = vld [vmem:[%s8706_s10 + $0x1660] sm:$0xff]  ;;  %538 = vst [vmem:[%s8702_s9 + $0xb20] sm:$0xff] %v537_v50 }
  0xcb   : >> { %v541_v52 = vld [vmem:[%s8706_s10 + $0x1680] sm:$0xff]  ;;  %540 = vst [vmem:[%s8702_s9 + $0xb30] sm:$0xff] %v539_v51 }
  0xcc   : >> { %v543_v53 = vld [vmem:[%s8706_s10 + $0x16a0] sm:$0xff]  ;;  %542 = vst [vmem:[%s8702_s9 + $0xb40] sm:$0xff] %v541_v52 }
  0xcd   : >> { %v545_v54 = vld [vmem:[%s8706_s10 + $0x16c0] sm:$0xff]  ;;  %544 = vst [vmem:[%s8702_s9 + $0xb50] sm:$0xff] %v543_v53 }
  0xce   : >> { %v547_v55 = vld [vmem:[%s8706_s10 + $0x16e0] sm:$0xff]  ;;  %546 = vst [vmem:[%s8702_s9 + $0xb60] sm:$0xff] %v545_v54 }
  0xcf   : >> { %v549_v56 = vld [vmem:[%s8706_s10 + $0x1700] sm:$0xff]  ;;  %548 = vst [vmem:[%s8702_s9 + $0xb70] sm:$0xff] %v547_v55 }
  0xd0   : >> { %v551_v57 = vld [vmem:[%s8706_s10 + $0x1720] sm:$0xff]  ;;  %550 = vst [vmem:[%s8702_s9 + $0xb80] sm:$0xff] %v549_v56 }
  0xd1   : >> { %v553_v58 = vld [vmem:[%s8706_s10 + $0x1740] sm:$0xff]  ;;  %552 = vst [vmem:[%s8702_s9 + $0xb90] sm:$0xff] %v551_v57 }
  0xd2   : >> { %v555_v59 = vld [vmem:[%s8706_s10 + $0x1760] sm:$0xff]  ;;  %554 = vst [vmem:[%s8702_s9 + $0xba0] sm:$0xff] %v553_v58 }
  0xd3   : >> { %v557_v60 = vld [vmem:[%s8706_s10 + $0x1780] sm:$0xff]  ;;  %556 = vst [vmem:[%s8702_s9 + $0xbb0] sm:$0xff] %v555_v59 }
  0xd4   : >> { %v559_v61 = vld [vmem:[%s8706_s10 + $0x17a0] sm:$0xff]  ;;  %558 = vst [vmem:[%s8702_s9 + $0xbc0] sm:$0xff] %v557_v60 }
  0xd5   : >> { %v561_v62 = vld [vmem:[%s8706_s10 + $0x17c0] sm:$0xff]  ;;  %560 = vst [vmem:[%s8702_s9 + $0xbd0] sm:$0xff] %v559_v61 }
  0xd6   : >> { %v563_v63 = vld [vmem:[%s8706_s10 + $0x17e0] sm:$0xff]  ;;  %562 = vst [vmem:[%s8702_s9 + $0xbe0] sm:$0xff] %v561_v62 }
  0xd7   : >> { %v565_v0 = vld [vmem:[%s8706_s10 + $0x1800] sm:$0xff]  ;;  %564 = vst [vmem:[%s8702_s9 + $0xbf0] sm:$0xff] %v563_v63 }
  0xd8   : >> { %v567_v1 = vld [vmem:[%s8706_s10 + $0x1820] sm:$0xff]  ;;  %566 = vst [vmem:[%s8702_s9 + $0xc00] sm:$0xff] %v565_v0 }
  0xd9   : >> { %v569_v2 = vld [vmem:[%s8706_s10 + $0x1840] sm:$0xff]  ;;  %568 = vst [vmem:[%s8702_s9 + $0xc10] sm:$0xff] %v567_v1 }
  0xda   : >> { %v571_v3 = vld [vmem:[%s8706_s10 + $0x1860] sm:$0xff]  ;;  %570 = vst [vmem:[%s8702_s9 + $0xc20] sm:$0xff] %v569_v2 }
  0xdb   : >> { %v573_v4 = vld [vmem:[%s8706_s10 + $0x1880] sm:$0xff]  ;;  %572 = vst [vmem:[%s8702_s9 + $0xc30] sm:$0xff] %v571_v3 }
  0xdc   : >> { %v575_v5 = vld [vmem:[%s8706_s10 + $0x18a0] sm:$0xff]  ;;  %574 = vst [vmem:[%s8702_s9 + $0xc40] sm:$0xff] %v573_v4 }
  0xdd   : >> { %v577_v6 = vld [vmem:[%s8706_s10 + $0x18c0] sm:$0xff]  ;;  %576 = vst [vmem:[%s8702_s9 + $0xc50] sm:$0xff] %v575_v5 }
  0xde   : >> { %v579_v7 = vld [vmem:[%s8706_s10 + $0x18e0] sm:$0xff]  ;;  %578 = vst [vmem:[%s8702_s9 + $0xc60] sm:$0xff] %v577_v6 }
  0xdf   : >> { %v581_v8 = vld [vmem:[%s8706_s10 + $0x1900] sm:$0xff]  ;;  %580 = vst [vmem:[%s8702_s9 + $0xc70] sm:$0xff] %v579_v7 }
  0xe0   : >> { %v583_v9 = vld [vmem:[%s8706_s10 + $0x1920] sm:$0xff]  ;;  %582 = vst [vmem:[%s8702_s9 + $0xc80] sm:$0xff] %v581_v8 }
  0xe1   : >> { %v585_v10 = vld [vmem:[%s8706_s10 + $0x1940] sm:$0xff]  ;;  %584 = vst [vmem:[%s8702_s9 + $0xc90] sm:$0xff] %v583_v9 }
  0xe2   : >> { %v587_v11 = vld [vmem:[%s8706_s10 + $0x1960] sm:$0xff]  ;;  %586 = vst [vmem:[%s8702_s9 + $0xca0] sm:$0xff] %v585_v10 }
  0xe3   : >> { %v589_v12 = vld [vmem:[%s8706_s10 + $0x1980] sm:$0xff]  ;;  %588 = vst [vmem:[%s8702_s9 + $0xcb0] sm:$0xff] %v587_v11 }
  0xe4   : >> { %v591_v13 = vld [vmem:[%s8706_s10 + $0x19a0] sm:$0xff]  ;;  %590 = vst [vmem:[%s8702_s9 + $0xcc0] sm:$0xff] %v589_v12 }
  0xe5   : >> { %v593_v14 = vld [vmem:[%s8706_s10 + $0x19c0] sm:$0xff]  ;;  %592 = vst [vmem:[%s8702_s9 + $0xcd0] sm:$0xff] %v591_v13 }
  0xe6   : >> { %v595_v15 = vld [vmem:[%s8706_s10 + $0x19e0] sm:$0xff]  ;;  %594 = vst [vmem:[%s8702_s9 + $0xce0] sm:$0xff] %v593_v14 }
  0xe7   : >> { %v597_v16 = vld [vmem:[%s8706_s10 + $0x1a00] sm:$0xff]  ;;  %596 = vst [vmem:[%s8702_s9 + $0xcf0] sm:$0xff] %v595_v15 }
  0xe8   : >> { %v599_v17 = vld [vmem:[%s8706_s10 + $0x1a20] sm:$0xff]  ;;  %598 = vst [vmem:[%s8702_s9 + $0xd00] sm:$0xff] %v597_v16 }
  0xe9   : >> { %v601_v18 = vld [vmem:[%s8706_s10 + $0x1a40] sm:$0xff]  ;;  %600 = vst [vmem:[%s8702_s9 + $0xd10] sm:$0xff] %v599_v17 }
  0xea   : >> { %v603_v19 = vld [vmem:[%s8706_s10 + $0x1a60] sm:$0xff]  ;;  %602 = vst [vmem:[%s8702_s9 + $0xd20] sm:$0xff] %v601_v18 }
  0xeb   : >> { %v605_v20 = vld [vmem:[%s8706_s10 + $0x1a80] sm:$0xff]  ;;  %604 = vst [vmem:[%s8702_s9 + $0xd30] sm:$0xff] %v603_v19 }
  0xec   : >> { %v607_v21 = vld [vmem:[%s8706_s10 + $0x1aa0] sm:$0xff]  ;;  %606 = vst [vmem:[%s8702_s9 + $0xd40] sm:$0xff] %v605_v20 }
  0xed   : >> { %v609_v22 = vld [vmem:[%s8706_s10 + $0x1ac0] sm:$0xff]  ;;  %608 = vst [vmem:[%s8702_s9 + $0xd50] sm:$0xff] %v607_v21 }
  0xee   : >> { %v611_v23 = vld [vmem:[%s8706_s10 + $0x1ae0] sm:$0xff]  ;;  %610 = vst [vmem:[%s8702_s9 + $0xd60] sm:$0xff] %v609_v22 }
  0xef   : >> { %v613_v24 = vld [vmem:[%s8706_s10 + $0x1b00] sm:$0xff]  ;;  %612 = vst [vmem:[%s8702_s9 + $0xd70] sm:$0xff] %v611_v23 }
  0xf0   : >> { %v615_v25 = vld [vmem:[%s8706_s10 + $0x1b20] sm:$0xff]  ;;  %614 = vst [vmem:[%s8702_s9 + $0xd80] sm:$0xff] %v613_v24 }
  0xf1   : >> { %v617_v26 = vld [vmem:[%s8706_s10 + $0x1b40] sm:$0xff]  ;;  %616 = vst [vmem:[%s8702_s9 + $0xd90] sm:$0xff] %v615_v25 }
  0xf2   : >> { %v619_v27 = vld [vmem:[%s8706_s10 + $0x1b60] sm:$0xff]  ;;  %618 = vst [vmem:[%s8702_s9 + $0xda0] sm:$0xff] %v617_v26 }
  0xf3   : >> { %v621_v28 = vld [vmem:[%s8706_s10 + $0x1b80] sm:$0xff]  ;;  %620 = vst [vmem:[%s8702_s9 + $0xdb0] sm:$0xff] %v619_v27 }
  0xf4   : >> { %v623_v29 = vld [vmem:[%s8706_s10 + $0x1ba0] sm:$0xff]  ;;  %622 = vst [vmem:[%s8702_s9 + $0xdc0] sm:$0xff] %v621_v28 }
  0xf5   : >> { %v625_v30 = vld [vmem:[%s8706_s10 + $0x1bc0] sm:$0xff]  ;;  %624 = vst [vmem:[%s8702_s9 + $0xdd0] sm:$0xff] %v623_v29 }
  0xf6   : >> { %v627_v31 = vld [vmem:[%s8706_s10 + $0x1be0] sm:$0xff]  ;;  %626 = vst [vmem:[%s8702_s9 + $0xde0] sm:$0xff] %v625_v30 }
  0xf7   : >> { %v629_v32 = vld [vmem:[%s8706_s10 + $0x1c00] sm:$0xff]  ;;  %628 = vst [vmem:[%s8702_s9 + $0xdf0] sm:$0xff] %v627_v31 }
  0xf8   : >> { %v631_v33 = vld [vmem:[%s8706_s10 + $0x1c20] sm:$0xff]  ;;  %630 = vst [vmem:[%s8702_s9 + $0xe00] sm:$0xff] %v629_v32 }
  0xf9   : >> { %v633_v34 = vld [vmem:[%s8706_s10 + $0x1c40] sm:$0xff]  ;;  %632 = vst [vmem:[%s8702_s9 + $0xe10] sm:$0xff] %v631_v33 }
  0xfa   : >> { %v635_v35 = vld [vmem:[%s8706_s10 + $0x1c60] sm:$0xff]  ;;  %634 = vst [vmem:[%s8702_s9 + $0xe20] sm:$0xff] %v633_v34 }
  0xfb   : >> { %v637_v36 = vld [vmem:[%s8706_s10 + $0x1c80] sm:$0xff]  ;;  %636 = vst [vmem:[%s8702_s9 + $0xe30] sm:$0xff] %v635_v35 }
  0xfc   : >> { %v639_v37 = vld [vmem:[%s8706_s10 + $0x1ca0] sm:$0xff]  ;;  %638 = vst [vmem:[%s8702_s9 + $0xe40] sm:$0xff] %v637_v36 }
  0xfd   : >> { %v641_v38 = vld [vmem:[%s8706_s10 + $0x1cc0] sm:$0xff]  ;;  %640 = vst [vmem:[%s8702_s9 + $0xe50] sm:$0xff] %v639_v37 }
  0xfe   : >> { %v643_v39 = vld [vmem:[%s8706_s10 + $0x1ce0] sm:$0xff]  ;;  %642 = vst [vmem:[%s8702_s9 + $0xe60] sm:$0xff] %v641_v38 }
  0xff   : >> { %v645_v40 = vld [vmem:[%s8706_s10 + $0x1d00] sm:$0xff]  ;;  %644 = vst [vmem:[%s8702_s9 + $0xe70] sm:$0xff] %v643_v39 }
 0x100   : >> { %v647_v41 = vld [vmem:[%s8706_s10 + $0x1d20] sm:$0xff]  ;;  %646 = vst [vmem:[%s8702_s9 + $0xe80] sm:$0xff] %v645_v40 }
 0x101   : >> { %v649_v42 = vld [vmem:[%s8706_s10 + $0x1d40] sm:$0xff]  ;;  %648 = vst [vmem:[%s8702_s9 + $0xe90] sm:$0xff] %v647_v41 }
 0x102   : >> { %v651_v43 = vld [vmem:[%s8706_s10 + $0x1d60] sm:$0xff]  ;;  %650 = vst [vmem:[%s8702_s9 + $0xea0] sm:$0xff] %v649_v42 }
 0x103   : >> { %v653_v44 = vld [vmem:[%s8706_s10 + $0x1d80] sm:$0xff]  ;;  %652 = vst [vmem:[%s8702_s9 + $0xeb0] sm:$0xff] %v651_v43 }
 0x104   : >> { %v655_v45 = vld [vmem:[%s8706_s10 + $0x1da0] sm:$0xff]  ;;  %654 = vst [vmem:[%s8702_s9 + $0xec0] sm:$0xff] %v653_v44 }
 0x105   : >> { %v657_v46 = vld [vmem:[%s8706_s10 + $0x1dc0] sm:$0xff]  ;;  %656 = vst [vmem:[%s8702_s9 + $0xed0] sm:$0xff] %v655_v45 }
 0x106   : >> { %v659_v47 = vld [vmem:[%s8706_s10 + $0x1de0] sm:$0xff]  ;;  %658 = vst [vmem:[%s8702_s9 + $0xee0] sm:$0xff] %v657_v46 }
 0x107   : >> { %v661_v48 = vld [vmem:[%s8706_s10 + $0x1e00] sm:$0xff]  ;;  %660 = vst [vmem:[%s8702_s9 + $0xef0] sm:$0xff] %v659_v47 }
 0x108   : >> { %v663_v49 = vld [vmem:[%s8706_s10 + $0x1e20] sm:$0xff]  ;;  %662 = vst [vmem:[%s8702_s9 + $0xf00] sm:$0xff] %v661_v48 }
 0x109   : >> { %v665_v50 = vld [vmem:[%s8706_s10 + $0x1e40] sm:$0xff]  ;;  %664 = vst [vmem:[%s8702_s9 + $0xf10] sm:$0xff] %v663_v49 }
 0x10a   : >> { %v667_v51 = vld [vmem:[%s8706_s10 + $0x1e60] sm:$0xff]  ;;  %666 = vst [vmem:[%s8702_s9 + $0xf20] sm:$0xff] %v665_v50 }
 0x10b   : >> { %v669_v52 = vld [vmem:[%s8706_s10 + $0x1e80] sm:$0xff]  ;;  %668 = vst [vmem:[%s8702_s9 + $0xf30] sm:$0xff] %v667_v51 }
 0x10c   : >> { %v671_v53 = vld [vmem:[%s8706_s10 + $0x1ea0] sm:$0xff]  ;;  %670 = vst [vmem:[%s8702_s9 + $0xf40] sm:$0xff] %v669_v52 }
 0x10d   : >> { %v673_v54 = vld [vmem:[%s8706_s10 + $0x1ec0] sm:$0xff]  ;;  %672 = vst [vmem:[%s8702_s9 + $0xf50] sm:$0xff] %v671_v53 }
 0x10e   : >> { %v675_v55 = vld [vmem:[%s8706_s10 + $0x1ee0] sm:$0xff]  ;;  %674 = vst [vmem:[%s8702_s9 + $0xf60] sm:$0xff] %v673_v54 }
 0x10f   : >> { %v677_v56 = vld [vmem:[%s8706_s10 + $0x1f00] sm:$0xff]  ;;  %676 = vst [vmem:[%s8702_s9 + $0xf70] sm:$0xff] %v675_v55 }
 0x110   : >> { %v679_v57 = vld [vmem:[%s8706_s10 + $0x1f20] sm:$0xff]  ;;  %678 = vst [vmem:[%s8702_s9 + $0xf80] sm:$0xff] %v677_v56 }
 0x111   : >> { %v681_v58 = vld [vmem:[%s8706_s10 + $0x1f40] sm:$0xff]  ;;  %680 = vst [vmem:[%s8702_s9 + $0xf90] sm:$0xff] %v679_v57 }
 0x112   : >> { %v683_v59 = vld [vmem:[%s8706_s10 + $0x1f60] sm:$0xff]  ;;  %682 = vst [vmem:[%s8702_s9 + $0xfa0] sm:$0xff] %v681_v58 }
 0x113   : >> { %v685_v60 = vld [vmem:[%s8706_s10 + $0x1f80] sm:$0xff]  ;;  %684 = vst [vmem:[%s8702_s9 + $0xfb0] sm:$0xff] %v683_v59  ;;  %176 = sbr.rel (!%p174_p8) target bundleno = 23 (0x17), region = 120 }
 0x114   : >> { %v687_v61 = vld [vmem:[%s8706_s10 + $0x1fa0] sm:$0xff]  ;;  %686 = vst [vmem:[%s8702_s9 + $0xfc0] sm:$0xff] %v685_v60 }
 0x115   : >> { %v689_v62 = vld [vmem:[%s8706_s10 + $0x1fc0] sm:$0xff]  ;;  %688 = vst [vmem:[%s8702_s9 + $0xfd0] sm:$0xff] %v687_v61 }
 0x116   : >> { %v691_v63 = vld [vmem:[%s8706_s10 + $0x1fe0] sm:$0xff]  ;;  %690 = vst [vmem:[%s8702_s9 + $0xfe0] sm:$0xff] %v689_v62  ;;  %s10636_s10 = smov %s9089_s24 }
 0x117   : >> { %692 = vst [vmem:[%s8702_s9 + $0xff0] sm:$0xff] %v691_v63  ;;  %s10635_s9 = smov %s9093_s26 }
 0x118 PF: > { %p5967_p9 = scmp.ge.s32.totalorder %s8698_s18, 1  ;;  %p1764_p10 = scmp.lt.s32.totalorder %s8698_s18, 9 }
 0x11a   : > { %p1765_p11 = pnand %p5967_p9, %p1764_p10 }
 0x11b   : > { %s1771_s27 = sand.u32 (!%p1765_p11), 1, %s8674_s12   ;;  %s5969_s29 = sshll.u32 (!%p1765_p11), %s8682_s14, 4 }
 0x11c   : > { %1768 = sbr.rel (%p1765_p11) target bundleno = 973 (0x3cd), region = 65  ;;  %s5968_s30 = sshll.u32 (!%p1765_p11), %s1771_s27, 12 }
 0x11d   : > { %p1804_p12 = scmp.lt.s32.totalorder (!%p1765_p11), %s5969_s29, 63  ;;  %s5971_s4 = sshll.u32 (!%p1765_p11), %s8686_s15, 2 }
 0x11e   : > { %p1812_p13 = scmp.lt.s32.totalorder (!%p1765_p11), %s5971_s4, 7  ;;  %s9382_s22 = scalar_lea.vmem (!%p1765_p11), [#allocation3], %s5968_s30 }
 0x11f   : > { %p5974_p0 = scmp.ne.s32.totalorder (!%p1765_p11), %s8682_s14, 0 }
 0x121   : > { %s10653_s29 = smov (!%p1804_p12, %s5969_s29), 63  ;;  %s10655_s4 = smov (!%p1812_p13, %s5971_s4), 7 }
 0x122   : > { %s5970_s5 = sshll.u32 %s10653_s29, 2  ;;  %s1814_s12 = scalar_lea.vmem %s10631_s2, %s10655_s4 }
 0x123   : > { %s9368_s7 = scalar_lea.vmem %s10629_s0, %s5970_s5  ;;  %s5973_s10 = sshll.u32 %s10655_s4, 2 }
 0x124   : > { %s9380_s15 = scalar_lea.vmem %s10632_s3, %s5973_s10  ;;  %1825 = sbr.rel (%p5974_p0) target bundleno = 302 (0x12e), region = 73 }
 0x129   : > { %v8716_v0 = vmov 0.0  }
 0x12a   : > { %1826 = vst [vmem:[#allocation2 + $0x10] sm:$0xff] %v8716_v0 }
 0x12b   : > { %1827 = vst [vmem:[#allocation2] sm:$0xff] %v8716_v0 }
 0x12c   : > { %1828 = vst [vmem:[#allocation2 + $0x18] sm:$0xff] %v8716_v0 }
 0x12d   : > { %1829 = vst [vmem:[#allocation2 + $0x8] sm:$0xff] %v8716_v0 }
 0x12e PF: > { %v6089_v1 = vld [vmem:[%s9382_s22 + $0xe0] sm:$0xf]  ;;  %v8057_v2 = vld [vmem:[%s9382_s22 + $0xec] sm:$0xf0]  ;;  %p8023_p1 = scmp.ne.s32.totalorder %s8682_s14, 3 }
 0x12f   : > { %v6217_v3 = vld [vmem:[%s9382_s22 + $0x1e0] sm:$0xf]  ;;  %v6090_v4 = vor.u32 %v8057_v2, %v6089_v1  ;;  %v8089_v5 = vld [vmem:[%s9382_s22 + $0x1ec] sm:$0xf0] }
 0x130   : > { %v6345_v6 = vld [vmem:[%s9382_s22 + $0x2e0] sm:$0xf]  ;;  %v8121_v7 = vld [vmem:[%s9382_s22 + $0x2ec] sm:$0xf0]  ;;  %v6218_v8 = vor.u32 %v8089_v5, %v6217_v3 }
 0x131   : > { %v6346_v9 = vor.u32 %v8121_v7, %v6345_v6  ;;  %v6473_v10 = vld [vmem:[%s9382_s22 + $0x3e0] sm:$0xf]  ;;  %v8153_v11 = vld [vmem:[%s9382_s22 + $0x3ec] sm:$0xf0]  ;;  %4970 = vmatpush.bf16.msra.mxu0 %v6090_v4 }
 0x132   : > { %v6073_v12 = vld [vmem:[%s9382_s22 + $0xc0] sm:$0xf]  ;;  %v6474_v13 = vor.u32 %v8153_v11, %v6473_v10  ;;  %v8053_v14 = vld [vmem:[%s9382_s22 + $0xcc] sm:$0xf0]  ;;  %4983 = vmatpush.bf16.msra.mxu1 %v6218_v8 }
 0x133   : > { %v6201_v15 = vld [vmem:[%s9382_s22 + $0x1c0] sm:$0xf]  ;;  %v8085_v16 = vld [vmem:[%s9382_s22 + $0x1cc] sm:$0xf0]  ;;  %4996 = vmatpush.bf16.msra.mxu2 %v6346_v9  ;;  %v6074_v17 = vor.u32 %v8053_v14, %v6073_v12 }
 0x134   : > { %v6202_v18 = vor.u32 %v8085_v16, %v6201_v15  ;;  %v6329_v19 = vld [vmem:[%s9382_s22 + $0x2c0] sm:$0xf]  ;;  %v8117_v20 = vld [vmem:[%s9382_s22 + $0x2cc] sm:$0xf0]  ;;  %5009 = vmatpush.bf16.msra.mxu3 %v6474_v13 }
 0x135   : > { %v6457_v21 = vld [vmem:[%s9382_s22 + $0x3c0] sm:$0xf]  ;;  %v6330_v22 = vor.u32 %v8117_v20, %v6329_v19  ;;  %v8149_v23 = vld [vmem:[%s9382_s22 + $0x3cc] sm:$0xf0]  ;;  %4971 = vmatpush.bf16.msra.mxu0 %v6074_v17 }
 0x136   : > { %v6057_v24 = vld [vmem:[%s9382_s22 + $0xa0] sm:$0xf]  ;;  %v8049_v25 = vld [vmem:[%s9382_s22 + $0xac] sm:$0xf0]  ;;  %v6458_v26 = vor.u32 %v8149_v23, %v6457_v21  ;;  %4984 = vmatpush.bf16.msra.mxu1 %v6202_v18 }
 0x137   : > { %v6185_v27 = vld [vmem:[%s9382_s22 + $0x1a0] sm:$0xf]  ;;  %v8081_v28 = vld [vmem:[%s9382_s22 + $0x1ac] sm:$0xf0]  ;;  %v6058_v30 = vor.u32 %v8049_v25, %v6057_v24  ;;  %4997 = vmatpush.bf16.msra.mxu2 %v6330_v22 }
 0x138   : > { %v6313_v29 = vld [vmem:[%s9382_s22 + $0x2a0] sm:$0xf]  ;;  %v8113_v31 = vld [vmem:[%s9382_s22 + $0x2ac] sm:$0xf0]  ;;  %v6186_v34 = vor.u32 %v8081_v28, %v6185_v27  ;;  %5010 = vmatpush.bf16.msra.mxu3 %v6458_v26 }
 0x139   : > { %v6441_v32 = vld [vmem:[%s9382_s22 + $0x3a0] sm:$0xf]  ;;  %v8145_v33 = vld [vmem:[%s9382_s22 + $0x3ac] sm:$0xf0]  ;;  %v6314_v35 = vor.u32 %v8113_v31, %v6313_v29  ;;  %4972 = vmatpush.bf16.msra.mxu0 %v6058_v30 }
 0x13a   : > { %v6041_v36 = vld [vmem:[%s9382_s22 + $0x80] sm:$0xf]  ;;  %v8045_v37 = vld [vmem:[%s9382_s22 + $0x8c] sm:$0xf0]  ;;  %v6442_v39 = vor.u32 %v8145_v33, %v6441_v32  ;;  %4985 = vmatpush.bf16.msra.mxu1 %v6186_v34 }
 0x13b   : > { %v6169_v38 = vld [vmem:[%s9382_s22 + $0x180] sm:$0xf]  ;;  %v8077_v40 = vld [vmem:[%s9382_s22 + $0x18c] sm:$0xf0]  ;;  %v6042_v45 = vor.u32 %v8045_v37, %v6041_v36  ;;  %4998 = vmatpush.bf16.msra.mxu2 %v6314_v35 }
 0x13c   : > { %v6297_v41 = vld [vmem:[%s9382_s22 + $0x280] sm:$0xf]  ;;  %v8109_v42 = vld [vmem:[%s9382_s22 + $0x28c] sm:$0xf0]  ;;  %v6170_v46 = vor.u32 %v8077_v40, %v6169_v38  ;;  %5011 = vmatpush.bf16.msra.mxu3 %v6442_v39 }
 0x13d   : > { %v6425_v43 = vld [vmem:[%s9382_s22 + $0x380] sm:$0xf]  ;;  %v8141_v44 = vld [vmem:[%s9382_s22 + $0x38c] sm:$0xf0]  ;;  %v6298_v47 = vor.u32 %v8109_v42, %v6297_v41  ;;  %4973 = vmatpush.bf16.msra.mxu0 %v6042_v45 }
 0x13e   : > { %v6025_v48 = vld [vmem:[%s9382_s22 + $0x60] sm:$0xf]  ;;  %v8041_v49 = vld [vmem:[%s9382_s22 + $0x6c] sm:$0xf0]  ;;  %v6426_v51 = vor.u32 %v8141_v44, %v6425_v43  ;;  %4986 = vmatpush.bf16.msra.mxu1 %v6170_v46 }
 0x13f   : > { %v6153_v50 = vld [vmem:[%s9382_s22 + $0x160] sm:$0xf]  ;;  %v8073_v52 = vld [vmem:[%s9382_s22 + $0x16c] sm:$0xf0]  ;;  %v6026_v57 = vor.u32 %v8041_v49, %v6025_v48  ;;  %4999 = vmatpush.bf16.msra.mxu2 %v6298_v47 }
 0x140   : > { %v6281_v53 = vld [vmem:[%s9382_s22 + $0x260] sm:$0xf]  ;;  %v8105_v54 = vld [vmem:[%s9382_s22 + $0x26c] sm:$0xf0]  ;;  %v6154_v58 = vor.u32 %v8073_v52, %v6153_v50  ;;  %5012 = vmatpush.bf16.msra.mxu3 %v6426_v51 }
 0x141   : > { %v6409_v55 = vld [vmem:[%s9382_s22 + $0x360] sm:$0xf]  ;;  %v8137_v56 = vld [vmem:[%s9382_s22 + $0x36c] sm:$0xf0]  ;;  %v6282_v59 = vor.u32 %v8105_v54, %v6281_v53  ;;  %4974 = vmatpush.bf16.msra.mxu0 %v6026_v57 }
 0x142   : > { %v6009_v60 = vld [vmem:[%s9382_s22 + $0x40] sm:$0xf]  ;;  %v8037_v61 = vld [vmem:[%s9382_s22 + $0x4c] sm:$0xf0]  ;;  %v6410_v63 = vor.u32 %v8137_v56, %v6409_v55  ;;  %4987 = vmatpush.bf16.msra.mxu1 %v6154_v58 }
 0x143   : > { %v6137_v62 = vld [vmem:[%s9382_s22 + $0x140] sm:$0xf]  ;;  %v8069_v0 = vld [vmem:[%s9382_s22 + $0x14c] sm:$0xf0]  ;;  %v6010_v5 = vor.u32 %v8037_v61, %v6009_v60  ;;  %5000 = vmatpush.bf16.msra.mxu2 %v6282_v59  ;;  %v1835_v59 = vld [vmem:[%s9368_s7 + $0x8] sm:$0xff] }
 0x144   : > { %v6265_v1 = vld [vmem:[%s9382_s22 + $0x240] sm:$0xf]  ;;  %v8101_v2 = vld [vmem:[%s9382_s22 + $0x24c] sm:$0xf0]  ;;  %v6138_v6 = vor.u32 %v8069_v0, %v6137_v62  ;;  %5013 = vmatpush.bf16.msra.mxu3 %v6410_v63  ;;  %v2364_v0 = vunpack.c.l.b16 %v1835_v59 }
 0x145   : > { %v6393_v3 = vld [vmem:[%s9382_s22 + $0x340] sm:$0xf]  ;;  %v8133_v4 = vld [vmem:[%s9382_s22 + $0x34c] sm:$0xf0]  ;;  %v6266_v7 = vor.u32 %v8101_v2, %v6265_v1  ;;  %4975 = vmatpush.bf16.msra.mxu0 %v6010_v5  ;;  %v2365_v1 = vunpack.c.h.b16 %v1835_v59 }
 0x146   : > { %v5993_v8 = vld [vmem:[%s9382_s22 + $0x20] sm:$0xf]  ;;  %v8033_v9 = vld [vmem:[%s9382_s22 + $0x2c] sm:$0xf0]  ;;  %v6394_v11 = vor.u32 %v8133_v4, %v6393_v3  ;;  %4988 = vmatpush.bf16.msra.mxu1 %v6138_v6  ;;  %v9474_v5 = vpack.c.b16 %v2364_v0, %v2364_v0 }
 0x147   : > { %v6121_v10 = vld [vmem:[%s9382_s22 + $0x120] sm:$0xf]  ;;  %v8065_v12 = vld [vmem:[%s9382_s22 + $0x12c] sm:$0xf0]  ;;  %v5994_v17 = vor.u32 %v8033_v9, %v5993_v8  ;;  %5001 = vmatpush.bf16.msra.mxu2 %v6266_v7  ;;  %v9477_v7 = vpack.c.b16 %v2365_v1, %v2365_v1 }
 0x148   : > { %v6249_v13 = vld [vmem:[%s9382_s22 + $0x220] sm:$0xf]  ;;  %v8097_v14 = vld [vmem:[%s9382_s22 + $0x22c] sm:$0xf0]  ;;  %v6122_v20 = vor.u32 %v8065_v12, %v6121_v10  ;;  %5014 = vmatpush.bf16.msra.mxu3 %v6394_v11 }
 0x149   : > { %v6377_v15 = vld [vmem:[%s9382_s22 + $0x320] sm:$0xf]  ;;  %v8129_v16 = vld [vmem:[%s9382_s22 + $0x32c] sm:$0xf0]  ;;  %v6250_v21 = vor.u32 %v8097_v14, %v6249_v13  ;;  %4976 = vmatpush.bf16.msra.mxu0 %v5994_v17 }
 0x14a   : > { %v5977_v18 = vld [vmem:[%s9382_s22] sm:$0xf]  ;;  %v8029_v19 = vld [vmem:[%s9382_s22 + $0xc] sm:$0xf0]  ;;  %v6378_v25 = vor.u32 %v8129_v16, %v6377_v15  ;;  %4989 = vmatpush.bf16.msra.mxu1 %v6122_v20 }
 0x14b   : > { %v6105_v22 = vld [vmem:[%s9382_s22 + $0x100] sm:$0xf]  ;;  %v8061_v23 = vld [vmem:[%s9382_s22 + $0x10c] sm:$0xf0]  ;;  %v5978_v32 = vor.u32 %v8029_v19, %v5977_v18  ;;  %5002 = vmatpush.bf16.msra.mxu2 %v6250_v21 }
 0x14c   : > { %v6233_v24 = vld [vmem:[%s9382_s22 + $0x200] sm:$0xf]  ;;  %v8093_v26 = vld [vmem:[%s9382_s22 + $0x20c] sm:$0xf0]  ;;  %v6106_v36 = vor.u32 %v8061_v23, %v6105_v22  ;;  %5015 = vmatpush.bf16.msra.mxu3 %v6378_v25 }
 0x14d   : > { %v6361_v27 = vld [vmem:[%s9382_s22 + $0x300] sm:$0xf]  ;;  %v8125_v28 = vld [vmem:[%s9382_s22 + $0x30c] sm:$0xf0]  ;;  %v6234_v37 = vor.u32 %v8093_v26, %v6233_v24  ;;  %4977 = vmatpush.bf16.msra.mxu0 %v5978_v32 }
 0x14e   : > { %v6601_v29 = vld [vmem:[%s9382_s22 + $0x4e0] sm:$0xf]  ;;  %v8185_v30 = vld [vmem:[%s9382_s22 + $0x4ec] sm:$0xf0]  ;;  %v6362_v40 = vor.u32 %v8125_v28, %v6361_v27  ;;  %4990 = vmatpush.bf16.msra.mxu1 %v6106_v36 }
 0x14f   : > { %v6729_v31 = vld [vmem:[%s9382_s22 + $0x5e0] sm:$0xf]  ;;  %v8217_v33 = vld [vmem:[%s9382_s22 + $0x5ec] sm:$0xf0]  ;;  %v6602_v41 = vor.u32 %v8185_v30, %v6601_v29  ;;  %5003 = vmatpush.bf16.msra.mxu2 %v6234_v37 }
 0x150   : > { %v6857_v34 = vld [vmem:[%s9382_s22 + $0x6e0] sm:$0xf]  ;;  %v8249_v35 = vld [vmem:[%s9382_s22 + $0x6ec] sm:$0xf0]  ;;  %v6730_v42 = vor.u32 %v8217_v33, %v6729_v31  ;;  %5016 = vmatpush.bf16.msra.mxu3 %v6362_v40 }
 0x151   : > { %v6985_v38 = vld [vmem:[%s9382_s22 + $0x7e0] sm:$0xf]  ;;  %v8281_v39 = vld [vmem:[%s9382_s22 + $0x7ec] sm:$0xf0]  ;;  %v6858_v43 = vor.u32 %v8249_v35, %v6857_v34  ;;  %5022 = vmatpush.bf16.msrb.mxu0 %v6602_v41 }
 0x152   : > { %v6585_v44 = vld [vmem:[%s9382_s22 + $0x4c0] sm:$0xf]  ;;  %v8181_v45 = vld [vmem:[%s9382_s22 + $0x4cc] sm:$0xf0]  ;;  %v6986_v47 = vor.u32 %v8281_v39, %v6985_v38  ;;  %5035 = vmatpush.bf16.msrb.mxu1 %v6730_v42  ;;  %5004 = vmatmul.bf16.vlgmr.msra.gmra.mxu2 %v9474_v5 }
 0x153   : > { %v6713_v46 = vld [vmem:[%s9382_s22 + $0x5c0] sm:$0xf]  ;;  %v8213_v48 = vld [vmem:[%s9382_s22 + $0x5cc] sm:$0xf0]  ;;  %v6586_v53 = vor.u32 %v8181_v45, %v6585_v44  ;;  %5048 = vmatpush.bf16.msrb.mxu2 %v6858_v43  ;;  %5017 = vmatmul.bf16.vlgmr.msra.gmra.mxu3 %v9477_v7 }
 0x154   : > { %v6841_v49 = vld [vmem:[%s9382_s22 + $0x6c0] sm:$0xf]  ;;  %v8245_v50 = vld [vmem:[%s9382_s22 + $0x6cc] sm:$0xf0]  ;;  %v6714_v55 = vor.u32 %v8213_v48, %v6713_v46  ;;  %5061 = vmatpush.bf16.msrb.mxu3 %v6986_v47 }
 0x155   : > { %v6969_v51 = vld [vmem:[%s9382_s22 + $0x7c0] sm:$0xf]  ;;  %v8277_v52 = vld [vmem:[%s9382_s22 + $0x7cc] sm:$0xf0]  ;;  %v6842_v56 = vor.u32 %v8245_v50, %v6841_v49  ;;  %5023 = vmatpush.bf16.msrb.mxu0 %v6586_v53 }
 0x156   : > { %v6569_v54 = vld [vmem:[%s9382_s22 + $0x4a0] sm:$0xf]  ;;  %v8177_v57 = vld [vmem:[%s9382_s22 + $0x4ac] sm:$0xf0]  ;;  %v6970_v60 = vor.u32 %v8277_v52, %v6969_v51  ;;  %5036 = vmatpush.bf16.msrb.mxu1 %v6714_v55 }
 0x157   : > { %v6697_v58 = vld [vmem:[%s9382_s22 + $0x5a0] sm:$0xf]  ;;  %v8209_v61 = vld [vmem:[%s9382_s22 + $0x5ac] sm:$0xf0]  ;;  %v6570_v4 = vor.u32 %v8177_v57, %v6569_v54  ;;  %5049 = vmatpush.bf16.msrb.mxu2 %v6842_v56 }
 0x158   : > { %v6825_v62 = vld [vmem:[%s9382_s22 + $0x6a0] sm:$0xf]  ;;  %v8241_v63 = vld [vmem:[%s9382_s22 + $0x6ac] sm:$0xf0]  ;;  %v6698_v8 = vor.u32 %v8209_v61, %v6697_v58  ;;  %5062 = vmatpush.bf16.msrb.mxu3 %v6970_v60 }
 0x159   : > { %v6953_v2 = vld [vmem:[%s9382_s22 + $0x7a0] sm:$0xf]  ;;  %v8273_v3 = vld [vmem:[%s9382_s22 + $0x7ac] sm:$0xf0]  ;;  %v6826_v9 = vor.u32 %v8241_v63, %v6825_v62  ;;  %5024 = vmatpush.bf16.msrb.mxu0 %v6570_v4  ;;  %v1837_v4 = vld [vmem:[%s9368_s7 + $0x18] sm:$0xff] }
 0x15a   : > { %v1834_v6 = vld [vmem:[%s9368_s7] sm:$0xff]  ;;  %v8173_v11 = vld [vmem:[%s9382_s22 + $0x48c] sm:$0xf0]  ;;  %v6954_v15 = vor.u32 %v8273_v3, %v6953_v2  ;;  %5037 = vmatpush.bf16.msrb.mxu1 %v6698_v8 }
 0x15b   : > { %v6553_v10 = vld [vmem:[%s9382_s22 + $0x480] sm:$0xf]  ;;  %v2362_v13 = vunpack.c.l.b16 %v1834_v6  ;;  %v2363_v14 = vunpack.c.h.b16 %v1834_v6  ;;  %v8205_v16 = vld [vmem:[%s9382_s22 + $0x58c] sm:$0xf0]  ;;  %5050 = vmatpush.bf16.msrb.mxu2 %v6826_v9 }
 0x15c   : > { %v6681_v12 = vld [vmem:[%s9382_s22 + $0x580] sm:$0xf]  ;;  %v8237_v18 = vld [vmem:[%s9382_s22 + $0x68c] sm:$0xf0]  ;;  %v6554_v23 = vor.u32 %v8173_v11, %v6553_v10  ;;  %5063 = vmatpush.bf16.msrb.mxu3 %v6954_v15 }
 0x15d   : > { %v6809_v17 = vld [vmem:[%s9382_s22 + $0x680] sm:$0xf]  ;;  %v8269_v20 = vld [vmem:[%s9382_s22 + $0x78c] sm:$0xf0]  ;;  %v9488_v21 = vpack.c.b16 %v2362_v13, %v2362_v13  ;;  %v9491_v22 = vpack.c.b16 %v2363_v14, %v2363_v14  ;;  %v6682_v24 = vor.u32 %v8205_v16, %v6681_v12 }
 0x15e   : > { %v6937_v19 = vld [vmem:[%s9382_s22 + $0x780] sm:$0xf]  ;;  %v6810_v25 = vor.u32 %v8237_v18, %v6809_v17  ;;  %v8169_v27 = vld [vmem:[%s9382_s22 + $0x46c] sm:$0xf0]  ;;  %5025 = vmatpush.bf16.msrb.mxu0 %v6554_v23  ;;  %v2368_v18 = vunpack.c.l.b16 %v1837_v4 }
 0x15f   : > { %v6537_v26 = vld [vmem:[%s9382_s22 + $0x460] sm:$0xf]  ;;  %v6938_v29 = vor.u32 %v8269_v20, %v6937_v19  ;;  %v8201_v30 = vld [vmem:[%s9382_s22 + $0x56c] sm:$0xf0]  ;;  %4978 = vmatmul.bf16.vlgmr.msra.gmra.mxu0 %v9488_v21  ;;  %4991 = vmatmul.bf16.vlgmr.msra.gmra.mxu1 %v9491_v22 }
 0x160   : > { %v6665_v28 = vld [vmem:[%s9382_s22 + $0x560] sm:$0xf]  ;;  %v8233_v32 = vld [vmem:[%s9382_s22 + $0x66c] sm:$0xf0]  ;;  %v6538_v35 = vor.u32 %v8169_v27, %v6537_v26  ;;  %5038 = vmatpush.bf16.msrb.mxu1 %v6682_v24  ;;  %5051 = vmatpush.bf16.msrb.mxu2 %v6810_v25  ;;  %v2369_v26 = vunpack.c.h.b16 %v1837_v4 }
 0x161   : > { %v6793_v31 = vld [vmem:[%s9382_s22 + $0x660] sm:$0xf]  ;;  %v8265_v34 = vld [vmem:[%s9382_s22 + $0x76c] sm:$0xf0]  ;;  %v6666_v36 = vor.u32 %v8201_v30, %v6665_v28  ;;  %5064 = vmatpush.bf16.msrb.mxu3 %v6938_v29 }
 0x162   : > { %v6921_v33 = vld [vmem:[%s9382_s22 + $0x760] sm:$0xf]  ;;  %v6794_v37 = vor.u32 %v8233_v32, %v6793_v31  ;;  %v8165_v39 = vld [vmem:[%s9382_s22 + $0x44c] sm:$0xf0]  ;;  %5026 = vmatpush.bf16.msrb.mxu0 %v6538_v35 }
 0x163   : > { %v6521_v38 = vld [vmem:[%s9382_s22 + $0x440] sm:$0xf]  ;;  %v6922_v41 = vor.u32 %v8265_v34, %v6921_v33  ;;  %v8197_v42 = vld [vmem:[%s9382_s22 + $0x54c] sm:$0xf0] }
 0x164   : > { %v6649_v40 = vld [vmem:[%s9382_s22 + $0x540] sm:$0xf]  ;;  %v8229_v44 = vld [vmem:[%s9382_s22 + $0x64c] sm:$0xf0]  ;;  %v6522_v47 = vor.u32 %v8165_v39, %v6521_v38  ;;  %5039 = vmatpush.bf16.msrb.mxu1 %v6666_v36  ;;  %5052 = vmatpush.bf16.msrb.mxu2 %v6794_v37  ;;  %v9543_v39 = vpack.c.b16 %v2368_v18, %v2368_v18 }
 0x165   : > { %v6777_v43 = vld [vmem:[%s9382_s22 + $0x640] sm:$0xf]  ;;  %v8261_v46 = vld [vmem:[%s9382_s22 + $0x74c] sm:$0xf0]  ;;  %v6650_v48 = vor.u32 %v8197_v42, %v6649_v40  ;;  %5065 = vmatpush.bf16.msrb.mxu3 %v6922_v41 }
 0x166   : > { %v6905_v45 = vld [vmem:[%s9382_s22 + $0x740] sm:$0xf]  ;;  %v6778_v49 = vor.u32 %v8229_v44, %v6777_v43  ;;  %v8161_v51 = vld [vmem:[%s9382_s22 + $0x42c] sm:$0xf0]  ;;  %5027 = vmatpush.bf16.msrb.mxu0 %v6522_v47  ;;  %v9549_v43 = vpack.c.b16 %v2369_v26, %v2369_v26 }
 0x167   : > { %v6505_v50 = vld [vmem:[%s9382_s22 + $0x420] sm:$0xf]  ;;  %v6906_v53 = vor.u32 %v8261_v46, %v6905_v45  ;;  %v8193_v54 = vld [vmem:[%s9382_s22 + $0x52c] sm:$0xf0] }
 0x168   : > { %v6633_v52 = vld [vmem:[%s9382_s22 + $0x520] sm:$0xf]  ;;  %v8225_v56 = vld [vmem:[%s9382_s22 + $0x62c] sm:$0xf0]  ;;  %v6506_v60 = vor.u32 %v8161_v51, %v6505_v50  ;;  %5040 = vmatpush.bf16.msrb.mxu1 %v6650_v48  ;;  %5053 = vmatpush.bf16.msrb.mxu2 %v6778_v49 }
 0x169   : > { %v6761_v55 = vld [vmem:[%s9382_s22 + $0x620] sm:$0xf]  ;;  %v8257_v58 = vld [vmem:[%s9382_s22 + $0x72c] sm:$0xf0]  ;;  %v6634_v0 = vor.u32 %v8193_v54, %v6633_v52  ;;  %5066 = vmatpush.bf16.msrb.mxu3 %v6906_v53 }
 0x16a   : > { %v6889_v57 = vld [vmem:[%s9382_s22 + $0x720] sm:$0xf]  ;;  %v8157_v61 = vld [vmem:[%s9382_s22 + $0x40c] sm:$0xf0]  ;;  %v6762_v1 = vor.u32 %v8225_v56, %v6761_v55  ;;  %5028 = vmatpush.bf16.msrb.mxu0 %v6506_v60 }
 0x16b   : > { %v6489_v59 = vld [vmem:[%s9382_s22 + $0x400] sm:$0xf]  ;;  %v8189_v63 = vld [vmem:[%s9382_s22 + $0x50c] sm:$0xf0]  ;;  %v6890_v6 = vor.u32 %v8257_v58, %v6889_v57 }
 0x16c   : > { %v6617_v62 = vld [vmem:[%s9382_s22 + $0x500] sm:$0xf]  ;;  %v8221_v3 = vld [vmem:[%s9382_s22 + $0x60c] sm:$0xf0]  ;;  %v6490_v14 = vor.u32 %v8157_v61, %v6489_v59  ;;  %5041 = vmatpush.bf16.msrb.mxu1 %v6634_v0  ;;  %5054 = vmatpush.bf16.msrb.mxu2 %v6762_v1 }
 0x16d   : > { %v6745_v2 = vld [vmem:[%s9382_s22 + $0x600] sm:$0xf]  ;;  %v8253_v9 = vld [vmem:[%s9382_s22 + $0x70c] sm:$0xf0]  ;;  %v6618_v19 = vor.u32 %v8189_v63, %v6617_v62  ;;  %5067 = vmatpush.bf16.msrb.mxu3 %v6890_v6 }
 0x16e   : > { %v6873_v8 = vld [vmem:[%s9382_s22 + $0x700] sm:$0xf]  ;;  %v1836_v10 = vld [vmem:[%s9368_s7 + $0x10] sm:$0xff]  ;;  %v6746_v20 = vor.u32 %v8221_v3, %v6745_v2  ;;  %5029 = vmatpush.bf16.msrb.mxu0 %v6490_v14 }
 0x16f   : > { %v7113_v11 = vld [vmem:[%s9382_s22 + $0x8e0] sm:$0xf]  ;;  %v8313_v12 = vld [vmem:[%s9382_s22 + $0x8ec] sm:$0xf0]  ;;  %v2366_v25 = vunpack.c.l.b16 %v1836_v10  ;;  %v6874_v27 = vor.u32 %v8253_v9, %v6873_v8  ;;  %v2367_v29 = vunpack.c.h.b16 %v1836_v10 }
 0x170   : > { %v7241_v13 = vld [vmem:[%s9382_s22 + $0x9e0] sm:$0xf]  ;;  %v8345_v15 = vld [vmem:[%s9382_s22 + $0x9ec] sm:$0xf0]  ;;  %v7114_v28 = vor.u32 %v8313_v12, %v7113_v11  ;;  %5042 = vmatpush.bf16.msrb.mxu1 %v6618_v19  ;;  %5055 = vmatpush.bf16.msrb.mxu2 %v6746_v20 }
 0x171   : > { %v7369_v16 = vld [vmem:[%s9382_s22 + $0xae0] sm:$0xf]  ;;  %v8377_v17 = vld [vmem:[%s9382_s22 + $0xaec] sm:$0xf0]  ;;  %v7242_v30 = vor.u32 %v8345_v15, %v7241_v13  ;;  %v9547_v42 = vpack.c.b16 %v2366_v25, %v2366_v25  ;;  %5068 = vmatpush.bf16.msrb.mxu3 %v6874_v27  ;;  %v9551_v45 = vpack.c.b16 %v2367_v29, %v2367_v29 }
 0x172   : > { %v7497_v23 = vld [vmem:[%s9382_s22 + $0xbe0] sm:$0xf]  ;;  %v8409_v24 = vld [vmem:[%s9382_s22 + $0xbec] sm:$0xf0]  ;;  %v7370_v31 = vor.u32 %v8377_v17, %v7369_v16  ;;  %5074 = vmatpush.bf16.msra.mxu0 %v7114_v28 }
 0x173   : > { %v7097_v32 = vld [vmem:[%s9382_s22 + $0x8c0] sm:$0xf]  ;;  %v8309_v33 = vld [vmem:[%s9382_s22 + $0x8cc] sm:$0xf0]  ;;  %v7498_v35 = vor.u32 %v8409_v24, %v7497_v23  ;;  %5056 = vmatmul.bf16.vlgmr.msrb.gmra.mxu2 %v9543_v39  ;;  %5030 = vmatmul.bf16.vlgmr.msrb.gmra.mxu0 %v9547_v42 }
 0x174   : > { %v7225_v34 = vld [vmem:[%s9382_s22 + $0x9c0] sm:$0xf]  ;;  %v8341_v36 = vld [vmem:[%s9382_s22 + $0x9cc] sm:$0xf0]  ;;  %v7098_v44 = vor.u32 %v8309_v33, %v7097_v32  ;;  %5087 = vmatpush.bf16.msra.mxu1 %v7242_v30  ;;  %5100 = vmatpush.bf16.msra.mxu2 %v7370_v31 }
 0x175   : > { %v7353_v37 = vld [vmem:[%s9382_s22 + $0xac0] sm:$0xf]  ;;  %v8373_v38 = vld [vmem:[%s9382_s22 + $0xacc] sm:$0xf0]  ;;  %v7226_v46 = vor.u32 %v8341_v36, %v7225_v34  ;;  %5113 = vmatpush.bf16.msra.mxu3 %v7498_v35  ;;  %5043 = vmatmul.bf16.vlgmr.msrb.gmra.mxu1 %v9551_v45 }
 0x176   : > { %v7481_v40 = vld [vmem:[%s9382_s22 + $0xbc0] sm:$0xf]  ;;  %v8405_v41 = vld [vmem:[%s9382_s22 + $0xbcc] sm:$0xf0]  ;;  %v7354_v47 = vor.u32 %v8373_v38, %v7353_v37  ;;  %5069 = vmatmul.bf16.vlgmr.msrb.gmra.mxu3 %v9549_v43  ;;  %5075 = vmatpush.bf16.msra.mxu0 %v7098_v44 }
 0x177   : > { %v7081_v48 = vld [vmem:[%s9382_s22 + $0x8a0] sm:$0xf]  ;;  %v8305_v49 = vld [vmem:[%s9382_s22 + $0x8ac] sm:$0xf0]  ;;  %v7482_v51 = vor.u32 %v8405_v41, %v7481_v40 }
 0x178   : > { %v7209_v50 = vld [vmem:[%s9382_s22 + $0x9a0] sm:$0xf]  ;;  %v8337_v52 = vld [vmem:[%s9382_s22 + $0x9ac] sm:$0xf0]  ;;  %v7082_v57 = vor.u32 %v8305_v49, %v7081_v48  ;;  %5088 = vmatpush.bf16.msra.mxu1 %v7226_v46  ;;  %5101 = vmatpush.bf16.msra.mxu2 %v7354_v47 }
 0x179   : > { %v7337_v53 = vld [vmem:[%s9382_s22 + $0xaa0] sm:$0xf]  ;;  %v8369_v54 = vld [vmem:[%s9382_s22 + $0xaac] sm:$0xf0]  ;;  %v7210_v58 = vor.u32 %v8337_v52, %v7209_v50  ;;  %5114 = vmatpush.bf16.msra.mxu3 %v7482_v51 }
 0x17a   : > { %v7465_v55 = vld [vmem:[%s9382_s22 + $0xba0] sm:$0xf]  ;;  %v8401_v56 = vld [vmem:[%s9382_s22 + $0xbac] sm:$0xf0]  ;;  %v7338_v59 = vor.u32 %v8369_v54, %v7337_v53  ;;  %5076 = vmatpush.bf16.msra.mxu0 %v7082_v57 }
 0x17b   : > { %v7065_v60 = vld [vmem:[%s9382_s22 + $0x880] sm:$0xf]  ;;  %v8301_v61 = vld [vmem:[%s9382_s22 + $0x88c] sm:$0xf0]  ;;  %v7466_v63 = vor.u32 %v8401_v56, %v7465_v55 }
 0x17c   : > { %v7193_v62 = vld [vmem:[%s9382_s22 + $0x980] sm:$0xf]  ;;  %v8333_v0 = vld [vmem:[%s9382_s22 + $0x98c] sm:$0xf0]  ;;  %v7066_v6 = vor.u32 %v8301_v61, %v7065_v60  ;;  %5089 = vmatpush.bf16.msra.mxu1 %v7210_v58  ;;  %5102 = vmatpush.bf16.msra.mxu2 %v7338_v59 }
 0x17d   : > { %v7321_v1 = vld [vmem:[%s9382_s22 + $0xa80] sm:$0xf]  ;;  %v8365_v2 = vld [vmem:[%s9382_s22 + $0xa8c] sm:$0xf0]  ;;  %v7194_v8 = vor.u32 %v8333_v0, %v7193_v62  ;;  %5115 = vmatpush.bf16.msra.mxu3 %v7466_v63  ;;  %v1839_v62 = vld [vmem:[%s9368_s7 + $0x28] sm:$0xff] }
 0x17e   : > { %v7449_v3 = vld [vmem:[%s9382_s22 + $0xb80] sm:$0xf]  ;;  %v8397_v4 = vld [vmem:[%s9382_s22 + $0xb8c] sm:$0xf0]  ;;  %v7322_v9 = vor.u32 %v8365_v2, %v7321_v1  ;;  %5077 = vmatpush.bf16.msra.mxu0 %v7066_v6 }
 0x17f   : > { %v7049_v10 = vld [vmem:[%s9382_s22 + $0x860] sm:$0xf]  ;;  %v8297_v11 = vld [vmem:[%s9382_s22 + $0x86c] sm:$0xf0]  ;;  %v7450_v13 = vor.u32 %v8397_v4, %v7449_v3 }
 0x180   : > { %v7177_v12 = vld [vmem:[%s9382_s22 + $0x960] sm:$0xf]  ;;  %v8329_v14 = vld [vmem:[%s9382_s22 + $0x96c] sm:$0xf0]  ;;  %v7050_v19 = vor.u32 %v8297_v11, %v7049_v10  ;;  %5090 = vmatpush.bf16.msra.mxu1 %v7194_v8  ;;  %5103 = vmatpush.bf16.msra.mxu2 %v7322_v9 }
 0x181   : > { %v7305_v15 = vld [vmem:[%s9382_s22 + $0xa60] sm:$0xf]  ;;  %v8361_v16 = vld [vmem:[%s9382_s22 + $0xa6c] sm:$0xf0]  ;;  %v7178_v20 = vor.u32 %v8329_v14, %v7177_v12  ;;  %5116 = vmatpush.bf16.msra.mxu3 %v7450_v13  ;;  %v2372_v13 = vunpack.c.l.b16 %v1839_v62 }
 0x182   : > { %v7433_v17 = vld [vmem:[%s9382_s22 + $0xb60] sm:$0xf]  ;;  %v8393_v18 = vld [vmem:[%s9382_s22 + $0xb6c] sm:$0xf0]  ;;  %v7306_v23 = vor.u32 %v8361_v16, %v7305_v15  ;;  %5078 = vmatpush.bf16.msra.mxu0 %v7050_v19 }
 0x183   : > { %v7033_v24 = vld [vmem:[%s9382_s22 + $0x840] sm:$0xf]  ;;  %v8293_v25 = vld [vmem:[%s9382_s22 + $0x84c] sm:$0xf0]  ;;  %v7434_v27 = vor.u32 %v8393_v18, %v7433_v17  ;;  %v2373_v17 = vunpack.c.h.b16 %v1839_v62 }
 0x184   : > { %v7161_v26 = vld [vmem:[%s9382_s22 + $0x940] sm:$0xf]  ;;  %v8325_v28 = vld [vmem:[%s9382_s22 + $0x94c] sm:$0xf0]  ;;  %v7034_v33 = vor.u32 %v8293_v25, %v7033_v24  ;;  %5091 = vmatpush.bf16.msra.mxu1 %v7178_v20  ;;  %5104 = vmatpush.bf16.msra.mxu2 %v7306_v23 }
 0x185   : > { %v7289_v29 = vld [vmem:[%s9382_s22 + $0xa40] sm:$0xf]  ;;  %v8357_v30 = vld [vmem:[%s9382_s22 + $0xa4c] sm:$0xf0]  ;;  %v7162_v34 = vor.u32 %v8325_v28, %v7161_v26  ;;  %5117 = vmatpush.bf16.msra.mxu3 %v7434_v27 }
 0x186   : > { %v7417_v31 = vld [vmem:[%s9382_s22 + $0xb40] sm:$0xf]  ;;  %v8389_v32 = vld [vmem:[%s9382_s22 + $0xb4c] sm:$0xf0]  ;;  %v7290_v35 = vor.u32 %v8357_v30, %v7289_v29  ;;  %5079 = vmatpush.bf16.msra.mxu0 %v7034_v33  ;;  %v9623_v30 = vpack.c.b16 %v2372_v13, %v2372_v13 }
 0x187   : > { %v7017_v36 = vld [vmem:[%s9382_s22 + $0x820] sm:$0xf]  ;;  %v8289_v37 = vld [vmem:[%s9382_s22 + $0x82c] sm:$0xf0]  ;;  %v7418_v40 = vor.u32 %v8389_v32, %v7417_v31 }
 0x188   : > { %v7145_v38 = vld [vmem:[%s9382_s22 + $0x920] sm:$0xf]  ;;  %v8321_v41 = vld [vmem:[%s9382_s22 + $0x92c] sm:$0xf0]  ;;  %v7018_v50 = vor.u32 %v8289_v37, %v7017_v36  ;;  %5092 = vmatpush.bf16.msra.mxu1 %v7162_v34  ;;  %5105 = vmatpush.bf16.msra.mxu2 %v7290_v35  ;;  %v9629_v34 = vpack.c.b16 %v2373_v17, %v2373_v17 }
 0x189   : > { %v7273_v44 = vld [vmem:[%s9382_s22 + $0xa20] sm:$0xf]  ;;  %v8353_v46 = vld [vmem:[%s9382_s22 + $0xa2c] sm:$0xf0]  ;;  %v7146_v54 = vor.u32 %v8321_v41, %v7145_v38  ;;  %5118 = vmatpush.bf16.msra.mxu3 %v7418_v40 }
 0x18a   : > { %v7401_v47 = vld [vmem:[%s9382_s22 + $0xb20] sm:$0xf]  ;;  %v8385_v48 = vld [vmem:[%s9382_s22 + $0xb2c] sm:$0xf0]  ;;  %v7274_v55 = vor.u32 %v8353_v46, %v7273_v44  ;;  %5080 = vmatpush.bf16.msra.mxu0 %v7018_v50 }
 0x18b   : > { %v7001_v49 = vld [vmem:[%s9382_s22 + $0x800] sm:$0xf]  ;;  %v8285_v51 = vld [vmem:[%s9382_s22 + $0x80c] sm:$0xf0]  ;;  %v7402_v59 = vor.u32 %v8385_v48, %v7401_v47 }
 0x18c   : > { %v7129_v52 = vld [vmem:[%s9382_s22 + $0x900] sm:$0xf]  ;;  %v8317_v53 = vld [vmem:[%s9382_s22 + $0x90c] sm:$0xf0]  ;;  %v7002_v2 = vor.u32 %v8285_v51, %v7001_v49  ;;  %5093 = vmatpush.bf16.msra.mxu1 %v7146_v54  ;;  %5106 = vmatpush.bf16.msra.mxu2 %v7274_v55 }
 0x18d   : > { %v7257_v56 = vld [vmem:[%s9382_s22 + $0xa00] sm:$0xf]  ;;  %v8349_v57 = vld [vmem:[%s9382_s22 + $0xa0c] sm:$0xf0]  ;;  %v7130_v9 = vor.u32 %v8317_v53, %v7129_v52  ;;  %5119 = vmatpush.bf16.msra.mxu3 %v7402_v59 }
 0x18e   : > { %v1838_v58 = vld [vmem:[%s9368_s7 + $0x20] sm:$0xff]  ;;  %v8381_v61 = vld [vmem:[%s9382_s22 + $0xb0c] sm:$0xf0]  ;;  %v7258_v10 = vor.u32 %v8349_v57, %v7257_v56  ;;  %5081 = vmatpush.bf16.msra.mxu0 %v7002_v2 }
 0x18f   : > { %v7385_v60 = vld [vmem:[%s9382_s22 + $0xb00] sm:$0xf]  ;;  %v8441_v0 = vld [vmem:[%s9382_s22 + $0xcec] sm:$0xf0]  ;;  %v2370_v8 = vunpack.c.l.b16 %v1838_v58  ;;  %v2371_v14 = vunpack.c.h.b16 %v1838_v58 }
 0x190   : > { %v7625_v63 = vld [vmem:[%s9382_s22 + $0xce0] sm:$0xf]  ;;  %v8473_v3 = vld [vmem:[%s9382_s22 + $0xdec] sm:$0xf0]  ;;  %v7386_v15 = vor.u32 %v8381_v61, %v7385_v60  ;;  %5094 = vmatpush.bf16.msra.mxu1 %v7130_v9  ;;  %5107 = vmatpush.bf16.msra.mxu2 %v7258_v10 }
 0x191   : > { %v7753_v1 = vld [vmem:[%s9382_s22 + $0xde0] sm:$0xf]  ;;  %v8505_v6 = vld [vmem:[%s9382_s22 + $0xeec] sm:$0xf0]  ;;  %v7626_v16 = vor.u32 %v8441_v0, %v7625_v63  ;;  %v9618_v26 = vpack.c.b16 %v2370_v8, %v2370_v8  ;;  %v9625_v31 = vpack.c.b16 %v2371_v14, %v2371_v14 }
 0x192   : > { %v7881_v4 = vld [vmem:[%s9382_s22 + $0xee0] sm:$0xf]  ;;  %v8537_v12 = vld [vmem:[%s9382_s22 + $0xfec] sm:$0xf0]  ;;  %v7754_v18 = vor.u32 %v8473_v3, %v7753_v1  ;;  %5120 = vmatpush.bf16.msra.mxu3 %v7386_v15 }
 0x193   : > { %v8009_v11 = vld [vmem:[%s9382_s22 + $0xfe0] sm:$0xf]  ;;  %v7882_v19 = vor.u32 %v8505_v6, %v7881_v4  ;;  %v8437_v23 = vld [vmem:[%s9382_s22 + $0xccc] sm:$0xf0]  ;;  %5126 = vmatpush.bf16.msrb.mxu0 %v7626_v16  ;;  %5108 = vmatmul.bf16.vlgmr.msra.gmra.mxu2 %v9623_v30 }
 0x194   : > { %v7609_v20 = vld [vmem:[%s9382_s22 + $0xcc0] sm:$0xf]  ;;  %v8010_v25 = vor.u32 %v8537_v12, %v8009_v11  ;;  %v8469_v27 = vld [vmem:[%s9382_s22 + $0xdcc] sm:$0xf0]  ;;  %5139 = vmatpush.bf16.msrb.mxu1 %v7754_v18  ;;  %5082 = vmatmul.bf16.vlgmr.msra.gmra.mxu0 %v9618_v26 }
 0x195   : > { %v7737_v24 = vld [vmem:[%s9382_s22 + $0xdc0] sm:$0xf]  ;;  %v8501_v29 = vld [vmem:[%s9382_s22 + $0xecc] sm:$0xf0]  ;;  %v7610_v35 = vor.u32 %v8437_v23, %v7609_v20  ;;  %5152 = vmatpush.bf16.msrb.mxu2 %v7882_v19  ;;  %5095 = vmatmul.bf16.vlgmr.msra.gmra.mxu1 %v9625_v31 }
 0x196   : > { %v7865_v28 = vld [vmem:[%s9382_s22 + $0xec0] sm:$0xf]  ;;  %v8533_v33 = vld [vmem:[%s9382_s22 + $0xfcc] sm:$0xf0]  ;;  %v7738_v36 = vor.u32 %v8469_v27, %v7737_v24  ;;  %5165 = vmatpush.bf16.msrb.mxu3 %v8010_v25 }
 0x197   : > { %v7993_v32 = vld [vmem:[%s9382_s22 + $0xfc0] sm:$0xf]  ;;  %v7866_v37 = vor.u32 %v8501_v29, %v7865_v28  ;;  %v8433_v40 = vld [vmem:[%s9382_s22 + $0xcac] sm:$0xf0]  ;;  %5121 = vmatmul.bf16.vlgmr.msra.gmra.mxu3 %v9629_v34  ;;  %5127 = vmatpush.bf16.msrb.mxu0 %v7610_v35 }
 0x198   : > { %v7593_v38 = vld [vmem:[%s9382_s22 + $0xca0] sm:$0xf]  ;;  %v7994_v44 = vor.u32 %v8533_v33, %v7993_v32  ;;  %v8465_v46 = vld [vmem:[%s9382_s22 + $0xdac] sm:$0xf0]  ;;  %5140 = vmatpush.bf16.msrb.mxu1 %v7738_v36 }
 0x199   : > { %v7721_v41 = vld [vmem:[%s9382_s22 + $0xda0] sm:$0xf]  ;;  %v8497_v48 = vld [vmem:[%s9382_s22 + $0xeac] sm:$0xf0]  ;;  %v7594_v51 = vor.u32 %v8433_v40, %v7593_v38  ;;  %5153 = vmatpush.bf16.msrb.mxu2 %v7866_v37 }
 0x19a   : > { %v7849_v47 = vld [vmem:[%s9382_s22 + $0xea0] sm:$0xf]  ;;  %v8529_v50 = vld [vmem:[%s9382_s22 + $0xfac] sm:$0xf0]  ;;  %v7722_v52 = vor.u32 %v8465_v46, %v7721_v41  ;;  %5166 = vmatpush.bf16.msrb.mxu3 %v7994_v44 }
 0x19b   : > { %v7977_v49 = vld [vmem:[%s9382_s22 + $0xfa0] sm:$0xf]  ;;  %v7850_v53 = vor.u32 %v8497_v48, %v7849_v47  ;;  %v8429_v55 = vld [vmem:[%s9382_s22 + $0xc8c] sm:$0xf0]  ;;  %5128 = vmatpush.bf16.msrb.mxu0 %v7594_v51 }
 0x19c   : > { %v7577_v54 = vld [vmem:[%s9382_s22 + $0xc80] sm:$0xf]  ;;  %v7978_v57 = vor.u32 %v8529_v50, %v7977_v49  ;;  %v8461_v58 = vld [vmem:[%s9382_s22 + $0xd8c] sm:$0xf0]  ;;  %5141 = vmatpush.bf16.msrb.mxu1 %v7722_v52 }
 0x19d   : > { %v7705_v56 = vld [vmem:[%s9382_s22 + $0xd80] sm:$0xf]  ;;  %v8493_v60 = vld [vmem:[%s9382_s22 + $0xe8c] sm:$0xf0]  ;;  %v7578_v63 = vor.u32 %v8429_v55, %v7577_v54  ;;  %5154 = vmatpush.bf16.msrb.mxu2 %v7850_v53 }
 0x19e   : > { %v7833_v59 = vld [vmem:[%s9382_s22 + $0xe80] sm:$0xf]  ;;  %v8525_v62 = vld [vmem:[%s9382_s22 + $0xf8c] sm:$0xf0]  ;;  %v7706_v0 = vor.u32 %v8461_v58, %v7705_v56  ;;  %5167 = vmatpush.bf16.msrb.mxu3 %v7978_v57 }
 0x19f   : > { %v7961_v61 = vld [vmem:[%s9382_s22 + $0xf80] sm:$0xf]  ;;  %v7834_v1 = vor.u32 %v8493_v60, %v7833_v59  ;;  %v8425_v3 = vld [vmem:[%s9382_s22 + $0xc6c] sm:$0xf0]  ;;  %5129 = vmatpush.bf16.msrb.mxu0 %v7578_v63  ;;  %v1841_v60 = vld [vmem:[%s9368_s7 + $0x38] sm:$0xff] }
 0x1a0   : > { %v7561_v2 = vld [vmem:[%s9382_s22 + $0xc60] sm:$0xf]  ;;  %v7962_v6 = vor.u32 %v8525_v62, %v7961_v61  ;;  %v8457_v8 = vld [vmem:[%s9382_s22 + $0xd6c] sm:$0xf0]  ;;  %5142 = vmatpush.bf16.msrb.mxu1 %v7706_v0  ;;  %v8055_v61 = vld [vmem:[%s9382_s22 + $0xe4] sm:$0xf] }
 0x1a1   : > { %v7689_v4 = vld [vmem:[%s9382_s22 + $0xd60] sm:$0xf]  ;;  %v8489_v10 = vld [vmem:[%s9382_s22 + $0xe6c] sm:$0xf0]  ;;  %v7562_v13 = vor.u32 %v8425_v3, %v7561_v2  ;;  %5155 = vmatpush.bf16.msrb.mxu2 %v7834_v1  ;;  %v6091_v62 = vld [vmem:[%s9382_s22 + $0xf0] sm:$0xf0] }
 0x1a2   : > { %v7817_v9 = vld [vmem:[%s9382_s22 + $0xe60] sm:$0xf]  ;;  %v8521_v12 = vld [vmem:[%s9382_s22 + $0xf6c] sm:$0xf0]  ;;  %v7690_v14 = vor.u32 %v8457_v8, %v7689_v4  ;;  %5168 = vmatpush.bf16.msrb.mxu3 %v7962_v6  ;;  %v8087_v63 = vld [vmem:[%s9382_s22 + $0x1e4] sm:$0xf] }
 0x1a3   : > { %v7945_v11 = vld [vmem:[%s9382_s22 + $0xf60] sm:$0xf]  ;;  %v7818_v15 = vor.u32 %v8489_v10, %v7817_v9  ;;  %v8421_v17 = vld [vmem:[%s9382_s22 + $0xc4c] sm:$0xf0]  ;;  %5130 = vmatpush.bf16.msrb.mxu0 %v7562_v13  ;;  %v6219_v1 = vld [vmem:[%s9382_s22 + $0x1f0] sm:$0xf0] }
 0x1a4   : > { %v7545_v16 = vld [vmem:[%s9382_s22 + $0xc40] sm:$0xf]  ;;  %v7946_v19 = vor.u32 %v8521_v12, %v7945_v11  ;;  %v8453_v20 = vld [vmem:[%s9382_s22 + $0xd4c] sm:$0xf0]  ;;  %5143 = vmatpush.bf16.msrb.mxu1 %v7690_v14  ;;  %v8119_v2 = vld [vmem:[%s9382_s22 + $0x2e4] sm:$0xf]  ;;  %v2376_v11 = vunpack.c.l.b16 %v1841_v60  ;;  %v6094_v14 = vor.u32 %v8055_v61, %v6091_v62 }
 0x1a5   : > { %v7673_v18 = vld [vmem:[%s9382_s22 + $0xd40] sm:$0xf]  ;;  %v8485_v24 = vld [vmem:[%s9382_s22 + $0xe4c] sm:$0xf0]  ;;  %v7546_v28 = vor.u32 %v8421_v17, %v7545_v16  ;;  %5156 = vmatpush.bf16.msrb.mxu2 %v7818_v15  ;;  %v6347_v3 = vld [vmem:[%s9382_s22 + $0x2f0] sm:$0xf0]  ;;  %v2377_v15 = vunpack.c.h.b16 %v1841_v60  ;;  %v6222_v16 = vor.u32 %v8087_v63, %v6219_v1 }
 0x1a6   : > { %v7801_v23 = vld [vmem:[%s9382_s22 + $0xe40] sm:$0xf]  ;;  %v8517_v27 = vld [vmem:[%s9382_s22 + $0xf4c] sm:$0xf0]  ;;  %v7674_v29 = vor.u32 %v8453_v20, %v7673_v18  ;;  %5169 = vmatpush.bf16.msrb.mxu3 %v7946_v19  ;;  %v8151_v9 = vld [vmem:[%s9382_s22 + $0x3e4] sm:$0xf]  ;;  %v6350_v17 = vor.u32 %v8119_v2, %v6347_v3 }
 0x1a7   : > { %v7929_v25 = vld [vmem:[%s9382_s22 + $0xf40] sm:$0xf]  ;;  %v7802_v32 = vor.u32 %v8485_v24, %v7801_v23  ;;  %v8417_v35 = vld [vmem:[%s9382_s22 + $0xc2c] sm:$0xf0]  ;;  %5131 = vmatpush.bf16.msrb.mxu0 %v7546_v28  ;;  %v6475_v10 = vld [vmem:[%s9382_s22 + $0x3f0] sm:$0xf0] }
 0x1a8   : > { %v7529_v33 = vld [vmem:[%s9382_s22 + $0xc20] sm:$0xf]  ;;  %v7930_v37 = vor.u32 %v8517_v27, %v7929_v25  ;;  %v8449_v38 = vld [vmem:[%s9382_s22 + $0xd2c] sm:$0xf0]  ;;  %5144 = vmatpush.bf16.msrb.mxu1 %v7674_v29  ;;  %v8051_v18 = vld [vmem:[%s9382_s22 + $0xc4] sm:$0xf]  ;;  %v6478_v23 = vor.u32 %v8151_v9, %v6475_v10  ;;  %v9701_v29 = vpack.c.b16 %v2376_v11, %v2376_v11 }
 0x1a9   : > { %v7657_v36 = vld [vmem:[%s9382_s22 + $0xd20] sm:$0xf]  ;;  %v8481_v41 = vld [vmem:[%s9382_s22 + $0xe2c] sm:$0xf0]  ;;  %v7530_v48 = vor.u32 %v8417_v35, %v7529_v33  ;;  %5157 = vmatpush.bf16.msrb.mxu2 %v7802_v32  ;;  %v6075_v19 = vld [vmem:[%s9382_s22 + $0xd0] sm:$0xf0] }
 0x1aa   : > { %v7785_v40 = vld [vmem:[%s9382_s22 + $0xe20] sm:$0xf]  ;;  %v8513_v46 = vld [vmem:[%s9382_s22 + $0xf2c] sm:$0xf0]  ;;  %v7658_v52 = vor.u32 %v8449_v38, %v7657_v36  ;;  %5170 = vmatpush.bf16.msrb.mxu3 %v7930_v37  ;;  %v8083_v20 = vld [vmem:[%s9382_s22 + $0x1c4] sm:$0xf]  ;;  %v9707_v36 = vpack.c.b16 %v2377_v15, %v2377_v15  ;;  %v6078_v37 = vor.u32 %v8051_v18, %v6075_v19 }
 0x1ab   : > { %v7913_v44 = vld [vmem:[%s9382_s22 + $0xf20] sm:$0xf]  ;;  %v8413_v49 = vld [vmem:[%s9382_s22 + $0xc0c] sm:$0xf0]  ;;  %v7786_v53 = vor.u32 %v8481_v41, %v7785_v40  ;;  %5132 = vmatpush.bf16.msrb.mxu0 %v7530_v48  ;;  %v6203_v25 = vld [vmem:[%s9382_s22 + $0x1d0] sm:$0xf0] }
 0x1ac   : > { %v7513_v47 = vld [vmem:[%s9382_s22 + $0xc00] sm:$0xf]  ;;  %v8445_v51 = vld [vmem:[%s9382_s22 + $0xd0c] sm:$0xf0]  ;;  %v7914_v57 = vor.u32 %v8513_v46, %v7913_v44  ;;  %5145 = vmatpush.bf16.msrb.mxu1 %v7658_v52  ;;  %v8115_v27 = vld [vmem:[%s9382_s22 + $0x2c4] sm:$0xf]  ;;  %v6206_v38 = vor.u32 %v8083_v20, %v6203_v25 }
 0x1ad   : > { %v7641_v50 = vld [vmem:[%s9382_s22 + $0xd00] sm:$0xf]  ;;  %v8477_v55 = vld [vmem:[%s9382_s22 + $0xe0c] sm:$0xf0]  ;;  %v7514_v0 = vor.u32 %v8413_v49, %v7513_v47  ;;  %5158 = vmatpush.bf16.msrb.mxu2 %v7786_v53  ;;  %v6331_v28 = vld [vmem:[%s9382_s22 + $0x2d0] sm:$0xf0] }
 0x1ae   : > { %v7769_v54 = vld [vmem:[%s9382_s22 + $0xe00] sm:$0xf]  ;;  %v1840_v56 = vld [vmem:[%s9368_s7 + $0x30] sm:$0xff]  ;;  %v7642_v6 = vor.u32 %v8445_v51, %v7641_v50  ;;  %5171 = vmatpush.bf16.msrb.mxu3 %v7914_v57  ;;  %v8147_v33 = vld [vmem:[%s9382_s22 + $0x3c4] sm:$0xf]  ;;  %v6334_v40 = vor.u32 %v8115_v27, %v6331_v28 }
 0x1af   : > { %v7897_v58 = vld [vmem:[%s9382_s22 + $0xf00] sm:$0xf]  ;;  %v8509_v59 = vld [vmem:[%s9382_s22 + $0xf0c] sm:$0xf0]  ;;  %v2374_v4 = vunpack.c.l.b16 %v1840_v56  ;;  %v7770_v8 = vor.u32 %v8477_v55, %v7769_v54  ;;  %v2375_v12 = vunpack.c.h.b16 %v1840_v56  ;;  %5133 = vmatpush.bf16.msrb.mxu0 %v7514_v0  ;;  %v6459_v35 = vld [vmem:[%s9382_s22 + $0x3d0] sm:$0xf0] }
 0x1b0   : > { %v7898_v13 = vor.u32 %v8509_v59, %v7897_v58  ;;  %5146 = vmatpush.bf16.msrb.mxu1 %v7642_v6  ;;  %v8047_v41 = vld [vmem:[%s9382_s22 + $0xa4] sm:$0xf]  ;;  %v6059_v44 = vld [vmem:[%s9382_s22 + $0xb0] sm:$0xf0]  ;;  %v6462_v47 = vor.u32 %v8147_v33, %v6459_v35 }
 0x1b1   : > { %v9696_v24 = vpack.c.b16 %v2374_v4, %v2374_v4  ;;  %5159 = vmatpush.bf16.msrb.mxu2 %v7770_v8  ;;  %v9703_v32 = vpack.c.b16 %v2375_v12, %v2375_v12  ;;  %v8079_v46 = vld [vmem:[%s9382_s22 + $0x1a4] sm:$0xf]  ;;  %v6187_v48 = vld [vmem:[%s9382_s22 + $0x1b0] sm:$0xf0]  ;;  %v6062_v53 = vor.u32 %v8047_v41, %v6059_v44 }
 0x1b2   : > { %5172 = vmatpush.bf16.msrb.mxu3 %v7898_v13  ;;  %v8111_v49 = vld [vmem:[%s9382_s22 + $0x2a4] sm:$0xf]  ;;  %v6315_v50 = vld [vmem:[%s9382_s22 + $0x2b0] sm:$0xf0]  ;;  %v6190_v54 = vor.u32 %v8079_v46, %v6187_v48 }
 0x1b3   : > { %5178 = vmatpush.bf16.msra.mxu0 %v6094_v14  ;;  %5147 = vmatmul.bf16.vlgmr.msrb.gmra.mxu1 %v9703_v32  ;;  %v8143_v51 = vld [vmem:[%s9382_s22 + $0x3a4] sm:$0xf]  ;;  %v6443_v52 = vld [vmem:[%s9382_s22 + $0x3b0] sm:$0xf0]  ;;  %v6318_v55 = vor.u32 %v8111_v49, %v6315_v50 }
 0x1b4   : > { %5191 = vmatpush.bf16.msra.mxu1 %v6222_v16  ;;  %5134 = vmatmul.bf16.vlgmr.msrb.gmra.mxu0 %v9696_v24  ;;  %v8043_v56 = vld [vmem:[%s9382_s22 + $0x84] sm:$0xf]  ;;  %v6043_v57 = vld [vmem:[%s9382_s22 + $0x90] sm:$0xf0]  ;;  %v6446_v59 = vor.u32 %v8143_v51, %v6443_v52 }
 0x1b5   : > { %5204 = vmatpush.bf16.msra.mxu2 %v6350_v17  ;;  %5173 = vmatmul.bf16.vlgmr.msrb.gmra.mxu3 %v9707_v36  ;;  %v8075_v58 = vld [vmem:[%s9382_s22 + $0x184] sm:$0xf]  ;;  %v6171_v60 = vld [vmem:[%s9382_s22 + $0x190] sm:$0xf0]  ;;  %v6046_v1 = vor.u32 %v8043_v56, %v6043_v57 }
 0x1b6   : > { %5217 = vmatpush.bf16.msra.mxu3 %v6478_v23  ;;  %5160 = vmatmul.bf16.vlgmr.msrb.gmra.mxu2 %v9701_v29  ;;  %v8107_v61 = vld [vmem:[%s9382_s22 + $0x284] sm:$0xf]  ;;  %v6299_v62 = vld [vmem:[%s9382_s22 + $0x290] sm:$0xf0]  ;;  %v6174_v2 = vor.u32 %v8075_v58, %v6171_v60 }
 0x1b7   : > { %5179 = vmatpush.bf16.msra.mxu0 %v6078_v37  ;;  %v8139_v63 = vld [vmem:[%s9382_s22 + $0x384] sm:$0xf]  ;;  %v6427_v0 = vld [vmem:[%s9382_s22 + $0x390] sm:$0xf0]  ;;  %v6302_v3 = vor.u32 %v8107_v61, %v6299_v62 }
 0x1b8   : > { %5192 = vmatpush.bf16.msra.mxu1 %v6206_v38  ;;  %v8039_v4 = vld [vmem:[%s9382_s22 + $0x64] sm:$0xf]  ;;  %v6027_v6 = vld [vmem:[%s9382_s22 + $0x70] sm:$0xf0]  ;;  %v6430_v9 = vor.u32 %v8139_v63, %v6427_v0 }
 0x1b9   : > { %5205 = vmatpush.bf16.msra.mxu2 %v6334_v40  ;;  %v8071_v8 = vld [vmem:[%s9382_s22 + $0x164] sm:$0xf]  ;;  %v6155_v10 = vld [vmem:[%s9382_s22 + $0x170] sm:$0xf0]  ;;  %v6030_v15 = vor.u32 %v8039_v4, %v6027_v6 }
 0x1ba   : > { %5218 = vmatpush.bf16.msra.mxu3 %v6462_v47  ;;  %v8103_v11 = vld [vmem:[%s9382_s22 + $0x264] sm:$0xf]  ;;  %v6283_v12 = vld [vmem:[%s9382_s22 + $0x270] sm:$0xf0]  ;;  %v6158_v16 = vor.u32 %v8071_v8, %v6155_v10 }
 0x1bb   : > { %5180 = vmatpush.bf16.msra.mxu0 %v6062_v53  ;;  %v8135_v13 = vld [vmem:[%s9382_s22 + $0x364] sm:$0xf]  ;;  %v6411_v14 = vld [vmem:[%s9382_s22 + $0x370] sm:$0xf0]  ;;  %v6286_v17 = vor.u32 %v8103_v11, %v6283_v12 }
 0x1bc   : > { %5193 = vmatpush.bf16.msra.mxu1 %v6190_v54  ;;  %v8035_v18 = vld [vmem:[%s9382_s22 + $0x44] sm:$0xf]  ;;  %v6011_v19 = vld [vmem:[%s9382_s22 + $0x50] sm:$0xf0]  ;;  %v6414_v23 = vor.u32 %v8135_v13, %v6411_v14 }
 0x1bd   : > { %5206 = vmatpush.bf16.msra.mxu2 %v6318_v55  ;;  %v8067_v20 = vld [vmem:[%s9382_s22 + $0x144] sm:$0xf]  ;;  %v6139_v25 = vld [vmem:[%s9382_s22 + $0x150] sm:$0xf0]  ;;  %v6014_v37 = vor.u32 %v8035_v18, %v6011_v19 }
 0x1be   : > { %5219 = vmatpush.bf16.msra.mxu3 %v6446_v59  ;;  %v8099_v27 = vld [vmem:[%s9382_s22 + $0x244] sm:$0xf]  ;;  %v6267_v28 = vld [vmem:[%s9382_s22 + $0x250] sm:$0xf0]  ;;  %v6142_v38 = vor.u32 %v8067_v20, %v6139_v25 }
 0x1bf   : > { %5181 = vmatpush.bf16.msra.mxu0 %v6046_v1  ;;  %v8131_v33 = vld [vmem:[%s9382_s22 + $0x344] sm:$0xf]  ;;  %v6395_v35 = vld [vmem:[%s9382_s22 + $0x350] sm:$0xf0]  ;;  %v6270_v40 = vor.u32 %v8099_v27, %v6267_v28 }
 0x1c0   : > { %5194 = vmatpush.bf16.msra.mxu1 %v6174_v2  ;;  %v8031_v41 = vld [vmem:[%s9382_s22 + $0x24] sm:$0xf]  ;;  %v5995_v44 = vld [vmem:[%s9382_s22 + $0x30] sm:$0xf0]  ;;  %v6398_v47 = vor.u32 %v8131_v33, %v6395_v35 }
 0x1c1   : > { %5207 = vmatpush.bf16.msra.mxu2 %v6302_v3  ;;  %v8063_v46 = vld [vmem:[%s9382_s22 + $0x124] sm:$0xf]  ;;  %v6123_v48 = vld [vmem:[%s9382_s22 + $0x130] sm:$0xf0]  ;;  %v5998_v53 = vor.u32 %v8031_v41, %v5995_v44 }
 0x1c2   : > { %5220 = vmatpush.bf16.msra.mxu3 %v6430_v9  ;;  %v8095_v49 = vld [vmem:[%s9382_s22 + $0x224] sm:$0xf]  ;;  %v6251_v50 = vld [vmem:[%s9382_s22 + $0x230] sm:$0xf0]  ;;  %v6126_v56 = vor.u32 %v8063_v46, %v6123_v48 }
 0x1c3   : > { %5182 = vmatpush.bf16.msra.mxu0 %v6030_v15  ;;  %v8127_v51 = vld [vmem:[%s9382_s22 + $0x324] sm:$0xf]  ;;  %v6379_v52 = vld [vmem:[%s9382_s22 + $0x330] sm:$0xf0]  ;;  %v6254_v57 = vor.u32 %v8095_v49, %v6251_v50 }
 0x1c4   : > { %5195 = vmatpush.bf16.msra.mxu1 %v6158_v16  ;;  %v8027_v54 = vld [vmem:[%s9382_s22 + $0x4] sm:$0xf]  ;;  %v5979_v55 = vld [vmem:[%s9382_s22 + $0x10] sm:$0xf0]  ;;  %v6382_v61 = vor.u32 %v8127_v51, %v6379_v52 }
 0x1c5   : > { %5208 = vmatpush.bf16.msra.mxu2 %v6286_v17  ;;  %v8059_v58 = vld [vmem:[%s9382_s22 + $0x104] sm:$0xf]  ;;  %v6107_v59 = vld [vmem:[%s9382_s22 + $0x110] sm:$0xf0]  ;;  %v5982_v4 = vor.u32 %v8027_v54, %v5979_v55 }
 0x1c6   : > { %5221 = vmatpush.bf16.msra.mxu3 %v6414_v23  ;;  %v8091_v60 = vld [vmem:[%s9382_s22 + $0x204] sm:$0xf]  ;;  %v6235_v62 = vld [vmem:[%s9382_s22 + $0x210] sm:$0xf0]  ;;  %v6110_v10 = vor.u32 %v8059_v58, %v6107_v59 }
 0x1c7   : > { %5183 = vmatpush.bf16.msra.mxu0 %v6014_v37  ;;  %v8123_v63 = vld [vmem:[%s9382_s22 + $0x304] sm:$0xf]  ;;  %v6363_v0 = vld [vmem:[%s9382_s22 + $0x310] sm:$0xf0]  ;;  %v6238_v11 = vor.u32 %v8091_v60, %v6235_v62 }
 0x1c8   : > { %5196 = vmatpush.bf16.msra.mxu1 %v6142_v38  ;;  %v8183_v1 = vld [vmem:[%s9382_s22 + $0x4e4] sm:$0xf]  ;;  %v6603_v2 = vld [vmem:[%s9382_s22 + $0x4f0] sm:$0xf0]  ;;  %v6366_v14 = vor.u32 %v8123_v63, %v6363_v0 }
 0x1c9   : > { %5209 = vmatpush.bf16.msra.mxu2 %v6270_v40  ;;  %v8215_v3 = vld [vmem:[%s9382_s22 + $0x5e4] sm:$0xf]  ;;  %v6731_v6 = vld [vmem:[%s9382_s22 + $0x5f0] sm:$0xf0]  ;;  %v6606_v15 = vor.u32 %v8183_v1, %v6603_v2 }
 0x1ca   : > { %5222 = vmatpush.bf16.msra.mxu3 %v6398_v47  ;;  %v8247_v8 = vld [vmem:[%s9382_s22 + $0x6e4] sm:$0xf]  ;;  %v6859_v9 = vld [vmem:[%s9382_s22 + $0x6f0] sm:$0xf0]  ;;  %v6734_v16 = vor.u32 %v8215_v3, %v6731_v6 }
 0x1cb   : > { %5184 = vmatpush.bf16.msra.mxu0 %v5998_v53  ;;  %v8279_v12 = vld [vmem:[%s9382_s22 + $0x7e4] sm:$0xf]  ;;  %v6987_v13 = vld [vmem:[%s9382_s22 + $0x7f0] sm:$0xf0]  ;;  %v6862_v17 = vor.u32 %v8247_v8, %v6859_v9 }
 0x1cc   : > { %5197 = vmatpush.bf16.msra.mxu1 %v6126_v56  ;;  %v8179_v18 = vld [vmem:[%s9382_s22 + $0x4c4] sm:$0xf]  ;;  %v6587_v19 = vld [vmem:[%s9382_s22 + $0x4d0] sm:$0xf0]  ;;  %v6990_v23 = vor.u32 %v8279_v12, %v6987_v13 }
 0x1cd   : > { %5210 = vmatpush.bf16.msra.mxu2 %v6254_v57  ;;  %v8211_v20 = vld [vmem:[%s9382_s22 + $0x5c4] sm:$0xf]  ;;  %v6715_v25 = vld [vmem:[%s9382_s22 + $0x5d0] sm:$0xf0]  ;;  %v6590_v37 = vor.u32 %v8179_v18, %v6587_v19 }
 0x1ce   : > { %5223 = vmatpush.bf16.msra.mxu3 %v6382_v61  ;;  %v8243_v27 = vld [vmem:[%s9382_s22 + $0x6c4] sm:$0xf]  ;;  %v6843_v28 = vld [vmem:[%s9382_s22 + $0x6d0] sm:$0xf0]  ;;  %v6718_v38 = vor.u32 %v8211_v20, %v6715_v25 }
 0x1cf   : > { %5185 = vmatpush.bf16.msra.mxu0 %v5982_v4  ;;  %v8275_v33 = vld [vmem:[%s9382_s22 + $0x7c4] sm:$0xf]  ;;  %v6971_v35 = vld [vmem:[%s9382_s22 + $0x7d0] sm:$0xf0]  ;;  %v6846_v40 = vor.u32 %v8243_v27, %v6843_v28 }
 0x1d0   : > { %5198 = vmatpush.bf16.msra.mxu1 %v6110_v10  ;;  %v8175_v41 = vld [vmem:[%s9382_s22 + $0x4a4] sm:$0xf]  ;;  %v6571_v44 = vld [vmem:[%s9382_s22 + $0x4b0] sm:$0xf0]  ;;  %v6974_v47 = vor.u32 %v8275_v33, %v6971_v35 }
 0x1d1   : > { %5211 = vmatpush.bf16.msra.mxu2 %v6238_v11  ;;  %v8207_v46 = vld [vmem:[%s9382_s22 + $0x5a4] sm:$0xf]  ;;  %v6699_v48 = vld [vmem:[%s9382_s22 + $0x5b0] sm:$0xf0]  ;;  %v6574_v53 = vor.u32 %v8175_v41, %v6571_v44 }
 0x1d2   : > { %5224 = vmatpush.bf16.msra.mxu3 %v6366_v14  ;;  %v8239_v49 = vld [vmem:[%s9382_s22 + $0x6a4] sm:$0xf]  ;;  %v6827_v50 = vld [vmem:[%s9382_s22 + $0x6b0] sm:$0xf0]  ;;  %5186 = vmatmul.bf16.vlgmr.msra.gmra.mxu0 %v9488_v21  ;;  %v6702_v54 = vor.u32 %v8207_v46, %v6699_v48 }
 0x1d3   : > { %5230 = vmatpush.bf16.msrb.mxu0 %v6606_v15  ;;  %v8271_v51 = vld [vmem:[%s9382_s22 + $0x7a4] sm:$0xf]  ;;  %v6955_v52 = vld [vmem:[%s9382_s22 + $0x7b0] sm:$0xf0]  ;;  %5199 = vmatmul.bf16.vlgmr.msra.gmra.mxu1 %v9491_v22  ;;  %v6830_v55 = vor.u32 %v8239_v49, %v6827_v50 }
 0x1d4   : > { %5243 = vmatpush.bf16.msrb.mxu1 %v6734_v16  ;;  %5212 = vmatmul.bf16.vlgmr.msra.gmra.mxu2 %v9474_v5  ;;  %v8171_v56 = vld [vmem:[%s9382_s22 + $0x484] sm:$0xf]  ;;  %v6555_v57 = vld [vmem:[%s9382_s22 + $0x490] sm:$0xf0]  ;;  %v6958_v59 = vor.u32 %v8271_v51, %v6955_v52 }
 0x1d5   : > { %5256 = vmatpush.bf16.msrb.mxu2 %v6862_v17  ;;  %5225 = vmatmul.bf16.vlgmr.msra.gmra.mxu3 %v9477_v7  ;;  %v8203_v58 = vld [vmem:[%s9382_s22 + $0x584] sm:$0xf]  ;;  %v6683_v60 = vld [vmem:[%s9382_s22 + $0x590] sm:$0xf0]  ;;  %v6558_v1 = vor.u32 %v8171_v56, %v6555_v57  ;;  %v9820_v49 = vpop.f32.mrf.mxu2 }
 0x1d6   : > { %5269 = vmatpush.bf16.msrb.mxu3 %v6990_v23  ;;  %v8235_v61 = vld [vmem:[%s9382_s22 + $0x684] sm:$0xf]  ;;  %v6811_v62 = vld [vmem:[%s9382_s22 + $0x690] sm:$0xf0]  ;;  %v6686_v2 = vor.u32 %v8203_v58, %v6683_v60 }
 0x1d7   : > { %5231 = vmatpush.bf16.msrb.mxu0 %v6590_v37  ;;  %v8267_v63 = vld [vmem:[%s9382_s22 + $0x784] sm:$0xf]  ;;  %v6939_v0 = vld [vmem:[%s9382_s22 + $0x790] sm:$0xf0]  ;;  %v6814_v3 = vor.u32 %v8235_v61, %v6811_v62 }
 0x1d8   : > { %5244 = vmatpush.bf16.msrb.mxu1 %v6718_v38  ;;  %v8167_v4 = vld [vmem:[%s9382_s22 + $0x464] sm:$0xf]  ;;  %v6539_v6 = vld [vmem:[%s9382_s22 + $0x470] sm:$0xf0]  ;;  %v6942_v9 = vor.u32 %v8267_v63, %v6939_v0 }
 0x1d9   : > { %5257 = vmatpush.bf16.msrb.mxu2 %v6846_v40  ;;  %v8199_v8 = vld [vmem:[%s9382_s22 + $0x564] sm:$0xf]  ;;  %v6667_v10 = vld [vmem:[%s9382_s22 + $0x570] sm:$0xf0]  ;;  %v6542_v15 = vor.u32 %v8167_v4, %v6539_v6 }
 0x1da   : > { %5270 = vmatpush.bf16.msrb.mxu3 %v6974_v47  ;;  %v8231_v11 = vld [vmem:[%s9382_s22 + $0x664] sm:$0xf]  ;;  %v6795_v12 = vld [vmem:[%s9382_s22 + $0x670] sm:$0xf0]  ;;  %v6670_v16 = vor.u32 %v8199_v8, %v6667_v10 }
 0x1db   : > { %5232 = vmatpush.bf16.msrb.mxu0 %v6574_v53  ;;  %v8263_v13 = vld [vmem:[%s9382_s22 + $0x764] sm:$0xf]  ;;  %v6923_v14 = vld [vmem:[%s9382_s22 + $0x770] sm:$0xf0]  ;;  %v6798_v17 = vor.u32 %v8231_v11, %v6795_v12 }
 0x1dc   : > { %5245 = vmatpush.bf16.msrb.mxu1 %v6702_v54  ;;  %v8163_v18 = vld [vmem:[%s9382_s22 + $0x444] sm:$0xf]  ;;  %v6523_v19 = vld [vmem:[%s9382_s22 + $0x450] sm:$0xf0]  ;;  %v6926_v23 = vor.u32 %v8263_v13, %v6923_v14  ;;  %v9813_v37 = vpop.f32.mrf.mxu0  ;;  %v9815_v40 = vpop.f32.mrf.mxu1 }
 0x1dd   : > { %5258 = vmatpush.bf16.msrb.mxu2 %v6830_v55  ;;  %v8195_v20 = vld [vmem:[%s9382_s22 + $0x544] sm:$0xf]  ;;  %v6651_v25 = vld [vmem:[%s9382_s22 + $0x550] sm:$0xf0]  ;;  %v6526_v38 = vor.u32 %v8163_v18, %v6523_v19  ;;  %v9825_v54 = vpop.f32.mrf.mxu3 }
 0x1de   : > { %5271 = vmatpush.bf16.msrb.mxu3 %v6958_v59  ;;  %v8227_v27 = vld [vmem:[%s9382_s22 + $0x644] sm:$0xf]  ;;  %v6779_v28 = vld [vmem:[%s9382_s22 + $0x650] sm:$0xf0]  ;;  %v6654_v41 = vor.u32 %v8195_v20, %v6651_v25  ;;  %v5007_v20 = vpop.f32.mrf.mxu2 }
 0x1df   : > { %5233 = vmatpush.bf16.msrb.mxu0 %v6558_v1  ;;  %v8259_v33 = vld [vmem:[%s9382_s22 + $0x744] sm:$0xf]  ;;  %v6907_v35 = vld [vmem:[%s9382_s22 + $0x750] sm:$0xf0]  ;;  %v6782_v44 = vor.u32 %v8227_v27, %v6779_v28 }
 0x1e0   : > { %5246 = vmatpush.bf16.msrb.mxu1 %v6686_v2  ;;  %v8159_v46 = vld [vmem:[%s9382_s22 + $0x424] sm:$0xf]  ;;  %v6507_v47 = vld [vmem:[%s9382_s22 + $0x430] sm:$0xf0]  ;;  %v6910_v50 = vor.u32 %v8259_v33, %v6907_v35 }
 0x1e1   : > { %5259 = vmatpush.bf16.msrb.mxu2 %v6814_v3  ;;  %v8191_v48 = vld [vmem:[%s9382_s22 + $0x524] sm:$0xf]  ;;  %v6635_v51 = vld [vmem:[%s9382_s22 + $0x530] sm:$0xf0]  ;;  %v6510_v57 = vor.u32 %v8159_v46, %v6507_v47 }
 0x1e2   : > { %5272 = vmatpush.bf16.msrb.mxu3 %v6942_v9  ;;  %v8223_v52 = vld [vmem:[%s9382_s22 + $0x624] sm:$0xf]  ;;  %v6763_v53 = vld [vmem:[%s9382_s22 + $0x630] sm:$0xf0]  ;;  %v6638_v60 = vor.u32 %v8191_v48, %v6635_v51 }
 0x1e3   : > { %5234 = vmatpush.bf16.msrb.mxu0 %v6542_v15  ;;  %v8255_v55 = vld [vmem:[%s9382_s22 + $0x724] sm:$0xf]  ;;  %v6891_v56 = vld [vmem:[%s9382_s22 + $0x730] sm:$0xf0]  ;;  %v6766_v61 = vor.u32 %v8223_v52, %v6763_v53 }
 0x1e4   : > { %5247 = vmatpush.bf16.msrb.mxu1 %v6670_v16  ;;  %v8155_v58 = vld [vmem:[%s9382_s22 + $0x404] sm:$0xf]  ;;  %v6491_v59 = vld [vmem:[%s9382_s22 + $0x410] sm:$0xf0]  ;;  %v6894_v1 = vor.u32 %v8255_v55, %v6891_v56  ;;  %v4981_v10 = vpop.f32.mrf.mxu0  ;;  %v4994_v15 = vpop.f32.mrf.mxu1 }
 0x1e5   : > { %5260 = vmatpush.bf16.msrb.mxu2 %v6798_v17  ;;  %v8187_v62 = vld [vmem:[%s9382_s22 + $0x504] sm:$0xf]  ;;  %v6619_v63 = vld [vmem:[%s9382_s22 + $0x510] sm:$0xf0]  ;;  %v6494_v11 = vor.u32 %v8155_v58, %v6491_v59  ;;  %v5020_v27 = vpop.f32.mrf.mxu3 }
 0x1e6   : > { %5273 = vmatpush.bf16.msrb.mxu3 %v6926_v23  ;;  %v8219_v0 = vld [vmem:[%s9382_s22 + $0x604] sm:$0xf]  ;;  %v6747_v2 = vld [vmem:[%s9382_s22 + $0x610] sm:$0xf0]  ;;  %v6622_v16 = vor.u32 %v8187_v62, %v6619_v63 }
 0x1e7   : > { %5235 = vmatpush.bf16.msrb.mxu0 %v6526_v38  ;;  %v8251_v3 = vld [vmem:[%s9382_s22 + $0x704] sm:$0xf]  ;;  %v6875_v4 = vld [vmem:[%s9382_s22 + $0x710] sm:$0xf0]  ;;  %v6750_v17 = vor.u32 %v8219_v0, %v6747_v2 }
 0x1e8   : > { %5248 = vmatpush.bf16.msrb.mxu1 %v6654_v41  ;;  %v8311_v6 = vld [vmem:[%s9382_s22 + $0x8e4] sm:$0xf]  ;;  %v7115_v8 = vld [vmem:[%s9382_s22 + $0x8f0] sm:$0xf0]  ;;  %v6878_v23 = vor.u32 %v8251_v3, %v6875_v4 }
 0x1e9   : > { %5261 = vmatpush.bf16.msrb.mxu2 %v6782_v44  ;;  %v8343_v9 = vld [vmem:[%s9382_s22 + $0x9e4] sm:$0xf]  ;;  %v7243_v12 = vld [vmem:[%s9382_s22 + $0x9f0] sm:$0xf0]  ;;  %v7118_v25 = vor.u32 %v8311_v6, %v7115_v8 }
 0x1ea   : > { %5274 = vmatpush.bf16.msrb.mxu3 %v6910_v50  ;;  %v8375_v13 = vld [vmem:[%s9382_s22 + $0xae4] sm:$0xf]  ;;  %v7371_v14 = vld [vmem:[%s9382_s22 + $0xaf0] sm:$0xf0]  ;;  %v7246_v28 = vor.u32 %v8343_v9, %v7243_v12 }
 0x1eb   : > { %5236 = vmatpush.bf16.msrb.mxu0 %v6510_v57  ;;  %v8407_v18 = vld [vmem:[%s9382_s22 + $0xbe4] sm:$0xf]  ;;  %v7499_v19 = vld [vmem:[%s9382_s22 + $0xbf0] sm:$0xf0]  ;;  %v7374_v33 = vor.u32 %v8375_v13, %v7371_v14 }
 0x1ec   : > { %5249 = vmatpush.bf16.msrb.mxu1 %v6638_v60  ;;  %v8307_v35 = vld [vmem:[%s9382_s22 + $0x8c4] sm:$0xf]  ;;  %v7099_v38 = vld [vmem:[%s9382_s22 + $0x8d0] sm:$0xf0]  ;;  %v7502_v44 = vor.u32 %v8407_v18, %v7499_v19 }
 0x1ed   : > { %5262 = vmatpush.bf16.msrb.mxu2 %v6766_v61  ;;  %v8339_v41 = vld [vmem:[%s9382_s22 + $0x9c4] sm:$0xf]  ;;  %v7227_v46 = vld [vmem:[%s9382_s22 + $0x9d0] sm:$0xf0]  ;;  %v7102_v52 = vor.u32 %v8307_v35, %v7099_v38 }
 0x1ee   : > { %5275 = vmatpush.bf16.msrb.mxu3 %v6894_v1  ;;  %v8371_v47 = vld [vmem:[%s9382_s22 + $0xac4] sm:$0xf]  ;;  %v7355_v48 = vld [vmem:[%s9382_s22 + $0xad0] sm:$0xf0]  ;;  %v7230_v53 = vor.u32 %v8339_v41, %v7227_v46 }
 0x1ef   : > { %5237 = vmatpush.bf16.msrb.mxu0 %v6494_v11  ;;  %v8403_v50 = vld [vmem:[%s9382_s22 + $0xbc4] sm:$0xf]  ;;  %v7483_v51 = vld [vmem:[%s9382_s22 + $0xbd0] sm:$0xf0]  ;;  %v7358_v55 = vor.u32 %v8371_v47, %v7355_v48 }
 0x1f0   : > { %5250 = vmatpush.bf16.msrb.mxu1 %v6622_v16  ;;  %v8303_v56 = vld [vmem:[%s9382_s22 + $0x8a4] sm:$0xf]  ;;  %v7083_v57 = vld [vmem:[%s9382_s22 + $0x8b0] sm:$0xf0]  ;;  %v7486_v59 = vor.u32 %v8403_v50, %v7483_v51  ;;  %v9873_v16 = vpop.f32.mrf.mxu0 }
 0x1f1   : > { %5263 = vmatpush.bf16.msrb.mxu2 %v6750_v17  ;;  %v8335_v58 = vld [vmem:[%s9382_s22 + $0x9a4] sm:$0xf]  ;;  %v7211_v60 = vld [vmem:[%s9382_s22 + $0x9b0] sm:$0xf0]  ;;  %v7086_v1 = vor.u32 %v8303_v56, %v7083_v57 }
 0x1f2   : > { %5276 = vmatpush.bf16.msrb.mxu3 %v6878_v23  ;;  %v8367_v61 = vld [vmem:[%s9382_s22 + $0xaa4] sm:$0xf]  ;;  %v7339_v62 = vld [vmem:[%s9382_s22 + $0xab0] sm:$0xf0]  ;;  %5238 = vmatmul.bf16.vlgmr.msrb.gmra.mxu0 %v9547_v42  ;;  %v7214_v2 = vor.u32 %v8335_v58, %v7211_v60 }
 0x1f3   : > { %5282 = vmatpush.bf16.msra.mxu0 %v7118_v25  ;;  %v8399_v63 = vld [vmem:[%s9382_s22 + $0xba4] sm:$0xf]  ;;  %v7467_v0 = vld [vmem:[%s9382_s22 + $0xbb0] sm:$0xf0]  ;;  %5251 = vmatmul.bf16.vlgmr.msrb.gmra.mxu1 %v9551_v45  ;;  %v7342_v3 = vor.u32 %v8367_v61, %v7339_v62  ;;  %v9878_v25 = vpop.f32.mrf.mxu1 }
 0x1f4   : > { %5295 = vmatpush.bf16.msra.mxu1 %v7246_v28  ;;  %5264 = vmatmul.bf16.vlgmr.msrb.gmra.mxu2 %v9543_v39  ;;  %v8299_v4 = vld [vmem:[%s9382_s22 + $0x884] sm:$0xf]  ;;  %v7067_v6 = vld [vmem:[%s9382_s22 + $0x890] sm:$0xf0]  ;;  %v7470_v9 = vor.u32 %v8399_v63, %v7467_v0 }
 0x1f5   : > { %5308 = vmatpush.bf16.msra.mxu2 %v7374_v33  ;;  %5277 = vmatmul.bf16.vlgmr.msrb.gmra.mxu3 %v9549_v43  ;;  %v8331_v8 = vld [vmem:[%s9382_s22 + $0x984] sm:$0xf]  ;;  %v7195_v10 = vld [vmem:[%s9382_s22 + $0x990] sm:$0xf0]  ;;  %v7070_v15 = vor.u32 %v8299_v4, %v7067_v6 }
 0x1f6   : > { %5321 = vmatpush.bf16.msra.mxu3 %v7502_v44  ;;  %v8363_v11 = vld [vmem:[%s9382_s22 + $0xa84] sm:$0xf]  ;;  %v7323_v12 = vld [vmem:[%s9382_s22 + $0xa90] sm:$0xf0]  ;;  %v7198_v17 = vor.u32 %v8331_v8, %v7195_v10 }
 0x1f7   : > { %5283 = vmatpush.bf16.msra.mxu0 %v7102_v52  ;;  %v8395_v13 = vld [vmem:[%s9382_s22 + $0xb84] sm:$0xf]  ;;  %v7451_v14 = vld [vmem:[%s9382_s22 + $0xb90] sm:$0xf0]  ;;  %v7326_v18 = vor.u32 %v8363_v11, %v7323_v12  ;;  %v9888_v52 = vpop.f32.mrf.mxu2 }
 0x1f8   : > { %5296 = vmatpush.bf16.msra.mxu1 %v7230_v53  ;;  %v8295_v19 = vld [vmem:[%s9382_s22 + $0x864] sm:$0xf]  ;;  %v7051_v20 = vld [vmem:[%s9382_s22 + $0x870] sm:$0xf0]  ;;  %v7454_v27 = vor.u32 %v8395_v13, %v7451_v14  ;;  %v5033_v62 = vpop.f32.mrf.mxu0 }
 0x1f9   : > { %5309 = vmatpush.bf16.msra.mxu2 %v7358_v55  ;;  %v8327_v23 = vld [vmem:[%s9382_s22 + $0x964] sm:$0xf]  ;;  %v7179_v28 = vld [vmem:[%s9382_s22 + $0x970] sm:$0xf0]  ;;  %v7054_v44 = vor.u32 %v8295_v19, %v7051_v20  ;;  %v9893_v58 = vpop.f32.mrf.mxu3 }
 0x1fa   : > { %5322 = vmatpush.bf16.msra.mxu3 %v7486_v59  ;;  %v8359_v33 = vld [vmem:[%s9382_s22 + $0xa64] sm:$0xf]  ;;  %v7307_v35 = vld [vmem:[%s9382_s22 + $0xa70] sm:$0xf0]  ;;  %v7182_v46 = vor.u32 %v8327_v23, %v7179_v28 }
 0x1fb   : > { %5284 = vmatpush.bf16.msra.mxu0 %v7086_v1  ;;  %v8391_v38 = vld [vmem:[%s9382_s22 + $0xb64] sm:$0xf]  ;;  %v7435_v41 = vld [vmem:[%s9382_s22 + $0xb70] sm:$0xf0]  ;;  %v7310_v47 = vor.u32 %v8359_v33, %v7307_v35  ;;  %v5046_v4 = vpop.f32.mrf.mxu1 }
 0x1fc   : > { %5297 = vmatpush.bf16.msra.mxu1 %v7214_v2  ;;  %v8291_v48 = vld [vmem:[%s9382_s22 + $0x844] sm:$0xf]  ;;  %v7035_v50 = vld [vmem:[%s9382_s22 + $0x850] sm:$0xf0]  ;;  %v7438_v53 = vor.u32 %v8391_v38, %v7435_v41 }
 0x1fd   : > { %5310 = vmatpush.bf16.msra.mxu2 %v7342_v3  ;;  %v8323_v51 = vld [vmem:[%s9382_s22 + $0x944] sm:$0xf]  ;;  %v7163_v55 = vld [vmem:[%s9382_s22 + $0x950] sm:$0xf0]  ;;  %v7038_v61 = vor.u32 %v8291_v48, %v7035_v50 }
 0x1fe   : > { %5323 = vmatpush.bf16.msra.mxu3 %v7470_v9  ;;  %v8355_v56 = vld [vmem:[%s9382_s22 + $0xa44] sm:$0xf]  ;;  %v7291_v57 = vld [vmem:[%s9382_s22 + $0xa50] sm:$0xf0]  ;;  %v7166_v63 = vor.u32 %v8323_v51, %v7163_v55 }
 0x1ff   : > { %5285 = vmatpush.bf16.msra.mxu0 %v7070_v15  ;;  %v8387_v59 = vld [vmem:[%s9382_s22 + $0xb44] sm:$0xf]  ;;  %v7419_v60 = vld [vmem:[%s9382_s22 + $0xb50] sm:$0xf0]  ;;  %v7294_v0 = vor.u32 %v8355_v56, %v7291_v57 }
 0x200   : > { %5298 = vmatpush.bf16.msra.mxu1 %v7198_v17  ;;  %v8287_v1 = vld [vmem:[%s9382_s22 + $0x824] sm:$0xf]  ;;  %v7019_v2 = vld [vmem:[%s9382_s22 + $0x830] sm:$0xf0]  ;;  %v7422_v6 = vor.u32 %v8387_v59, %v7419_v60 }
 0x201   : > { %5311 = vmatpush.bf16.msra.mxu2 %v7326_v18  ;;  %v8319_v3 = vld [vmem:[%s9382_s22 + $0x924] sm:$0xf]  ;;  %v7147_v8 = vld [vmem:[%s9382_s22 + $0x930] sm:$0xf0]  ;;  %v7022_v13 = vor.u32 %v8287_v1, %v7019_v2  ;;  %v5072_v41 = vpop.f32.mrf.mxu3 }
 0x202   : > { %5324 = vmatpush.bf16.msra.mxu3 %v7454_v27  ;;  %v8351_v9 = vld [vmem:[%s9382_s22 + $0xa24] sm:$0xf]  ;;  %v7275_v10 = vld [vmem:[%s9382_s22 + $0xa30] sm:$0xf0]  ;;  %v7150_v17 = vor.u32 %v8319_v3, %v7147_v8  ;;  %v5059_v27 = vpop.f32.mrf.mxu2 }
 0x203   : > { %5286 = vmatpush.bf16.msra.mxu0 %v7054_v44  ;;  %v8383_v11 = vld [vmem:[%s9382_s22 + $0xb24] sm:$0xf]  ;;  %v7403_v12 = vld [vmem:[%s9382_s22 + $0xb30] sm:$0xf0]  ;;  %v7278_v18 = vor.u32 %v8351_v9, %v7275_v10 }
 0x204   : > { %5299 = vmatpush.bf16.msra.mxu1 %v7182_v46  ;;  %v8283_v14 = vld [vmem:[%s9382_s22 + $0x804] sm:$0xf]  ;;  %v7003_v15 = vld [vmem:[%s9382_s22 + $0x810] sm:$0xf0]  ;;  %v7406_v28 = vor.u32 %v8383_v11, %v7403_v12  ;;  %v4993_v12 = vadd.f32 %v9815_v40, %v9813_v37 }
 0x205   : > { %5312 = vmatpush.bf16.msra.mxu2 %v7310_v47  ;;  %v8315_v19 = vld [vmem:[%s9382_s22 + $0x904] sm:$0xf]  ;;  %v7131_v20 = vld [vmem:[%s9382_s22 + $0x910] sm:$0xf0]  ;;  %v7006_v48 = vor.u32 %v8283_v14, %v7003_v15 }
 0x206   : > { %5325 = vmatpush.bf16.msra.mxu3 %v7438_v53  ;;  %v8347_v23 = vld [vmem:[%s9382_s22 + $0xa04] sm:$0xf]  ;;  %v7259_v33 = vld [vmem:[%s9382_s22 + $0xa10] sm:$0xf0]  ;;  %v7134_v55 = vor.u32 %v8315_v19, %v7131_v20 }
 0x207   : > { %5287 = vmatpush.bf16.msra.mxu0 %v7038_v61  ;;  %v8379_v35 = vld [vmem:[%s9382_s22 + $0xb04] sm:$0xf]  ;;  %v7387_v38 = vld [vmem:[%s9382_s22 + $0xb10] sm:$0xf0]  ;;  %v7262_v56 = vor.u32 %v8347_v23, %v7259_v33  ;;  %v5006_v33 = vadd.f32 %v9820_v49, %v4993_v12 }
 0x208   : > { %5300 = vmatpush.bf16.msra.mxu1 %v7166_v63  ;;  %v8439_v44 = vld [vmem:[%s9382_s22 + $0xce4] sm:$0xf]  ;;  %v7627_v46 = vld [vmem:[%s9382_s22 + $0xcf0] sm:$0xf0]  ;;  %v7390_v60 = vor.u32 %v8379_v35, %v7387_v38 }
 0x209   : > { %5313 = vmatpush.bf16.msra.mxu2 %v7294_v0  ;;  %v8471_v47 = vld [vmem:[%s9382_s22 + $0xde4] sm:$0xf]  ;;  %v7755_v50 = vld [vmem:[%s9382_s22 + $0xdf0] sm:$0xf0]  ;;  %v7630_v61 = vor.u32 %v8439_v44, %v7627_v46 }
 0x20a   : > { %5326 = vmatpush.bf16.msra.mxu3 %v7422_v6  ;;  %v8503_v51 = vld [vmem:[%s9382_s22 + $0xee4] sm:$0xf]  ;;  %v7883_v53 = vld [vmem:[%s9382_s22 + $0xef0] sm:$0xf0]  ;;  %v7758_v62 = vor.u32 %v8471_v47, %v7755_v50 }
 0x20b   : > { %5288 = vmatpush.bf16.msra.mxu0 %v7022_v13  ;;  %v8535_v57 = vld [vmem:[%s9382_s22 + $0xfe4] sm:$0xf]  ;;  %v8011_v59 = vld [vmem:[%s9382_s22 + $0xff0] sm:$0xf0]  ;;  %v7886_v63 = vor.u32 %v8503_v51, %v7883_v53 }
 0x20c   : > { %5301 = vmatpush.bf16.msra.mxu1 %v7150_v17  ;;  %v8435_v0 = vld [vmem:[%s9382_s22 + $0xcc4] sm:$0xf]  ;;  %v7611_v1 = vld [vmem:[%s9382_s22 + $0xcd0] sm:$0xf0]  ;;  %v8014_v3 = vor.u32 %v8535_v57, %v8011_v59  ;;  %v5019_v59 = vadd.f32 %v9825_v54, %v5006_v33 }
 0x20d   : > { %5314 = vmatpush.bf16.msra.mxu2 %v7278_v18  ;;  %v8467_v2 = vld [vmem:[%s9382_s22 + $0xdc4] sm:$0xf]  ;;  %v7739_v4 = vld [vmem:[%s9382_s22 + $0xdd0] sm:$0xf0]  ;;  %v7614_v11 = vor.u32 %v8435_v0, %v7611_v1 }
 0x20e   : > { %5327 = vmatpush.bf16.msra.mxu3 %v7406_v28  ;;  %v8499_v6 = vld [vmem:[%s9382_s22 + $0xec4] sm:$0xf]  ;;  %v7867_v8 = vld [vmem:[%s9382_s22 + $0xed0] sm:$0xf0]  ;;  %v7742_v13 = vor.u32 %v8467_v2, %v7739_v4 }
 0x20f   : > { %5289 = vmatpush.bf16.msra.mxu0 %v7006_v48  ;;  %v8531_v9 = vld [vmem:[%s9382_s22 + $0xfc4] sm:$0xf]  ;;  %v7995_v10 = vld [vmem:[%s9382_s22 + $0xfd0] sm:$0xf0]  ;;  %v7870_v14 = vor.u32 %v8499_v6, %v7867_v8 }
 0x210   : > { %5302 = vmatpush.bf16.msra.mxu1 %v7134_v55  ;;  %v8431_v15 = vld [vmem:[%s9382_s22 + $0xca4] sm:$0xf]  ;;  %v7595_v17 = vld [vmem:[%s9382_s22 + $0xcb0] sm:$0xf0]  ;;  %v7998_v19 = vor.u32 %v8531_v9, %v7995_v10  ;;  %v5032_v9 = vadd.f32 %v9873_v16, %v5019_v59 }
 0x211   : > { %5315 = vmatpush.bf16.msra.mxu2 %v7262_v56  ;;  %v8463_v18 = vld [vmem:[%s9382_s22 + $0xda4] sm:$0xf]  ;;  %v7723_v20 = vld [vmem:[%s9382_s22 + $0xdb0] sm:$0xf0]  ;;  %v7598_v28 = vor.u32 %v8431_v15, %v7595_v17  ;;  %v9950_v53 = vpop.f32.mrf.mxu0 }
 0x212   : > { %5328 = vmatpush.bf16.msra.mxu3 %v7390_v60  ;;  %5290 = vmatmul.bf16.vlgmr.msra.gmra.mxu0 %v9618_v26  ;;  %v8495_v23 = vld [vmem:[%s9382_s22 + $0xea4] sm:$0xf]  ;;  %v7851_v27 = vld [vmem:[%s9382_s22 + $0xeb0] sm:$0xf0]  ;;  %v7726_v35 = vor.u32 %v8463_v18, %v7723_v20  ;;  %v9954_v57 = vpop.f32.mrf.mxu1  ;;  %v5045_v33 = vadd.f32 %v9878_v25, %v5032_v9  ;;  %v6225_v9 = vld [vmem:[%s9382_s22 + $0x1e8] sm:$0xf] }
 0x213   : > { %5334 = vmatpush.bf16.msrb.mxu0 %v7630_v61  ;;  %5303 = vmatmul.bf16.vlgmr.msra.gmra.mxu1 %v9625_v31  ;;  %v8527_v37 = vld [vmem:[%s9382_s22 + $0xfa4] sm:$0xf]  ;;  %v7979_v40 = vld [vmem:[%s9382_s22 + $0xfb0] sm:$0xf0]  ;;  %v7854_v38 = vor.u32 %v8495_v23, %v7851_v27 }
 0x214   : > { %5347 = vmatpush.bf16.msrb.mxu1 %v7758_v62  ;;  %5316 = vmatmul.bf16.vlgmr.msra.gmra.mxu2 %v9623_v30  ;;  %v8427_v41 = vld [vmem:[%s9382_s22 + $0xc84] sm:$0xf]  ;;  %v7579_v44 = vld [vmem:[%s9382_s22 + $0xc90] sm:$0xf0]  ;;  %v7982_v47 = vor.u32 %v8527_v37, %v7979_v40 }
 0x215   : > { %5360 = vmatpush.bf16.msrb.mxu2 %v7886_v63  ;;  %5329 = vmatmul.bf16.vlgmr.msra.gmra.mxu3 %v9629_v34  ;;  %v8459_v46 = vld [vmem:[%s9382_s22 + $0xd84] sm:$0xf]  ;;  %v7707_v48 = vld [vmem:[%s9382_s22 + $0xd90] sm:$0xf0]  ;;  %v7582_v56 = vor.u32 %v8427_v41, %v7579_v44 }
 0x216   : > { %5373 = vmatpush.bf16.msrb.mxu3 %v8014_v3  ;;  %v8491_v50 = vld [vmem:[%s9382_s22 + $0xe84] sm:$0xf]  ;;  %v7835_v51 = vld [vmem:[%s9382_s22 + $0xe90] sm:$0xf0]  ;;  %v7710_v60 = vor.u32 %v8459_v46, %v7707_v48  ;;  %v9969_v17 = vpop.f32.mrf.mxu2 }
 0x217   : > { %5335 = vmatpush.bf16.msrb.mxu0 %v7614_v11  ;;  %v8523_v55 = vld [vmem:[%s9382_s22 + $0xf84] sm:$0xf]  ;;  %v7963_v49 = vld [vmem:[%s9382_s22 + $0xf90] sm:$0xf0]  ;;  %v7838_v61 = vor.u32 %v8491_v50, %v7835_v51 }
 0x218   : > { %5348 = vmatpush.bf16.msrb.mxu1 %v7742_v13  ;;  %v8423_v62 = vld [vmem:[%s9382_s22 + $0xc64] sm:$0xf]  ;;  %v7563_v63 = vld [vmem:[%s9382_s22 + $0xc70] sm:$0xf0]  ;;  %v7966_v1 = vor.u32 %v8523_v55, %v7963_v49 }
 0x219   : > { %5361 = vmatpush.bf16.msrb.mxu2 %v7870_v14  ;;  %v8455_v0 = vld [vmem:[%s9382_s22 + $0xd64] sm:$0xf]  ;;  %v7691_v2 = vld [vmem:[%s9382_s22 + $0xd70] sm:$0xf0]  ;;  %v7566_v54 = vor.u32 %v8423_v62, %v7563_v63  ;;  %v5085_v37 = vpop.f32.mrf.mxu0 }
 0x21a   : > { %5374 = vmatpush.bf16.msrb.mxu3 %v7998_v19  ;;  %v8487_v3 = vld [vmem:[%s9382_s22 + $0xe64] sm:$0xf]  ;;  %v7819_v4 = vld [vmem:[%s9382_s22 + $0xe70] sm:$0xf0]  ;;  %v7694_v10 = vor.u32 %v8455_v0, %v7691_v2  ;;  %v9974_v23 = vpop.f32.mrf.mxu3 }
 0x21b   : > { %5336 = vmatpush.bf16.msrb.mxu0 %v7598_v28  ;;  %v8519_v6 = vld [vmem:[%s9382_s22 + $0xf64] sm:$0xf]  ;;  %v7947_v8 = vld [vmem:[%s9382_s22 + $0xf70] sm:$0xf0]  ;;  %v7822_v11 = vor.u32 %v8487_v3, %v7819_v4  ;;  %v5098_v28 = vpop.f32.mrf.mxu1 }
 0x21c   : > { %5349 = vmatpush.bf16.msrb.mxu1 %v7726_v35  ;;  %v8419_v12 = vld [vmem:[%s9382_s22 + $0xc44] sm:$0xf]  ;;  %v7547_v13 = vld [vmem:[%s9382_s22 + $0xc50] sm:$0xf0]  ;;  %v7950_v15 = vor.u32 %v8519_v6, %v7947_v8 }
 0x21d   : > { %5362 = vmatpush.bf16.msrb.mxu2 %v7854_v38  ;;  %v8451_v14 = vld [vmem:[%s9382_s22 + $0xd44] sm:$0xf]  ;;  %v7675_v18 = vld [vmem:[%s9382_s22 + $0xd50] sm:$0xf0]  ;;  %v7550_v40 = vor.u32 %v8419_v12, %v7547_v13  ;;  %v8090_v12 = vld [vmem:[%s9382_s22 + $0x1f4] sm:$0xf0] }
 0x21e   : > { %5375 = vmatpush.bf16.msrb.mxu3 %v7982_v47  ;;  %v8483_v19 = vld [vmem:[%s9382_s22 + $0xe44] sm:$0xf]  ;;  %v7803_v20 = vld [vmem:[%s9382_s22 + $0xe50] sm:$0xf0]  ;;  %v7678_v35 = vor.u32 %v8451_v14, %v7675_v18  ;;  %v5111_v8 = vpop.f32.mrf.mxu2  ;;  %v6353_v13 = vld [vmem:[%s9382_s22 + $0x2e8] sm:$0xf]  ;;  %v6226_v28 = vor.u32 %v8090_v12, %v6225_v9 }
 0x21f   : > { %5337 = vmatpush.bf16.msrb.mxu0 %v7582_v56  ;;  %v8515_v16 = vld [vmem:[%s9382_s22 + $0xf44] sm:$0xf]  ;;  %v7931_v27 = vld [vmem:[%s9382_s22 + $0xf50] sm:$0xf0]  ;;  %v7806_v38 = vor.u32 %v8483_v19, %v7803_v20  ;;  %v8122_v14 = vld [vmem:[%s9382_s22 + $0x2f4] sm:$0xf0] }
 0x220   : > { %5350 = vmatpush.bf16.msrb.mxu1 %v7710_v60  ;;  %v8415_v41 = vld [vmem:[%s9382_s22 + $0xc24] sm:$0xf]  ;;  %v7531_v44 = vld [vmem:[%s9382_s22 + $0xc30] sm:$0xf0]  ;;  %v7934_v47 = vor.u32 %v8515_v16, %v7931_v27  ;;  %v5058_v60 = vadd.f32 %v9888_v52, %v5045_v33  ;;  %v6097_v52 = vld [vmem:[%s9382_s22 + $0xe8] sm:$0xf]  ;;  %v6354_v33 = vor.u32 %v8122_v14, %v6353_v13 }
 0x221   : > { %5363 = vmatpush.bf16.msrb.mxu2 %v7838_v61  ;;  %v8447_v46 = vld [vmem:[%s9382_s22 + $0xd24] sm:$0xf]  ;;  %v7659_v48 = vld [vmem:[%s9382_s22 + $0xd30] sm:$0xf0]  ;;  %v7534_v49 = vor.u32 %v8415_v41, %v7531_v44  ;;  %v6481_v20 = vld [vmem:[%s9382_s22 + $0x3e8] sm:$0xf] }
 0x222   : > { %5376 = vmatpush.bf16.msrb.mxu3 %v7966_v1  ;;  %v8479_v50 = vld [vmem:[%s9382_s22 + $0xe24] sm:$0xf]  ;;  %v7787_v51 = vld [vmem:[%s9382_s22 + $0xe30] sm:$0xf0]  ;;  %v7662_v61 = vor.u32 %v8447_v46, %v7659_v48  ;;  %v8154_v16 = vld [vmem:[%s9382_s22 + $0x3f4] sm:$0xf0] }
 0x223   : > { %5338 = vmatpush.bf16.msrb.mxu0 %v7566_v54  ;;  %v8511_v55 = vld [vmem:[%s9382_s22 + $0xf24] sm:$0xf]  ;;  %v7915_v25 = vld [vmem:[%s9382_s22 + $0xf30] sm:$0xf0]  ;;  %v7790_v62 = vor.u32 %v8479_v50, %v7787_v51  ;;  %v8058_v54 = vld [vmem:[%s9382_s22 + $0xf4] sm:$0xf0]  ;;  %v6482_v41 = vor.u32 %v8154_v16, %v6481_v20 }
 0x224   : > { %5351 = vmatpush.bf16.msrb.mxu1 %v7694_v10  ;;  %v8411_v56 = vld [vmem:[%s9382_s22 + $0xc04] sm:$0xf]  ;;  %v7515_v59 = vld [vmem:[%s9382_s22 + $0xc10] sm:$0xf0]  ;;  %v7918_v2 = vor.u32 %v8511_v55, %v7915_v25  ;;  %v5124_v10 = vpop.f32.mrf.mxu3  ;;  %v6098_v37 = vor.u32 %v8058_v54, %v6097_v52  ;;  %v8086_v44 = vld [vmem:[%s9382_s22 + $0x1d4] sm:$0xf0] }
 0x225   : > { %5364 = vmatpush.bf16.msrb.mxu2 %v7822_v11  ;;  %v8443_v63 = vld [vmem:[%s9382_s22 + $0xd04] sm:$0xf]  ;;  %v7643_v0 = vld [vmem:[%s9382_s22 + $0xd10] sm:$0xf0]  ;;  %v7518_v11 = vor.u32 %v8411_v56, %v7515_v59  ;;  %v6337_v46 = vld [vmem:[%s9382_s22 + $0x2c8] sm:$0xf] }
 0x226   : > { %5377 = vmatpush.bf16.msrb.mxu3 %v7950_v15  ;;  %v8475_v1 = vld [vmem:[%s9382_s22 + $0xe04] sm:$0xf]  ;;  %v7771_v3 = vld [vmem:[%s9382_s22 + $0xe10] sm:$0xf0]  ;;  %v5071_v15 = vadd.f32 %v9893_v58, %v5058_v60  ;;  %v7646_v18 = vor.u32 %v8443_v63, %v7643_v0  ;;  %v8054_v58 = vld [vmem:[%s9382_s22 + $0xd4] sm:$0xf0] }
 0x227   : > { %5339 = vmatpush.bf16.msrb.mxu0 %v7550_v40  ;;  %v8507_v4 = vld [vmem:[%s9382_s22 + $0xf04] sm:$0xf]  ;;  %v7899_v6 = vld [vmem:[%s9382_s22 + $0xf10] sm:$0xf0]  ;;  %v7774_v19 = vor.u32 %v8475_v1, %v7771_v3  ;;  %v6465_v48 = vld [vmem:[%s9382_s22 + $0x3c8] sm:$0xf] }
 0x228   : > { %5352 = vmatpush.bf16.msrb.mxu1 %v7678_v35  ;;  %v7902_v27 = vor.u32 %v8507_v4, %v7899_v6  ;;  %v5084_v40 = vadd.f32 %v9950_v53, %v5071_v15  ;;  %v6081_v35 = vld [vmem:[%s9382_s22 + $0xc8] sm:$0xf]  ;;  %v8150_v50 = vld [vmem:[%s9382_s22 + $0x3d4] sm:$0xf0] }
 0x229   : > { %5365 = vmatpush.bf16.msrb.mxu2 %v7806_v38  ;;  %v6209_v38 = vld [vmem:[%s9382_s22 + $0x1c8] sm:$0xf]  ;;  %v6082_v53 = vor.u32 %v8054_v58, %v6081_v35  ;;  %v8050_v56 = vld [vmem:[%s9382_s22 + $0xb4] sm:$0xf0]  ;;  %v6466_v60 = vor.u32 %v8150_v50, %v6465_v48 }
 0x22a   : > { %5378 = vmatpush.bf16.msrb.mxu3 %v7934_v47  ;;  %v8118_v47 = vld [vmem:[%s9382_s22 + $0x2d4] sm:$0xf0]  ;;  %v5097_v51 = vadd.f32 %v9954_v57, %v5084_v40  ;;  %v6210_v55 = vor.u32 %v8086_v44, %v6209_v38  ;;  %v6193_v59 = vld [vmem:[%s9382_s22 + $0x1a8] sm:$0xf] }
 0x22b   : > { %5340 = vmatpush.bf16.msrb.mxu0 %v7534_v49  ;;  %v6338_v25 = vor.u32 %v8118_v47, %v6337_v46  ;;  %v6065_v49 = vld [vmem:[%s9382_s22 + $0xa8] sm:$0xf]  ;;  %v8114_v63 = vld [vmem:[%s9382_s22 + $0x2b4] sm:$0xf0] }
 0x22c   : > { %5353 = vmatpush.bf16.msrb.mxu1 %v7662_v61  ;;  %v8082_v61 = vld [vmem:[%s9382_s22 + $0x1b4] sm:$0xf0]  ;;  %v5110_v57 = vadd.f32 %v9969_v17, %v5097_v51  ;;  %v6449_v0 = vld [vmem:[%s9382_s22 + $0x3a8] sm:$0xf] }
 0x22d   : > { %5366 = vmatpush.bf16.msrb.mxu2 %v7790_v62  ;;  %v6321_v62 = vld [vmem:[%s9382_s22 + $0x2a8] sm:$0xf]  ;;  %v8146_v1 = vld [vmem:[%s9382_s22 + $0x3b4] sm:$0xf0]  ;;  %v6194_v3 = vor.u32 %v8082_v61, %v6193_v59 }
 0x22e   : > { %5379 = vmatpush.bf16.msrb.mxu3 %v7918_v2  ;;  %v6066_v2 = vor.u32 %v8050_v56, %v6065_v49  ;;  %v6322_v4 = vor.u32 %v8114_v63, %v6321_v62  ;;  %v6049_v17 = vld [vmem:[%s9382_s22 + $0x88] sm:$0xf]  ;;  %v8046_v6 = vld [vmem:[%s9382_s22 + $0x94] sm:$0xf0]  ;;  %v6450_v52 = vor.u32 %v8146_v1, %v6449_v0 }
 0x22f   : > { %5341 = vmatpush.bf16.msrb.mxu0 %v7518_v11  ;;  %v6177_v8 = vld [vmem:[%s9382_s22 + $0x188] sm:$0xf]  ;;  %v8078_v54 = vld [vmem:[%s9382_s22 + $0x194] sm:$0xf0]  ;;  %v5123_v11 = vadd.f32 %v9974_v23, %v5110_v57  ;;  %v6050_v15 = vor.u32 %v8046_v6, %v6049_v17  ;;  %v1830_v57 = vld [vmem:[#allocation2 + $0x10] sm:$0xff] }
 0x230   : > { %5354 = vmatpush.bf16.msrb.mxu1 %v7646_v18  ;;  %v6305_v9 = vld [vmem:[%s9382_s22 + $0x288] sm:$0xf]  ;;  %v8110_v10 = vld [vmem:[%s9382_s22 + $0x294] sm:$0xf0]  ;;  %v5148_v18 = vpop.f32.mrf.mxu1  ;;  %v6178_v20 = vor.u32 %v8078_v54, %v6177_v8 }
 0x231   : > { %5367 = vmatpush.bf16.msrb.mxu2 %v7774_v19  ;;  %v5135_v12 = vpop.f32.mrf.mxu0  ;;  %v6433_v13 = vld [vmem:[%s9382_s22 + $0x388] sm:$0xf]  ;;  %v8142_v14 = vld [vmem:[%s9382_s22 + $0x394] sm:$0xf0]  ;;  %v6306_v16 = vor.u32 %v8110_v10, %v6305_v9 }
 0x232   : > { %5380 = vmatpush.bf16.msrb.mxu3 %v7902_v27  ;;  %5342 = vmatmul.bf16.vlgmr.msrb.gmra.mxu0 %v9696_v24  ;;  %v5136_v19 = vadd.f32 %v5135_v12, %v5123_v11  ;;  %v6033_v27 = vld [vmem:[%s9382_s22 + $0x68] sm:$0xf]  ;;  %v6434_v40 = vor.u32 %v8142_v14, %v6433_v13  ;;  %v8106_v35 = vld [vmem:[%s9382_s22 + $0x274] sm:$0xf0] }
 0x233   : > { %5386 = vmatpush.bf16.msra.mxu0 %v6098_v37  ;;  %5355 = vmatmul.bf16.vlgmr.msrb.gmra.mxu1 %v9703_v32  ;;  %v8042_v37 = vld [vmem:[%s9382_s22 + $0x74] sm:$0xf0]  ;;  %v6161_v23 = vld [vmem:[%s9382_s22 + $0x168] sm:$0xf] }
 0x234   : > { %5399 = vmatpush.bf16.msra.mxu1 %v6226_v28  ;;  %5368 = vmatmul.bf16.vlgmr.msrb.gmra.mxu2 %v9701_v29  ;;  %v8074_v28 = vld [vmem:[%s9382_s22 + $0x174] sm:$0xf0]  ;;  %v6417_v58 = vld [vmem:[%s9382_s22 + $0x368] sm:$0xf]  ;;  %v5149_v44 = vadd.f32 %v5148_v18, %v5136_v19 }
 0x235   : > { %5412 = vmatpush.bf16.msra.mxu2 %v6354_v33  ;;  %5381 = vmatmul.bf16.vlgmr.msrb.gmra.mxu3 %v9707_v36  ;;  %v6289_v33 = vld [vmem:[%s9382_s22 + $0x268] sm:$0xf]  ;;  %v8138_v38 = vld [vmem:[%s9382_s22 + $0x374] sm:$0xf0]  ;;  %v6162_v46 = vor.u32 %v8074_v28, %v6161_v23 }
 0x236   : > { %5425 = vmatpush.bf16.msra.mxu3 %v6482_v41  ;;  %v6034_v41 = vor.u32 %v8042_v37, %v6033_v27  ;;  %v6290_v47 = vor.u32 %v8106_v35, %v6289_v33  ;;  %v6017_v48 = vld [vmem:[%s9382_s22 + $0x48] sm:$0xf]  ;;  %v8038_v50 = vld [vmem:[%s9382_s22 + $0x54] sm:$0xf0]  ;;  %v6418_v51 = vor.u32 %v8138_v38, %v6417_v58 }
 0x237   : > { %5387 = vmatpush.bf16.msra.mxu0 %v6082_v53  ;;  %v6145_v53 = vld [vmem:[%s9382_s22 + $0x148] sm:$0xf]  ;;  %v8102_v56 = vld [vmem:[%s9382_s22 + $0x254] sm:$0xf0]  ;;  %v6018_v0 = vor.u32 %v8038_v50, %v6017_v48 }
 0x238   : > { %5400 = vmatpush.bf16.msra.mxu1 %v6210_v55  ;;  %v6273_v49 = vld [vmem:[%s9382_s22 + $0x248] sm:$0xf]  ;;  %v8134_v62 = vld [vmem:[%s9382_s22 + $0x354] sm:$0xf0]  ;;  %v5150_v1 = vpop.f32.mrf.mxu1 }
 0x239   : > { %5413 = vmatpush.bf16.msra.mxu2 %v6338_v25  ;;  %v5161_v55 = vpop.f32.mrf.mxu2  ;;  %v8070_v25 = vld [vmem:[%s9382_s22 + $0x154] sm:$0xf0]  ;;  %v6401_v61 = vld [vmem:[%s9382_s22 + $0x348] sm:$0xf]  ;;  %v5137_v63 = vpop.f32.mrf.mxu0 }
 0x23a   : > { %5426 = vmatpush.bf16.msra.mxu3 %v6466_v60  ;;  %v5162_v59 = vadd.f32 %v5161_v55, %v5149_v44  ;;  %v5174_v60 = vpop.f32.mrf.mxu3  ;;  %v6001_v17 = vld [vmem:[%s9382_s22 + $0x28] sm:$0xf]  ;;  %v8034_v6 = vld [vmem:[%s9382_s22 + $0x34] sm:$0xf0] }
 0x23b   : > { %5388 = vmatpush.bf16.msra.mxu0 %v6066_v2  ;;  %v6129_v8 = vld [vmem:[%s9382_s22 + $0x128] sm:$0xf]  ;;  %v8066_v54 = vld [vmem:[%s9382_s22 + $0x134] sm:$0xf0]  ;;  %v6002_v14 = vor.u32 %v8034_v6, %v6001_v17 }
 0x23c   : > { %5401 = vmatpush.bf16.msra.mxu1 %v6194_v3  ;;  %v5175_v2 = vadd.f32 %v5174_v60, %v5162_v59  ;;  %v6146_v3 = vor.u32 %v8070_v25, %v6145_v53  ;;  %v6257_v9 = vld [vmem:[%s9382_s22 + $0x228] sm:$0xf]  ;;  %v8098_v10 = vld [vmem:[%s9382_s22 + $0x234] sm:$0xf0] }
 0x23d   : > { %5414 = vmatpush.bf16.msra.mxu2 %v6322_v4  ;;  %v6274_v4 = vor.u32 %v8102_v56, %v6273_v49  ;;  %v6385_v12 = vld [vmem:[%s9382_s22 + $0x328] sm:$0xf]  ;;  %v8130_v13 = vld [vmem:[%s9382_s22 + $0x334] sm:$0xf0] }
 0x23e   : > { %5427 = vmatpush.bf16.msra.mxu3 %v6450_v52  ;;  %v6402_v52 = vor.u32 %v8134_v62, %v6401_v61  ;;  %v5802_v11 = vadd.f32 %v5175_v2, %v1830_v57  ;;  %v8030_v18 = vld [vmem:[%s9382_s22 + $0x14] sm:$0xf0]  ;;  %v6113_v19 = vld [vmem:[%s9382_s22 + $0x108] sm:$0xf]  ;;  %v6386_v23 = vor.u32 %v8130_v13, %v6385_v12 }
 0x23f   : > { %5389 = vmatpush.bf16.msra.mxu0 %v6050_v15  ;;  %v5985_v15 = vld [vmem:[%s9382_s22 + $0x8] sm:$0xf]  ;;  %v8062_v27 = vld [vmem:[%s9382_s22 + $0x114] sm:$0xf0] }
 0x240   : > { %5402 = vmatpush.bf16.msra.mxu1 %v6178_v20  ;;  %5806 = vst [vmem:[#allocation2 + $0x10] sm:$0xff] %v5802_v11  ;;  %v6130_v20 = vor.u32 %v8066_v54, %v6129_v8  ;;  %v6241_v37 = vld [vmem:[%s9382_s22 + $0x208] sm:$0xf]  ;;  %v8126_v33 = vld [vmem:[%s9382_s22 + $0x314] sm:$0xf0]  ;;  %v6114_v53 = vor.u32 %v8062_v27, %v6113_v19 }
 0x241   : > { %5415 = vmatpush.bf16.msra.mxu2 %v6306_v16  ;;  %v6258_v16 = vor.u32 %v8098_v10, %v6257_v9  ;;  %v6369_v28 = vld [vmem:[%s9382_s22 + $0x308] sm:$0xf]  ;;  %v5163_v35 = vpop.f32.mrf.mxu2  ;;  %v8186_v38 = vld [vmem:[%s9382_s22 + $0x4f4] sm:$0xf0] }
 0x242   : > { %5428 = vmatpush.bf16.msra.mxu3 %v6434_v40  ;;  %v8094_v40 = vld [vmem:[%s9382_s22 + $0x214] sm:$0xf0]  ;;  %v6609_v58 = vld [vmem:[%s9382_s22 + $0x4e8] sm:$0xf]  ;;  %v5176_v44 = vpop.f32.mrf.mxu3  ;;  %v6370_v49 = vor.u32 %v8126_v33, %v6369_v28 }
 0x243   : > { %5390 = vmatpush.bf16.msra.mxu0 %v6034_v41  ;;  %v6737_v41 = vld [vmem:[%s9382_s22 + $0x5e8] sm:$0xf]  ;;  %v8250_v50 = vld [vmem:[%s9382_s22 + $0x6f4] sm:$0xf0]  ;;  %v6610_v56 = vor.u32 %v8186_v38, %v6609_v58 }
 0x244   : > { %5403 = vmatpush.bf16.msra.mxu1 %v6162_v46  ;;  %v5986_v46 = vor.u32 %v8030_v18, %v5985_v15  ;;  %v6865_v48 = vld [vmem:[%s9382_s22 + $0x6e8] sm:$0xf]  ;;  %v8282_v25 = vld [vmem:[%s9382_s22 + $0x7f4] sm:$0xf0] }
 0x245   : > { %5416 = vmatpush.bf16.msra.mxu2 %v6290_v47  ;;  %v8218_v47 = vld [vmem:[%s9382_s22 + $0x5f4] sm:$0xf0]  ;;  %v6993_v55 = vld [vmem:[%s9382_s22 + $0x7e8] sm:$0xf]  ;;  %v6866_v60 = vor.u32 %v8250_v50, %v6865_v48 }
 0x246   : > { %5429 = vmatpush.bf16.msra.mxu3 %v6418_v51  ;;  %v6242_v51 = vor.u32 %v8094_v40, %v6241_v37  ;;  %v6738_v59 = vor.u32 %v8218_v47, %v6737_v41  ;;  %v6593_v61 = vld [vmem:[%s9382_s22 + $0x4c8] sm:$0xf]  ;;  %v8182_v62 = vld [vmem:[%s9382_s22 + $0x4d4] sm:$0xf0]  ;;  %v6994_v57 = vor.u32 %v8282_v25, %v6993_v55 }
 0x247   : > { %5391 = vmatpush.bf16.msra.mxu0 %v6018_v0  ;;  %v6721_v63 = vld [vmem:[%s9382_s22 + $0x5c8] sm:$0xf]  ;;  %v8214_v0 = vld [vmem:[%s9382_s22 + $0x5d4] sm:$0xf0]  ;;  %v6594_v17 = vor.u32 %v8182_v62, %v6593_v61 }
 0x248   : > { %5404 = vmatpush.bf16.msra.mxu1 %v6146_v3  ;;  %v6849_v1 = vld [vmem:[%s9382_s22 + $0x6c8] sm:$0xf]  ;;  %v8246_v2 = vld [vmem:[%s9382_s22 + $0x6d4] sm:$0xf0]  ;;  %v6722_v6 = vor.u32 %v8214_v0, %v6721_v63 }
 0x249   : > { %5417 = vmatpush.bf16.msra.mxu2 %v6274_v4  ;;  %v6977_v3 = vld [vmem:[%s9382_s22 + $0x7c8] sm:$0xf]  ;;  %v8278_v4 = vld [vmem:[%s9382_s22 + $0x7d4] sm:$0xf0]  ;;  %v6850_v8 = vor.u32 %v8246_v2, %v6849_v1 }
 0x24a   : > { %5430 = vmatpush.bf16.msra.mxu3 %v6402_v52  ;;  %v6577_v52 = vld [vmem:[%s9382_s22 + $0x4a8] sm:$0xf]  ;;  %v8178_v54 = vld [vmem:[%s9382_s22 + $0x4b4] sm:$0xf0]  ;;  %v6978_v10 = vor.u32 %v8278_v4, %v6977_v3 }
 0x24b   : > { %5392 = vmatpush.bf16.msra.mxu0 %v6002_v14  ;;  %v6705_v9 = vld [vmem:[%s9382_s22 + $0x5a8] sm:$0xf]  ;;  %v8210_v11 = vld [vmem:[%s9382_s22 + $0x5b4] sm:$0xf0]  ;;  %v6578_v18 = vor.u32 %v8178_v54, %v6577_v52 }
 0x24c   : > { %5405 = vmatpush.bf16.msra.mxu1 %v6130_v20  ;;  %v6833_v12 = vld [vmem:[%s9382_s22 + $0x6a8] sm:$0xf]  ;;  %v8242_v13 = vld [vmem:[%s9382_s22 + $0x6b4] sm:$0xf0]  ;;  %v6706_v19 = vor.u32 %v8210_v11, %v6705_v9 }
 0x24d   : > { %5418 = vmatpush.bf16.msra.mxu2 %v6258_v16  ;;  %v6961_v14 = vld [vmem:[%s9382_s22 + $0x7a8] sm:$0xf]  ;;  %v8274_v15 = vld [vmem:[%s9382_s22 + $0x7b4] sm:$0xf0]  ;;  %v6834_v20 = vor.u32 %v8242_v13, %v6833_v12 }
 0x24e   : > { %5431 = vmatpush.bf16.msra.mxu3 %v6386_v23  ;;  %v6561_v16 = vld [vmem:[%s9382_s22 + $0x488] sm:$0xf]  ;;  %v8174_v27 = vld [vmem:[%s9382_s22 + $0x494] sm:$0xf0]  ;;  %v6962_v23 = vor.u32 %v8274_v15, %v6961_v14 }
 0x24f   : > { %5393 = vmatpush.bf16.msra.mxu0 %v5986_v46  ;;  %v6689_v37 = vld [vmem:[%s9382_s22 + $0x588] sm:$0xf]  ;;  %v8206_v40 = vld [vmem:[%s9382_s22 + $0x594] sm:$0xf0]  ;;  %v6562_v38 = vor.u32 %v8174_v27, %v6561_v16  ;;  %v5187_v41 = vpop.f32.mrf.mxu0 }
 0x250   : > { %5406 = vmatpush.bf16.msra.mxu1 %v6114_v53  ;;  %v6817_v28 = vld [vmem:[%s9382_s22 + $0x688] sm:$0xf]  ;;  %v8238_v33 = vld [vmem:[%s9382_s22 + $0x694] sm:$0xf0]  ;;  %v6690_v44 = vor.u32 %v8206_v40, %v6689_v37  ;;  %v5200_v53 = vpop.f32.mrf.mxu1 }
 0x251   : > { %5419 = vmatpush.bf16.msra.mxu2 %v6242_v51  ;;  %v6945_v35 = vld [vmem:[%s9382_s22 + $0x788] sm:$0xf]  ;;  %v8270_v58 = vld [vmem:[%s9382_s22 + $0x794] sm:$0xf0]  ;;  %v6818_v46 = vor.u32 %v8238_v33, %v6817_v28 }
 0x252   : > { %5432 = vmatpush.bf16.msra.mxu3 %v6370_v49  ;;  %5394 = vmatmul.bf16.vlgmr.msra.gmra.mxu0 %v9488_v21  ;;  %v6545_v47 = vld [vmem:[%s9382_s22 + $0x468] sm:$0xf]  ;;  %v8170_v48 = vld [vmem:[%s9382_s22 + $0x474] sm:$0xf0]  ;;  %v6946_v51 = vor.u32 %v8270_v58, %v6945_v35 }
 0x253   : > { %5438 = vmatpush.bf16.msrb.mxu0 %v6610_v56  ;;  %5407 = vmatmul.bf16.vlgmr.msra.gmra.mxu1 %v9491_v22  ;;  %v6673_v50 = vld [vmem:[%s9382_s22 + $0x568] sm:$0xf]  ;;  %v8202_v55 = vld [vmem:[%s9382_s22 + $0x574] sm:$0xf0]  ;;  %v5201_v56 = vadd.f32 %v5200_v53, %v5187_v41  ;;  %v6546_v61 = vor.u32 %v8170_v48, %v6545_v47 }
 0x254   : > { %5451 = vmatpush.bf16.msrb.mxu1 %v6738_v59  ;;  %5420 = vmatmul.bf16.vlgmr.msra.gmra.mxu2 %v9474_v5  ;;  %v6801_v25 = vld [vmem:[%s9382_s22 + $0x668] sm:$0xf]  ;;  %v8234_v49 = vld [vmem:[%s9382_s22 + $0x674] sm:$0xf0]  ;;  %v6674_v62 = vor.u32 %v8202_v55, %v6673_v50 }
 0x255   : > { %5464 = vmatpush.bf16.msrb.mxu2 %v6866_v60  ;;  %5433 = vmatmul.bf16.vlgmr.msra.gmra.mxu3 %v9477_v7  ;;  %v6929_v59 = vld [vmem:[%s9382_s22 + $0x768] sm:$0xf]  ;;  %v8266_v60 = vld [vmem:[%s9382_s22 + $0x774] sm:$0xf0]  ;;  %v6802_v63 = vor.u32 %v8234_v49, %v6801_v25 }
 0x256   : > { %5477 = vmatpush.bf16.msrb.mxu3 %v6994_v57  ;;  %v6529_v57 = vld [vmem:[%s9382_s22 + $0x448] sm:$0xf]  ;;  %v8166_v0 = vld [vmem:[%s9382_s22 + $0x454] sm:$0xf0]  ;;  %v6930_v3 = vor.u32 %v8266_v60, %v6929_v59 }
 0x257   : > { %5439 = vmatpush.bf16.msrb.mxu0 %v6594_v17  ;;  %v6657_v1 = vld [vmem:[%s9382_s22 + $0x548] sm:$0xf]  ;;  %v5213_v2 = vpop.f32.mrf.mxu2  ;;  %v8198_v4 = vld [vmem:[%s9382_s22 + $0x554] sm:$0xf0]  ;;  %v5189_v12 = vpop.f32.mrf.mxu0 }
 0x258   : > { %5452 = vmatpush.bf16.msrb.mxu1 %v6722_v6  ;;  %v6785_v17 = vld [vmem:[%s9382_s22 + $0x648] sm:$0xf]  ;;  %v8230_v6 = vld [vmem:[%s9382_s22 + $0x654] sm:$0xf0]  ;;  %v5226_v52 = vpop.f32.mrf.mxu3  ;;  %v6658_v13 = vor.u32 %v8198_v4, %v6657_v1 }
 0x259   : > { %5465 = vmatpush.bf16.msrb.mxu2 %v6850_v8  ;;  %v5214_v8 = vadd.f32 %v5213_v2, %v5201_v56  ;;  %v6913_v54 = vld [vmem:[%s9382_s22 + $0x748] sm:$0xf]  ;;  %v8262_v9 = vld [vmem:[%s9382_s22 + $0x754] sm:$0xf0]  ;;  %v6786_v14 = vor.u32 %v8230_v6, %v6785_v17 }
 0x25a   : > { %5478 = vmatpush.bf16.msrb.mxu3 %v6978_v10  ;;  %v6530_v10 = vor.u32 %v8166_v0, %v6529_v57  ;;  %v6513_v15 = vld [vmem:[%s9382_s22 + $0x428] sm:$0xf]  ;;  %v6914_v16 = vor.u32 %v8262_v9, %v6913_v54  ;;  %v8194_v27 = vld [vmem:[%s9382_s22 + $0x534] sm:$0xf0] }
 0x25b   : > { %5440 = vmatpush.bf16.msrb.mxu0 %v6578_v18  ;;  %v10121_v11 = vadd.f32 %v5226_v52, %v5214_v8  ;;  %v8162_v18 = vld [vmem:[%s9382_s22 + $0x434] sm:$0xf0]  ;;  %v6769_v37 = vld [vmem:[%s9382_s22 + $0x628] sm:$0xf] }
 0x25c   : > { %5453 = vmatpush.bf16.msrb.mxu1 %v6706_v19  ;;  %v6641_v19 = vld [vmem:[%s9382_s22 + $0x528] sm:$0xf]  ;;  %v8258_v28 = vld [vmem:[%s9382_s22 + $0x734] sm:$0xf0]  ;;  %v6514_v33 = vor.u32 %v8162_v18, %v6513_v15 }
 0x25d   : > { %5466 = vmatpush.bf16.msrb.mxu2 %v6834_v20  ;;  %v5202_v20 = vpop.f32.mrf.mxu1  ;;  %v6897_v40 = vld [vmem:[%s9382_s22 + $0x728] sm:$0xf]  ;;  %v8158_v58 = vld [vmem:[%s9382_s22 + $0x414] sm:$0xf0] }
 0x25e   : > { %5479 = vmatpush.bf16.msrb.mxu3 %v6962_v23  ;;  %v8226_v23 = vld [vmem:[%s9382_s22 + $0x634] sm:$0xf0]  ;;  %v6497_v35 = vld [vmem:[%s9382_s22 + $0x408] sm:$0xf]  ;;  %v6898_v50 = vor.u32 %v8258_v28, %v6897_v40 }
 0x25f   : > { %5441 = vmatpush.bf16.msrb.mxu0 %v6562_v38  ;;  %v6642_v38 = vor.u32 %v8194_v27, %v6641_v19  ;;  %v6770_v41 = vor.u32 %v8226_v23, %v6769_v37  ;;  %v6753_v47 = vld [vmem:[%s9382_s22 + $0x608] sm:$0xf]  ;;  %v5215_v48 = vpop.f32.mrf.mxu2  ;;  %v8222_v53 = vld [vmem:[%s9382_s22 + $0x614] sm:$0xf0]  ;;  %v6498_v60 = vor.u32 %v8158_v58, %v6497_v35 }
 0x260   : > { %5454 = vmatpush.bf16.msrb.mxu1 %v6690_v44  ;;  %v6625_v44 = vld [vmem:[%s9382_s22 + $0x508] sm:$0xf]  ;;  %v8254_v55 = vld [vmem:[%s9382_s22 + $0x714] sm:$0xf0]  ;;  %v5228_v25 = vpop.f32.mrf.mxu3  ;;  %v6754_v0 = vor.u32 %v8222_v53, %v6753_v47 }
 0x261   : > { %5467 = vmatpush.bf16.msrb.mxu2 %v6818_v46  ;;  %v8190_v46 = vld [vmem:[%s9382_s22 + $0x514] sm:$0xf0]  ;;  %v7121_v49 = vld [vmem:[%s9382_s22 + $0x8e8] sm:$0xf] }
 0x262   : > { %5480 = vmatpush.bf16.msrb.mxu3 %v6946_v51  ;;  %v6881_v51 = vld [vmem:[%s9382_s22 + $0x708] sm:$0xf]  ;;  %v8314_v56 = vld [vmem:[%s9382_s22 + $0x8f4] sm:$0xf0]  ;;  %v6626_v57 = vor.u32 %v8190_v46, %v6625_v44 }
 0x263   : > { %5442 = vmatpush.bf16.msrb.mxu0 %v6546_v61  ;;  %v7249_v59 = vld [vmem:[%s9382_s22 + $0x9e8] sm:$0xf]  ;;  %v8346_v61 = vld [vmem:[%s9382_s22 + $0x9f4] sm:$0xf0]  ;;  %v7122_v4 = vor.u32 %v8314_v56, %v7121_v49 }
 0x264   : > { %5455 = vmatpush.bf16.msrb.mxu1 %v6674_v62  ;;  %v7377_v62 = vld [vmem:[%s9382_s22 + $0xae8] sm:$0xf]  ;;  %v8410_v2 = vld [vmem:[%s9382_s22 + $0xbf4] sm:$0xf0]  ;;  %v7250_v17 = vor.u32 %v8346_v61, %v7249_v59 }
 0x265   : > { %5468 = vmatpush.bf16.msrb.mxu2 %v6802_v63  ;;  %v8378_v63 = vld [vmem:[%s9382_s22 + $0xaf4] sm:$0xf0]  ;;  %v7505_v1 = vld [vmem:[%s9382_s22 + $0xbe8] sm:$0xf] }
 0x266   : > { %5481 = vmatpush.bf16.msrb.mxu3 %v6930_v3  ;;  %v6882_v3 = vor.u32 %v8254_v55, %v6881_v51  ;;  %v7378_v6 = vor.u32 %v8378_v63, %v7377_v62  ;;  %v7105_v8 = vld [vmem:[%s9382_s22 + $0x8c8] sm:$0xf]  ;;  %v8310_v52 = vld [vmem:[%s9382_s22 + $0x8d4] sm:$0xf0]  ;;  %v7506_v9 = vor.u32 %v8410_v2, %v7505_v1 }
 0x267   : > { %5443 = vmatpush.bf16.msrb.mxu0 %v6530_v10  ;;  %v7233_v54 = vld [vmem:[%s9382_s22 + $0x9c8] sm:$0xf]  ;;  %v8342_v10 = vld [vmem:[%s9382_s22 + $0x9d4] sm:$0xf0]  ;;  %v7106_v18 = vor.u32 %v8310_v52, %v7105_v8 }
 0x268   : > { %5456 = vmatpush.bf16.msrb.mxu1 %v6658_v13  ;;  %v7361_v12 = vld [vmem:[%s9382_s22 + $0xac8] sm:$0xf]  ;;  %v8374_v13 = vld [vmem:[%s9382_s22 + $0xad4] sm:$0xf0]  ;;  %v7234_v19 = vor.u32 %v8342_v10, %v7233_v54 }
 0x269   : > { %5469 = vmatpush.bf16.msrb.mxu2 %v6786_v14  ;;  %v7489_v14 = vld [vmem:[%s9382_s22 + $0xbc8] sm:$0xf]  ;;  %v8406_v15 = vld [vmem:[%s9382_s22 + $0xbd4] sm:$0xf0]  ;;  %v7362_v20 = vor.u32 %v8374_v13, %v7361_v12 }
 0x26a   : > { %5482 = vmatpush.bf16.msrb.mxu3 %v6914_v16  ;;  %v7089_v16 = vld [vmem:[%s9382_s22 + $0x8a8] sm:$0xf]  ;;  %v8306_v27 = vld [vmem:[%s9382_s22 + $0x8b4] sm:$0xf0]  ;;  %v7490_v23 = vor.u32 %v8406_v15, %v7489_v14 }
 0x26b   : > { %5444 = vmatpush.bf16.msrb.mxu0 %v6514_v33  ;;  %v7217_v37 = vld [vmem:[%s9382_s22 + $0x9a8] sm:$0xf]  ;;  %v8338_v40 = vld [vmem:[%s9382_s22 + $0x9b4] sm:$0xf0] }
 0x26c   : > { %5457 = vmatpush.bf16.msrb.mxu1 %v6642_v38  ;;  %v7345_v28 = vld [vmem:[%s9382_s22 + $0xaa8] sm:$0xf]  ;;  %v8370_v33 = vld [vmem:[%s9382_s22 + $0xab4] sm:$0xf0]  ;;  %v7090_v38 = vor.u32 %v8306_v27, %v7089_v16 }
 0x26d   : > { %5470 = vmatpush.bf16.msrb.mxu2 %v6770_v41  ;;  %v7473_v35 = vld [vmem:[%s9382_s22 + $0xba8] sm:$0xf]  ;;  %v8402_v58 = vld [vmem:[%s9382_s22 + $0xbb4] sm:$0xf0]  ;;  %v7218_v41 = vor.u32 %v8338_v40, %v7217_v37  ;;  %v7346_v44 = vor.u32 %v8370_v33, %v7345_v28 }
 0x26e   : > { %5483 = vmatpush.bf16.msrb.mxu3 %v6898_v50  ;;  %v7073_v46 = vld [vmem:[%s9382_s22 + $0x888] sm:$0xf]  ;;  %v8302_v47 = vld [vmem:[%s9382_s22 + $0x894] sm:$0xf0]  ;;  %v7474_v50 = vor.u32 %v8402_v58, %v7473_v35 }
 0x26f   : > { %5445 = vmatpush.bf16.msrb.mxu0 %v6498_v60  ;;  %v7201_v48 = vld [vmem:[%s9382_s22 + $0x988] sm:$0xf]  ;;  %v8334_v53 = vld [vmem:[%s9382_s22 + $0x994] sm:$0xf0]  ;;  %v7074_v56 = vor.u32 %v8302_v47, %v7073_v46  ;;  %v10175_v59 = vpop.f32.mrf.mxu0 }
 0x270   : > { %5458 = vmatpush.bf16.msrb.mxu1 %v6626_v57  ;;  %v7329_v51 = vld [vmem:[%s9382_s22 + $0xa88] sm:$0xf]  ;;  %v8366_v55 = vld [vmem:[%s9382_s22 + $0xa94] sm:$0xf0]  ;;  %v7202_v60 = vor.u32 %v8334_v53, %v7201_v48 }
 0x271   : > { %5471 = vmatpush.bf16.msrb.mxu2 %v6754_v0  ;;  %v7457_v25 = vld [vmem:[%s9382_s22 + $0xb88] sm:$0xf]  ;;  %v8398_v49 = vld [vmem:[%s9382_s22 + $0xb94] sm:$0xf0]  ;;  %v7330_v61 = vor.u32 %v8366_v55, %v7329_v51  ;;  %v10180_v0 = vpop.f32.mrf.mxu1 }
 0x272   : > { %5484 = vmatpush.bf16.msrb.mxu3 %v6882_v3  ;;  %5446 = vmatmul.bf16.vlgmr.msrb.gmra.mxu0 %v9547_v42  ;;  %v7057_v62 = vld [vmem:[%s9382_s22 + $0x868] sm:$0xf]  ;;  %v8298_v63 = vld [vmem:[%s9382_s22 + $0x874] sm:$0xf0]  ;;  %v7458_v1 = vor.u32 %v8398_v49, %v7457_v25 }
 0x273   : > { %5490 = vmatpush.bf16.msra.mxu0 %v7122_v4  ;;  %5459 = vmatmul.bf16.vlgmr.msrb.gmra.mxu1 %v9551_v45  ;;  %v7185_v57 = vld [vmem:[%s9382_s22 + $0x968] sm:$0xf]  ;;  %v8330_v2 = vld [vmem:[%s9382_s22 + $0x974] sm:$0xf0]  ;;  %v7058_v8 = vor.u32 %v8298_v63, %v7057_v62 }
 0x274   : > { %5503 = vmatpush.bf16.msra.mxu1 %v7250_v17  ;;  %5472 = vmatmul.bf16.vlgmr.msrb.gmra.mxu2 %v9543_v39  ;;  %v7313_v3 = vld [vmem:[%s9382_s22 + $0xa68] sm:$0xf]  ;;  %v8362_v4 = vld [vmem:[%s9382_s22 + $0xa74] sm:$0xf0]  ;;  %v7186_v52 = vor.u32 %v8330_v2, %v7185_v57 }
 0x275   : > { %5516 = vmatpush.bf16.msra.mxu2 %v7378_v6  ;;  %5485 = vmatmul.bf16.vlgmr.msrb.gmra.mxu3 %v9549_v43  ;;  %v7441_v17 = vld [vmem:[%s9382_s22 + $0xb68] sm:$0xf]  ;;  %v8394_v6 = vld [vmem:[%s9382_s22 + $0xb74] sm:$0xf0]  ;;  %v7314_v54 = vor.u32 %v8362_v4, %v7313_v3 }
 0x276   : > { %5529 = vmatpush.bf16.msra.mxu3 %v7506_v9  ;;  %v7041_v9 = vld [vmem:[%s9382_s22 + $0x848] sm:$0xf]  ;;  %v8294_v10 = vld [vmem:[%s9382_s22 + $0x854] sm:$0xf0]  ;;  %v7442_v14 = vor.u32 %v8394_v6, %v7441_v17 }
 0x277   : > { %5491 = vmatpush.bf16.msra.mxu0 %v7106_v18  ;;  %v7169_v12 = vld [vmem:[%s9382_s22 + $0x948] sm:$0xf]  ;;  %v10190_v13 = vpop.f32.mrf.mxu2  ;;  %v8326_v15 = vld [vmem:[%s9382_s22 + $0x954] sm:$0xf0]  ;;  %v7042_v37 = vor.u32 %v8294_v10, %v7041_v9 }
 0x278   : > { %5504 = vmatpush.bf16.msra.mxu1 %v7234_v19  ;;  %v7297_v18 = vld [vmem:[%s9382_s22 + $0xa48] sm:$0xf]  ;;  %v8358_v19 = vld [vmem:[%s9382_s22 + $0xa54] sm:$0xf0]  ;;  %v7170_v40 = vor.u32 %v8326_v15, %v7169_v12 }
 0x279   : > { %5517 = vmatpush.bf16.msra.mxu2 %v7362_v20  ;;  %v10195_v20 = vpop.f32.mrf.mxu3  ;;  %v7425_v16 = vld [vmem:[%s9382_s22 + $0xb48] sm:$0xf]  ;;  %v8390_v27 = vld [vmem:[%s9382_s22 + $0xb54] sm:$0xf0]  ;;  %v7298_v28 = vor.u32 %v8358_v19, %v7297_v18 }
 0x27a   : > { %5530 = vmatpush.bf16.msra.mxu3 %v7490_v23  ;;  %v5241_v23 = vpop.f32.mrf.mxu0  ;;  %v7025_v33 = vld [vmem:[%s9382_s22 + $0x828] sm:$0xf]  ;;  %v8290_v35 = vld [vmem:[%s9382_s22 + $0x834] sm:$0xf0] }
 0x27b   : > { %5492 = vmatpush.bf16.msra.mxu0 %v7090_v38  ;;  %v7153_v58 = vld [vmem:[%s9382_s22 + $0x928] sm:$0xf]  ;;  %v5254_v38 = vpop.f32.mrf.mxu1  ;;  %v8354_v47 = vld [vmem:[%s9382_s22 + $0xa34] sm:$0xf0]  ;;  %v7026_v53 = vor.u32 %v8290_v35, %v7025_v33 }
 0x27c   : > { %5505 = vmatpush.bf16.msra.mxu1 %v7218_v41  ;;  %v7426_v41 = vor.u32 %v8390_v27, %v7425_v16  ;;  %v7281_v46 = vld [vmem:[%s9382_s22 + $0xa28] sm:$0xf]  ;;  %v8286_v55 = vld [vmem:[%s9382_s22 + $0x814] sm:$0xf0] }
 0x27d   : > { %5518 = vmatpush.bf16.msra.mxu2 %v7346_v44  ;;  %v8322_v44 = vld [vmem:[%s9382_s22 + $0x934] sm:$0xf0]  ;;  %v7409_v48 = vld [vmem:[%s9382_s22 + $0xb28] sm:$0xf]  ;;  %v7282_v49 = vor.u32 %v8354_v47, %v7281_v46 }
 0x27e   : > { %5531 = vmatpush.bf16.msra.mxu3 %v7474_v50  ;;  %v8386_v50 = vld [vmem:[%s9382_s22 + $0xb34] sm:$0xf0]  ;;  %v7009_v51 = vld [vmem:[%s9382_s22 + $0x808] sm:$0xf]  ;;  %v7154_v25 = vor.u32 %v8322_v44, %v7153_v58 }
 0x27f   : > { %5493 = vmatpush.bf16.msra.mxu0 %v7074_v56  ;;  %v7137_v56 = vld [vmem:[%s9382_s22 + $0x908] sm:$0xf]  ;;  %v5267_v62 = vpop.f32.mrf.mxu2  ;;  %v7410_v63 = vor.u32 %v8386_v50, %v7409_v48  ;;  %v8350_v57 = vld [vmem:[%s9382_s22 + $0xa14] sm:$0xf0] }
 0x280   : > { %5506 = vmatpush.bf16.msra.mxu1 %v7202_v60  ;;  %v8318_v60 = vld [vmem:[%s9382_s22 + $0x914] sm:$0xf0]  ;;  %v7633_v4 = vld [vmem:[%s9382_s22 + $0xce8] sm:$0xf] }
 0x281   : > { %5519 = vmatpush.bf16.msra.mxu2 %v7330_v61  ;;  %v7265_v61 = vld [vmem:[%s9382_s22 + $0xa08] sm:$0xf]  ;;  %v8382_v2 = vld [vmem:[%s9382_s22 + $0xb14] sm:$0xf0]  ;;  %v5280_v3 = vpop.f32.mrf.mxu3  ;;  %v7138_v10 = vor.u32 %v8318_v60, %v7137_v56 }
 0x282   : > { %5532 = vmatpush.bf16.msra.mxu3 %v7458_v1  ;;  %v7393_v1 = vld [vmem:[%s9382_s22 + $0xb08] sm:$0xf]  ;;  %v8442_v17 = vld [vmem:[%s9382_s22 + $0xcf4] sm:$0xf0]  ;;  %v7266_v12 = vor.u32 %v8350_v57, %v7265_v61 }
 0x283   : > { %5494 = vmatpush.bf16.msra.mxu0 %v7058_v8  ;;  %v7761_v6 = vld [vmem:[%s9382_s22 + $0xde8] sm:$0xf]  ;;  %v7010_v8 = vor.u32 %v8286_v55, %v7009_v51  ;;  %v8506_v9 = vld [vmem:[%s9382_s22 + $0xef4] sm:$0xf0]  ;;  %v7394_v18 = vor.u32 %v8382_v2, %v7393_v1  ;;  %v7634_v19 = vor.u32 %v8442_v17, %v7633_v4 }
 0x284   : > { %5507 = vmatpush.bf16.msra.mxu1 %v7186_v52  ;;  %v8474_v52 = vld [vmem:[%s9382_s22 + $0xdf4] sm:$0xf0]  ;;  %v7873_v35 = vld [vmem:[%s9382_s22 + $0xec8] sm:$0xf] }
 0x285   : > { %5520 = vmatpush.bf16.msra.mxu2 %v7314_v54  ;;  %v7889_v54 = vld [vmem:[%s9382_s22 + $0xee8] sm:$0xf]  ;;  %v8538_v15 = vld [vmem:[%s9382_s22 + $0xff4] sm:$0xf0]  ;;  %v7762_v16 = vor.u32 %v8474_v52, %v7761_v6 }
 0x286   : > { %5533 = vmatpush.bf16.msra.mxu3 %v7442_v14  ;;  %v8017_v14 = vld [vmem:[%s9382_s22 + $0xfe8] sm:$0xf]  ;;  %v7890_v27 = vor.u32 %v8506_v9, %v7889_v54  ;;  %v8438_v23 = vld [vmem:[%s9382_s22 + $0xcd4] sm:$0xf0] }
 0x287   : > { %5495 = vmatpush.bf16.msra.mxu0 %v7042_v37  ;;  %v7617_v37 = vld [vmem:[%s9382_s22 + $0xcc8] sm:$0xf]  ;;  %v8470_v33 = vld [vmem:[%s9382_s22 + $0xdd4] sm:$0xf0] }
 0x288   : > { %5508 = vmatpush.bf16.msra.mxu1 %v7170_v40  ;;  %v7745_v40 = vld [vmem:[%s9382_s22 + $0xdc8] sm:$0xf]  ;;  %v8502_v58 = vld [vmem:[%s9382_s22 + $0xed4] sm:$0xf0]  ;;  %v7618_v44 = vor.u32 %v8438_v23, %v7617_v37 }
 0x289   : > { %5521 = vmatpush.bf16.msra.mxu2 %v7298_v28  ;;  %v8018_v28 = vor.u32 %v8538_v15, %v8017_v14  ;;  %v8001_v38 = vld [vmem:[%s9382_s22 + $0xfc8] sm:$0xf]  ;;  %v7746_v46 = vor.u32 %v8470_v33, %v7745_v40  ;;  %v7874_v47 = vor.u32 %v8502_v58, %v7873_v35  ;;  %v8434_v50 = vld [vmem:[%s9382_s22 + $0xcb4] sm:$0xf0]  ;;  %v5240_v35 = vadd.f32 %v10175_v59, %v10121_v11 }
 0x28a   : > { %5534 = vmatpush.bf16.msra.mxu3 %v7426_v41  ;;  %v8534_v41 = vld [vmem:[%s9382_s22 + $0xfd4] sm:$0xf0]  ;;  %v7601_v48 = vld [vmem:[%s9382_s22 + $0xca8] sm:$0xf] }
 0x28b   : > { %5496 = vmatpush.bf16.msra.mxu0 %v7026_v53  ;;  %v7729_v53 = vld [vmem:[%s9382_s22 + $0xda8] sm:$0xf]  ;;  %v8002_v51 = vor.u32 %v8534_v41, %v8001_v38  ;;  %v8466_v55 = vld [vmem:[%s9382_s22 + $0xdb4] sm:$0xf0]  ;;  %v7602_v61 = vor.u32 %v8434_v50, %v7601_v48 }
 0x28c   : > { %5509 = vmatpush.bf16.msra.mxu1 %v7154_v25  ;;  %v7857_v25 = vld [vmem:[%s9382_s22 + $0xea8] sm:$0xf]  ;;  %v8530_v60 = vld [vmem:[%s9382_s22 + $0xfb4] sm:$0xf0]  ;;  %v7730_v62 = vor.u32 %v8466_v55, %v7729_v53 }
 0x28d   : > { %5522 = vmatpush.bf16.msra.mxu2 %v7282_v49  ;;  %v8498_v49 = vld [vmem:[%s9382_s22 + $0xeb4] sm:$0xf0]  ;;  %v7985_v56 = vld [vmem:[%s9382_s22 + $0xfa8] sm:$0xf] }
 0x28e   : > { %5535 = vmatpush.bf16.msra.mxu3 %v7410_v63  ;;  %v7858_v63 = vor.u32 %v8498_v49, %v7857_v25  ;;  %v7585_v57 = vld [vmem:[%s9382_s22 + $0xc88] sm:$0xf]  ;;  %v8430_v1 = vld [vmem:[%s9382_s22 + $0xc94] sm:$0xf0]  ;;  %v7986_v3 = vor.u32 %v8530_v60, %v7985_v56  ;;  %v5253_v60 = vadd.f32 %v10180_v0, %v5240_v35  ;;  %v8088_v35 = vld [vmem:[%s9382_s22 + $0x1ec] sm:$0xf] }
 0x28f   : > { %5497 = vmatpush.bf16.msra.mxu0 %v7010_v8  ;;  %v7713_v2 = vld [vmem:[%s9382_s22 + $0xd88] sm:$0xf]  ;;  %v8462_v4 = vld [vmem:[%s9382_s22 + $0xd94] sm:$0xf0]  ;;  %v10249_v8 = vpop.f32.mrf.mxu0  ;;  %v7586_v9 = vor.u32 %v8430_v1, %v7585_v57 }
 0x290   : > { %5510 = vmatpush.bf16.msra.mxu1 %v7138_v10  ;;  %v7841_v17 = vld [vmem:[%s9382_s22 + $0xe88] sm:$0xf]  ;;  %v8494_v6 = vld [vmem:[%s9382_s22 + $0xe94] sm:$0xf0]  ;;  %v10253_v10 = vpop.f32.mrf.mxu1 }
 0x291   : > { %5523 = vmatpush.bf16.msra.mxu2 %v7266_v12  ;;  %v7969_v52 = vld [vmem:[%s9382_s22 + $0xf88] sm:$0xf]  ;;  %v8526_v54 = vld [vmem:[%s9382_s22 + $0xf94] sm:$0xf0]  ;;  %v7714_v12 = vor.u32 %v8462_v4, %v7713_v2  ;;  %v7842_v14 = vor.u32 %v8494_v6, %v7841_v17 }
 0x292   : > { %5536 = vmatpush.bf16.msra.mxu3 %v7394_v18  ;;  %5498 = vmatmul.bf16.vlgmr.msra.gmra.mxu0 %v9618_v26  ;;  %v7569_v15 = vld [vmem:[%s9382_s22 + $0xc68] sm:$0xf]  ;;  %v8426_v18 = vld [vmem:[%s9382_s22 + $0xc74] sm:$0xf0] }
 0x293   : > { %5542 = vmatpush.bf16.msrb.mxu0 %v7634_v19  ;;  %5511 = vmatmul.bf16.vlgmr.msra.gmra.mxu1 %v9625_v31  ;;  %v7697_v19 = vld [vmem:[%s9382_s22 + $0xd68] sm:$0xf]  ;;  %v8490_v23 = vld [vmem:[%s9382_s22 + $0xe74] sm:$0xf0]  ;;  %v7570_v33 = vor.u32 %v8426_v18, %v7569_v15 }
 0x294   : > { %5555 = vmatpush.bf16.msrb.mxu1 %v7762_v16  ;;  %5524 = vmatmul.bf16.vlgmr.msra.gmra.mxu2 %v9623_v30  ;;  %v7970_v16 = vor.u32 %v8526_v54, %v7969_v52  ;;  %v7825_v37 = vld [vmem:[%s9382_s22 + $0xe68] sm:$0xf]  ;;  %v8454_v50 = vld [vmem:[%s9382_s22 + $0xd54] sm:$0xf0] }
 0x295   : > { %5568 = vmatpush.bf16.msrb.mxu2 %v7890_v27  ;;  %5537 = vmatmul.bf16.vlgmr.msra.gmra.mxu3 %v9629_v34  ;;  %v8458_v27 = vld [vmem:[%s9382_s22 + $0xd74] sm:$0xf0]  ;;  %v7953_v40 = vld [vmem:[%s9382_s22 + $0xf68] sm:$0xf]  ;;  %v7826_v38 = vor.u32 %v8490_v23, %v7825_v37 }
 0x296   : > { %5581 = vmatpush.bf16.msrb.mxu3 %v8018_v28  ;;  %v8522_v28 = vld [vmem:[%s9382_s22 + $0xf74] sm:$0xf0]  ;;  %v7698_v58 = vor.u32 %v8458_v27, %v7697_v19  ;;  %v7553_v41 = vld [vmem:[%s9382_s22 + $0xc48] sm:$0xf] }
 0x297   : > { %5543 = vmatpush.bf16.msrb.mxu0 %v7618_v44  ;;  %v8422_v44 = vld [vmem:[%s9382_s22 + $0xc54] sm:$0xf0]  ;;  %v10268_v48 = vpop.f32.mrf.mxu2  ;;  %v7809_v53 = vld [vmem:[%s9382_s22 + $0xe48] sm:$0xf]  ;;  %v5293_v25 = vpop.f32.mrf.mxu0 }
 0x298   : > { %5556 = vmatpush.bf16.msrb.mxu1 %v7746_v46  ;;  %v7681_v46 = vld [vmem:[%s9382_s22 + $0xd48] sm:$0xf]  ;;  %v10273_v55 = vpop.f32.mrf.mxu3  ;;  %v8518_v59 = vld [vmem:[%s9382_s22 + $0xf54] sm:$0xf0]  ;;  %v7554_v49 = vor.u32 %v8422_v44, %v7553_v41  ;;  %v5306_v56 = vpop.f32.mrf.mxu1  ;;  %v6227_v41 = vld [vmem:[%s9382_s22 + $0x1f8] sm:$0xf0] }
 0x299   : > { %5569 = vmatpush.bf16.msrb.mxu2 %v7874_v47  ;;  %v7954_v47 = vor.u32 %v8522_v28, %v7953_v40  ;;  %v7937_v11 = vld [vmem:[%s9382_s22 + $0xf48] sm:$0xf]  ;;  %v8418_v57 = vld [vmem:[%s9382_s22 + $0xc34] sm:$0xf0]  ;;  %v8120_v44 = vld [vmem:[%s9382_s22 + $0x2ec] sm:$0xf]  ;;  %v6230_v56 = vor.u32 %v8088_v35, %v6227_v41 }
 0x29a   : > { %5582 = vmatpush.bf16.msrb.mxu3 %v8002_v51  ;;  %v8486_v51 = vld [vmem:[%s9382_s22 + $0xe54] sm:$0xf0]  ;;  %v7665_v1 = vld [vmem:[%s9382_s22 + $0xd28] sm:$0xf]  ;;  %v7938_v2 = vor.u32 %v8518_v59, %v7937_v11  ;;  %v6483_v11 = vld [vmem:[%s9382_s22 + $0x3f8] sm:$0xf0] }
 0x29b   : > { %5544 = vmatpush.bf16.msrb.mxu0 %v7602_v61  ;;  %v7682_v61 = vor.u32 %v8454_v50, %v7681_v46  ;;  %v7793_v4 = vld [vmem:[%s9382_s22 + $0xe28] sm:$0xf]  ;;  %v8482_v17 = vld [vmem:[%s9382_s22 + $0xe34] sm:$0xf0]  ;;  %v6355_v46 = vld [vmem:[%s9382_s22 + $0x2f8] sm:$0xf0] }
 0x29c   : > { %5557 = vmatpush.bf16.msrb.mxu1 %v7730_v62  ;;  %v7810_v62 = vor.u32 %v8486_v51, %v7809_v53  ;;  %v7921_v6 = vld [vmem:[%s9382_s22 + $0xf28] sm:$0xf]  ;;  %v8514_v0 = vld [vmem:[%s9382_s22 + $0xf34] sm:$0xf0]  ;;  %v7794_v15 = vor.u32 %v8482_v17, %v7793_v4  ;;  %v8152_v51 = vld [vmem:[%s9382_s22 + $0x3ec] sm:$0xf] }
 0x29d   : > { %5570 = vmatpush.bf16.msrb.mxu2 %v7858_v63  ;;  %v7537_v63 = vld [vmem:[%s9382_s22 + $0xc28] sm:$0xf]  ;;  %v8446_v19 = vld [vmem:[%s9382_s22 + $0xd14] sm:$0xf0]  ;;  %v7922_v27 = vor.u32 %v8514_v0, %v7921_v6  ;;  %v6467_v4 = vld [vmem:[%s9382_s22 + $0x3d8] sm:$0xf0] }
 0x29e   : > { %5583 = vmatpush.bf16.msrb.mxu3 %v7986_v3  ;;  %v8450_v3 = vld [vmem:[%s9382_s22 + $0xd34] sm:$0xf0]  ;;  %v7538_v52 = vor.u32 %v8418_v57, %v7537_v63  ;;  %v7521_v54 = vld [vmem:[%s9382_s22 + $0xc08] sm:$0xf]  ;;  %v6486_v63 = vor.u32 %v8152_v51, %v6483_v11  ;;  %v6211_v57 = vld [vmem:[%s9382_s22 + $0x1d8] sm:$0xf0] }
 0x29f   : > { %5545 = vmatpush.bf16.msrb.mxu0 %v7586_v9  ;;  %v8414_v9 = vld [vmem:[%s9382_s22 + $0xc14] sm:$0xf0]  ;;  %v7649_v18 = vld [vmem:[%s9382_s22 + $0xd08] sm:$0xf]  ;;  %v5319_v28 = vpop.f32.mrf.mxu2  ;;  %v8108_v35 = vld [vmem:[%s9382_s22 + $0x28c] sm:$0xf] }
 0x2a0   : > { %5558 = vmatpush.bf16.msrb.mxu1 %v7714_v12  ;;  %v5266_v12 = vadd.f32 %v10190_v13, %v5253_v60  ;;  %v8478_v37 = vld [vmem:[%s9382_s22 + $0xe14] sm:$0xf0]  ;;  %v7905_v23 = vld [vmem:[%s9382_s22 + $0xf08] sm:$0xf]  ;;  %v8056_v13 = vld [vmem:[%s9382_s22 + $0xec] sm:$0xf]  ;;  %v7650_v50 = vor.u32 %v8446_v19, %v7649_v18  ;;  %v6358_v60 = vor.u32 %v8120_v44, %v6355_v46 }
 0x2a1   : > { %5571 = vmatpush.bf16.msrb.mxu2 %v7842_v14  ;;  %v7666_v14 = vor.u32 %v8450_v3, %v7665_v1  ;;  %v8510_v40 = vld [vmem:[%s9382_s22 + $0xf14] sm:$0xf0]  ;;  %v8116_v1 = vld [vmem:[%s9382_s22 + $0x2cc] sm:$0xf]  ;;  %v6323_v18 = vld [vmem:[%s9382_s22 + $0x2b8] sm:$0xf0] }
 0x2a2   : > { %5584 = vmatpush.bf16.msrb.mxu3 %v7970_v16  ;;  %v7777_v16 = vld [vmem:[%s9382_s22 + $0xe08] sm:$0xf]  ;;  %v7906_v59 = vor.u32 %v8510_v40, %v7905_v23  ;;  %v8148_v3 = vld [vmem:[%s9382_s22 + $0x3cc] sm:$0xf]  ;;  %v6051_v40 = vld [vmem:[%s9382_s22 + $0x98] sm:$0xf0] }
 0x2a3   : > { %5546 = vmatpush.bf16.msrb.mxu0 %v7570_v33  ;;  %v6099_v33 = vld [vmem:[%s9382_s22 + $0xf8] sm:$0xf0]  ;;  %v7778_v53 = vor.u32 %v8478_v37, %v7777_v16  ;;  %v8144_v19 = vld [vmem:[%s9382_s22 + $0x3ac] sm:$0xf] }
 0x2a4   : > { %5559 = vmatpush.bf16.msrb.mxu1 %v7698_v58  ;;  %v5332_v58 = vpop.f32.mrf.mxu3  ;;  %v6102_v25 = vor.u32 %v8056_v13, %v6099_v33  ;;  %v6451_v16 = vld [vmem:[%s9382_s22 + $0x3b8] sm:$0xf0]  ;;  %v8076_v28 = vld [vmem:[%s9382_s22 + $0x18c] sm:$0xf] }
 0x2a5   : > { %5572 = vmatpush.bf16.msrb.mxu2 %v7826_v38  ;;  %v7522_v38 = vor.u32 %v8414_v9, %v7521_v54  ;;  %v6067_v54 = vld [vmem:[%s9382_s22 + $0xb8] sm:$0xf0]  ;;  %v8080_v9 = vld [vmem:[%s9382_s22 + $0x1ac] sm:$0xf]  ;;  %v6454_v13 = vor.u32 %v8144_v19, %v6451_v16 }
 0x2a6   : > { %5585 = vmatpush.bf16.msrb.mxu3 %v7954_v47  ;;  %v5279_v47 = vadd.f32 %v10195_v20, %v5266_v12  ;;  %v6083_v20 = vld [vmem:[%s9382_s22 + $0xd8] sm:$0xf0]  ;;  %v6470_v12 = vor.u32 %v8148_v3, %v6467_v4  ;;  %v8140_v44 = vld [vmem:[%s9382_s22 + $0x38c] sm:$0xf] }
 0x2a7   : > { %5547 = vmatpush.bf16.msrb.mxu0 %v7554_v49  ;;  %v6179_v33 = vld [vmem:[%s9382_s22 + $0x198] sm:$0xf0]  ;;  %v8036_v3 = vld [vmem:[%s9382_s22 + $0x4c] sm:$0xf] }
 0x2a8   : > { %5560 = vmatpush.bf16.msrb.mxu1 %v7682_v61  ;;  %v5292_v49 = vadd.f32 %v10249_v8, %v5279_v47  ;;  %v8052_v61 = vld [vmem:[%s9382_s22 + $0xcc] sm:$0xf]  ;;  %v6307_v58 = vld [vmem:[%s9382_s22 + $0x298] sm:$0xf0]  ;;  %v6182_v51 = vor.u32 %v8076_v28, %v6179_v33 }
 0x2a9   : > { %5573 = vmatpush.bf16.msrb.mxu2 %v7810_v62  ;;  %v8084_v62 = vld [vmem:[%s9382_s22 + $0x1cc] sm:$0xf]  ;;  %v6086_v8 = vor.u32 %v8052_v61, %v6083_v20  ;;  %v6435_v46 = vld [vmem:[%s9382_s22 + $0x398] sm:$0xf0]  ;;  %v6310_v11 = vor.u32 %v8108_v35, %v6307_v58 }
 0x2aa   : > { %5586 = vmatpush.bf16.msrb.mxu3 %v7938_v2  ;;  %v6339_v2 = vld [vmem:[%s9382_s22 + $0x2d8] sm:$0xf0]  ;;  %v5305_v17 = vadd.f32 %v10253_v10, %v5292_v49  ;;  %v6214_v6 = vor.u32 %v8084_v62, %v6211_v57  ;;  %v6438_v49 = vor.u32 %v8140_v44, %v6435_v46  ;;  %v8136_v20 = vld [vmem:[%s9382_s22 + $0x36c] sm:$0xf] }
 0x2ab   : > { %5548 = vmatpush.bf16.msrb.mxu0 %v7538_v52  ;;  %v6342_v0 = vor.u32 %v8116_v1, %v6339_v2  ;;  %v8048_v52 = vld [vmem:[%s9382_s22 + $0xac] sm:$0xf]  ;;  %v6291_v61 = vld [vmem:[%s9382_s22 + $0x278] sm:$0xf0] }
 0x2ac   : > { %5561 = vmatpush.bf16.msrb.mxu1 %v7666_v14  ;;  %v6195_v14 = vld [vmem:[%s9382_s22 + $0x1b8] sm:$0xf0]  ;;  %v5318_v10 = vadd.f32 %v10268_v48, %v5305_v17  ;;  %v8044_v48 = vld [vmem:[%s9382_s22 + $0x8c] sm:$0xf] }
 0x2ad   : > { %5574 = vmatpush.bf16.msrb.mxu2 %v7794_v15  ;;  %v8112_v15 = vld [vmem:[%s9382_s22 + $0x2ac] sm:$0xf]  ;;  %v6198_v37 = vor.u32 %v8080_v9, %v6195_v14  ;;  %v6054_v47 = vor.u32 %v8044_v48, %v6051_v40  ;;  %v6419_v62 = vld [vmem:[%s9382_s22 + $0x378] sm:$0xf0] }
 0x2ae   : > { %5587 = vmatpush.bf16.msrb.mxu3 %v7922_v27  ;;  %v6070_v27 = vor.u32 %v8048_v52, %v6067_v54  ;;  %v6326_v23 = vor.u32 %v8112_v15, %v6323_v18  ;;  %v6019_v4 = vld [vmem:[%s9382_s22 + $0x58] sm:$0xf0]  ;;  %v6422_v17 = vor.u32 %v8136_v20, %v6419_v62  ;;  %v8100_v52 = vld [vmem:[%s9382_s22 + $0x24c] sm:$0xf] }
 0x2af   : > { %5549 = vmatpush.bf16.msrb.mxu0 %v7522_v38  ;;  %v5331_v38 = vadd.f32 %v10273_v55, %v5318_v10  ;;  %v5343_v41 = vpop.f32.mrf.mxu0  ;;  %v8072_v55 = vld [vmem:[%s9382_s22 + $0x16c] sm:$0xf]  ;;  %v6275_v54 = vld [vmem:[%s9382_s22 + $0x258] sm:$0xf0]  ;;  %v1831_v10 = vld [vmem:[#allocation2] sm:$0xff]  ;;  %v6022_v19 = vor.u32 %v8036_v3, %v6019_v4 }
 0x2b0   : > { %5562 = vmatpush.bf16.msrb.mxu1 %v7650_v50  ;;  %v5356_v50 = vpop.f32.mrf.mxu1  ;;  %v8132_v14 = vld [vmem:[%s9382_s22 + $0x34c] sm:$0xf]  ;;  %v6403_v15 = vld [vmem:[%s9382_s22 + $0x358] sm:$0xf0] }
 0x2b1   : > { %5575 = vmatpush.bf16.msrb.mxu2 %v7778_v53  ;;  %v5344_v53 = vadd.f32 %v5343_v41, %v5331_v38  ;;  %v8032_v48 = vld [vmem:[%s9382_s22 + $0x2c] sm:$0xf]  ;;  %v6003_v40 = vld [vmem:[%s9382_s22 + $0x38] sm:$0xf0] }
 0x2b2   : > { %5588 = vmatpush.bf16.msrb.mxu3 %v7906_v59  ;;  %5550 = vmatmul.bf16.vlgmr.msrb.gmra.mxu0 %v9696_v24  ;;  %v8040_v59 = vld [vmem:[%s9382_s22 + $0x6c] sm:$0xf]  ;;  %v6131_v33 = vld [vmem:[%s9382_s22 + $0x138] sm:$0xf0]  ;;  %v6006_v46 = vor.u32 %v8032_v48, %v6003_v40 }
 0x2b3   : > { %5594 = vmatpush.bf16.msra.mxu0 %v6102_v25  ;;  %5563 = vmatmul.bf16.vlgmr.msrb.gmra.mxu1 %v9703_v32  ;;  %v6035_v25 = vld [vmem:[%s9382_s22 + $0x78] sm:$0xf0]  ;;  %v5357_v57 = vadd.f32 %v5356_v50, %v5344_v53  ;;  %v8064_v28 = vld [vmem:[%s9382_s22 + $0x12c] sm:$0xf] }
 0x2b4   : > { %5607 = vmatpush.bf16.msra.mxu1 %v6230_v56  ;;  %5576 = vmatmul.bf16.vlgmr.msrb.gmra.mxu2 %v9701_v29  ;;  %v6163_v56 = vld [vmem:[%s9382_s22 + $0x178] sm:$0xf0]  ;;  %v8096_v35 = vld [vmem:[%s9382_s22 + $0x22c] sm:$0xf] }
 0x2b5   : > { %5620 = vmatpush.bf16.msra.mxu2 %v6358_v60  ;;  %5589 = vmatmul.bf16.vlgmr.msrb.gmra.mxu3 %v9707_v36  ;;  %v8104_v60 = vld [vmem:[%s9382_s22 + $0x26c] sm:$0xf]  ;;  %v6166_v1 = vor.u32 %v8072_v55, %v6163_v56  ;;  %v6259_v58 = vld [vmem:[%s9382_s22 + $0x238] sm:$0xf0] }
 0x2b6   : > { %5633 = vmatpush.bf16.msra.mxu3 %v6486_v63  ;;  %v6038_v63 = vor.u32 %v8040_v59, %v6035_v25  ;;  %v6294_v2 = vor.u32 %v8104_v60, %v6291_v61  ;;  %v8128_v41 = vld [vmem:[%s9382_s22 + $0x32c] sm:$0xf]  ;;  %v6387_v44 = vld [vmem:[%s9382_s22 + $0x338] sm:$0xf0] }
 0x2b7   : > { %5595 = vmatpush.bf16.msra.mxu0 %v6086_v8  ;;  %v8068_v8 = vld [vmem:[%s9382_s22 + $0x14c] sm:$0xf]  ;;  %v5345_v18 = vpop.f32.mrf.mxu0  ;;  %v5987_v50 = vld [vmem:[%s9382_s22 + $0x18] sm:$0xf0]  ;;  %v6390_v55 = vor.u32 %v8128_v41, %v6387_v44 }
 0x2b8   : > { %5608 = vmatpush.bf16.msra.mxu1 %v6214_v6  ;;  %v5369_v6 = vpop.f32.mrf.mxu2  ;;  %v5358_v16 = vpop.f32.mrf.mxu1  ;;  %v8060_v53 = vld [vmem:[%s9382_s22 + $0x10c] sm:$0xf]  ;;  %v6115_v59 = vld [vmem:[%s9382_s22 + $0x118] sm:$0xf0] }
 0x2b9   : > { %5621 = vmatpush.bf16.msra.mxu2 %v6342_v0  ;;  %v6147_v0 = vld [vmem:[%s9382_s22 + $0x158] sm:$0xf0]  ;;  %v5370_v9 = vadd.f32 %v5369_v6, %v5357_v57  ;;  %v8092_v25 = vld [vmem:[%s9382_s22 + $0x20c] sm:$0xf] }
 0x2ba   : > { %5634 = vmatpush.bf16.msra.mxu3 %v6470_v12  ;;  %v5382_v12 = vpop.f32.mrf.mxu3  ;;  %v8124_v56 = vld [vmem:[%s9382_s22 + $0x30c] sm:$0xf]  ;;  %v6371_v60 = vld [vmem:[%s9382_s22 + $0x318] sm:$0xf0] }
 0x2bb   : > { %5596 = vmatpush.bf16.msra.mxu0 %v6070_v27  ;;  %v5383_v27 = vadd.f32 %v5382_v12, %v5370_v9  ;;  %v8184_v20 = vld [vmem:[%s9382_s22 + $0x4ec] sm:$0xf]  ;;  %v6611_v62 = vld [vmem:[%s9382_s22 + $0x4f8] sm:$0xf0] }
 0x2bc   : > { %5609 = vmatpush.bf16.msra.mxu1 %v6198_v37  ;;  %v6150_v37 = vor.u32 %v8068_v8, %v6147_v0  ;;  %v8248_v3 = vld [vmem:[%s9382_s22 + $0x6ec] sm:$0xf]  ;;  %v6867_v4 = vld [vmem:[%s9382_s22 + $0x6f8] sm:$0xf0]  ;;  %v6118_v8 = vor.u32 %v8060_v53, %v6115_v59 }
 0x2bd   : > { %5622 = vmatpush.bf16.msra.mxu2 %v6326_v23  ;;  %v6278_v23 = vor.u32 %v8100_v52, %v6275_v54  ;;  %v5803_v38 = vadd.f32 %v5383_v27, %v1831_v10  ;;  %v8280_v6 = vld [vmem:[%s9382_s22 + $0x7ec] sm:$0xf]  ;;  %v6995_v0 = vld [vmem:[%s9382_s22 + $0x7f8] sm:$0xf0]  ;;  %v6374_v52 = vor.u32 %v8124_v56, %v6371_v60  ;;  %v6614_v54 = vor.u32 %v8184_v20, %v6611_v62 }
 0x2be   : > { %5635 = vmatpush.bf16.msra.mxu3 %v6454_v13  ;;  %v6406_v13 = vor.u32 %v8132_v14, %v6403_v15  ;;  %v6870_v12 = vor.u32 %v8248_v3, %v6867_v4  ;;  %v8180_v14 = vld [vmem:[%s9382_s22 + $0x4cc] sm:$0xf]  ;;  %v6595_v15 = vld [vmem:[%s9382_s22 + $0x4d8] sm:$0xf0]  ;;  %v6998_v10 = vor.u32 %v8280_v6, %v6995_v0 }
 0x2bf   : > { %5597 = vmatpush.bf16.msra.mxu0 %v6054_v47  ;;  %v8028_v47 = vld [vmem:[%s9382_s22 + $0xc] sm:$0xf]  ;;  %5807 = vst [vmem:[#allocation2] sm:$0xff] %v5803_v38  ;;  %v6851_v27 = vld [vmem:[%s9382_s22 + $0x6d8] sm:$0xf0]  ;;  %v6598_v48 = vor.u32 %v8180_v14, %v6595_v15 }
 0x2c0   : > { %5610 = vmatpush.bf16.msra.mxu1 %v6182_v51  ;;  %v6134_v51 = vor.u32 %v8064_v28, %v6131_v33  ;;  %v5371_v61 = vpop.f32.mrf.mxu2  ;;  %v8212_v18 = vld [vmem:[%s9382_s22 + $0x5cc] sm:$0xf]  ;;  %v6579_v33 = vld [vmem:[%s9382_s22 + $0x4b8] sm:$0xf0] }
 0x2c1   : > { %5623 = vmatpush.bf16.msra.mxu2 %v6310_v11  ;;  %v6262_v11 = vor.u32 %v8096_v35, %v6259_v58  ;;  %v8244_v16 = vld [vmem:[%s9382_s22 + $0x6cc] sm:$0xf]  ;;  %v6707_v38 = vld [vmem:[%s9382_s22 + $0x5b8] sm:$0xf0] }
 0x2c2   : > { %5636 = vmatpush.bf16.msra.mxu3 %v6438_v49  ;;  %v6243_v49 = vld [vmem:[%s9382_s22 + $0x218] sm:$0xf0]  ;;  %v5384_v57 = vpop.f32.mrf.mxu3  ;;  %v6854_v28 = vor.u32 %v8244_v16, %v6851_v27  ;;  %v8208_v35 = vld [vmem:[%s9382_s22 + $0x5ac] sm:$0xf] }
 0x2c3   : > { %5598 = vmatpush.bf16.msra.mxu0 %v6038_v63  ;;  %v8216_v63 = vld [vmem:[%s9382_s22 + $0x5ec] sm:$0xf]  ;;  %v6835_v44 = vld [vmem:[%s9382_s22 + $0x6b8] sm:$0xf0]  ;;  %v6710_v53 = vor.u32 %v8208_v35, %v6707_v38 }
 0x2c4   : > { %5611 = vmatpush.bf16.msra.mxu1 %v6166_v1  ;;  %v5990_v1 = vor.u32 %v8028_v47, %v5987_v50  ;;  %v8240_v41 = vld [vmem:[%s9382_s22 + $0x6ac] sm:$0xf]  ;;  %v6963_v47 = vld [vmem:[%s9382_s22 + $0x7b8] sm:$0xf0] }
 0x2c5   : > { %5624 = vmatpush.bf16.msra.mxu2 %v6294_v2  ;;  %v6739_v2 = vld [vmem:[%s9382_s22 + $0x5f8] sm:$0xf0]  ;;  %v8204_v59 = vld [vmem:[%s9382_s22 + $0x58c] sm:$0xf] }
 0x2c6   : > { %5637 = vmatpush.bf16.msra.mxu3 %v6422_v17  ;;  %v6246_v17 = vor.u32 %v8092_v25, %v6243_v49  ;;  %v6742_v9 = vor.u32 %v8216_v63, %v6739_v2  ;;  %v6691_v25 = vld [vmem:[%s9382_s22 + $0x598] sm:$0xf0]  ;;  %v8268_v49 = vld [vmem:[%s9382_s22 + $0x78c] sm:$0xf] }
 0x2c7   : > { %5599 = vmatpush.bf16.msra.mxu0 %v6022_v19  ;;  %v6723_v19 = vld [vmem:[%s9382_s22 + $0x5d8] sm:$0xf0]  ;;  %v6694_v61 = vor.u32 %v8204_v59, %v6691_v25  ;;  %v8168_v62 = vld [vmem:[%s9382_s22 + $0x46c] sm:$0xf] }
 0x2c8   : > { %5612 = vmatpush.bf16.msra.mxu1 %v6150_v37  ;;  %v8276_v37 = vld [vmem:[%s9382_s22 + $0x7cc] sm:$0xf]  ;;  %v6726_v40 = vor.u32 %v8212_v18, %v6723_v19  ;;  %v6947_v56 = vld [vmem:[%s9382_s22 + $0x798] sm:$0xf0] }
 0x2c9   : > { %5625 = vmatpush.bf16.msra.mxu2 %v6278_v23  ;;  %v6979_v23 = vld [vmem:[%s9382_s22 + $0x7d8] sm:$0xf0]  ;;  %v8200_v57 = vld [vmem:[%s9382_s22 + $0x56c] sm:$0xf]  ;;  %v6950_v2 = vor.u32 %v8268_v49, %v6947_v56 }
 0x2ca   : > { %5638 = vmatpush.bf16.msra.mxu3 %v6406_v13  ;;  %v8176_v13 = vld [vmem:[%s9382_s22 + $0x4ac] sm:$0xf]  ;;  %v6982_v58 = vor.u32 %v8276_v37, %v6979_v23  ;;  %v6547_v63 = vld [vmem:[%s9382_s22 + $0x478] sm:$0xf0] }
 0x2cb   : > { %5600 = vmatpush.bf16.msra.mxu0 %v6006_v46  ;;  %v8272_v46 = vld [vmem:[%s9382_s22 + $0x7ac] sm:$0xf]  ;;  %v6582_v50 = vor.u32 %v8176_v13, %v6579_v33  ;;  %v6675_v3 = vld [vmem:[%s9382_s22 + $0x578] sm:$0xf0] }
 0x2cc   : > { %5613 = vmatpush.bf16.msra.mxu1 %v6134_v51  ;;  %v6838_v51 = vor.u32 %v8240_v41, %v6835_v44  ;;  %v8232_v4 = vld [vmem:[%s9382_s22 + $0x66c] sm:$0xf]  ;;  %v6931_v0 = vld [vmem:[%s9382_s22 + $0x778] sm:$0xf0] }
 0x2cd   : > { %5626 = vmatpush.bf16.msra.mxu2 %v6262_v11  ;;  %v6563_v11 = vld [vmem:[%s9382_s22 + $0x498] sm:$0xf0]  ;;  %v8264_v6 = vld [vmem:[%s9382_s22 + $0x76c] sm:$0xf] }
 0x2ce   : > { %5639 = vmatpush.bf16.msra.mxu3 %v6390_v55  ;;  %v6819_v55 = vld [vmem:[%s9382_s22 + $0x698] sm:$0xf0]  ;;  %v8196_v15 = vld [vmem:[%s9382_s22 + $0x54c] sm:$0xf] }
 0x2cf   : > { %5601 = vmatpush.bf16.msra.mxu0 %v5990_v1  ;;  %v5395_v60 = vpop.f32.mrf.mxu0  ;;  %v6531_v14 = vld [vmem:[%s9382_s22 + $0x458] sm:$0xf0]  ;;  %v8228_v16 = vld [vmem:[%s9382_s22 + $0x64c] sm:$0xf] }
 0x2d0   : > { %5614 = vmatpush.bf16.msra.mxu1 %v6118_v8  ;;  %v5408_v1 = vpop.f32.mrf.mxu1  ;;  %v6803_v8 = vld [vmem:[%s9382_s22 + $0x678] sm:$0xf0]  ;;  %v8160_v38 = vld [vmem:[%s9382_s22 + $0x42c] sm:$0xf] }
 0x2d1   : > { %5627 = vmatpush.bf16.msra.mxu2 %v6246_v17  ;;  %v5409_v17 = vadd.f32 %v5408_v1, %v5395_v60  ;;  %v6659_v19 = vld [vmem:[%s9382_s22 + $0x558] sm:$0xf0]  ;;  %v8192_v44 = vld [vmem:[%s9382_s22 + $0x52c] sm:$0xf] }
 0x2d2   : > { %5640 = vmatpush.bf16.msra.mxu3 %v6374_v52  ;;  %5602 = vmatmul.bf16.vlgmr.msra.gmra.mxu0 %v9488_v21  ;;  %v6966_v21 = vor.u32 %v8272_v46, %v6963_v47  ;;  %v6550_v52 = vor.u32 %v8168_v62, %v6547_v63  ;;  %v6787_v27 = vld [vmem:[%s9382_s22 + $0x658] sm:$0xf0]  ;;  %v6662_v35 = vor.u32 %v8196_v15, %v6659_v19  ;;  %v8188_v49 = vld [vmem:[%s9382_s22 + $0x50c] sm:$0xf] }
 0x2d3   : > { %5646 = vmatpush.bf16.msrb.mxu0 %v6614_v54  ;;  %5615 = vmatmul.bf16.vlgmr.msra.gmra.mxu1 %v9491_v22  ;;  %v6678_v54 = vor.u32 %v8200_v57, %v6675_v3  ;;  %v6515_v41 = vld [vmem:[%s9382_s22 + $0x438] sm:$0xf0]  ;;  %v8252_v62 = vld [vmem:[%s9382_s22 + $0x70c] sm:$0xf] }
 0x2d4   : > { %5659 = vmatpush.bf16.msrb.mxu1 %v6742_v9  ;;  %5628 = vmatmul.bf16.vlgmr.msra.gmra.mxu2 %v9474_v5  ;;  %v8172_v5 = vld [vmem:[%s9382_s22 + $0x48c] sm:$0xf]  ;;  %v6806_v9 = vor.u32 %v8232_v4, %v6803_v8  ;;  %v6518_v59 = vor.u32 %v8160_v38, %v6515_v41  ;;  %v6499_v25 = vld [vmem:[%s9382_s22 + $0x418] sm:$0xf0] }
 0x2d5   : > { %5672 = vmatpush.bf16.msrb.mxu2 %v6870_v12  ;;  %5641 = vmatmul.bf16.vlgmr.msra.gmra.mxu3 %v9477_v7  ;;  %v8236_v7 = vld [vmem:[%s9382_s22 + $0x68c] sm:$0xf]  ;;  %v6566_v22 = vor.u32 %v8172_v5, %v6563_v11  ;;  %v6899_v11 = vld [vmem:[%s9382_s22 + $0x738] sm:$0xf0] }
 0x2d6   : > { %5685 = vmatpush.bf16.msrb.mxu3 %v6998_v10  ;;  %v6822_v20 = vor.u32 %v8236_v7, %v6819_v55  ;;  %v8164_v12 = vld [vmem:[%s9382_s22 + $0x44c] sm:$0xf]  ;;  %v6934_v10 = vor.u32 %v8264_v6, %v6931_v0  ;;  %v6627_v56 = vld [vmem:[%s9382_s22 + $0x518] sm:$0xf0] }
 0x2d7   : > { %5647 = vmatpush.bf16.msrb.mxu0 %v6598_v48  ;;  %v5421_v18 = vpop.f32.mrf.mxu2  ;;  %v8260_v48 = vld [vmem:[%s9382_s22 + $0x74c] sm:$0xf]  ;;  %v5397_v33 = vpop.f32.mrf.mxu0  ;;  %v6883_v63 = vld [vmem:[%s9382_s22 + $0x718] sm:$0xf0]  ;;  %v6630_v0 = vor.u32 %v8188_v49, %v6627_v56 }
 0x2d8   : > { %5660 = vmatpush.bf16.msrb.mxu1 %v6726_v40  ;;  %v5422_v37 = vadd.f32 %v5421_v18, %v5409_v17  ;;  %v5434_v23 = vpop.f32.mrf.mxu3  ;;  %v6915_v40 = vld [vmem:[%s9382_s22 + $0x758] sm:$0xf0]  ;;  %v5410_v46 = vpop.f32.mrf.mxu1  ;;  %v8256_v5 = vld [vmem:[%s9382_s22 + $0x72c] sm:$0xf] }
 0x2d9   : > { %5673 = vmatpush.bf16.msrb.mxu2 %v6854_v28  ;;  %v6534_v28 = vor.u32 %v8164_v12, %v6531_v14  ;;  %v6918_v47 = vor.u32 %v8260_v48, %v6915_v40  ;;  %v8312_v1 = vld [vmem:[%s9382_s22 + $0x8ec] sm:$0xf]  ;;  %v7251_v8 = vld [vmem:[%s9382_s22 + $0x9f8] sm:$0xf0]  ;;  %v6886_v12 = vor.u32 %v8252_v62, %v6883_v63 }
 0x2da   : > { %5686 = vmatpush.bf16.msrb.mxu3 %v6982_v58  ;;  %v10420_v13 = vadd.f32 %v5434_v23, %v5422_v37  ;;  %v6790_v58 = vor.u32 %v8228_v16, %v6787_v27  ;;  %v8344_v3 = vld [vmem:[%s9382_s22 + $0x9ec] sm:$0xf]  ;;  %v7379_v6 = vld [vmem:[%s9382_s22 + $0xaf8] sm:$0xf0] }
 0x2db   : > { %5648 = vmatpush.bf16.msrb.mxu0 %v6582_v50  ;;  %v6643_v50 = vld [vmem:[%s9382_s22 + $0x538] sm:$0xf0]  ;;  %v8376_v17 = vld [vmem:[%s9382_s22 + $0xaec] sm:$0xf]  ;;  %v7254_v15 = vor.u32 %v8344_v3, %v7251_v8 }
 0x2dc   : > { %5661 = vmatpush.bf16.msrb.mxu1 %v6710_v53  ;;  %v8224_v53 = vld [vmem:[%s9382_s22 + $0x62c] sm:$0xf]  ;;  %v6646_v7 = vor.u32 %v8192_v44, %v6643_v50  ;;  %v7382_v18 = vor.u32 %v8376_v17, %v7379_v6  ;;  %v7107_v19 = vld [vmem:[%s9382_s22 + $0x8d8] sm:$0xf0] }
 0x2dd   : > { %5674 = vmatpush.bf16.msrb.mxu2 %v6838_v51  ;;  %v6771_v51 = vld [vmem:[%s9382_s22 + $0x638] sm:$0xf0]  ;;  %v8340_v16 = vld [vmem:[%s9382_s22 + $0x9cc] sm:$0xf] }
 0x2de   : > { %5687 = vmatpush.bf16.msrb.mxu3 %v6966_v21  ;;  %v8156_v21 = vld [vmem:[%s9382_s22 + $0x40c] sm:$0xf]  ;;  %v6774_v55 = vor.u32 %v8224_v53, %v6771_v51  ;;  %v7235_v37 = vld [vmem:[%s9382_s22 + $0x9d8] sm:$0xf0] }
 0x2df   : > { %5649 = vmatpush.bf16.msrb.mxu0 %v6566_v22  ;;  %v8220_v22 = vld [vmem:[%s9382_s22 + $0x60c] sm:$0xf]  ;;  %v5423_v60 = vpop.f32.mrf.mxu2  ;;  %v6502_v4 = vor.u32 %v8156_v21, %v6499_v25  ;;  %v7363_v48 = vld [vmem:[%s9382_s22 + $0xad8] sm:$0xf0] }
 0x2e0   : > { %5662 = vmatpush.bf16.msrb.mxu1 %v6694_v61  ;;  %v6902_v61 = vor.u32 %v8256_v5, %v6899_v11  ;;  %v5436_v57 = vpop.f32.mrf.mxu3  ;;  %v8372_v23 = vld [vmem:[%s9382_s22 + $0xacc] sm:$0xf]  ;;  %v7091_v41 = vld [vmem:[%s9382_s22 + $0x8b8] sm:$0xf0] }
 0x2e1   : > { %5675 = vmatpush.bf16.msrb.mxu2 %v6822_v20  ;;  %v6755_v20 = vld [vmem:[%s9382_s22 + $0x618] sm:$0xf0]  ;;  %v8404_v40 = vld [vmem:[%s9382_s22 + $0xbcc] sm:$0xf] }
 0x2e2   : > { %5688 = vmatpush.bf16.msrb.mxu3 %v6950_v2  ;;  %v7123_v2 = vld [vmem:[%s9382_s22 + $0x8f8] sm:$0xf0]  ;;  %v8304_v38 = vld [vmem:[%s9382_s22 + $0x8ac] sm:$0xf] }
 0x2e3   : > { %5650 = vmatpush.bf16.msrb.mxu0 %v6550_v52  ;;  %v6758_v52 = vor.u32 %v8220_v22, %v6755_v20  ;;  %v7126_v14 = vor.u32 %v8312_v1, %v7123_v2  ;;  %v8336_v44 = vld [vmem:[%s9382_s22 + $0x9ac] sm:$0xf]  ;;  %v7347_v53 = vld [vmem:[%s9382_s22 + $0xab8] sm:$0xf0]  ;;  %v7094_v11 = vor.u32 %v8304_v38, %v7091_v41 }
 0x2e4   : > { %5663 = vmatpush.bf16.msrb.mxu1 %v6678_v54  ;;  %v8408_v54 = vld [vmem:[%s9382_s22 + $0xbec] sm:$0xf]  ;;  %v7475_v5 = vld [vmem:[%s9382_s22 + $0xbb8] sm:$0xf0] }
 0x2e5   : > { %5676 = vmatpush.bf16.msrb.mxu2 %v6806_v9  ;;  %v7507_v9 = vld [vmem:[%s9382_s22 + $0xbf8] sm:$0xf0]  ;;  %v8368_v50 = vld [vmem:[%s9382_s22 + $0xaac] sm:$0xf] }
 0x2e6   : > { %5689 = vmatpush.bf16.msrb.mxu3 %v6934_v10  ;;  %v8308_v10 = vld [vmem:[%s9382_s22 + $0x8cc] sm:$0xf]  ;;  %v7510_v27 = vor.u32 %v8408_v54, %v7507_v9  ;;  %v7075_v25 = vld [vmem:[%s9382_s22 + $0x898] sm:$0xf0] }
 0x2e7   : > { %5651 = vmatpush.bf16.msrb.mxu0 %v6534_v28  ;;  %v7491_v28 = vld [vmem:[%s9382_s22 + $0xbd8] sm:$0xf0]  ;;  %v7110_v33 = vor.u32 %v8308_v10, %v7107_v19  ;;  %v8400_v51 = vld [vmem:[%s9382_s22 + $0xbac] sm:$0xf] }
 0x2e8   : > { %5664 = vmatpush.bf16.msrb.mxu1 %v6662_v35  ;;  %v7238_v35 = vor.u32 %v8340_v16, %v7235_v37  ;;  %v7494_v46 = vor.u32 %v8404_v40, %v7491_v28  ;;  %v8300_v21 = vld [vmem:[%s9382_s22 + $0x88c] sm:$0xf]  ;;  %v7331_v49 = vld [vmem:[%s9382_s22 + $0xa98] sm:$0xf0] }
 0x2e9   : > { %5677 = vmatpush.bf16.msrb.mxu2 %v6790_v58  ;;  %v7366_v58 = vor.u32 %v8372_v23, %v7363_v48  ;;  %v8396_v56 = vld [vmem:[%s9382_s22 + $0xb8c] sm:$0xf]  ;;  %v7459_v22 = vld [vmem:[%s9382_s22 + $0xb98] sm:$0xf0] }
 0x2ea   : > { %5690 = vmatpush.bf16.msrb.mxu3 %v6918_v47  ;;  %v7219_v47 = vld [vmem:[%s9382_s22 + $0x9b8] sm:$0xf0]  ;;  %v8296_v62 = vld [vmem:[%s9382_s22 + $0x86c] sm:$0xf]  ;;  %v7462_v2 = vor.u32 %v8396_v56, %v7459_v22 }
 0x2eb   : > { %5652 = vmatpush.bf16.msrb.mxu0 %v6518_v59  ;;  %v7350_v59 = vor.u32 %v8368_v50, %v7347_v53  ;;  %v7059_v63 = vld [vmem:[%s9382_s22 + $0x878] sm:$0xf0]  ;;  %v8328_v57 = vld [vmem:[%s9382_s22 + $0x96c] sm:$0xf] }
 0x2ec   : > { %5665 = vmatpush.bf16.msrb.mxu1 %v6646_v7  ;;  %v7203_v7 = vld [vmem:[%s9382_s22 + $0x998] sm:$0xf0]  ;;  %v8392_v17 = vld [vmem:[%s9382_s22 + $0xb6c] sm:$0xf] }
 0x2ed   : > { %5678 = vmatpush.bf16.msrb.mxu2 %v6774_v55  ;;  %v8364_v55 = vld [vmem:[%s9382_s22 + $0xa8c] sm:$0xf]  ;;  %v7187_v3 = vld [vmem:[%s9382_s22 + $0x978] sm:$0xf0] }
 0x2ee   : > { %5691 = vmatpush.bf16.msrb.mxu3 %v6902_v61  ;;  %v7334_v20 = vor.u32 %v8364_v55, %v7331_v49  ;;  %v7315_v8 = vld [vmem:[%s9382_s22 + $0xa78] sm:$0xf0]  ;;  %v8292_v9 = vld [vmem:[%s9382_s22 + $0x84c] sm:$0xf] }
 0x2ef   : > { %5653 = vmatpush.bf16.msrb.mxu0 %v6502_v4  ;;  %v10474_v60 = vpop.f32.mrf.mxu0  ;;  %v8360_v4 = vld [vmem:[%s9382_s22 + $0xa6c] sm:$0xf]  ;;  %v7443_v6 = vld [vmem:[%s9382_s22 + $0xb78] sm:$0xf0] }
 0x2f0   : > { %5666 = vmatpush.bf16.msrb.mxu1 %v6630_v0  ;;  %v10479_v1 = vpop.f32.mrf.mxu1  ;;  %v7062_v0 = vor.u32 %v8296_v62, %v7059_v63  ;;  %v7318_v54 = vor.u32 %v8360_v4, %v7315_v8  ;;  %v7171_v10 = vld [vmem:[%s9382_s22 + $0x958] sm:$0xf0]  ;;  %v8356_v19 = vld [vmem:[%s9382_s22 + $0xa4c] sm:$0xf] }
 0x2f1   : > { %5679 = vmatpush.bf16.msrb.mxu2 %v6758_v52  ;;  %v7190_v52 = vor.u32 %v8328_v57, %v7187_v3  ;;  %v7299_v16 = vld [vmem:[%s9382_s22 + $0xa58] sm:$0xf0]  ;;  %v8388_v37 = vld [vmem:[%s9382_s22 + $0xb4c] sm:$0xf] }
 0x2f2   : > { %5692 = vmatpush.bf16.msrb.mxu3 %v6886_v12  ;;  %5654 = vmatmul.bf16.vlgmr.msrb.gmra.mxu0 %v9547_v42  ;;  %v8332_v42 = vld [vmem:[%s9382_s22 + $0x98c] sm:$0xf]  ;;  %v7043_v12 = vld [vmem:[%s9382_s22 + $0x858] sm:$0xf0] }
 0x2f3   : > { %5698 = vmatpush.bf16.msra.mxu0 %v7126_v14  ;;  %5667 = vmatmul.bf16.vlgmr.msrb.gmra.mxu1 %v9551_v45  ;;  %v7078_v45 = vor.u32 %v8300_v21, %v7075_v25  ;;  %v7206_v61 = vor.u32 %v8332_v42, %v7203_v7  ;;  %v8324_v14 = vld [vmem:[%s9382_s22 + $0x94c] sm:$0xf]  ;;  %v7427_v23 = vld [vmem:[%s9382_s22 + $0xb58] sm:$0xf0]  ;;  %v7046_v48 = vor.u32 %v8292_v9, %v7043_v12 }
 0x2f4   : > { %5711 = vmatpush.bf16.msra.mxu1 %v7254_v15  ;;  %5680 = vmatmul.bf16.vlgmr.msrb.gmra.mxu2 %v9543_v39  ;;  %v7222_v39 = vor.u32 %v8336_v44, %v7219_v47  ;;  %v7174_v28 = vor.u32 %v8324_v14, %v7171_v10  ;;  %v8320_v38 = vld [vmem:[%s9382_s22 + $0x92c] sm:$0xf]  ;;  %v7430_v44 = vor.u32 %v8388_v37, %v7427_v23  ;;  %v7283_v50 = vld [vmem:[%s9382_s22 + $0xa38] sm:$0xf0] }
 0x2f5   : > { %5724 = vmatpush.bf16.msra.mxu2 %v7382_v18  ;;  %5693 = vmatmul.bf16.vlgmr.msrb.gmra.mxu3 %v9549_v43  ;;  %v7478_v43 = vor.u32 %v8400_v51, %v7475_v5  ;;  %v7446_v18 = vor.u32 %v8392_v17, %v7443_v6  ;;  %v8352_v47 = vld [vmem:[%s9382_s22 + $0xa2c] sm:$0xf]  ;;  %v7411_v51 = vld [vmem:[%s9382_s22 + $0xb38] sm:$0xf0] }
 0x2f6   : > { %5737 = vmatpush.bf16.msra.mxu3 %v7510_v27  ;;  %v8384_v53 = vld [vmem:[%s9382_s22 + $0xb2c] sm:$0xf]  ;;  %v7286_v21 = vor.u32 %v8352_v47, %v7283_v50  ;;  %v7139_v42 = vld [vmem:[%s9382_s22 + $0x918] sm:$0xf0] }
 0x2f7   : > { %5699 = vmatpush.bf16.msra.mxu0 %v7110_v33  ;;  %v10489_v15 = vpop.f32.mrf.mxu2  ;;  %v5449_v40 = vpop.f32.mrf.mxu0  ;;  %v7302_v33 = vor.u32 %v8356_v19, %v7299_v16  ;;  %v8316_v25 = vld [vmem:[%s9382_s22 + $0x90c] sm:$0xf]  ;;  %v7414_v55 = vor.u32 %v8384_v53, %v7411_v51  ;;  %v7267_v49 = vld [vmem:[%s9382_s22 + $0xa18] sm:$0xf0] }
 0x2f8   : > { %5712 = vmatpush.bf16.msra.mxu1 %v7238_v35  ;;  %v10494_v27 = vpop.f32.mrf.mxu3  ;;  %v8288_v35 = vld [vmem:[%s9382_s22 + $0x82c] sm:$0xf]  ;;  %v5462_v41 = vpop.f32.mrf.mxu1  ;;  %v7395_v22 = vld [vmem:[%s9382_s22 + $0xb18] sm:$0xf0]  ;;  %v7142_v4 = vor.u32 %v8316_v25, %v7139_v42 }
 0x2f9   : > { %5725 = vmatpush.bf16.msra.mxu2 %v7366_v58  ;;  %v7027_v58 = vld [vmem:[%s9382_s22 + $0x838] sm:$0xf0]  ;;  %v8380_v56 = vld [vmem:[%s9382_s22 + $0xb0c] sm:$0xf] }
 0x2fa   : > { %5738 = vmatpush.bf16.msra.mxu3 %v7494_v46  ;;  %v7155_v46 = vld [vmem:[%s9382_s22 + $0x938] sm:$0xf0]  ;;  %v7030_v5 = vor.u32 %v8288_v35, %v7027_v58  ;;  %v8472_v62 = vld [vmem:[%s9382_s22 + $0xdec] sm:$0xf] }
 0x2fb   : > { %5700 = vmatpush.bf16.msra.mxu0 %v7094_v11  ;;  %v8284_v11 = vld [vmem:[%s9382_s22 + $0x80c] sm:$0xf]  ;;  %v7763_v57 = vld [vmem:[%s9382_s22 + $0xdf8] sm:$0xf0] }
 0x2fc   : > { %5713 = vmatpush.bf16.msra.mxu1 %v7222_v39  ;;  %v7011_v39 = vld [vmem:[%s9382_s22 + $0x818] sm:$0xf0]  ;;  %v8536_v17 = vld [vmem:[%s9382_s22 + $0xfec] sm:$0xf] }
 0x2fd   : > { %5726 = vmatpush.bf16.msra.mxu2 %v7350_v59  ;;  %v7158_v59 = vor.u32 %v8320_v38, %v7155_v46  ;;  %v7014_v63 = vor.u32 %v8284_v11, %v7011_v39  ;;  %v7891_v3 = vld [vmem:[%s9382_s22 + $0xef8] sm:$0xf0]  ;;  %v8436_v12 = vld [vmem:[%s9382_s22 + $0xccc] sm:$0xf] }
 0x2fe   : > { %5739 = vmatpush.bf16.msra.mxu3 %v7478_v43  ;;  %v8348_v43 = vld [vmem:[%s9382_s22 + $0xa0c] sm:$0xf]  ;;  %v8019_v6 = vld [vmem:[%s9382_s22 + $0xff8] sm:$0xf0] }
 0x2ff   : > { %5701 = vmatpush.bf16.msra.mxu0 %v7078_v45  ;;  %v5475_v7 = vpop.f32.mrf.mxu2  ;;  %v7270_v8 = vor.u32 %v8348_v43, %v7267_v49  ;;  %v7619_v14 = vld [vmem:[%s9382_s22 + $0xcd8] sm:$0xf0]  ;;  %v8022_v10 = vor.u32 %v8536_v17, %v8019_v6  ;;  %v8500_v16 = vld [vmem:[%s9382_s22 + $0xecc] sm:$0xf] }
 0x300   : > { %5714 = vmatpush.bf16.msra.mxu1 %v7206_v61  ;;  %v5488_v45 = vpop.f32.mrf.mxu3  ;;  %v8440_v61 = vld [vmem:[%s9382_s22 + $0xcec] sm:$0xf]  ;;  %v7747_v19 = vld [vmem:[%s9382_s22 + $0xdd8] sm:$0xf0]  ;;  %v7622_v40 = vor.u32 %v8436_v12, %v7619_v14 }
 0x301   : > { %5727 = vmatpush.bf16.msra.mxu2 %v7334_v20  ;;  %v7635_v20 = vld [vmem:[%s9382_s22 + $0xcf8] sm:$0xf0]  ;;  %v8532_v23 = vld [vmem:[%s9382_s22 + $0xfcc] sm:$0xf] }
 0x302   : > { %5740 = vmatpush.bf16.msra.mxu3 %v7462_v2  ;;  %v8504_v2 = vld [vmem:[%s9382_s22 + $0xeec] sm:$0xf]  ;;  %v7875_v37 = vld [vmem:[%s9382_s22 + $0xed8] sm:$0xf0] }
 0x303   : > { %5702 = vmatpush.bf16.msra.mxu0 %v7062_v0  ;;  %v7398_v0 = vor.u32 %v8380_v56, %v7395_v22  ;;  %v7894_v9 = vor.u32 %v8504_v2, %v7891_v3  ;;  %v8432_v35 = vld [vmem:[%s9382_s22 + $0xcac] sm:$0xf]  ;;  %v7603_v58 = vld [vmem:[%s9382_s22 + $0xcb8] sm:$0xf0] }
 0x304   : > { %5715 = vmatpush.bf16.msra.mxu1 %v7190_v52  ;;  %v7638_v52 = vor.u32 %v8440_v61, %v7635_v20  ;;  %v8464_v38 = vld [vmem:[%s9382_s22 + $0xdac] sm:$0xf]  ;;  %v7859_v47 = vld [vmem:[%s9382_s22 + $0xeb8] sm:$0xf0] }
 0x305   : > { %5728 = vmatpush.bf16.msra.mxu2 %v7318_v54  ;;  %v7766_v54 = vor.u32 %v8472_v62, %v7763_v57  ;;  %v8496_v46 = vld [vmem:[%s9382_s22 + $0xeac] sm:$0xf]  ;;  %v7987_v53 = vld [vmem:[%s9382_s22 + $0xfb8] sm:$0xf0] }
 0x306   : > { %5741 = vmatpush.bf16.msra.mxu3 %v7446_v18  ;;  %v8468_v18 = vld [vmem:[%s9382_s22 + $0xdcc] sm:$0xf]  ;;  %v7587_v39 = vld [vmem:[%s9382_s22 + $0xc98] sm:$0xf0] }
 0x307   : > { %5703 = vmatpush.bf16.msra.mxu0 %v7046_v48  ;;  %v8003_v48 = vld [vmem:[%s9382_s22 + $0xfd8] sm:$0xf0]  ;;  %v8528_v50 = vld [vmem:[%s9382_s22 + $0xfac] sm:$0xf] }
 0x308   : > { %5716 = vmatpush.bf16.msra.mxu1 %v7174_v28  ;;  %v7750_v28 = vor.u32 %v8468_v18, %v7747_v19  ;;  %v8006_v41 = vor.u32 %v8532_v23, %v8003_v48  ;;  %v8428_v11 = vld [vmem:[%s9382_s22 + $0xc8c] sm:$0xf]  ;;  %v7843_v25 = vld [vmem:[%s9382_s22 + $0xe98] sm:$0xf0] }
 0x309   : > { %5729 = vmatpush.bf16.msra.mxu2 %v7302_v33  ;;  %v7878_v33 = vor.u32 %v8500_v16, %v7875_v37  ;;  %v8524_v42 = vld [vmem:[%s9382_s22 + $0xf8c] sm:$0xf]  ;;  %v7971_v43 = vld [vmem:[%s9382_s22 + $0xf98] sm:$0xf0]  ;;  %v7590_v7 = vor.u32 %v8428_v11, %v7587_v39 }
 0x30a   : > { %5742 = vmatpush.bf16.msra.mxu3 %v7430_v44  ;;  %v7731_v44 = vld [vmem:[%s9382_s22 + $0xdb8] sm:$0xf0]  ;;  %v8424_v22 = vld [vmem:[%s9382_s22 + $0xc6c] sm:$0xf]  ;;  %v7974_v20 = vor.u32 %v8524_v42, %v7971_v43 }
 0x30b   : > { %5704 = vmatpush.bf16.msra.mxu0 %v7030_v5  ;;  %v7734_v51 = vor.u32 %v8464_v38, %v7731_v44  ;;  %v7862_v5 = vor.u32 %v8496_v46, %v7859_v47  ;;  %v7571_v45 = vld [vmem:[%s9382_s22 + $0xc78] sm:$0xf0]  ;;  %v8456_v61 = vld [vmem:[%s9382_s22 + $0xd6c] sm:$0xf] }
 0x30c   : > { %5717 = vmatpush.bf16.msra.mxu1 %v7158_v59  ;;  %v7715_v59 = vld [vmem:[%s9382_s22 + $0xd98] sm:$0xf0]  ;;  %v8520_v2 = vld [vmem:[%s9382_s22 + $0xf6c] sm:$0xf] }
 0x30d   : > { %5730 = vmatpush.bf16.msra.mxu2 %v7286_v21  ;;  %v8492_v21 = vld [vmem:[%s9382_s22 + $0xe8c] sm:$0xf]  ;;  %v7699_v62 = vld [vmem:[%s9382_s22 + $0xd78] sm:$0xf0] }
 0x30e   : > { %5743 = vmatpush.bf16.msra.mxu3 %v7414_v55  ;;  %v7846_v56 = vor.u32 %v8492_v21, %v7843_v25  ;;  %v7827_v57 = vld [vmem:[%s9382_s22 + $0xe78] sm:$0xf0]  ;;  %v7702_v17 = vor.u32 %v8456_v61, %v7699_v62  ;;  %v8484_v18 = vld [vmem:[%s9382_s22 + $0xe4c] sm:$0xf] }
 0x30f   : > { %5705 = vmatpush.bf16.msra.mxu0 %v7014_v63  ;;  %v8488_v63 = vld [vmem:[%s9382_s22 + $0xe6c] sm:$0xf]  ;;  %v7955_v3 = vld [vmem:[%s9382_s22 + $0xf78] sm:$0xf0] }
 0x310   : > { %5718 = vmatpush.bf16.msra.mxu1 %v7142_v4  ;;  %v10552_v55 = vpop.f32.mrf.mxu1  ;;  %v7574_v4 = vor.u32 %v8424_v22, %v7571_v45  ;;  %v7830_v6 = vor.u32 %v8488_v63, %v7827_v57  ;;  %v7683_v14 = vld [vmem:[%s9382_s22 + $0xd58] sm:$0xf0]  ;;  %v8480_v44 = vld [vmem:[%s9382_s22 + $0xe2c] sm:$0xf] }
 0x311   : > { %5731 = vmatpush.bf16.msra.mxu2 %v7270_v8  ;;  %v5448_v8 = vadd.f32 %v10474_v60, %v10420_v13  ;;  %v8516_v13 = vld [vmem:[%s9382_s22 + $0xf4c] sm:$0xf]  ;;  %v7939_v60 = vld [vmem:[%s9382_s22 + $0xf58] sm:$0xf0] }
 0x312   : > { %5744 = vmatpush.bf16.msra.mxu3 %v7398_v0  ;;  %5706 = vmatmul.bf16.vlgmr.msra.gmra.mxu0 %v9618_v26  ;;  %v7606_v26 = vor.u32 %v8432_v35, %v7603_v58  ;;  %v8420_v0 = vld [vmem:[%s9382_s22 + $0xc4c] sm:$0xf]  ;;  %v7539_v35 = vld [vmem:[%s9382_s22 + $0xc38] sm:$0xf0]  ;;  %v7942_v38 = vor.u32 %v8516_v13, %v7939_v60 }
 0x313   : > { %5750 = vmatpush.bf16.msrb.mxu0 %v7638_v52  ;;  %5719 = vmatmul.bf16.vlgmr.msra.gmra.mxu1 %v9625_v31  ;;  %v7990_v31 = vor.u32 %v8528_v50, %v7987_v53  ;;  %v7555_v52 = vld [vmem:[%s9382_s22 + $0xc58] sm:$0xf0]  ;;  %v5461_v48 = vadd.f32 %v10479_v1, %v5448_v8  ;;  %v8448_v58 = vld [vmem:[%s9382_s22 + $0xd2c] sm:$0xf] }
 0x314   : > { %5763 = vmatpush.bf16.msrb.mxu1 %v7766_v54  ;;  %5732 = vmatmul.bf16.vlgmr.msra.gmra.mxu2 %v9623_v30  ;;  %v8460_v30 = vld [vmem:[%s9382_s22 + $0xd8c] sm:$0xf]  ;;  %v7558_v37 = vor.u32 %v8420_v0, %v7555_v52  ;;  %v7795_v46 = vld [vmem:[%s9382_s22 + $0xe38] sm:$0xf0] }
 0x315   : > { %5776 = vmatpush.bf16.msrb.mxu2 %v7894_v9  ;;  %5745 = vmatmul.bf16.vlgmr.msra.gmra.mxu3 %v9629_v34  ;;  %v10548_v34 = vpop.f32.mrf.mxu0  ;;  %v7718_v49 = vor.u32 %v8460_v30, %v7715_v59  ;;  %v8452_v54 = vld [vmem:[%s9382_s22 + $0xd4c] sm:$0xf]  ;;  %v7958_v9 = vor.u32 %v8520_v2, %v7955_v3  ;;  %v7923_v1 = vld [vmem:[%s9382_s22 + $0xf38] sm:$0xf0]  ;;  %v5474_v53 = vadd.f32 %v10489_v15, %v5461_v48 }
 0x316   : > { %5789 = vmatpush.bf16.msrb.mxu3 %v8022_v10  ;;  %v7811_v10 = vld [vmem:[%s9382_s22 + $0xe58] sm:$0xf0]  ;;  %v8512_v47 = vld [vmem:[%s9382_s22 + $0xf2c] sm:$0xf] }
 0x317   : > { %5751 = vmatpush.bf16.msrb.mxu0 %v7622_v40  ;;  %v10567_v12 = vpop.f32.mrf.mxu2  ;;  %v7686_v40 = vor.u32 %v8452_v54, %v7683_v14  ;;  %v7523_v11 = vld [vmem:[%s9382_s22 + $0xc18] sm:$0xf0]  ;;  %v8444_v39 = vld [vmem:[%s9382_s22 + $0xd0c] sm:$0xf]  ;;  %v7926_v30 = vor.u32 %v8512_v47, %v7923_v1  ;;  %v5487_v15 = vadd.f32 %v10494_v27, %v5474_v53 }
 0x318   : > { %5764 = vmatpush.bf16.msrb.mxu1 %v7750_v28  ;;  %v5538_v19 = vpop.f32.mrf.mxu3  ;;  %v5514_v23 = vpop.f32.mrf.mxu1  ;;  %v7814_v28 = vor.u32 %v8484_v18, %v7811_v10  ;;  %v8476_v59 = vld [vmem:[%s9382_s22 + $0xe0c] sm:$0xf]  ;;  %v7779_v21 = vld [vmem:[%s9382_s22 + $0xe18] sm:$0xf0] }
 0x319   : > { %5777 = vmatpush.bf16.msrb.mxu2 %v7878_v33  ;;  %v8416_v33 = vld [vmem:[%s9382_s22 + $0xc2c] sm:$0xf]  ;;  %v7907_v43 = vld [vmem:[%s9382_s22 + $0xf18] sm:$0xf0]  ;;  %v7782_v22 = vor.u32 %v8476_v59, %v7779_v21  ;;  %v5500_v61 = vadd.f32 %v10548_v34, %v5487_v15 }
 0x31a   : > { %5790 = vmatpush.bf16.msrb.mxu3 %v8006_v41  ;;  %v7667_v41 = vld [vmem:[%s9382_s22 + $0xd38] sm:$0xf0]  ;;  %v7542_v50 = vor.u32 %v8416_v33, %v7539_v35  ;;  %v8508_v42 = vld [vmem:[%s9382_s22 + $0xf0c] sm:$0xf] }
 0x31b   : > { %5752 = vmatpush.bf16.msrb.mxu0 %v7606_v26  ;;  %v7670_v26 = vor.u32 %v8448_v58, %v7667_v41  ;;  %v7910_v45 = vor.u32 %v8508_v42, %v7907_v43 }
 0x31c   : > { %5765 = vmatpush.bf16.msrb.mxu1 %v7734_v51  ;;  %v7798_v51 = vor.u32 %v8480_v44, %v7795_v46 }
 0x31d   : > { %5778 = vmatpush.bf16.msrb.mxu2 %v7862_v5  ;;  %v5501_v16 = vpop.f32.mrf.mxu0  ;;  %v8412_v5 = vld [vmem:[%s9382_s22 + $0xc0c] sm:$0xf] }
 0x31e   : > { %5791 = vmatpush.bf16.msrb.mxu3 %v7990_v31  ;;  %v7651_v31 = vld [vmem:[%s9382_s22 + $0xd18] sm:$0xf0] }
 0x31f   : > { %5753 = vmatpush.bf16.msrb.mxu0 %v7590_v7  ;;  %v5527_v25 = vpop.f32.mrf.mxu2 }
 0x320   : > { %5766 = vmatpush.bf16.msrb.mxu1 %v7718_v49  ;;  %v5540_v7 = vpop.f32.mrf.mxu3  ;;  %v7526_v49 = vor.u32 %v8412_v5, %v7523_v11 }
 0x321   : > { %5779 = vmatpush.bf16.msrb.mxu2 %v7846_v56  ;;  %v7654_v56 = vor.u32 %v8444_v39, %v7651_v31 }
 0x322   : > { %5792 = vmatpush.bf16.msrb.mxu3 %v7974_v20  ;;  %v5513_v20 = vadd.f32 %v10552_v55, %v5500_v61  ;;  %v1832_v55 = vld [vmem:[#allocation2 + $0x18] sm:$0xff] }
 0x323   : > { %5754 = vmatpush.bf16.msrb.mxu0 %v7574_v4 }
 0x324   : > { %5767 = vmatpush.bf16.msrb.mxu1 %v7702_v17  ;;  %v5526_v27 = vadd.f32 %v10567_v12, %v5513_v20 }
 0x325   : > { %5780 = vmatpush.bf16.msrb.mxu2 %v7830_v6 }
 0x326   : > { %5793 = vmatpush.bf16.msrb.mxu3 %v7958_v9  ;;  %v5539_v62 = vadd.f32 %v5538_v19, %v5526_v27 }
 0x327   : > { %5755 = vmatpush.bf16.msrb.mxu0 %v7558_v37 }
 0x328   : > { %5768 = vmatpush.bf16.msrb.mxu1 %v7686_v40 }
 0x329   : > { %5781 = vmatpush.bf16.msrb.mxu2 %v7814_v28 }
 0x32a   : > { %5794 = vmatpush.bf16.msrb.mxu3 %v7942_v38 }
 0x32b   : > { %5756 = vmatpush.bf16.msrb.mxu0 %v7542_v50 }
 0x32c   : > { %5769 = vmatpush.bf16.msrb.mxu1 %v7670_v26 }
 0x32d   : > { %5782 = vmatpush.bf16.msrb.mxu2 %v7798_v51 }
 0x32e   : > { %5795 = vmatpush.bf16.msrb.mxu3 %v7926_v30 }
 0x32f   : > { %5757 = vmatpush.bf16.msrb.mxu0 %v7526_v49  ;;  %v5551_v63 = vpop.f32.mrf.mxu0 }
 0x330   : > { %5770 = vmatpush.bf16.msrb.mxu1 %v7654_v56  ;;  %v5564_v57 = vpop.f32.mrf.mxu1  ;;  %v5552_v34 = vadd.f32 %v5551_v63, %v5539_v62  ;;  %v1833_v56 = vld [vmem:[#allocation2 + $0x8] sm:$0xff] }
 0x331   : > { %5783 = vmatpush.bf16.msrb.mxu2 %v7782_v22 }
 0x332   : > { %5796 = vmatpush.bf16.msrb.mxu3 %v7910_v45  ;;  %5758 = vmatmul.bf16.vlgmr.msrb.gmra.mxu0 %v9696_v24  ;;  %v5565_v2 = vadd.f32 %v5564_v57, %v5552_v34 }
 0x333   : > { %5771 = vmatmul.bf16.vlgmr.msrb.gmra.mxu1 %v9703_v32 }
 0x334   : > { %5784 = vmatmul.bf16.vlgmr.msrb.gmra.mxu2 %v9701_v29 }
 0x335   : > { %5797 = vmatmul.bf16.vlgmr.msrb.gmra.mxu3 %v9707_v36 }
 0x337   : > { %v5577_v3 = vpop.f32.mrf.mxu2  ;;  %v5553_v17 = vpop.f32.mrf.mxu0 }
 0x338   : > { %v5578_v4 = vadd.f32 %v5577_v3, %v5565_v2  ;;  %v5590_v8 = vpop.f32.mrf.mxu3  ;;  %v5566_v6 = vpop.f32.mrf.mxu1 }
 0x33a   : > { %v5591_v24 = vadd.f32 %v5590_v8, %v5578_v4 }
 0x33c   : > { %v5804_v0 = vadd.f32 %v5591_v24, %v1832_v55 }
 0x33e   : > { %5808 = vst [vmem:[#allocation2 + $0x18] sm:$0xff] %v5804_v0 }
 0x33f   : > { %v5579_v32 = vpop.f32.mrf.mxu2 }
 0x340   : > { %v5592_v29 = vpop.f32.mrf.mxu3 }
 0x34f   : > { %v5603_v52 = vpop.f32.mrf.mxu0 }
 0x350   : > { %v5616_v54 = vpop.f32.mrf.mxu1 }
 0x351   : > { %v5617_v9 = vadd.f32 %v5616_v54, %v5603_v52 }
 0x357   : > { %v5629_v36 = vpop.f32.mrf.mxu2  ;;  %v5605_v10 = vpop.f32.mrf.mxu0 }
 0x358   : > { %v5630_v12 = vadd.f32 %v5629_v36, %v5617_v9  ;;  %v5642_v14 = vpop.f32.mrf.mxu3  ;;  %v5618_v19 = vpop.f32.mrf.mxu1 }
 0x35a   : > { %v5643_v18 = vadd.f32 %v5642_v14, %v5630_v12 }
 0x35f   : > { %v5631_v13 = vpop.f32.mrf.mxu2 }
 0x360   : > { %v5644_v60 = vpop.f32.mrf.mxu3 }
 0x36f   : > { %v5655_v16 = vpop.f32.mrf.mxu0 }
 0x370   : > { %v5668_v37 = vpop.f32.mrf.mxu1  ;;  %v5656_v41 = vadd.f32 %v5655_v16, %v5643_v18 }
 0x372   : > { %v5669_v1 = vadd.f32 %v5668_v37, %v5656_v41 }
 0x377   : > { %v5681_v23 = vpop.f32.mrf.mxu2  ;;  %v5657_v40 = vpop.f32.mrf.mxu0 }
 0x378   : > { %v5694_v48 = vpop.f32.mrf.mxu3  ;;  %v5670_v28 = vpop.f32.mrf.mxu1  ;;  %v5682_v53 = vadd.f32 %v5681_v23, %v5669_v1 }
 0x37a   : > { %v5695_v5 = vadd.f32 %v5694_v48, %v5682_v53 }
 0x37f   : > { %v5683_v33 = vpop.f32.mrf.mxu2 }
 0x380   : > { %v5696_v35 = vpop.f32.mrf.mxu3 }
 0x38f   : > { %v5707_v58 = vpop.f32.mrf.mxu0 }
 0x390   : > { %v5720_v38 = vpop.f32.mrf.mxu1  ;;  %v5708_v11 = vadd.f32 %v5707_v58, %v5695_v5 }
 0x392   : > { %v5721_v39 = vadd.f32 %v5720_v38, %v5708_v11 }
 0x397   : > { %v5733_v44 = vpop.f32.mrf.mxu2  ;;  %v5709_v47 = vpop.f32.mrf.mxu0 }
 0x398   : > { %v5746_v46 = vpop.f32.mrf.mxu3  ;;  %v5722_v50 = vpop.f32.mrf.mxu1  ;;  %v5734_v30 = vadd.f32 %v5733_v44, %v5721_v39 }
 0x39a   : > { %v5747_v31 = vadd.f32 %v5746_v46, %v5734_v30 }
 0x39f   : > { %v5735_v26 = vpop.f32.mrf.mxu2 }
 0x3a0   : > { %v5748_v51 = vpop.f32.mrf.mxu3 }
 0x3af   : > { %v5759_v59 = vpop.f32.mrf.mxu0 }
 0x3b0   : > { %v5772_v21 = vpop.f32.mrf.mxu1  ;;  %v5760_v25 = vadd.f32 %v5759_v59, %v5747_v31 }
 0x3b2   : > { %v5773_v42 = vadd.f32 %v5772_v21, %v5760_v25 }
 0x3b7   : > { %v5785_v43 = vpop.f32.mrf.mxu2  ;;  %v5761_v15 = vpop.f32.mrf.mxu0 }
 0x3b8   : > { %v5786_v7 = vadd.f32 %v5785_v43, %v5773_v42  ;;  %v5798_v49 = vpop.f32.mrf.mxu3  ;;  %v5774_v22 = vpop.f32.mrf.mxu1 }
 0x3ba   : > { %v5799_v45 = vadd.f32 %v5798_v49, %v5786_v7 }
 0x3bc   : > { %v5805_v61 = vadd.f32 %v5799_v45, %v1833_v56  ;;  %5813 = sbr.rel (%p8023_p1) target bundleno = 973 (0x3cd), region = 77 }
 0x3be   : > { %5809 = vst [vmem:[#allocation2 + $0x8] sm:$0xff] %v5805_v61 }
 0x3bf   : > { %v5787_v20 = vpop.f32.mrf.mxu2 }
 0x3c0   : > { %v5800_v27 = vpop.f32.mrf.mxu3 }
 0x3c1   : > { %v5814_v62 = vld [vmem:[#allocation2 + $0x10] sm:$0xff]  ;;  %v5815_v63 = vld [vmem:[#allocation2] sm:$0xff]  ;;  %v5816_v3 = vld [vmem:[#allocation2 + $0x18] sm:$0xff] }
 0x3c2   : > { %v5818_v57 = vld [vmem:[%s1814_s12] sm:$0xf] }
 0x3c3   : > { %v5820_v34 = vperm.slane %v5818_v57, 0  ;;  %v5821_v2 = vperm.slane %v5818_v57, 1  ;;  %v5822_v8 = vperm.slane %v5818_v57, 2  ;;  %v5823_v17 = vperm.slane %v5818_v57, 3 }
 0x3c5   : > { %v5817_v4 = vld [vmem:[#allocation2 + $0x8] sm:$0xff]  ;;  %v5828_v55 = vadd.f32 %v5820_v34, %v5814_v62  ;;  %v5829_v6 = vadd.f32 %v5821_v2, %v5815_v63  ;;  %v5830_v24 = vadd.f32 %v5822_v8, %v5816_v3 }
 0x3c6   : > { %v5831_v0 = vadd.f32 %v5823_v17, %v5817_v4 }
 0x3c7   : > { %v5832_v32 = vmax.f32 %v5828_v55, 0.0  ;;  %v5833_v29 = vmax.f32 %v5829_v6, 0.0  ;;  %v5834_v52 = vmax.f32 %v5830_v24, 0.0 }
 0x3c8   : > { %v5835_v54 = vmax.f32 %v5831_v0, 0.0 }
 0x3c9   : > { %v5836_v9 = vpack.c.bf16 %v5833_v29, %v5832_v32 }
 0x3ca   : > { %v5837_v36 = vpack.c.bf16 %v5835_v54, %v5834_v52 }
 0x3cb   : > { %5838 = vst [vmem:[%s9380_s15] sm:$0xff] %v5836_v9 }
 0x3cc   : > { %5839 = vst [vmem:[%s9380_s15 + $0x8] sm:$0xff] %v5837_v36 }
 0x3cd PF: > { %s13_s18 = sadd.s32 1, %s8698_s18   ;;  %s10638_s12 = smov %s8678_s13 }
 0x3ce   : > { %p10_p2 = scmp.ge.s32.totalorder %s13_s18, 10   ;;  %s10639_s13 = smov %s8788_s25 }
 0x3cf   : > { %s10640_s14 = smov %s8690_s16  ;;  %s10641_s15 = smov %s8694_s17 }
 0x3d0   : > { %s10642_s16 = smov %s10645_s19  ;;  %s10643_s17 = smov %s10649_s20 }
 0x3d1   :  { %12 = sbr.rel (!%p10_p2) target bundleno = 4 (0x4), region = 131 }

</bundles_post_ra>
